<compile_context>
chip_gen: v7x
topology: tpu7x:2x2x1
jax: 0.10.0
libtpu: 0.0.40
codegen_flags: <defaults>
</compile_context>

<pallas_src>
import functools

import jax
import jax.numpy as jnp
from jax.experimental import pallas as pl
from jax.experimental.pallas import tpu as pltpu

LANE = 128
_VMEM = pl.BlockSpec(memory_space=pltpu.MemorySpace.VMEM)
_SMEM = pl.BlockSpec(memory_space=pltpu.MemorySpace.SMEM)


def _round_up(x, m):
    return (x + m - 1) // m * m


# ============================================================================ kernel 1/2
# im2col matmul (bf16 -> f32 acc) -> train-mode BatchNorm -> LeakyReLU(0.2) -> bf16.
def _conv_bn_lrelu_kernel(m_real, eps):
    inv = 1.0 / float(m_real)

    def kernel(a_ref, w_ref, g_ref, b_ref, o_ref):
        y = jnp.dot(a_ref[...], w_ref[...], preferred_element_type=jnp.float32)
        mp = y.shape[0]
        rmask = (jax.lax.broadcasted_iota(jnp.int32, (mp, 1), 0) < m_real
                 ).astype(jnp.float32)
        # BatchNorm2d (training): stats over the B*H*W real rows; padded rows are zero
        # so sums are exact; two-pass variance (numerically safe), biased (divide by N).
        mean = jnp.sum(y, axis=0, keepdims=True) * inv
        cen = (y - mean) * rmask
        var = jnp.sum(cen * cen, axis=0, keepdims=True) * inv
        yn = cen * (g_ref[...] * jax.lax.rsqrt(var + eps)) + b_ref[...]
        yn = jnp.maximum(yn, 0.2 * yn)                       # LeakyReLU(0.2)
        o_ref[...] = (yn * rmask).astype(o_ref.dtype)        # keep padded rows zero

    return kernel


def conv_bn_lrelu(A, pack, m_real, eps=1e-5):
    """A: (M_pad, K_pad) bf16 patches.  Returns (M_pad, 128) bf16, lane-dense."""
    return pl.pallas_call(
        _conv_bn_lrelu_kernel(m_real, eps),
        out_shape=jax.ShapeDtypeStruct((A.shape[0], pack["w"].shape[1]), jnp.bfloat16),
        in_specs=[_VMEM] * 4,
        out_specs=_VMEM,
    )(A, pack["w"], pack["gamma"], pack["beta"])


# ============================================================================ kernel 3
# conv3 + ResBlock(128) + residual LeakyReLU + sigmoid head, fused, on the
# position-flattened layout: rows = batch, lanes = 4 position blocks x 128 channels.
def _tail_kernel(b_real, eps):
    inv = 1.0 / float(b_real * 4)                            # BN count = B * 2 * 2

    def kernel(a_ref, wc3_ref, gc3_ref, bc3_ref,
               wr1_ref, gr1_ref, br1_ref,
               wr2_ref, gr2_ref, br2_ref,
               wr3_ref, gr3_ref, br3_ref,
               wh_ref, bh_ref, o_ref):
        mp = o_ref.shape[0]
        kc3 = wc3_ref.shape[0]                               # 16 * 128 = 2048
        rmask = (jax.lax.broadcasted_iota(jnp.int32, (mp, 1), 0) < b_real
                 ).astype(jnp.float32)

        def fold4(v):                                        # (1, 512) -> (1, 128)
            return v[:, 0:128] + v[:, 128:256] + v[:, 256:384] + v[:, 384:512]

        def tile4(v):                                        # (1, 128) -> (1, 512)
            return jnp.concatenate([v, v, v, v], axis=1)

        def bn(y, g, b):
            # per-channel stats folded over the 4 position blocks and real rows;
            # two-pass variance; padded rows/lanes contribute zero to the sums.
            mean = tile4(fold4(jnp.sum(y, axis=0, keepdims=True)) * inv)
            cen = (y - mean) * rmask
            var = tile4(fold4(jnp.sum(cen * cen, axis=0, keepdims=True)) * inv)
            return cen * (g * jax.lax.rsqrt(var + eps)) + b

        # ---- conv3: Conv(64->128, 4,2,1) -> BN -> LeakyReLU, one matmul per output
        #      position on the flattened patch layout ----------------------------------
        wc3 = wc3_ref[...]
        y = jnp.concatenate(
            [jnp.dot(a_ref[:, p * kc3:(p + 1) * kc3], wc3,
                     preferred_element_type=jnp.float32) for p in range(4)],
            axis=1)                                          # (mp, 512) f32
        y = bn(y, gc3_ref[...], bc3_ref[...])
        x = jnp.maximum(y, 0.2 * y) * rmask                  # LeakyReLU(0.2)

        # ---- ResBlock(128): 1x1->BN->ReLU, 3x3->BN->ReLU, 3x3->BN -------------------
        # (3x3 convs on the 2x2 map are exact position-mixing matmuls, packed at init)
        h = jnp.dot(x.astype(jnp.bfloat16), wr1_ref[...],
                    preferred_element_type=jnp.float32)
        h = jnp.maximum(bn(h, gr1_ref[...], br1_ref[...]), 0.0) * rmask
        h = jnp.dot(h.astype(jnp.bfloat16), wr2_ref[...],
                    preferred_element_type=jnp.float32)
        h = jnp.maximum(bn(h, gr2_ref[...], br2_ref[...]), 0.0) * rmask
        h = jnp.dot(h.astype(jnp.bfloat16), wr3_ref[...],
                    preferred_element_type=jnp.float32)
        h = bn(h, gr3_ref[...], br3_ref[...])

        z = x + h                                            # residual add (f32)
        z = jnp.maximum(z, 0.2 * z)                          # LeakyReLU(x + residual)

        # ---- head: Conv(128->1, k=2, bias) + Sigmoid == VPU mul + lane reduce + EUP --
        s = jnp.sum(z * wh_ref[...], axis=1, keepdims=True) + bh_ref[0]
        o_ref[...] = jnp.broadcast_to(jax.nn.sigmoid(s), o_ref.shape)

    return kernel


def tail_block(A_flat, p, b_real, eps=1e-5):
    args = (A_flat, p["wc3"], p["gc3"], p["bc3"],
            p["wr1"], p["gr1"], p["br1"],
            p["wr2"], p["gr2"], p["br2"],
            p["wr3"], p["gr3"], p["br3"],
            p["wh"], p["bh"])
    return pl.pallas_call(
        _tail_kernel(b_real, eps),
        out_shape=jax.ShapeDtypeStruct((A_flat.shape[0], LANE), jnp.float32),
        in_specs=[_VMEM] * (len(args) - 1) + [_SMEM],        # head bias: SMEM scalar
        out_specs=_VMEM,
    )(*args)


# ============================================================================ JAX glue
def _im2col(x_nhwc, k, stride, pad):
    """Strided conv patches, column order (kh, kw, c).  Fused by XLA under jit."""
    B, H, W, C = x_nhwc.shape
    Ho = (H + 2 * pad - k) // stride + 1
    Wo = (W + 2 * pad - k) // stride + 1
    xp = jnp.pad(x_nhwc, ((0, 0), (pad, pad), (pad, pad), (0, 0)))
    cols = []
    for kh in range(k):
        for kw in range(k):
            cols.append(xp[:, kh:kh + stride * Ho:stride, kw:kw + stride * Wo:stride, :])
    patches = jnp.concatenate(cols, axis=-1).reshape(B * Ho * Wo, k * k * C)
    return patches, (Ho, Wo)


# ============================================================================ parameters
def init_params(key, img_channel, condition_dim, img_size, ref_dim=32):
    c_in = img_channel + condition_dim
    ks = jax.random.split(key, 16)

    def rnd(k, shape):
        return 0.05 * jax.random.normal(k, shape, jnp.float32)

    def bn_init(k, n):
        ka, kb = jax.random.split(k)
        return (1.0 + 0.1 * jax.random.normal(ka, (n,), jnp.float32),
                0.1 * jax.random.normal(kb, (n,), jnp.float32))

    def pack_conv(w, cin_pad, k_pad=None, n_pad=LANE):
        # OIHW -> (kh*kw*cin_pad, n_pad) bf16, matching the im2col column order.
        O, I, KH, KW = w.shape
        wm = jnp.transpose(w, (2, 3, 1, 0))                  # (kh, kw, I, O)
        wm = jnp.pad(wm, ((0, 0), (0, 0), (0, cin_pad - I), (0, n_pad - O)))
        wm = wm.reshape(KH * KW * cin_pad, n_pad)
        if k_pad is not None:
            wm = jnp.pad(wm, ((0, k_pad - wm.shape[0]), (0, 0)))
        return wm.astype(jnp.bfloat16)

    def pad_vec(v, n=LANE):
        return jnp.pad(v, (0, n - v.shape[0])).reshape(1, n).astype(jnp.float32)

    def tile4_vec(v):
        vv = pad_vec(v)
        return jnp.concatenate([vv] * 4, axis=1)             # (1, 512)

    params = {}

    # conv1 / conv2 (row-layout im2col kernels)
    w1 = rnd(ks[0], (ref_dim, c_in, 4, 4))
    g1, b1 = bn_init(ks[1], ref_dim)
    params["c1"] = {"w": pack_conv(w1, cin_pad=c_in, k_pad=_round_up(16 * c_in, LANE)),
                    "gamma": pad_vec(g1), "beta": pad_vec(b1)}

    w2 = rnd(ks[2], (ref_dim * 2, ref_dim, 4, 4))
    g2, b2 = bn_init(ks[3], ref_dim * 2)
    params["c2"] = {"w": pack_conv(w2, cin_pad=LANE),        # input is lane-padded to 128
                    "gamma": pad_vec(g2), "beta": pad_vec(b2)}

    # conv3 + ResBlock + head (position-flattened tail kernel)
    w3 = rnd(ks[4], (ref_dim * 4, ref_dim * 2, 4, 4))
    g3, b3 = bn_init(ks[5], ref_dim * 4)
    wr1 = rnd(ks[6], (ref_dim, ref_dim * 4, 1, 1))
    gr1, br1 = bn_init(ks[7], ref_dim)
    wr2 = rnd(ks[8], (ref_dim, ref_dim, 3, 3))
    gr2, br2 = bn_init(ks[9], ref_dim)
    wr3 = rnd(ks[10], (ref_dim * 4, ref_dim, 3, 3))
    gr3, br3 = bn_init(ks[11], ref_dim * 4)

    k_head = img_size[0] // 8                                # == 2 for 16x16 inputs
    wh = rnd(ks[12], (1, ref_dim * 4, k_head, k_head))
    bh = 0.1 * jax.random.normal(ks[13], (1,), jnp.float32)

    # 1x1 conv == block-diagonal position matmul (4 blocks of 128 lanes).
    blk1 = jnp.pad(wr1[:, :, 0, 0].T, ((0, 0), (0, LANE - ref_dim)))   # (128, 128)
    wbig_r1 = jnp.kron(jnp.eye(4, dtype=jnp.float32), blk1)

    # 3x3 conv (pad 1) on a 2x2 map == constant position-pair mixing matrix.
    def mix3x3(w):                                           # (O, I, 3, 3)
        O, I = w.shape[0], w.shape[1]
        big = jnp.zeros((4 * LANE, 4 * LANE), jnp.float32)
        for hi in range(2):
            for wi in range(2):
                for ho in range(2):
                    for wo in range(2):
                        kh, kw = hi - ho + 1, wi - wo + 1
                        blkv = w[:, :, kh, kw].T             # (I, O)
                        p_in, p_out = hi * 2 + wi, ho * 2 + wo
                        big = big.at[p_in * LANE:p_in * LANE + I,
                                     p_out * LANE:p_out * LANE + O].set(blkv)
        return big

    # head weight in the (position, channel) flattened layout.
    wh_flat = jnp.transpose(wh[0], (1, 2, 0)).reshape(1, k_head * k_head * ref_dim * 4)

    params["tail"] = {
        "wc3": pack_conv(w3, cin_pad=LANE),                  # (2048, 128) bf16
        "gc3": tile4_vec(g3), "bc3": tile4_vec(b3),
        "wr1": wbig_r1.astype(jnp.bfloat16),
        "gr1": tile4_vec(gr1), "br1": tile4_vec(br1),
        "wr2": mix3x3(wr2).astype(jnp.bfloat16),
        "gr2": tile4_vec(gr2), "br2": tile4_vec(br2),
        "wr3": mix3x3(wr3).astype(jnp.bfloat16),
        "gr3": tile4_vec(gr3), "br3": tile4_vec(br3),
        "wh": wh_flat.astype(jnp.float32),                   # (1, 512) f32
        "bh": bh.astype(jnp.float32),                        # (1,) f32 (SMEM scalar)
    }
    return params


# ============================================================================ forward
@jax.jit
def discriminator_forward(params, z, c):
    B = z.shape[0]

    # torch.cat([z, c], 1) in NCHW, then channels-last bf16 for the whole network.
    x = jnp.concatenate([z, c], axis=1)
    x = jnp.transpose(x, (0, 2, 3, 1)).astype(jnp.bfloat16)

    # conv1: Conv(cin -> 32, 4, 2, 1) -> BN -> LeakyReLU(0.2)
    A, (Ho, Wo) = _im2col(x, 4, 2, 1)
    M = B * Ho * Wo
    Mp = _round_up(max(M, 16), 16)
    Kp = params["c1"]["w"].shape[0]
    A = jnp.pad(A, ((0, Mp - M), (0, Kp - A.shape[1])))
    y = conv_bn_lrelu(A, params["c1"], M)
    x = y[:M].reshape(B, Ho, Wo, LANE)                       # lane-dense (32 real ch)

    # conv2: Conv(32 -> 64, 4, 2, 1) -> BN -> LeakyReLU(0.2)
    A, (Ho, Wo) = _im2col(x, 4, 2, 1)
    M = B * Ho * Wo
    Mp = _round_up(max(M, 16), 16)
    A = jnp.pad(A, ((0, Mp - M), (0, 0)))
    y = conv_bn_lrelu(A, params["c2"], M)
    x = y[:M].reshape(B, Ho, Wo, LANE)                       # (B, 4, 4, 128)

    # conv3 + ResBlock(128) + sigmoid head, fused into one kernel on the
    # position-flattened (B, 4 * K) layout.
    A, (Ho, Wo) = _im2col(x, 4, 2, 1)                        # (B*4, 2048)
    assert (Ho, Wo) == (2, 2), (Ho, Wo)
    A = A.reshape(B, Ho * Wo * A.shape[1])                   # (B, 8192)
    Mp = _round_up(max(B, 16), 16)
    A = jnp.pad(A, ((0, Mp - B), (0, 0)))
    out = tail_block(A, params["tail"], B)                   # (Mp, 128) f32
    return out[:B, 0]                                        # (B,)


# ============================================================================ main
if __name__ == "__main__":
    # Discriminator(img_size=(16, 16), condition_dim=1, img_channel=1); ref_dim = 32.
    img_size = (16, 16)
    condition_dim, img_channel = 1, 1
    B = 2

    key = jax.random.PRNGKey(0)
    kp, kz, kc = jax.random.split(key, 3)
    params = init_params(kp, img_channel, condition_dim, img_size)

    z = jax.random.normal(kz, (B, img_channel, img_size[0], img_size[1]), jnp.float32)
    c = jax.random.normal(kc, (B, condition_dim, img_size[0], img_size[1]), jnp.float32)

    pred = discriminator_forward(params, z, c)
    pred = jax.block_until_ready(pred)

    assert pred.shape == (B,), pred.shape
    assert bool(jnp.all(jnp.isfinite(pred)))
    assert bool(jnp.all((pred >= 0.0) & (pred <= 1.0)))      # sigmoid range
    print("KERNEL_OK")
</pallas_src>

<mosaic_0001>
module attributes {stable_mosaic.version = 11 : i64} {
  func.func @kernel(%arg0: memref<128x128xbf16, #tpu.memory_space<vmem>>, %arg1: memref<128x128xbf16, #tpu.memory_space<vmem>>, %arg2: memref<1x128xf32, #tpu.memory_space<vmem>>, %arg3: memref<1x128xf32, #tpu.memory_space<vmem>>, %arg4: memref<128x128xbf16, #tpu.memory_space<vmem>>) attributes {dimension_semantics = [], scalar_prefetch = 0 : i64, scratch_operands = 0 : i64, tpu.core_type = #tpu.core_type<tc>} {
    %c0 = arith.constant 0 : index
    %c0_0 = arith.constant 0 : index
    %0 = vector.load %arg0[%c0, %c0_0] : memref<128x128xbf16, #tpu.memory_space<vmem>>, vector<128x128xbf16>
    %c0_1 = arith.constant 0 : index
    %c0_2 = arith.constant 0 : index
    %1 = vector.load %arg1[%c0_1, %c0_2] : memref<128x128xbf16, #tpu.memory_space<vmem>>, vector<128x128xbf16>
    %cst = arith.constant dense<0.000000e+00> : vector<128x128xf32>
    %2 = tpu.matmul %0, %1, %cst {dimension_numbers = #tpu.dot_dimension_numbers<[1], [0], [0], [1], [0, 0, 1, 1], [], []>} : vector<128x128xbf16>, vector<128x128xbf16>, vector<128x128xf32> -> vector<128x128xf32>
    %3 = tpu.iota {dimensions = array<i32: 0>} : vector<128x1xi32>
    %c128_i32 = arith.constant 128 : i32
    %4 = vector.broadcast %c128_i32 : i32 to vector<128x1xi32>
    %5 = arith.cmpi slt, %3, %4 : vector<128x1xi32>
    %6 = arith.extui %5 : vector<128x1xi1> to vector<128x1xi32>
    %7 = arith.sitofp %6 : vector<128x1xi32> to vector<128x1xf32>
    %cst_3 = arith.constant dense<0.000000e+00> : vector<128xf32>
    %8 = vector.multi_reduction <add>, %2, %cst_3 [0] : vector<128x128xf32> to vector<128xf32>
    %9 = vector.shape_cast %8 : vector<128xf32> to vector<1x128xf32>
    %cst_4 = arith.constant 7.812500e-03 : f32
    %10 = vector.broadcast %cst_4 : f32 to vector<1x128xf32>
    %11 = arith.mulf %9, %10 : vector<1x128xf32>
    %12 = vector.broadcast %11 : vector<1x128xf32> to vector<128x128xf32>
    %13 = arith.subf %2, %12 : vector<128x128xf32>
    %14 = vector.broadcast %7 : vector<128x1xf32> to vector<128x128xf32>
    %15 = arith.mulf %13, %14 : vector<128x128xf32>
    %16 = arith.mulf %15, %15 : vector<128x128xf32>
    %cst_5 = arith.constant dense<0.000000e+00> : vector<128xf32>
    %17 = vector.multi_reduction <add>, %16, %cst_5 [0] : vector<128x128xf32> to vector<128xf32>
    %18 = vector.shape_cast %17 : vector<128xf32> to vector<1x128xf32>
    %cst_6 = arith.constant 7.812500e-03 : f32
    %19 = vector.broadcast %cst_6 : f32 to vector<1x128xf32>
    %20 = arith.mulf %18, %19 : vector<1x128xf32>
    %c0_7 = arith.constant 0 : index
    %c0_8 = arith.constant 0 : index
    %21 = vector.load %arg2[%c0_7, %c0_8] : memref<1x128xf32, #tpu.memory_space<vmem>>, vector<1x128xf32>
    %cst_9 = arith.constant 9.99999974E-6 : f32
    %22 = vector.broadcast %cst_9 : f32 to vector<1x128xf32>
    %23 = arith.addf %20, %22 : vector<1x128xf32>
    %24 = math.rsqrt %23 : vector<1x128xf32>
    %25 = arith.mulf %21, %24 : vector<1x128xf32>
    %26 = vector.broadcast %25 : vector<1x128xf32> to vector<128x128xf32>
    %27 = arith.mulf %15, %26 : vector<128x128xf32>
    %c0_10 = arith.constant 0 : index
    %c0_11 = arith.constant 0 : index
    %28 = vector.load %arg3[%c0_10, %c0_11] : memref<1x128xf32, #tpu.memory_space<vmem>>, vector<1x128xf32>
    %29 = vector.broadcast %28 : vector<1x128xf32> to vector<128x128xf32>
    %30 = arith.addf %27, %29 : vector<128x128xf32>
    %cst_12 = arith.constant 2.000000e-01 : f32
    %31 = vector.broadcast %cst_12 : f32 to vector<128x128xf32>
    %32 = arith.mulf %31, %30 : vector<128x128xf32>
    %33 = arith.maximumf %30, %32 : vector<128x128xf32>
    %34 = vector.broadcast %7 : vector<128x1xf32> to vector<128x128xf32>
    %35 = arith.mulf %33, %34 : vector<128x128xf32>
    %36 = arith.truncf %35 : vector<128x128xf32> to vector<128x128xbf16>
    %c0_13 = arith.constant 0 : index
    %c0_14 = arith.constant 0 : index
    %37 = vector.load %arg4[%c0_13, %c0_14] : memref<128x128xbf16, #tpu.memory_space<vmem>>, vector<128x128xbf16>
    tpu.vector_store %arg4[%c0_13, %c0_14], %36 {strides = array<i32>} : memref<128x128xbf16, #tpu.memory_space<vmem>>, vector<128x128xbf16>,
    return
  }
}

module attributes {stable_mosaic.version = 11 : i64} {
  func.func @kernel(%arg0: memref<32x2048xbf16, #tpu.memory_space<vmem>>, %arg1: memref<2048x128xbf16, #tpu.memory_space<vmem>>, %arg2: memref<1x128xf32, #tpu.memory_space<vmem>>, %arg3: memref<1x128xf32, #tpu.memory_space<vmem>>, %arg4: memref<32x128xbf16, #tpu.memory_space<vmem>>) attributes {dimension_semantics = [], scalar_prefetch = 0 : i64, scratch_operands = 0 : i64, tpu.core_type = #tpu.core_type<tc>} {
    %c0 = arith.constant 0 : index
    %c0_0 = arith.constant 0 : index
    %0 = vector.load %arg0[%c0, %c0_0] : memref<32x2048xbf16, #tpu.memory_space<vmem>>, vector<32x2048xbf16>
    %c0_1 = arith.constant 0 : index
    %c0_2 = arith.constant 0 : index
    %1 = vector.load %arg1[%c0_1, %c0_2] : memref<2048x128xbf16, #tpu.memory_space<vmem>>, vector<2048x128xbf16>
    %cst = arith.constant dense<0.000000e+00> : vector<32x128xf32>
    %2 = tpu.matmul %0, %1, %cst {dimension_numbers = #tpu.dot_dimension_numbers<[1], [0], [0], [1], [0, 0, 1, 1], [], []>} : vector<32x2048xbf16>, vector<2048x128xbf16>, vector<32x128xf32> -> vector<32x128xf32>
    %3 = tpu.iota {dimensions = array<i32: 0>} : vector<32x1xi32>
    %c32_i32 = arith.constant 32 : i32
    %4 = vector.broadcast %c32_i32 : i32 to vector<32x1xi32>
    %5 = arith.cmpi slt, %3, %4 : vector<32x1xi32>
    %6 = arith.extui %5 : vector<32x1xi1> to vector<32x1xi32>
    %7 = arith.sitofp %6 : vector<32x1xi32> to vector<32x1xf32>
    %cst_3 = arith.constant dense<0.000000e+00> : vector<128xf32>
    %8 = vector.multi_reduction <add>, %2, %cst_3 [0] : vector<32x128xf32> to vector<128xf32>
    %9 = vector.shape_cast %8 : vector<128xf32> to vector<1x128xf32>
    %cst_4 = arith.constant 3.125000e-02 : f32
    %10 = vector.broadcast %cst_4 : f32 to vector<1x128xf32>
    %11 = arith.mulf %9, %10 : vector<1x128xf32>
    %12 = vector.broadcast %11 : vector<1x128xf32> to vector<32x128xf32>
    %13 = arith.subf %2, %12 : vector<32x128xf32>
    %14 = vector.broadcast %7 : vector<32x1xf32> to vector<32x128xf32>
    %15 = arith.mulf %13, %14 : vector<32x128xf32>
    %16 = arith.mulf %15, %15 : vector<32x128xf32>
    %cst_5 = arith.constant dense<0.000000e+00> : vector<128xf32>
    %17 = vector.multi_reduction <add>, %16, %cst_5 [0] : vector<32x128xf32> to vector<128xf32>
    %18 = vector.shape_cast %17 : vector<128xf32> to vector<1x128xf32>
    %cst_6 = arith.constant 3.125000e-02 : f32
    %19 = vector.broadcast %cst_6 : f32 to vector<1x128xf32>
    %20 = arith.mulf %18, %19 : vector<1x128xf32>
    %c0_7 = arith.constant 0 : index
    %c0_8 = arith.constant 0 : index
    %21 = vector.load %arg2[%c0_7, %c0_8] : memref<1x128xf32, #tpu.memory_space<vmem>>, vector<1x128xf32>
    %cst_9 = arith.constant 9.99999974E-6 : f32
    %22 = vector.broadcast %cst_9 : f32 to vector<1x128xf32>
    %23 = arith.addf %20, %22 : vector<1x128xf32>
    %24 = math.rsqrt %23 : vector<1x128xf32>
    %25 = arith.mulf %21, %24 : vector<1x128xf32>
    %26 = vector.broadcast %25 : vector<1x128xf32> to vector<32x128xf32>
    %27 = arith.mulf %15, %26 : vector<32x128xf32>
    %c0_10 = arith.constant 0 : index
    %c0_11 = arith.constant 0 : index
    %28 = vector.load %arg3[%c0_10, %c0_11] : memref<1x128xf32, #tpu.memory_space<vmem>>, vector<1x128xf32>
    %29 = vector.broadcast %28 : vector<1x128xf32> to vector<32x128xf32>
    %30 = arith.addf %27, %29 : vector<32x128xf32>
    %cst_12 = arith.constant 2.000000e-01 : f32
    %31 = vector.broadcast %cst_12 : f32 to vector<32x128xf32>
    %32 = arith.mulf %31, %30 : vector<32x128xf32>
    %33 = arith.maximumf %30, %32 : vector<32x128xf32>
    %34 = vector.broadcast %7 : vector<32x1xf32> to vector<32x128xf32>
    %35 = arith.mulf %33, %34 : vector<32x128xf32>
    %36 = arith.truncf %35 : vector<32x128xf32> to vector<32x128xbf16>
    %c0_13 = arith.constant 0 : index
    %c0_14 = arith.constant 0 : index
    %37 = vector.load %arg4[%c0_13, %c0_14] : memref<32x128xbf16, #tpu.memory_space<vmem>>, vector<32x128xbf16>
    tpu.vector_store %arg4[%c0_13, %c0_14], %36 {strides = array<i32>} : memref<32x128xbf16, #tpu.memory_space<vmem>>, vector<32x128xbf16>,
    return
  }
}

module attributes {stable_mosaic.version = 11 : i64} {
  func.func @kernel(%arg0: memref<16x8192xbf16, #tpu.memory_space<vmem>>, %arg1: memref<2048x128xbf16, #tpu.memory_space<vmem>>, %arg2: memref<1x512xf32, #tpu.memory_space<vmem>>, %arg3: memref<1x512xf32, #tpu.memory_space<vmem>>, %arg4: memref<512x512xbf16, #tpu.memory_space<vmem>>, %arg5: memref<1x512xf32, #tpu.memory_space<vmem>>, %arg6: memref<1x512xf32, #tpu.memory_space<vmem>>, %arg7: memref<512x512xbf16, #tpu.memory_space<vmem>>, %arg8: memref<1x512xf32, #tpu.memory_space<vmem>>, %arg9: memref<1x512xf32, #tpu.memory_space<vmem>>, %arg10: memref<512x512xbf16, #tpu.memory_space<vmem>>, %arg11: memref<1x512xf32, #tpu.memory_space<vmem>>, %arg12: memref<1x512xf32, #tpu.memory_space<vmem>>, %arg13: memref<1x512xf32, #tpu.memory_space<vmem>>, %arg14: memref<1xf32, #tpu.memory_space<smem>>, %arg15: memref<16x128xf32, #tpu.memory_space<vmem>>) attributes {dimension_semantics = [], scalar_prefetch = 0 : i64, scratch_operands = 0 : i64, tpu.core_type = #tpu.core_type<tc>} {
    %0 = tpu.iota {dimensions = array<i32: 0>} : vector<16x1xi32>
    %c2_i32 = arith.constant 2 : i32
    %1 = vector.broadcast %c2_i32 : i32 to vector<16x1xi32>
    %2 = arith.cmpi slt, %0, %1 : vector<16x1xi32>
    %3 = arith.extui %2 : vector<16x1xi1> to vector<16x1xi32>
    %4 = arith.sitofp %3 : vector<16x1xi32> to vector<16x1xf32>
    %c0 = arith.constant 0 : index
    %c0_0 = arith.constant 0 : index
    %5 = vector.load %arg1[%c0, %c0_0] : memref<2048x128xbf16, #tpu.memory_space<vmem>>, vector<2048x128xbf16>
    %c0_1 = arith.constant 0 : index
    %c0_2 = arith.constant 0 : index
    %6 = vector.load %arg0[%c0_1, %c0_2] : memref<16x8192xbf16, #tpu.memory_space<vmem>>, vector<16x2048xbf16>
    %cst = arith.constant dense<0.000000e+00> : vector<16x128xf32>
    %7 = tpu.matmul %6, %5, %cst {dimension_numbers = #tpu.dot_dimension_numbers<[1], [0], [0], [1], [0, 0, 1, 1], [], []>} : vector<16x2048xbf16>, vector<2048x128xbf16>, vector<16x128xf32> -> vector<16x128xf32>
    %c0_3 = arith.constant 0 : index
    %c2048 = arith.constant 2048 : index
    %8 = vector.load %arg0[%c0_3, %c2048] : memref<16x8192xbf16, #tpu.memory_space<vmem>>, vector<16x2048xbf16>
    %cst_4 = arith.constant dense<0.000000e+00> : vector<16x128xf32>
    %9 = tpu.matmul %8, %5, %cst_4 {dimension_numbers = #tpu.dot_dimension_numbers<[1], [0], [0], [1], [0, 0, 1, 1], [], []>} : vector<16x2048xbf16>, vector<2048x128xbf16>, vector<16x128xf32> -> vector<16x128xf32>
    %c0_5 = arith.constant 0 : index
    %c4096 = arith.constant 4096 : index
    %10 = vector.load %arg0[%c0_5, %c4096] : memref<16x8192xbf16, #tpu.memory_space<vmem>>, vector<16x2048xbf16>
    %cst_6 = arith.constant dense<0.000000e+00> : vector<16x128xf32>
    %11 = tpu.matmul %10, %5, %cst_6 {dimension_numbers = #tpu.dot_dimension_numbers<[1], [0], [0], [1], [0, 0, 1, 1], [], []>} : vector<16x2048xbf16>, vector<2048x128xbf16>, vector<16x128xf32> -> vector<16x128xf32>
    %c0_7 = arith.constant 0 : index
    %c6144 = arith.constant 6144 : index
    %12 = vector.load %arg0[%c0_7, %c6144] : memref<16x8192xbf16, #tpu.memory_space<vmem>>, vector<16x2048xbf16>
    %cst_8 = arith.constant dense<0.000000e+00> : vector<16x128xf32>
    %13 = tpu.matmul %12, %5, %cst_8 {dimension_numbers = #tpu.dot_dimension_numbers<[1], [0], [0], [1], [0, 0, 1, 1], [], []>} : vector<16x2048xbf16>, vector<2048x128xbf16>, vector<16x128xf32> -> vector<16x128xf32>
    %14 = tpu.concatenate %7, %9, %11, %13 in 1 : vector<16x128xf32>, vector<16x128xf32>, vector<16x128xf32>, vector<16x128xf32> -> vector<16x512xf32>
    %c0_9 = arith.constant 0 : index
    %c0_10 = arith.constant 0 : index
    %15 = vector.load %arg2[%c0_9, %c0_10] : memref<1x512xf32, #tpu.memory_space<vmem>>, vector<1x512xf32>
    %c0_11 = arith.constant 0 : index
    %c0_12 = arith.constant 0 : index
    %16 = vector.load %arg3[%c0_11, %c0_12] : memref<1x512xf32, #tpu.memory_space<vmem>>, vector<1x512xf32>
    %cst_13 = arith.constant dense<0.000000e+00> : vector<512xf32>
    %17 = vector.multi_reduction <add>, %14, %cst_13 [0] : vector<16x512xf32> to vector<512xf32>
    %18 = vector.shape_cast %17 : vector<512xf32> to vector<1x512xf32>
    %19 = vector.extract_strided_slice %18 {offsets = [0, 0], sizes = [1, 128], strides = [1, 1]} : vector<1x512xf32> to vector<1x128xf32>
    %20 = vector.extract_strided_slice %18 {offsets = [0, 128], sizes = [1, 128], strides = [1, 1]} : vector<1x512xf32> to vector<1x128xf32>
    %21 = arith.addf %19, %20 : vector<1x128xf32>
    %22 = vector.extract_strided_slice %18 {offsets = [0, 256], sizes = [1, 128], strides = [1, 1]} : vector<1x512xf32> to vector<1x128xf32>
    %23 = arith.addf %21, %22 : vector<1x128xf32>
    %24 = vector.extract_strided_slice %18 {offsets = [0, 384], sizes = [1, 128], strides = [1, 1]} : vector<1x512xf32> to vector<1x128xf32>
    %25 = arith.addf %23, %24 : vector<1x128xf32>
    %cst_14 = arith.constant 1.250000e-01 : f32
    %26 = vector.broadcast %cst_14 : f32 to vector<1x128xf32>
    %27 = arith.mulf %25, %26 : vector<1x128xf32>
    %28 = tpu.concatenate %27, %27, %27, %27 in 1 : vector<1x128xf32>, vector<1x128xf32>, vector<1x128xf32>, vector<1x128xf32> -> vector<1x512xf32>
    %29 = vector.broadcast %28 : vector<1x512xf32> to vector<16x512xf32>
    %30 = arith.subf %14, %29 : vector<16x512xf32>
    %31 = vector.broadcast %4 : vector<16x1xf32> to vector<16x512xf32>
    %32 = arith.mulf %30, %31 : vector<16x512xf32>
    %33 = arith.mulf %32, %32 : vector<16x512xf32>
    %cst_15 = arith.constant dense<0.000000e+00> : vector<512xf32>
    %34 = vector.multi_reduction <add>, %33, %cst_15 [0] : vector<16x512xf32> to vector<512xf32>
    %35 = vector.shape_cast %34 : vector<512xf32> to vector<1x512xf32>
    %36 = vector.extract_strided_slice %35 {offsets = [0, 0], sizes = [1, 128], strides = [1, 1]} : vector<1x512xf32> to vector<1x128xf32>
    %37 = vector.extract_strided_slice %35 {offsets = [0, 128], sizes = [1, 128], strides = [1, 1]} : vector<1x512xf32> to vector<1x128xf32>
    %38 = arith.addf %36, %37 : vector<1x128xf32>
    %39 = vector.extract_strided_slice %35 {offsets = [0, 256], sizes = [1, 128], strides = [1, 1]} : vector<1x512xf32> to vector<1x128xf32>
    %40 = arith.addf %38, %39 : vector<1x128xf32>
    %41 = vector.extract_strided_slice %35 {offsets = [0, 384], sizes = [1, 128], strides = [1, 1]} : vector<1x512xf32> to vector<1x128xf32>
    %42 = arith.addf %40, %41 : vector<1x128xf32>
    %cst_16 = arith.constant 1.250000e-01 : f32
    %43 = vector.broadcast %cst_16 : f32 to vector<1x128xf32>
    %44 = arith.mulf %42, %43 : vector<1x128xf32>
    %45 = tpu.concatenate %44, %44, %44, %44 in 1 : vector<1x128xf32>, vector<1x128xf32>, vector<1x128xf32>, vector<1x128xf32> -> vector<1x512xf32>
    %cst_17 = arith.constant 9.99999974E-6 : f32
    %46 = vector.broadcast %cst_17 : f32 to vector<1x512xf32>
    %47 = arith.addf %45, %46 : vector<1x512xf32>
    %48 = math.rsqrt %47 : vector<1x512xf32>
    %49 = arith.mulf %15, %48 : vector<1x512xf32>
    %50 = vector.broadcast %49 : vector<1x512xf32> to vector<16x512xf32>
    %51 = arith.mulf %32, %50 : vector<16x512xf32>
    %52 = vector.broadcast %16 : vector<1x512xf32> to vector<16x512xf32>
    %53 = arith.addf %51, %52 : vector<16x512xf32>
    %cst_18 = arith.constant 2.000000e-01 : f32
    %54 = vector.broadcast %cst_18 : f32 to vector<16x512xf32>
    %55 = arith.mulf %54, %53 : vector<16x512xf32>
    %56 = arith.maximumf %53, %55 : vector<16x512xf32>
    %57 = vector.broadcast %4 : vector<16x1xf32> to vector<16x512xf32>
    %58 = arith.mulf %56, %57 : vector<16x512xf32>
    %59 = arith.truncf %58 : vector<16x512xf32> to vector<16x512xbf16>
    %c0_19 = arith.constant 0 : index
    %c0_20 = arith.constant 0 : index
    %60 = vector.load %arg4[%c0_19, %c0_20] : memref<512x512xbf16, #tpu.memory_space<vmem>>, vector<512x512xbf16>
    %cst_21 = arith.constant dense<0.000000e+00> : vector<16x512xf32>
    %61 = tpu.matmul %59, %60, %cst_21 {dimension_numbers = #tpu.dot_dimension_numbers<[1], [0], [0], [1], [0, 0, 1, 1], [], []>} : vector<16x512xbf16>, vector<512x512xbf16>, vector<16x512xf32> -> vector<16x512xf32>
    %c0_22 = arith.constant 0 : index
    %c0_23 = arith.constant 0 : index
    %62 = vector.load %arg5[%c0_22, %c0_23] : memref<1x512xf32, #tpu.memory_space<vmem>>, vector<1x512xf32>
    %c0_24 = arith.constant 0 : index
    %c0_25 = arith.constant 0 : index
    %63 = vector.load %arg6[%c0_24, %c0_25] : memref<1x512xf32, #tpu.memory_space<vmem>>, vector<1x512xf32>
    %cst_26 = arith.constant dense<0.000000e+00> : vector<512xf32>
    %64 = vector.multi_reduction <add>, %61, %cst_26 [0] : vector<16x512xf32> to vector<512xf32>
    %65 = vector.shape_cast %64 : vector<512xf32> to vector<1x512xf32>
    %66 = vector.extract_strided_slice %65 {offsets = [0, 0], sizes = [1, 128], strides = [1, 1]} : vector<1x512xf32> to vector<1x128xf32>
    %67 = vector.extract_strided_slice %65 {offsets = [0, 128], sizes = [1, 128], strides = [1, 1]} : vector<1x512xf32> to vector<1x128xf32>
    %68 = arith.addf %66, %67 : vector<1x128xf32>
    %69 = vector.extract_strided_slice %65 {offsets = [0, 256], sizes = [1, 128], strides = [1, 1]} : vector<1x512xf32> to vector<1x128xf32>
    %70 = arith.addf %68, %69 : vector<1x128xf32>
    %71 = vector.extract_strided_slice %65 {offsets = [0, 384], sizes = [1, 128], strides = [1, 1]} : vector<1x512xf32> to vector<1x128xf32>
    %72 = arith.addf %70, %71 : vector<1x128xf32>
    %cst_27 = arith.constant 1.250000e-01 : f32
    %73 = vector.broadcast %cst_27 : f32 to vector<1x128xf32>
    %74 = arith.mulf %72, %73 : vector<1x128xf32>
    %75 = tpu.concatenate %74, %74, %74, %74 in 1 : vector<1x128xf32>, vector<1x128xf32>, vector<1x128xf32>, vector<1x128xf32> -> vector<1x512xf32>
    %76 = vector.broadcast %75 : vector<1x512xf32> to vector<16x512xf32>
    %77 = arith.subf %61, %76 : vector<16x512xf32>
    %78 = vector.broadcast %4 : vector<16x1xf32> to vector<16x512xf32>
    %79 = arith.mulf %77, %78 : vector<16x512xf32>
    %80 = arith.mulf %79, %79 : vector<16x512xf32>
    %cst_28 = arith.constant dense<0.000000e+00> : vector<512xf32>
    %81 = vector.multi_reduction <add>, %80, %cst_28 [0] : vector<16x512xf32> to vector<512xf32>
    %82 = vector.shape_cast %81 : vector<512xf32> to vector<1x512xf32>
    %83 = vector.extract_strided_slice %82 {offsets = [0, 0], sizes = [1, 128], strides = [1, 1]} : vector<1x512xf32> to vector<1x128xf32>
    %84 = vector.extract_strided_slice %82 {offsets = [0, 128], sizes = [1, 128], strides = [1, 1]} : vector<1x512xf32> to vector<1x128xf32>
    %85 = arith.addf %83, %84 : vector<1x128xf32>
    %86 = vector.extract_strided_slice %82 {offsets = [0, 256], sizes = [1, 128], strides = [1, 1]} : vector<1x512xf32> to vector<1x128xf32>
    %87 = arith.addf %85, %86 : vector<1x128xf32>
    %88 = vector.extract_strided_slice %82 {offsets = [0, 384], sizes = [1, 128], strides = [1, 1]} : vector<1x512xf32> to vector<1x128xf32>
    %89 = arith.addf %87, %88 : vector<1x128xf32>
    %cst_29 = arith.constant 1.250000e-01 : f32
    %90 = vector.broadcast %cst_29 : f32 to vector<1x128xf32>
    %91 = arith.mulf %89, %90 : vector<1x128xf32>
    %92 = tpu.concatenate %91, %91, %91, %91 in 1 : vector<1x128xf32>, vector<1x128xf32>, vector<1x128xf32>, vector<1x128xf32> -> vector<1x512xf32>
    %cst_30 = arith.constant 9.99999974E-6 : f32
    %93 = vector.broadcast %cst_30 : f32 to vector<1x512xf32>
    %94 = arith.addf %92, %93 : vector<1x512xf32>
    %95 = math.rsqrt %94 : vector<1x512xf32>
    %96 = arith.mulf %62, %95 : vector<1x512xf32>
    %97 = vector.broadcast %96 : vector<1x512xf32> to vector<16x512xf32>
    %98 = arith.mulf %79, %97 : vector<16x512xf32>
    %99 = vector.broadcast %63 : vector<1x512xf32> to vector<16x512xf32>
    %100 = arith.addf %98, %99 : vector<16x512xf32>
    %cst_31 = arith.constant 0.000000e+00 : f32
    %101 = vector.broadcast %cst_31 : f32 to vector<16x512xf32>
    %102 = arith.maximumf %100, %101 : vector<16x512xf32>
    %103 = vector.broadcast %4 : vector<16x1xf32> to vector<16x512xf32>
    %104 = arith.mulf %102, %103 : vector<16x512xf32>
    %105 = arith.truncf %104 : vector<16x512xf32> to vector<16x512xbf16>
    %c0_32 = arith.constant 0 : index
    %c0_33 = arith.constant 0 : index
    %106 = vector.load %arg7[%c0_32, %c0_33] : memref<512x512xbf16, #tpu.memory_space<vmem>>, vector<512x512xbf16>
    %cst_34 = arith.constant dense<0.000000e+00> : vector<16x512xf32>
    %107 = tpu.matmul %105, %106, %cst_34 {dimension_numbers = #tpu.dot_dimension_numbers<[1], [0], [0], [1], [0, 0, 1, 1], [], []>} : vector<16x512xbf16>, vector<512x512xbf16>, vector<16x512xf32> -> vector<16x512xf32>
    %c0_35 = arith.constant 0 : index
    %c0_36 = arith.constant 0 : index
    %108 = vector.load %arg8[%c0_35, %c0_36] : memref<1x512xf32, #tpu.memory_space<vmem>>, vector<1x512xf32>
    %c0_37 = arith.constant 0 : index
    %c0_38 = arith.constant 0 : index
    %109 = vector.load %arg9[%c0_37, %c0_38] : memref<1x512xf32, #tpu.memory_space<vmem>>, vector<1x512xf32>
    %cst_39 = arith.constant dense<0.000000e+00> : vector<512xf32>
    %110 = vector.multi_reduction <add>, %107, %cst_39 [0] : vector<16x512xf32> to vector<512xf32>
    %111 = vector.shape_cast %110 : vector<512xf32> to vector<1x512xf32>
    %112 = vector.extract_strided_slice %111 {offsets = [0, 0], sizes = [1, 128], strides = [1, 1]} : vector<1x512xf32> to vector<1x128xf32>
    %113 = vector.extract_strided_slice %111 {offsets = [0, 128], sizes = [1, 128], strides = [1, 1]} : vector<1x512xf32> to vector<1x128xf32>
    %114 = arith.addf %112, %113 : vector<1x128xf32>
    %115 = vector.extract_strided_slice %111 {offsets = [0, 256], sizes = [1, 128], strides = [1, 1]} : vector<1x512xf32> to vector<1x128xf32>
    %116 = arith.addf %114, %115 : vector<1x128xf32>
    %117 = vector.extract_strided_slice %111 {offsets = [0, 384], sizes = [1, 128], strides = [1, 1]} : vector<1x512xf32> to vector<1x128xf32>
    %118 = arith.addf %116, %117 : vector<1x128xf32>
    %cst_40 = arith.constant 1.250000e-01 : f32
    %119 = vector.broadcast %cst_40 : f32 to vector<1x128xf32>
    %120 = arith.mulf %118, %119 : vector<1x128xf32>
    %121 = tpu.concatenate %120, %120, %120, %120 in 1 : vector<1x128xf32>, vector<1x128xf32>, vector<1x128xf32>, vector<1x128xf32> -> vector<1x512xf32>
    %122 = vector.broadcast %121 : vector<1x512xf32> to vector<16x512xf32>
    %123 = arith.subf %107, %122 : vector<16x512xf32>
    %124 = vector.broadcast %4 : vector<16x1xf32> to vector<16x512xf32>
    %125 = arith.mulf %123, %124 : vector<16x512xf32>
    %126 = arith.mulf %125, %125 : vector<16x512xf32>
    %cst_41 = arith.constant dense<0.000000e+00> : vector<512xf32>
    %127 = vector.multi_reduction <add>, %126, %cst_41 [0] : vector<16x512xf32> to vector<512xf32>
    %128 = vector.shape_cast %127 : vector<512xf32> to vector<1x512xf32>
    %129 = vector.extract_strided_slice %128 {offsets = [0, 0], sizes = [1, 128], strides = [1, 1]} : vector<1x512xf32> to vector<1x128xf32>
    %130 = vector.extract_strided_slice %128 {offsets = [0, 128], sizes = [1, 128], strides = [1, 1]} : vector<1x512xf32> to vector<1x128xf32>
    %131 = arith.addf %129, %130 : vector<1x128xf32>
    %132 = vector.extract_strided_slice %128 {offsets = [0, 256], sizes = [1, 128], strides = [1, 1]} : vector<1x512xf32> to vector<1x128xf32>
    %133 = arith.addf %131, %132 : vector<1x128xf32>
    %134 = vector.extract_strided_slice %128 {offsets = [0, 384], sizes = [1, 128], strides = [1, 1]} : vector<1x512xf32> to vector<1x128xf32>
    %135 = arith.addf %133, %134 : vector<1x128xf32>
    %cst_42 = arith.constant 1.250000e-01 : f32
    %136 = vector.broadcast %cst_42 : f32 to vector<1x128xf32>
    %137 = arith.mulf %135, %136 : vector<1x128xf32>
    %138 = tpu.concatenate %137, %137, %137, %137 in 1 : vector<1x128xf32>, vector<1x128xf32>, vector<1x128xf32>, vector<1x128xf32> -> vector<1x512xf32>
    %cst_43 = arith.constant 9.99999974E-6 : f32
    %139 = vector.broadcast %cst_43 : f32 to vector<1x512xf32>
    %140 = arith.addf %138, %139 : vector<1x512xf32>
    %141 = math.rsqrt %140 : vector<1x512xf32>
    %142 = arith.mulf %108, %141 : vector<1x512xf32>
    %143 = vector.broadcast %142 : vector<1x512xf32> to vector<16x512xf32>
    %144 = arith.mulf %125, %143 : vector<16x512xf32>
    %145 = vector.broadcast %109 : vector<1x512xf32> to vector<16x512xf32>
    %146 = arith.addf %144, %145 : vector<16x512xf32>
    %cst_44 = arith.constant 0.000000e+00 : f32
    %147 = vector.broadcast %cst_44 : f32 to vector<16x512xf32>
    %148 = arith.maximumf %146, %147 : vector<16x512xf32>
    %149 = vector.broadcast %4 : vector<16x1xf32> to vector<16x512xf32>
    %150 = arith.mulf %148, %149 : vector<16x512xf32>
    %151 = arith.truncf %150 : vector<16x512xf32> to vector<16x512xbf16>
    %c0_45 = arith.constant 0 : index
    %c0_46 = arith.constant 0 : index
    %152 = vector.load %arg10[%c0_45, %c0_46] : memref<512x512xbf16, #tpu.memory_space<vmem>>, vector<512x512xbf16>
    %cst_47 = arith.constant dense<0.000000e+00> : vector<16x512xf32>
    %153 = tpu.matmul %151, %152, %cst_47 {dimension_numbers = #tpu.dot_dimension_numbers<[1], [0], [0], [1], [0, 0, 1, 1], [], []>} : vector<16x512xbf16>, vector<512x512xbf16>, vector<16x512xf32> -> vector<16x512xf32>
    %c0_48 = arith.constant 0 : index
    %c0_49 = arith.constant 0 : index
    %154 = vector.load %arg11[%c0_48, %c0_49] : memref<1x512xf32, #tpu.memory_space<vmem>>, vector<1x512xf32>
    %c0_50 = arith.constant 0 : index
    %c0_51 = arith.constant 0 : index
    %155 = vector.load %arg12[%c0_50, %c0_51] : memref<1x512xf32, #tpu.memory_space<vmem>>, vector<1x512xf32>
    %cst_52 = arith.constant dense<0.000000e+00> : vector<512xf32>
    %156 = vector.multi_reduction <add>, %153, %cst_52 [0] : vector<16x512xf32> to vector<512xf32>
    %157 = vector.shape_cast %156 : vector<512xf32> to vector<1x512xf32>
    %158 = vector.extract_strided_slice %157 {offsets = [0, 0], sizes = [1, 128], strides = [1, 1]} : vector<1x512xf32> to vector<1x128xf32>
    %159 = vector.extract_strided_slice %157 {offsets = [0, 128], sizes = [1, 128], strides = [1, 1]} : vector<1x512xf32> to vector<1x128xf32>
    %160 = arith.addf %158, %159 : vector<1x128xf32>
    %161 = vector.extract_strided_slice %157 {offsets = [0, 256], sizes = [1, 128], strides = [1, 1]} : vector<1x512xf32> to vector<1x128xf32>
    %162 = arith.addf %160, %161 : vector<1x128xf32>
    %163 = vector.extract_strided_slice %157 {offsets = [0, 384], sizes = [1, 128], strides = [1, 1]} : vector<1x512xf32> to vector<1x128xf32>
    %164 = arith.addf %162, %163 : vector<1x128xf32>
    %cst_53 = arith.constant 1.250000e-01 : f32
    %165 = vector.broadcast %cst_53 : f32 to vector<1x128xf32>
    %166 = arith.mulf %164, %165 : vector<1x128xf32>
    %167 = tpu.concatenate %166, %166, %166, %166 in 1 : vector<1x128xf32>, vector<1x128xf32>, vector<1x128xf32>, vector<1x128xf32> -> vector<1x512xf32>
    %168 = vector.broadcast %167 : vector<1x512xf32> to vector<16x512xf32>
    %169 = arith.subf %153, %168 : vector<16x512xf32>
    %170 = vector.broadcast %4 : vector<16x1xf32> to vector<16x512xf32>
    %171 = arith.mulf %169, %170 : vector<16x512xf32>
    %172 = arith.mulf %171, %171 : vector<16x512xf32>
    %cst_54 = arith.constant dense<0.000000e+00> : vector<512xf32>
    %173 = vector.multi_reduction <add>, %172, %cst_54 [0] : vector<16x512xf32> to vector<512xf32>
    %174 = vector.shape_cast %173 : vector<512xf32> to vector<1x512xf32>
    %175 = vector.extract_strided_slice %174 {offsets = [0, 0], sizes = [1, 128], strides = [1, 1]} : vector<1x512xf32> to vector<1x128xf32>
    %176 = vector.extract_strided_slice %174 {offsets = [0, 128], sizes = [1, 128], strides = [1, 1]} : vector<1x512xf32> to vector<1x128xf32>
    %177 = arith.addf %175, %176 : vector<1x128xf32>
    %178 = vector.extract_strided_slice %174 {offsets = [0, 256], sizes = [1, 128], strides = [1, 1]} : vector<1x512xf32> to vector<1x128xf32>
    %179 = arith.addf %177, %178 : vector<1x128xf32>
    %180 = vector.extract_strided_slice %174 {offsets = [0, 384], sizes = [1, 128], strides = [1, 1]} : vector<1x512xf32> to vector<1x128xf32>
    %181 = arith.addf %179, %180 : vector<1x128xf32>
    %cst_55 = arith.constant 1.250000e-01 : f32
    %182 = vector.broadcast %cst_55 : f32 to vector<1x128xf32>
    %183 = arith.mulf %181, %182 : vector<1x128xf32>
    %184 = tpu.concatenate %183, %183, %183, %183 in 1 : vector<1x128xf32>, vector<1x128xf32>, vector<1x128xf32>, vector<1x128xf32> -> vector<1x512xf32>
    %cst_56 = arith.constant 9.99999974E-6 : f32
    %185 = vector.broadcast %cst_56 : f32 to vector<1x512xf32>
    %186 = arith.addf %184, %185 : vector<1x512xf32>
    %187 = math.rsqrt %186 : vector<1x512xf32>
    %188 = arith.mulf %154, %187 : vector<1x512xf32>
    %189 = vector.broadcast %188 : vector<1x512xf32> to vector<16x512xf32>
    %190 = arith.mulf %171, %189 : vector<16x512xf32>
    %191 = vector.broadcast %155 : vector<1x512xf32> to vector<16x512xf32>
    %192 = arith.addf %190, %191 : vector<16x512xf32>
    %193 = arith.addf %58, %192 : vector<16x512xf32>
    %cst_57 = arith.constant 2.000000e-01 : f32
    %194 = vector.broadcast %cst_57 : f32 to vector<16x512xf32>
    %195 = arith.mulf %194, %193 : vector<16x512xf32>
    %196 = arith.maximumf %193, %195 : vector<16x512xf32>
    %c0_58 = arith.constant 0 : index
    %c0_59 = arith.constant 0 : index
    %197 = vector.load %arg13[%c0_58, %c0_59] : memref<1x512xf32, #tpu.memory_space<vmem>>, vector<1x512xf32>
    %198 = vector.broadcast %197 : vector<1x512xf32> to vector<16x512xf32>
    %199 = arith.mulf %196, %198 : vector<16x512xf32>
    %cst_60 = arith.constant dense<0.000000e+00> : vector<16xf32>
    %200 = vector.multi_reduction <add>, %199, %cst_60 [1] : vector<16x512xf32> to vector<16xf32>
    %201 = vector.shape_cast %200 : vector<16xf32> to vector<16x1xf32>
    %c0_61 = arith.constant 0 : index
    %202 = memref.load %arg14[%c0_61] : memref<1xf32, #tpu.memory_space<smem>>
    %203 = vector.broadcast %202 : f32 to vector<16x1xf32>
    %204 = arith.addf %201, %203 : vector<16x1xf32>
    %205 = arith.negf %204 : vector<16x1xf32>
    %206 = math.exp %205 : vector<16x1xf32>
    %cst_62 = arith.constant 1.000000e+00 : f32
    %207 = vector.broadcast %cst_62 : f32 to vector<16x1xf32>
    %208 = arith.addf %207, %206 : vector<16x1xf32>
    %209 = arith.divf %207, %208 : vector<16x1xf32>
    %210 = vector.shape_cast %209 : vector<16x1xf32> to vector<16x1xf32>
    %211 = vector.broadcast %210 : vector<16x1xf32> to vector<16x128xf32>
    %c0_63 = arith.constant 0 : index
    %c0_64 = arith.constant 0 : index
    %212 = vector.load %arg15[%c0_63, %c0_64] : memref<16x128xf32, #tpu.memory_space<vmem>>, vector<16x128xf32>
    tpu.vector_store %arg15[%c0_63, %c0_64], %211 {strides = array<i32>} : memref<16x128xf32, #tpu.memory_space<vmem>>, vector<16x128xf32>,
    return
  }
}

</mosaic_0001>

<bundles_post_ra>
// kernel: discriminator_forward.3
= control target key start
LH: loop header
LB: loop body
LE: loop exit
PB: predicated region body
PF: predicated region fallthrough
CT: control target
= control target key end

     0   :  { %s942_s1 = inlined_call_operand.vmem [shape: bf16[128,128], index: 1, kind: input, shape index: {}]   ;;  %s943_s0 = inlined_call_operand.vmem [shape: bf16[128,128], index: 0, kind: input, shape index: {}]   ;;  %s944_s2 = inlined_call_operand.vmem [shape: f32[1,128], index: 2, kind: input, shape index: {}]   ;;  %s945_s3 = inlined_call_operand.vmem [shape: f32[1,128], index: 3, kind: input, shape index: {}]   ;;  %s946_s4 = inlined_call_operand.vmem [shape: bf16[128,128], index: 4, kind: output, shape index: {}]  }
   0x1   :  { %v741_v0 = vld [vmem:[%s942_s1] sm:$0xff]   ;;  %v742_v1 = vld [vmem:[%s942_s1 + $0x8] sm:$0xff]   ;;  %v743_v2 = vld [vmem:[%s942_s1 + $0x10] sm:$0xff]  }
   0x2   :  { %693 = vmatprep.subr.bf16.mxu0 %v741_v0  ;;  %725 = vmatprep.subr.bf16.mxu1 %v741_v0  ;;  %v744_v3 = vld [vmem:[%s942_s1 + $0x18] sm:$0xff]   ;;  %v749_v4 = vld [vmem:[%s943_s0] sm:$0xff]   ;;  %v746_v7 = vld [vmem:[%s942_s1 + $0x28] sm:$0xff]  }
   0x3   :  { %694 = vmatpush3.bf16.msra.mxu0 %v741_v0  ;;  %733 = vmatpush3.bf16.msra.mxu1 %v741_v0  ;;  %v745_v5 = vld [vmem:[%s942_s1 + $0x20] sm:$0xff]   ;;  %v747_v8 = vld [vmem:[%s942_s1 + $0x30] sm:$0xff]   ;;  %v748_v9 = vld [vmem:[%s942_s1 + $0x38] sm:$0xff]  }
   0x4   :  { %695 = vmatprep.subr.bf16.mxu0 %v742_v1  ;;  %726 = vmatprep.subr.bf16.mxu1 %v742_v1  ;;  %v753_v6 = vld [vmem:[%s943_s0 + $0x20] sm:$0xff]   ;;  %v750_v10 = vld [vmem:[%s943_s0 + $0x8] sm:$0xff]   ;;  %v751_v12 = vld [vmem:[%s943_s0 + $0x10] sm:$0xff]  }
   0x5   :  { %709 = vmatprep.mubr.bf16.mxu0 %v749_v4  ;;  %717 = vmatprep.mubr.bf16.mxu1 %v753_v6  ;;  %v754_v11 = vld [vmem:[%s943_s0 + $0x28] sm:$0xff]   ;;  %v755_v13 = vld [vmem:[%s943_s0 + $0x30] sm:$0xff]   ;;  %v752_v14 = vld [vmem:[%s943_s0 + $0x18] sm:$0xff]  }
   0x6   :  { %v756_v15 = vld [vmem:[%s943_s0 + $0x38] sm:$0xff]  }
   0x7   :  { %696 = vmatpush3.bf16.msra.mxu0 %v742_v1  ;;  %734 = vmatpush3.bf16.msra.mxu1 %v742_v1 }
   0x8   :  { %697 = vmatprep.subr.bf16.mxu0 %v743_v2  ;;  %727 = vmatprep.subr.bf16.mxu1 %v743_v2 }
   0xb   :  { %698 = vmatpush3.bf16.msra.mxu0 %v743_v2  ;;  %735 = vmatpush3.bf16.msra.mxu1 %v743_v2 }
   0xc   :  { %699 = vmatprep.subr.bf16.mxu0 %v744_v3  ;;  %728 = vmatprep.subr.bf16.mxu1 %v744_v3 }
   0xf   :  { %700 = vmatpush3.bf16.msra.mxu0 %v744_v3  ;;  %736 = vmatpush3.bf16.msra.mxu1 %v744_v3 }
  0x10   :  { %701 = vmatprep.subr.bf16.mxu0 %v745_v5  ;;  %729 = vmatprep.subr.bf16.mxu1 %v745_v5 }
  0x13   :  { %702 = vmatpush3.bf16.msra.mxu0 %v745_v5  ;;  %737 = vmatpush3.bf16.msra.mxu1 %v745_v5 }
  0x14   :  { %703 = vmatprep.subr.bf16.mxu0 %v746_v7  ;;  %730 = vmatprep.subr.bf16.mxu1 %v746_v7 }
  0x17   :  { %704 = vmatpush3.bf16.msra.mxu0 %v746_v7  ;;  %738 = vmatpush3.bf16.msra.mxu1 %v746_v7 }
  0x18   :  { %705 = vmatprep.subr.bf16.mxu0 %v747_v8  ;;  %731 = vmatprep.subr.bf16.mxu1 %v747_v8 }
  0x1b   :  { %706 = vmatpush3.bf16.msra.mxu0 %v747_v8  ;;  %739 = vmatpush3.bf16.msra.mxu1 %v747_v8 }
  0x1c   :  { %707 = vmatprep.subr.bf16.mxu0 %v748_v9  ;;  %732 = vmatprep.subr.bf16.mxu1 %v748_v9 }
  0x1f   :  { %708 = vmatpush3.bf16.msra.mxu0 %v748_v9  ;;  %740 = vmatpush3.bf16.msra.mxu1 %v748_v9 }
  0x22   :  { %710 = vmatmul.mubr.bf16.vlgmr.msra.gmra.mrb[0].mxu0 %v750_v10  ;;  %718 = vmatmul.mubr.bf16.vlgmr.msra.gmra.mrb[0].mxu1 %v754_v11 }
  0x23   :  { %713 = vmatprep.mubr.bf16.mxu0 %v751_v12  ;;  %721 = vmatprep.mubr.bf16.mxu1 %v755_v13 }
  0x2a   :  { %714 = vmatmul.mubr.bf16.gmra.mrb[4].mxu0 %v752_v14  ;;  %722 = vmatmul.mubr.bf16.gmra.mrb[4].mxu1 %v756_v15 }
  0xf5   :  { %v711_v16 = vpop.f32.mrb[0].mxu0  ;;  %v719_v17 = vpop.f32.mrb[0].mxu1 }
  0xf6   :  { %v180_v18 = vpop.f32.mrb[1].mxu0  ;;  %v212_v19 = vpop.f32.mrb[1].mxu1 }
  0xf7   :  { %v712_v20 = vpop.f32.mrb[2].mxu0  ;;  %v720_v21 = vpop.f32.mrb[2].mxu1 }
  0xf8   :  { %v183_v22 = vpop.f32.mrb[3].mxu0  ;;  %v215_v23 = vpop.f32.mrb[3].mxu1 }
  0xf9   :  { %v308_v24 = vadd.f32 %v183_v22, %v180_v18 }
  0xfb   :  { %v309_v25 = vadd.f32 %v711_v16, %v308_v24 }
  0xfd   :  { %v715_v26 = vpop.f32.mrb[4].mxu0  ;;  %v310_v27 = vadd.f32 %v712_v20, %v309_v25  ;;  %v723_v28 = vpop.f32.mrb[4].mxu1 }
  0xfe   :  { %v196_v29 = vpop.f32.mrb[5].mxu0  ;;  %v228_v30 = vpop.f32.mrb[5].mxu1 }
  0xff   :  { %v311_v31 = vadd.f32 %v310_v27, %v196_v29  ;;  %v716_v32 = vpop.f32.mrb[6].mxu0  ;;  %v724_v33 = vpop.f32.mrb[6].mxu1 }
 0x100   :  { %v199_v34 = vpop.f32.mrb[7].mxu0  ;;  %v231_v35 = vpop.f32.mrb[7].mxu1 }
 0x101   :  { %v312_v36 = vadd.f32 %v311_v31, %v199_v34 }
 0x103   :  { %v313_v37 = vadd.f32 %v715_v26, %v312_v36 }
 0x105   :  { %v314_v38 = vadd.f32 %v716_v32, %v313_v37 }
 0x107   :  { %v315_v39 = vadd.f32 %v314_v38, %v212_v19 }
 0x109   :  { %v316_v40 = vadd.f32 %v315_v39, %v215_v23 }
 0x10b   :  { %v317_v41 = vadd.f32 %v719_v17, %v316_v40 }
 0x10d   :  { %v318_v42 = vadd.f32 %v720_v21, %v317_v41 }
 0x10f   :  { %v319_v43 = vadd.f32 %v318_v42, %v228_v30 }
 0x111   :  { %v320_v44 = vadd.f32 %v319_v43, %v231_v35 }
 0x113   :  { %v321_v45 = vadd.f32 %v723_v28, %v320_v44 }
 0x115   :  { %v322_v46 = vadd.f32 %v724_v33, %v321_v45  ;;  %v405_v45 = vlaneseq }
 0x117   :  { %v323_v47 = vrot.slane %v322_v46, 4 }
 0x119   :  { %v324_v48 = vadd.f32 %v323_v47, %v322_v46  ;;  %v406_v46 = vshrl.u32 %v405_v45, 7  ;;  %v400_v47 = vld [vmem:[%s944_s2] sm:$0x1] }
 0x11b   :  { %v325_v49 = vrot.slane %v324_v48, 2 }
 0x11d   :  { %v326_v50 = vadd.f32 %v325_v49, %v324_v48  ;;  %v407_v48 = vsub.s32 0, %v406_v46 }
 0x11f   :  { %v327_v51 = vrot.slane %v326_v50, 1 }
 0x121   :  { %v328_v52 = vadd.f32 %v327_v51, %v326_v50 }
 0x123   :  { %v329_v53 = vmul.f32 0.0078125, %v328_v52 }
 0x125   :  { %v832_v54 = vsub.f32 %v180_v18, %v329_v53  ;;  %v834_v55 = vsub.f32 %v183_v22, %v329_v53  ;;  %v836_v56 = vsub.f32 %v711_v16, %v329_v53  ;;  %v838_v57 = vsub.f32 %v712_v20, %v329_v53 }
 0x126   :  { %v840_v58 = vsub.f32 %v196_v29, %v329_v53  ;;  %v842_v59 = vsub.f32 %v199_v34, %v329_v53  ;;  %v844_v60 = vsub.f32 %v715_v26, %v329_v53  ;;  %v846_v61 = vsub.f32 %v716_v32, %v329_v53 }
 0x127   :  { %v848_v62 = vsub.f32 %v212_v19, %v329_v53  ;;  %v850_v63 = vsub.f32 %v215_v23, %v329_v53  ;;  %v852_v0 = vsub.f32 %v719_v17, %v329_v53  ;;  %v854_v1 = vsub.f32 %v720_v21, %v329_v53 }
 0x128   :  { %v856_v2 = vsub.f32 %v228_v30, %v329_v53  ;;  %v858_v3 = vsub.f32 %v231_v35, %v329_v53  ;;  %v860_v4 = vsub.f32 %v723_v28, %v329_v53  ;;  %v862_v5 = vsub.f32 %v724_v33, %v329_v53 }
 0x129   :  { %v362_v6 = vmul.f32 %v832_v54, %v832_v54  ;;  %v363_v7 = vmul.f32 %v834_v55, %v834_v55  ;;  %v364_v8 = vmul.f32 %v836_v56, %v836_v56  ;;  %v365_v10 = vmul.f32 %v838_v57, %v838_v57 }
 0x12a   :  { %v366_v12 = vmul.f32 %v840_v58, %v840_v58  ;;  %v367_v14 = vmul.f32 %v842_v59, %v842_v59  ;;  %v368_v16 = vmul.f32 %v844_v60, %v844_v60  ;;  %v369_v18 = vmul.f32 %v846_v61, %v846_v61 }
 0x12b   :  { %v378_v9 = vadd.f32 %v363_v7, %v362_v6  ;;  %v370_v20 = vmul.f32 %v848_v62, %v848_v62  ;;  %v371_v22 = vmul.f32 %v850_v63, %v850_v63  ;;  %v372_v24 = vmul.f32 %v852_v0, %v852_v0 }
 0x12c   :  { %v373_v26 = vmul.f32 %v854_v1, %v854_v1  ;;  %v374_v28 = vmul.f32 %v856_v2, %v856_v2  ;;  %v375_v30 = vmul.f32 %v858_v3, %v858_v3  ;;  %v376_v32 = vmul.f32 %v860_v4, %v860_v4 }
 0x12d   :  { %v379_v11 = vadd.f32 %v378_v9, %v364_v8  ;;  %v377_v34 = vmul.f32 %v862_v5, %v862_v5 }
 0x12f   :  { %v380_v13 = vadd.f32 %v379_v11, %v365_v10 }
 0x131   :  { %v381_v15 = vadd.f32 %v380_v13, %v366_v12  ;;  %v597_v12 = vld [vmem:[%s945_s3] ss:$0 sm:$0xff] }
 0x133   :  { %v382_v17 = vadd.f32 %v381_v15, %v367_v14 }
 0x135   :  { %v383_v19 = vadd.f32 %v382_v17, %v368_v16 }
 0x137   :  { %v384_v21 = vadd.f32 %v383_v19, %v369_v18 }
 0x139   :  { %v385_v23 = vadd.f32 %v384_v21, %v370_v20 }
 0x13b   :  { %v386_v25 = vadd.f32 %v385_v23, %v371_v22 }
 0x13d   :  { %v387_v27 = vadd.f32 %v386_v25, %v372_v24 }
 0x13f   :  { %v388_v29 = vadd.f32 %v387_v27, %v373_v26 }
 0x141   :  { %v389_v31 = vadd.f32 %v388_v29, %v374_v28 }
 0x143   :  { %v390_v33 = vadd.f32 %v389_v31, %v375_v30 }
 0x145   :  { %v391_v35 = vadd.f32 %v390_v33, %v376_v32 }
 0x147   :  { %v392_v36 = vadd.f32 %v391_v35, %v377_v34 }
 0x149   :  { %v393_v37 = vrot.slane %v392_v36, 4 }
 0x14b   :  { %v394_v38 = vadd.f32 %v393_v37, %v392_v36 }
 0x14d   :  { %v395_v39 = vrot.slane %v394_v38, 2 }
 0x14f   :  { %v396_v40 = vadd.f32 %v395_v39, %v394_v38 }
 0x151   :  { %v397_v41 = vrot.slane %v396_v40, 1 }
 0x153   :  { %v398_v42 = vadd.f32 %v397_v41, %v396_v40 }
 0x155   :  { %v399_v43 = vmul.f32 0.0078125, %v398_v42 }
 0x157   :  { %v401_v44 = vadd.f32 1e-05, %v399_v43 }
 0x159   :  { %757 = vrsqrt.f32 %v401_v44 }
 0x163   :  { %v758_v49 = vpop.eup %757 }
 0x164   :  { %v403_v50 = vmul.f32 %v758_v49, %v400_v47 }
 0x166   :  { %v408_v51 = vrot.slane %v403_v50, %v407_v48 }
 0x168   :  { %v410_v52 = vmul.f32 %v408_v51, %v832_v54  ;;  %v411_v53 = vmul.f32 %v408_v51, %v834_v55  ;;  %v412_v6 = vmul.f32 %v408_v51, %v836_v56  ;;  %v413_v7 = vmul.f32 %v408_v51, %v838_v57 }
 0x169   :  { %v414_v8 = vmul.f32 %v408_v51, %v840_v58  ;;  %v415_v9 = vmul.f32 %v408_v51, %v842_v59  ;;  %v416_v10 = vmul.f32 %v408_v51, %v844_v60  ;;  %v417_v11 = vmul.f32 %v408_v51, %v846_v61 }
 0x16a   :  { %v418_v54 = vmul.f32 %v408_v51, %v848_v62  ;;  %v419_v55 = vmul.f32 %v408_v51, %v850_v63  ;;  %v420_v56 = vmul.f32 %v408_v51, %v852_v0  ;;  %v421_v57 = vmul.f32 %v408_v51, %v854_v1 }
 0x16b   :  { %v422_v58 = vmul.f32 %v408_v51, %v856_v2  ;;  %v423_v59 = vmul.f32 %v408_v51, %v858_v3  ;;  %v424_v60 = vmul.f32 %v408_v51, %v860_v4  ;;  %v425_v61 = vmul.f32 %v408_v51, %v862_v5 }
 0x16c   :  { %v433_v13 = vadd.f32 %v597_v12, %v410_v52  ;;  %v434_v14 = vadd.f32 %v597_v12, %v411_v53  ;;  %v435_v15 = vadd.f32 %v597_v12, %v412_v6  ;;  %v436_v16 = vadd.f32 %v597_v12, %v413_v7 }
 0x16d   :  { %v437_v17 = vadd.f32 %v597_v12, %v414_v8  ;;  %v438_v62 = vadd.f32 %v597_v12, %v415_v9  ;;  %v439_v18 = vadd.f32 %v597_v12, %v416_v10  ;;  %v440_v63 = vadd.f32 %v597_v12, %v417_v11 }
 0x16e   :  { %v441_v19 = vadd.f32 %v597_v12, %v418_v54  ;;  %v442_v0 = vadd.f32 %v597_v12, %v419_v55  ;;  %v443_v20 = vadd.f32 %v597_v12, %v420_v56  ;;  %v444_v1 = vadd.f32 %v597_v12, %v421_v57 }
 0x16f   :  { %v445_v21 = vadd.f32 %v597_v12, %v422_v58  ;;  %v446_v2 = vadd.f32 %v597_v12, %v423_v59  ;;  %v447_v22 = vadd.f32 %v597_v12, %v424_v60  ;;  %v449_v3 = vmul.f32 0.2, %v433_v13 }
 0x170   :  { %v450_v23 = vmul.f32 0.2, %v434_v14  ;;  %v451_v4 = vmul.f32 0.2, %v435_v15  ;;  %v448_v24 = vadd.f32 %v597_v12, %v425_v61  ;;  %v452_v5 = vmul.f32 0.2, %v436_v16 }
 0x171   :  { %v453_v25 = vmul.f32 0.2, %v437_v17  ;;  %v454_v26 = vmul.f32 0.2, %v438_v62  ;;  %v455_v27 = vmul.f32 0.2, %v439_v18  ;;  %v465_v30 = vmax.f32 %v433_v13, %v449_v3 }
 0x172   :  { %v456_v28 = vmul.f32 0.2, %v440_v63  ;;  %v457_v29 = vmul.f32 0.2, %v441_v19  ;;  %v458_v31 = vmul.f32 0.2, %v442_v0  ;;  %v466_v34 = vmax.f32 %v434_v14, %v450_v23 }
 0x173   :  { %v459_v32 = vmul.f32 0.2, %v443_v20  ;;  %v460_v33 = vmul.f32 0.2, %v444_v1  ;;  %v461_v35 = vmul.f32 0.2, %v445_v21  ;;  %v467_v38 = vmax.f32 %v435_v15, %v451_v4 }
 0x174   :  { %v462_v36 = vmul.f32 0.2, %v446_v2  ;;  %v463_v37 = vmul.f32 0.2, %v447_v22  ;;  %v464_v39 = vmul.f32 0.2, %v448_v24  ;;  %v468_v40 = vmax.f32 %v436_v16, %v452_v5 }
 0x175   :  { %v469_v41 = vmax.f32 %v437_v17, %v453_v25  ;;  %v470_v42 = vmax.f32 %v438_v62, %v454_v26  ;;  %v471_v43 = vmax.f32 %v439_v18, %v455_v27  ;;  %v472_v44 = vmax.f32 %v440_v63, %v456_v28 }
 0x176   :  { %v473_v45 = vmax.f32 %v441_v19, %v457_v29  ;;  %v474_v46 = vmax.f32 %v442_v0, %v458_v31  ;;  %v475_v47 = vmax.f32 %v443_v20, %v459_v32  ;;  %v476_v48 = vmax.f32 %v444_v1, %v460_v33 }
 0x177   :  { %v477_v49 = vmax.f32 %v445_v21, %v461_v35  ;;  %v478_v50 = vmax.f32 %v446_v2, %v462_v36  ;;  %v479_v51 = vmax.f32 %v447_v22, %v463_v37  ;;  %v480_v52 = vmax.f32 %v448_v24, %v464_v39 }
 0x178   :  { %v633_v53 = vpack.c.bf16 %v466_v34, %v465_v30  ;;  %v638_v6 = vpack.c.bf16 %v468_v40, %v467_v38  ;;  %v643_v7 = vpack.c.bf16 %v470_v42, %v469_v41  ;;  %v648_v8 = vpack.c.bf16 %v472_v44, %v471_v43 }
 0x179   :  { %v653_v9 = vpack.c.bf16 %v474_v46, %v473_v45  ;;  %v658_v10 = vpack.c.bf16 %v476_v48, %v475_v47  ;;  %v663_v11 = vpack.c.bf16 %v478_v50, %v477_v49  ;;  %v668_v12 = vpack.c.bf16 %v480_v52, %v479_v51 }
 0x17a   :  { %634 = vst [vmem:[%s946_s4] sm:$0xff] %v633_v53   ;;  %670 = vst [vmem:[%s946_s4 + $0x8] sm:$0xff] %v638_v6  }
 0x17b   :  { %671 = vst [vmem:[%s946_s4 + $0x10] sm:$0xff] %v643_v7   ;;  %672 = vst [vmem:[%s946_s4 + $0x18] sm:$0xff] %v648_v8  }
 0x17c   :  { %673 = vst [vmem:[%s946_s4 + $0x20] sm:$0xff] %v653_v9   ;;  %674 = vst [vmem:[%s946_s4 + $0x28] sm:$0xff] %v658_v10  }
 0x17d   :  { %675 = vst [vmem:[%s946_s4 + $0x30] sm:$0xff] %v663_v11   ;;  %676 = vst [vmem:[%s946_s4 + $0x38] sm:$0xff] %v668_v12  }

// kernel: discriminator_forward.4
= control target key start
LH: loop header
LB: loop body
LE: loop exit
PB: predicated region body
PF: predicated region fallthrough
CT: control target
= control target key end

     0   :  { %s2787_s1 = inlined_call_operand.vmem [shape: bf16[2048,128], index: 1, kind: input, shape index: {}]   ;;  %s2788_s0 = inlined_call_operand.vmem [shape: bf16[32,2048], index: 0, kind: input, shape index: {}]   ;;  %s2789_s2 = inlined_call_operand.vmem [shape: f32[1,128], index: 2, kind: input, shape index: {}]   ;;  %s2790_s3 = inlined_call_operand.vmem [shape: f32[1,128], index: 3, kind: input, shape index: {}]   ;;  %s2791_s4 = inlined_call_operand.vmem [shape: bf16[32,128], index: 4, kind: output, shape index: {}]  }
   0x1   :  { %v2140_v0 = vld [vmem:[%s2787_s1 + $0x40] sm:$0xff]   ;;  %v2144_v4 = vld [vmem:[%s2787_s1 + $0x48] sm:$0xff]   ;;  %v2148_v8 = vld [vmem:[%s2787_s1 + $0x50] sm:$0xff]  }
   0x2   :  { %v2141_v1 = vld [vmem:[%s2787_s1 + $0xc0] sm:$0xff]   ;;  %1916 = vmatprep.subr.bf16.mxu0 %v2140_v0  ;;  %v2145_v5 = vld [vmem:[%s2787_s1 + $0xc8] sm:$0xff]   ;;  %v2149_v9 = vld [vmem:[%s2787_s1 + $0xd0] sm:$0xff]  }
   0x3   :  { %v2142_v2 = vld [vmem:[%s2787_s1] sm:$0xff]   ;;  %1944 = vmatprep.subr.bf16.mxu1 %v2141_v1  ;;  %v2146_v6 = vld [vmem:[%s2787_s1 + $0x8] sm:$0xff]   ;;  %v2150_v10 = vld [vmem:[%s2787_s1 + $0x10] sm:$0xff]  }
   0x4   :  { %v2143_v3 = vld [vmem:[%s2787_s1 + $0x80] sm:$0xff]   ;;  %1917 = vmatpush3.bf16.msra.mxu0 %v2142_v2  ;;  %v2147_v7 = vld [vmem:[%s2787_s1 + $0x88] sm:$0xff]   ;;  %v2151_v11 = vld [vmem:[%s2787_s1 + $0x90] sm:$0xff]  }
   0x5   :  { %1945 = vmatpush3.bf16.msra.mxu1 %v2143_v3  ;;  %1918 = vmatprep.subr.bf16.mxu0 %v2144_v4  ;;  %v2152_v12 = vld [vmem:[%s2787_s1 + $0x58] sm:$0xff]   ;;  %v2156_v16 = vld [vmem:[%s2787_s1 + $0x60] sm:$0xff]   ;;  %v2160_v20 = vld [vmem:[%s2787_s1 + $0x68] sm:$0xff]  }
   0x6   :  { %1946 = vmatprep.subr.bf16.mxu1 %v2145_v5  ;;  %v2153_v13 = vld [vmem:[%s2787_s1 + $0xd8] sm:$0xff]   ;;  %v2157_v17 = vld [vmem:[%s2787_s1 + $0xe0] sm:$0xff]   ;;  %v2161_v21 = vld [vmem:[%s2787_s1 + $0xe8] sm:$0xff]  }
   0x7   :  { %v2154_v14 = vld [vmem:[%s2787_s1 + $0x18] sm:$0xff]   ;;  %v2158_v18 = vld [vmem:[%s2787_s1 + $0x20] sm:$0xff]   ;;  %v2162_v22 = vld [vmem:[%s2787_s1 + $0x28] sm:$0xff]  }
   0x8   :  { %1919 = vmatpush3.bf16.msra.mxu0 %v2146_v6  ;;  %v2155_v15 = vld [vmem:[%s2787_s1 + $0x98] sm:$0xff]   ;;  %v2159_v19 = vld [vmem:[%s2787_s1 + $0xa0] sm:$0xff]   ;;  %v2163_v23 = vld [vmem:[%s2787_s1 + $0xa8] sm:$0xff]  }
   0x9   :  { %1947 = vmatpush3.bf16.msra.mxu1 %v2147_v7  ;;  %1920 = vmatprep.subr.bf16.mxu0 %v2148_v8  ;;  %v2164_v24 = vld [vmem:[%s2787_s1 + $0x70] sm:$0xff]   ;;  %v2168_v28 = vld [vmem:[%s2787_s1 + $0x78] sm:$0xff]   ;;  %v18_v32 = vld [vmem:[%s2788_s0] sm:$0xff] }
   0xa   :  { %1948 = vmatprep.subr.bf16.mxu1 %v2149_v9  ;;  %v2165_v25 = vld [vmem:[%s2787_s1 + $0xf0] sm:$0xff]   ;;  %v2169_v29 = vld [vmem:[%s2787_s1 + $0xf8] sm:$0xff]   ;;  %v26_v33 = vld [vmem:[%s2788_s0 + $0x40] sm:$0xff] }
   0xb   :  { %v2166_v26 = vld [vmem:[%s2787_s1 + $0x30] sm:$0xff]   ;;  %v2170_v30 = vld [vmem:[%s2787_s1 + $0x38] sm:$0xff]   ;;  %v19_v34 = vld [vmem:[%s2788_s0 + $0x8] sm:$0xff]  ;;  %v1736_v35 = vcombine.low %v18_v32, %v26_v33  ;;  %v1737_v36 = vcombine.high %v18_v32, %v26_v33 }
   0xc   :  { %1921 = vmatpush3.bf16.msra.mxu0 %v2150_v10  ;;  %v2167_v27 = vld [vmem:[%s2787_s1 + $0xb0] sm:$0xff]   ;;  %v2171_v31 = vld [vmem:[%s2787_s1 + $0xb8] sm:$0xff]   ;;  %v27_v37 = vld [vmem:[%s2788_s0 + $0x48] sm:$0xff] }
   0xd   :  { %1949 = vmatpush3.bf16.msra.mxu1 %v2151_v11  ;;  %1922 = vmatprep.subr.bf16.mxu0 %v2152_v12  ;;  %v1738_v38 = vcombine.low %v19_v34, %v27_v37  ;;  %v1739_v39 = vcombine.high %v19_v34, %v27_v37  ;;  %v2172_v40 = vld [vmem:[%s2787_s1 + $0x140] sm:$0xff]   ;;  %v2176_v44 = vld [vmem:[%s2787_s1 + $0x148] sm:$0xff]   ;;  %v2180_v48 = vld [vmem:[%s2787_s1 + $0x150] sm:$0xff]  }
   0xe   :  { %1950 = vmatprep.subr.bf16.mxu1 %v2153_v13  ;;  %1266 = vmatprep.mubr.bf16.mxu0 %v1737_v36  ;;  %v2173_v41 = vld [vmem:[%s2787_s1 + $0x1c0] sm:$0xff]   ;;  %v2177_v45 = vld [vmem:[%s2787_s1 + $0x1c8] sm:$0xff]   ;;  %v2181_v49 = vld [vmem:[%s2787_s1 + $0x1d0] sm:$0xff]  }
   0xf   :  { %1315 = vmatprep.mubr.bf16.mxu1 %v1739_v39  ;;  %v2174_v42 = vld [vmem:[%s2787_s1 + $0x100] sm:$0xff]   ;;  %v2178_v46 = vld [vmem:[%s2787_s1 + $0x108] sm:$0xff]   ;;  %v2182_v50 = vld [vmem:[%s2787_s1 + $0x110] sm:$0xff]  }
  0x10   :  { %1923 = vmatpush3.bf16.msra.mxu0 %v2154_v14  ;;  %v2175_v43 = vld [vmem:[%s2787_s1 + $0x180] sm:$0xff]   ;;  %v2179_v47 = vld [vmem:[%s2787_s1 + $0x188] sm:$0xff]   ;;  %v2183_v51 = vld [vmem:[%s2787_s1 + $0x190] sm:$0xff]  }
  0x11   :  { %1951 = vmatpush3.bf16.msra.mxu1 %v2155_v15  ;;  %1924 = vmatprep.subr.bf16.mxu0 %v2156_v16  ;;  %v2184_v52 = vld [vmem:[%s2787_s1 + $0x158] sm:$0xff]   ;;  %v2188_v56 = vld [vmem:[%s2787_s1 + $0x160] sm:$0xff]   ;;  %v2192_v60 = vld [vmem:[%s2787_s1 + $0x168] sm:$0xff]  }
  0x12   :  { %1952 = vmatprep.subr.bf16.mxu1 %v2157_v17  ;;  %v2185_v53 = vld [vmem:[%s2787_s1 + $0x1d8] sm:$0xff]   ;;  %v2189_v57 = vld [vmem:[%s2787_s1 + $0x1e0] sm:$0xff]   ;;  %v2193_v61 = vld [vmem:[%s2787_s1 + $0x1e8] sm:$0xff]  }
  0x13   :  { %v2186_v54 = vld [vmem:[%s2787_s1 + $0x118] sm:$0xff]   ;;  %v2190_v58 = vld [vmem:[%s2787_s1 + $0x120] sm:$0xff]   ;;  %v35_v1 = vld [vmem:[%s2788_s0 + $0x88] sm:$0xff] }
  0x14   :  { %1925 = vmatpush3.bf16.msra.mxu0 %v2158_v18  ;;  %v2187_v55 = vld [vmem:[%s2787_s1 + $0x198] sm:$0xff]   ;;  %v2191_v59 = vld [vmem:[%s2787_s1 + $0x1a0] sm:$0xff]   ;;  %v43_v2 = vld [vmem:[%s2788_s0 + $0xc8] sm:$0xff] }
  0x15   :  { %1953 = vmatpush3.bf16.msra.mxu1 %v2159_v19  ;;  %1926 = vmatprep.subr.bf16.mxu0 %v2160_v20  ;;  %v34_v62 = vld [vmem:[%s2788_s0 + $0x80] sm:$0xff]  ;;  %v1755_v4 = vcombine.high %v35_v1, %v43_v2  ;;  %v2194_v5 = vld [vmem:[%s2787_s1 + $0x128] sm:$0xff]   ;;  %v1754_v6 = vcombine.low %v35_v1, %v43_v2  ;;  %v2196_v8 = vld [vmem:[%s2787_s1 + $0x170] sm:$0xff]  }
  0x16   :  { %1954 = vmatprep.subr.bf16.mxu1 %v2161_v21  ;;  %v42_v63 = vld [vmem:[%s2788_s0 + $0xc0] sm:$0xff]  ;;  %v2195_v7 = vld [vmem:[%s2787_s1 + $0x1a8] sm:$0xff]   ;;  %v2197_v9 = vld [vmem:[%s2787_s1 + $0x1f0] sm:$0xff]  }
  0x17   :  { %v1753_v0 = vcombine.high %v34_v62, %v42_v63  ;;  %v1752_v3 = vcombine.low %v34_v62, %v42_v63  ;;  %v2198_v10 = vld [vmem:[%s2787_s1 + $0x130] sm:$0xff]   ;;  %v2200_v12 = vld [vmem:[%s2787_s1 + $0x178] sm:$0xff]   ;;  %v30_v1 = vld [vmem:[%s2788_s0 + $0x60] sm:$0xff] }
  0x18   :  { %1927 = vmatpush3.bf16.msra.mxu0 %v2162_v22  ;;  %v2199_v11 = vld [vmem:[%s2787_s1 + $0x1b0] sm:$0xff]   ;;  %v2201_v13 = vld [vmem:[%s2787_s1 + $0x1f8] sm:$0xff]  }
  0x19   :  { %1955 = vmatpush3.bf16.msra.mxu1 %v2163_v23  ;;  %1928 = vmatprep.subr.bf16.mxu0 %v2164_v24  ;;  %v2202_v14 = vld [vmem:[%s2787_s1 + $0x138] sm:$0xff]   ;;  %v20_v16 = vld [vmem:[%s2788_s0 + $0x10] sm:$0xff]  ;;  %v2204_v24 = vld [vmem:[%s2787_s1 + $0x240] sm:$0xff]  }
  0x1a   :  { %1956 = vmatprep.subr.bf16.mxu1 %v2165_v25  ;;  %v2203_v15 = vld [vmem:[%s2787_s1 + $0x1b8] sm:$0xff]   ;;  %v28_v17 = vld [vmem:[%s2788_s0 + $0x50] sm:$0xff]  ;;  %v2205_v25 = vld [vmem:[%s2787_s1 + $0x2c0] sm:$0xff]  }
  0x1b   :  { %v21_v18 = vld [vmem:[%s2788_s0 + $0x18] sm:$0xff]  ;;  %v1740_v20 = vcombine.low %v20_v16, %v28_v17  ;;  %v1741_v21 = vcombine.high %v20_v16, %v28_v17  ;;  %v36_v32 = vld [vmem:[%s2788_s0 + $0x90] sm:$0xff]  ;;  %v38_v16 = vld [vmem:[%s2788_s0 + $0xa0] sm:$0xff] }
  0x1c   :  { %1929 = vmatpush3.bf16.msra.mxu0 %v2166_v26  ;;  %v29_v19 = vld [vmem:[%s2788_s0 + $0x58] sm:$0xff]  ;;  %v2206_v26 = vld [vmem:[%s2787_s1 + $0x200] sm:$0xff]   ;;  %v44_v33 = vld [vmem:[%s2788_s0 + $0xd0] sm:$0xff] }
  0x1d   :  { %1957 = vmatpush3.bf16.msra.mxu1 %v2167_v27  ;;  %1930 = vmatprep.subr.bf16.mxu0 %v2168_v28  ;;  %v1742_v22 = vcombine.low %v21_v18, %v29_v19  ;;  %v1743_v23 = vcombine.high %v21_v18, %v29_v19  ;;  %v2207_v27 = vld [vmem:[%s2787_s1 + $0x280] sm:$0xff]   ;;  %v2208_v28 = vld [vmem:[%s2787_s1 + $0x248] sm:$0xff]   ;;  %v1757_v34 = vcombine.high %v36_v32, %v44_v33  ;;  %v2212_v36 = vld [vmem:[%s2787_s1 + $0x250] sm:$0xff]  }
  0x1e   :  { %1958 = vmatprep.subr.bf16.mxu1 %v2169_v29  ;;  %v2209_v29 = vld [vmem:[%s2787_s1 + $0x2c8] sm:$0xff]   ;;  %v2213_v37 = vld [vmem:[%s2787_s1 + $0x2d0] sm:$0xff]   ;;  %v45_v39 = vld [vmem:[%s2788_s0 + $0xd8] sm:$0xff] }
  0x1f   :  { %v2234_v62 = vld [vmem:[%s2787_s1 + $0x238] sm:$0xff]   ;;  %v46_v17 = vld [vmem:[%s2788_s0 + $0xe0] sm:$0xff] }
  0x20   :  { %1931 = vmatpush3.bf16.msra.mxu0 %v2170_v30  ;;  %v2210_v30 = vld [vmem:[%s2787_s1 + $0x208] sm:$0xff]   ;;  %v2235_v63 = vld [vmem:[%s2787_s1 + $0x2b8] sm:$0xff]   ;;  %v1761_v18 = vcombine.high %v38_v16, %v46_v17  ;;  %v1760_v19 = vcombine.low %v38_v16, %v46_v17 }
  0x21   :  { %1959 = vmatpush3.bf16.msra.mxu1 %v2171_v31  ;;  %1972 = vmatprep.subr.bf16.mxu0 %v2172_v40  ;;  %v2211_v31 = vld [vmem:[%s2787_s1 + $0x288] sm:$0xff]  }
  0x22   :  { %2000 = vmatprep.subr.bf16.mxu1 %v2173_v41  ;;  %v2214_v41 = vld [vmem:[%s2787_s1 + $0x210] sm:$0xff]  }
  0x23   :  { %1267 = vmatmul.mubr.bf16.vlgmr.msra.gmra.mrb[0].mxu0 %v1736_v35  ;;  %v1756_v35 = vcombine.low %v36_v32, %v44_v33  ;;  %v2252_v32 = vld [vmem:[%s2787_s1 + $0x360] sm:$0xff]  }
  0x24   :  { %1316 = vmatmul.mubr.bf16.vlgmr.msra.gmra.mrb[0].mxu1 %v1738_v38  ;;  %1973 = vmatpush3.bf16.msra.mxu0 %v2174_v42  ;;  %v37_v38 = vld [vmem:[%s2788_s0 + $0x98] sm:$0xff]  ;;  %v2253_v33 = vld [vmem:[%s2787_s1 + $0x3e0] sm:$0xff]  }
  0x25   :  { %2001 = vmatpush3.bf16.msra.mxu1 %v2175_v43  ;;  %1974 = vmatprep.subr.bf16.mxu0 %v2176_v44  ;;  %v1759_v40 = vcombine.high %v37_v38, %v45_v39  ;;  %v1758_v42 = vcombine.low %v37_v38, %v45_v39  ;;  %v2215_v43 = vld [vmem:[%s2787_s1 + $0x290] sm:$0xff]   ;;  %v2216_v44 = vld [vmem:[%s2787_s1 + $0x258] sm:$0xff]   ;;  %v2258_v38 = vld [vmem:[%s2787_s1 + $0x328] sm:$0xff]  }
  0x26   :  { %2002 = vmatprep.subr.bf16.mxu1 %v2177_v45  ;;  %1274 = vmatprep.mubr.bf16.mxu0 %v1753_v0  ;;  %v2217_v45 = vld [vmem:[%s2787_s1 + $0x2d8] sm:$0xff]   ;;  %v22_v0 = vld [vmem:[%s2788_s0 + $0x20] sm:$0xff]  ;;  %v2259_v39 = vld [vmem:[%s2787_s1 + $0x3a8] sm:$0xff]  }
  0x27   :  { %1323 = vmatprep.mubr.bf16.mxu1 %v1755_v4  ;;  %v1744_v2 = vcombine.low %v22_v0, %v30_v1  ;;  %v23_v4 = vld [vmem:[%s2788_s0 + $0x28] sm:$0xff] }
  0x28   :  { %1975 = vmatpush3.bf16.msra.mxu0 %v2178_v46  ;;  %v2218_v46 = vld [vmem:[%s2787_s1 + $0x218] sm:$0xff]  }
  0x29   :  { %2003 = vmatpush3.bf16.msra.mxu1 %v2179_v47  ;;  %1976 = vmatprep.subr.bf16.mxu0 %v2180_v48  ;;  %v2219_v47 = vld [vmem:[%s2787_s1 + $0x298] sm:$0xff]   ;;  %v2220_v48 = vld [vmem:[%s2787_s1 + $0x260] sm:$0xff]  }
  0x2a   :  { %2004 = vmatprep.subr.bf16.mxu1 %v2181_v49  ;;  %v2221_v49 = vld [vmem:[%s2787_s1 + $0x2e0] sm:$0xff]  }
  0x2b   :  { %1275 = vmatmul.mubr.bf16.gmra.mrb[4].mxu0 %v1752_v3  ;;  %v1745_v3 = vcombine.high %v22_v0, %v30_v1 }
  0x2c   :  { %1977 = vmatpush3.bf16.msra.mxu0 %v2182_v50  ;;  %1324 = vmatmul.mubr.bf16.gmra.mrb[4].mxu1 %v1754_v6  ;;  %v2222_v50 = vld [vmem:[%s2787_s1 + $0x220] sm:$0xff]  }
  0x2d   :  { %2005 = vmatpush3.bf16.msra.mxu1 %v2183_v51  ;;  %1978 = vmatprep.subr.bf16.mxu0 %v2184_v52  ;;  %v2223_v51 = vld [vmem:[%s2787_s1 + $0x2a0] sm:$0xff]   ;;  %v2224_v52 = vld [vmem:[%s2787_s1 + $0x268] sm:$0xff]  }
  0x2e   :  { %2006 = vmatprep.subr.bf16.mxu1 %v2185_v53  ;;  %1364 = vmatprep.mubr.bf16.mxu0 %v1741_v21  ;;  %v2225_v53 = vld [vmem:[%s2787_s1 + $0x2e8] sm:$0xff]   ;;  %v2245_v21 = vld [vmem:[%s2787_s1 + $0x3d0] sm:$0xff]  }
  0x2f   :  { %1413 = vmatprep.mubr.bf16.mxu1 %v1743_v23  ;;  %v47_v23 = vld [vmem:[%s2788_s0 + $0xe8] sm:$0xff] }
  0x30   :  { %1979 = vmatpush3.bf16.msra.mxu0 %v2186_v54  ;;  %v2226_v54 = vld [vmem:[%s2787_s1 + $0x228] sm:$0xff]  }
  0x31   :  { %2007 = vmatpush3.bf16.msra.mxu1 %v2187_v55  ;;  %1980 = vmatprep.subr.bf16.mxu0 %v2188_v56  ;;  %v2227_v55 = vld [vmem:[%s2787_s1 + $0x2a8] sm:$0xff]   ;;  %v2228_v56 = vld [vmem:[%s2787_s1 + $0x270] sm:$0xff]  }
  0x32   :  { %2008 = vmatprep.subr.bf16.mxu1 %v2189_v57  ;;  %v2229_v57 = vld [vmem:[%s2787_s1 + $0x2f0] sm:$0xff]  }
  0x34   :  { %1981 = vmatpush3.bf16.msra.mxu0 %v2190_v58  ;;  %v2230_v58 = vld [vmem:[%s2787_s1 + $0x230] sm:$0xff]  }
  0x35   :  { %2009 = vmatpush3.bf16.msra.mxu1 %v2191_v59  ;;  %1982 = vmatprep.subr.bf16.mxu0 %v2192_v60  ;;  %v2231_v59 = vld [vmem:[%s2787_s1 + $0x2b0] sm:$0xff]   ;;  %v2232_v60 = vld [vmem:[%s2787_s1 + $0x278] sm:$0xff]  }
  0x36   :  { %2010 = vmatprep.subr.bf16.mxu1 %v2193_v61  ;;  %v2233_v61 = vld [vmem:[%s2787_s1 + $0x2f8] sm:$0xff]  }
  0x38   :  { %1983 = vmatpush3.bf16.msra.mxu0 %v2194_v5  ;;  %v31_v5 = vld [vmem:[%s2788_s0 + $0x68] sm:$0xff] }
  0x39   :  { %2011 = vmatpush3.bf16.msra.mxu1 %v2195_v7  ;;  %1984 = vmatprep.subr.bf16.mxu0 %v2196_v8  ;;  %v1746_v6 = vcombine.low %v23_v4, %v31_v5  ;;  %v1747_v7 = vcombine.high %v23_v4, %v31_v5  ;;  %v2236_v8 = vld [vmem:[%s2787_s1 + $0x340] sm:$0xff]  }
  0x3a   :  { %2012 = vmatprep.subr.bf16.mxu1 %v2197_v9  ;;  %v2237_v9 = vld [vmem:[%s2787_s1 + $0x3c0] sm:$0xff]  }
  0x3c   :  { %1985 = vmatpush3.bf16.msra.mxu0 %v2198_v10  ;;  %v2238_v10 = vld [vmem:[%s2787_s1 + $0x300] sm:$0xff]  }
  0x3d   :  { %2013 = vmatpush3.bf16.msra.mxu1 %v2199_v11  ;;  %1986 = vmatprep.subr.bf16.mxu0 %v2200_v12  ;;  %v2239_v11 = vld [vmem:[%s2787_s1 + $0x380] sm:$0xff]   ;;  %v2240_v12 = vld [vmem:[%s2787_s1 + $0x348] sm:$0xff]  }
  0x3e   :  { %2014 = vmatprep.subr.bf16.mxu1 %v2201_v13  ;;  %v2241_v13 = vld [vmem:[%s2787_s1 + $0x3c8] sm:$0xff]  }
  0x40   :  { %1987 = vmatpush3.bf16.msra.mxu0 %v2202_v14  ;;  %v2242_v14 = vld [vmem:[%s2787_s1 + $0x308] sm:$0xff]  }
  0x41   :  { %2015 = vmatpush3.bf16.msra.mxu1 %v2203_v15  ;;  %2028 = vmatprep.subr.bf16.mxu0 %v2204_v24  ;;  %v2243_v15 = vld [vmem:[%s2787_s1 + $0x388] sm:$0xff]  }
  0x42   :  { %2056 = vmatprep.subr.bf16.mxu1 %v2205_v25  ;;  %v2246_v25 = vld [vmem:[%s2787_s1 + $0x310] sm:$0xff]  }
  0x43   :  { %1365 = vmatmul.mubr.bf16.vlgmr.msra.gmra.mrb[8].mxu0 %v1740_v20  ;;  %v2244_v20 = vld [vmem:[%s2787_s1 + $0x350] sm:$0xff]  }
  0x44   :  { %1414 = vmatmul.mubr.bf16.vlgmr.msra.gmra.mrb[8].mxu1 %v1742_v22  ;;  %2029 = vmatpush3.bf16.msra.mxu0 %v2206_v26  ;;  %v39_v22 = vld [vmem:[%s2788_s0 + $0xa8] sm:$0xff] }
  0x45   :  { %2057 = vmatpush3.bf16.msra.mxu1 %v2207_v27  ;;  %2030 = vmatprep.subr.bf16.mxu0 %v2208_v28  ;;  %v1763_v24 = vcombine.high %v39_v22, %v47_v23  ;;  %v1762_v26 = vcombine.low %v39_v22, %v47_v23  ;;  %v2247_v27 = vld [vmem:[%s2787_s1 + $0x390] sm:$0xff]   ;;  %v2248_v28 = vld [vmem:[%s2787_s1 + $0x358] sm:$0xff]  }
  0x46   :  { %2058 = vmatprep.subr.bf16.mxu1 %v2209_v29  ;;  %1372 = vmatprep.mubr.bf16.mxu0 %v1757_v34  ;;  %v2249_v29 = vld [vmem:[%s2787_s1 + $0x3d8] sm:$0xff]   ;;  %v2254_v34 = vld [vmem:[%s2787_s1 + $0x320] sm:$0xff]  }
  0x47   :  { %1421 = vmatprep.mubr.bf16.mxu1 %v1759_v40  ;;  %v2260_v40 = vld [vmem:[%s2787_s1 + $0x370] sm:$0xff]  }
  0x48   :  { %2031 = vmatpush3.bf16.msra.mxu0 %v2210_v30  ;;  %v2250_v30 = vld [vmem:[%s2787_s1 + $0x318] sm:$0xff]  }
  0x49   :  { %2059 = vmatpush3.bf16.msra.mxu1 %v2211_v31  ;;  %2032 = vmatprep.subr.bf16.mxu0 %v2212_v36  ;;  %v2251_v31 = vld [vmem:[%s2787_s1 + $0x398] sm:$0xff]   ;;  %v2256_v36 = vld [vmem:[%s2787_s1 + $0x368] sm:$0xff]  }
  0x4a   :  { %2060 = vmatprep.subr.bf16.mxu1 %v2213_v37  ;;  %v2257_v37 = vld [vmem:[%s2787_s1 + $0x3e8] sm:$0xff]  }
  0x4b   :  { %1373 = vmatmul.mubr.bf16.gmra.mrb[12].mxu0 %v1756_v35  ;;  %v2255_v35 = vld [vmem:[%s2787_s1 + $0x3a0] sm:$0xff]  }
  0x4c   :  { %2033 = vmatpush3.bf16.msra.mxu0 %v2214_v41  ;;  %1422 = vmatmul.mubr.bf16.gmra.mrb[12].mxu1 %v1758_v42  ;;  %v2261_v41 = vld [vmem:[%s2787_s1 + $0x3f0] sm:$0xff]  }
  0x4d   :  { %2061 = vmatpush3.bf16.msra.mxu1 %v2215_v43  ;;  %2034 = vmatprep.subr.bf16.mxu0 %v2216_v44  ;;  %v2262_v42 = vld [vmem:[%s2787_s1 + $0x330] sm:$0xff]   ;;  %v2264_v44 = vld [vmem:[%s2787_s1 + $0x378] sm:$0xff]  }
  0x4e   :  { %2062 = vmatprep.subr.bf16.mxu1 %v2217_v45  ;;  %1462 = vmatprep.mubr.bf16.mxu0 %v1745_v3  ;;  %v2263_v43 = vld [vmem:[%s2787_s1 + $0x3b0] sm:$0xff]   ;;  %v2265_v45 = vld [vmem:[%s2787_s1 + $0x3f8] sm:$0xff]  }
  0x4f   :  { %1511 = vmatprep.mubr.bf16.mxu1 %v1747_v7 }
  0x50   :  { %2035 = vmatpush3.bf16.msra.mxu0 %v2218_v46  ;;  %v2266_v46 = vld [vmem:[%s2787_s1 + $0x338] sm:$0xff]  }
  0x51   :  { %2063 = vmatpush3.bf16.msra.mxu1 %v2219_v47  ;;  %2036 = vmatprep.subr.bf16.mxu0 %v2220_v48  ;;  %v2267_v47 = vld [vmem:[%s2787_s1 + $0x3b8] sm:$0xff]   ;;  %v24_v48 = vld [vmem:[%s2788_s0 + $0x30] sm:$0xff] }
  0x52   :  { %2064 = vmatprep.subr.bf16.mxu1 %v2221_v49  ;;  %v32_v49 = vld [vmem:[%s2788_s0 + $0x70] sm:$0xff] }
  0x54   :  { %2037 = vmatpush3.bf16.msra.mxu0 %v2222_v50  ;;  %v25_v50 = vld [vmem:[%s2788_s0 + $0x38] sm:$0xff] }
  0x55   :  { %2065 = vmatpush3.bf16.msra.mxu1 %v2223_v51  ;;  %2038 = vmatprep.subr.bf16.mxu0 %v2224_v52  ;;  %v1748_v51 = vcombine.low %v24_v48, %v32_v49  ;;  %v1749_v52 = vcombine.high %v24_v48, %v32_v49 }
  0x56   :  { %2066 = vmatprep.subr.bf16.mxu1 %v2225_v53  ;;  %v33_v53 = vld [vmem:[%s2788_s0 + $0x78] sm:$0xff] }
  0x58   :  { %2039 = vmatpush3.bf16.msra.mxu0 %v2226_v54  ;;  %v40_v54 = vld [vmem:[%s2788_s0 + $0xb0] sm:$0xff] }
  0x59   :  { %2067 = vmatpush3.bf16.msra.mxu1 %v2227_v55  ;;  %2040 = vmatprep.subr.bf16.mxu0 %v2228_v56  ;;  %v48_v55 = vld [vmem:[%s2788_s0 + $0xf0] sm:$0xff]  ;;  %v1750_v56 = vcombine.low %v25_v50, %v33_v53 }
  0x5a   :  { %2068 = vmatprep.subr.bf16.mxu1 %v2229_v57  ;;  %v1751_v57 = vcombine.high %v25_v50, %v33_v53 }
  0x5c   :  { %2041 = vmatpush3.bf16.msra.mxu0 %v2230_v58  ;;  %v1765_v58 = vcombine.high %v40_v54, %v48_v55 }
  0x5d   :  { %2069 = vmatpush3.bf16.msra.mxu1 %v2231_v59  ;;  %2042 = vmatprep.subr.bf16.mxu0 %v2232_v60  ;;  %v41_v59 = vld [vmem:[%s2788_s0 + $0xb8] sm:$0xff] }
  0x5e   :  { %2070 = vmatprep.subr.bf16.mxu1 %v2233_v61  ;;  %v49_v60 = vld [vmem:[%s2788_s0 + $0xf8] sm:$0xff] }
  0x5f   :  { %v1767_v61 = vcombine.high %v41_v59, %v49_v60 }
  0x60   :  { %2043 = vmatpush3.bf16.msra.mxu0 %v2234_v62  ;;  %v1764_v62 = vcombine.low %v40_v54, %v48_v55 }
  0x61   :  { %2071 = vmatpush3.bf16.msra.mxu1 %v2235_v63  ;;  %2084 = vmatprep.subr.bf16.mxu0 %v2236_v8  ;;  %v1766_v63 = vcombine.low %v41_v59, %v49_v60 }
  0x62   :  { %2112 = vmatprep.subr.bf16.mxu1 %v2237_v9 }
  0x63   :  { %1463 = vmatmul.mubr.bf16.vlgmr.msra.gmra.mrb[16].mxu0 %v1744_v2 }
  0x64   :  { %1512 = vmatmul.mubr.bf16.vlgmr.msra.gmra.mrb[16].mxu1 %v1746_v6  ;;  %2085 = vmatpush3.bf16.msra.mxu0 %v2238_v10 }
  0x65   :  { %2113 = vmatpush3.bf16.msra.mxu1 %v2239_v11  ;;  %2086 = vmatprep.subr.bf16.mxu0 %v2240_v12 }
  0x66   :  { %2114 = vmatprep.subr.bf16.mxu1 %v2241_v13  ;;  %1470 = vmatprep.mubr.bf16.mxu0 %v1761_v18 }
  0x67   :  { %1519 = vmatprep.mubr.bf16.mxu1 %v1763_v24 }
  0x68   :  { %2087 = vmatpush3.bf16.msra.mxu0 %v2242_v14 }
  0x69   :  { %2115 = vmatpush3.bf16.msra.mxu1 %v2243_v15  ;;  %2088 = vmatprep.subr.bf16.mxu0 %v2244_v20 }
  0x6a   :  { %2116 = vmatprep.subr.bf16.mxu1 %v2245_v21 }
  0x6b   :  { %1471 = vmatmul.mubr.bf16.gmra.mrb[20].mxu0 %v1760_v19 }
  0x6c   :  { %2089 = vmatpush3.bf16.msra.mxu0 %v2246_v25  ;;  %1520 = vmatmul.mubr.bf16.gmra.mrb[20].mxu1 %v1762_v26 }
  0x6d   :  { %2117 = vmatpush3.bf16.msra.mxu1 %v2247_v27  ;;  %2090 = vmatprep.subr.bf16.mxu0 %v2248_v28 }
  0x6e   :  { %2118 = vmatprep.subr.bf16.mxu1 %v2249_v29  ;;  %1560 = vmatprep.mubr.bf16.mxu0 %v1749_v52 }
  0x6f   :  { %1609 = vmatprep.mubr.bf16.mxu1 %v1751_v57 }
  0x70   :  { %2091 = vmatpush3.bf16.msra.mxu0 %v2250_v30 }
  0x71   :  { %2119 = vmatpush3.bf16.msra.mxu1 %v2251_v31  ;;  %2092 = vmatprep.subr.bf16.mxu0 %v2252_v32 }
  0x72   :  { %2120 = vmatprep.subr.bf16.mxu1 %v2253_v33 }
  0x74   :  { %2093 = vmatpush3.bf16.msra.mxu0 %v2254_v34 }
  0x75   :  { %2121 = vmatpush3.bf16.msra.mxu1 %v2255_v35  ;;  %2094 = vmatprep.subr.bf16.mxu0 %v2256_v36 }
  0x76   :  { %2122 = vmatprep.subr.bf16.mxu1 %v2257_v37 }
  0x78   :  { %2095 = vmatpush3.bf16.msra.mxu0 %v2258_v38 }
  0x79   :  { %2123 = vmatpush3.bf16.msra.mxu1 %v2259_v39  ;;  %2096 = vmatprep.subr.bf16.mxu0 %v2260_v40 }
  0x7a   :  { %2124 = vmatprep.subr.bf16.mxu1 %v2261_v41 }
  0x7c   :  { %2097 = vmatpush3.bf16.msra.mxu0 %v2262_v42 }
  0x7d   :  { %2125 = vmatpush3.bf16.msra.mxu1 %v2263_v43  ;;  %2098 = vmatprep.subr.bf16.mxu0 %v2264_v44 }
  0x7e   :  { %2126 = vmatprep.subr.bf16.mxu1 %v2265_v45 }
  0x80   :  { %2099 = vmatpush3.bf16.msra.mxu0 %v2266_v46 }
  0x81   :  { %2127 = vmatpush3.bf16.msra.mxu1 %v2267_v47 }
  0x83   :  { %1561 = vmatmul.mubr.bf16.vlgmr.msra.gmra.mrb[24].mxu0 %v1748_v51 }
  0x84   :  { %1610 = vmatmul.mubr.bf16.vlgmr.msra.gmra.mrb[24].mxu1 %v1750_v56  ;;  %1568 = vmatprep.mubr.bf16.mxu0 %v1765_v58 }
  0x85   :  { %1617 = vmatprep.mubr.bf16.mxu1 %v1767_v61 }
  0x8b   :  { %1569 = vmatmul.mubr.bf16.gmra.mrb[28].mxu0 %v1764_v62 }
  0x8c   :  { %1618 = vmatmul.mubr.bf16.gmra.mrb[28].mxu1 %v1766_v63 }
  0xf6   :  { %v1932_v0 = vpop.f32.mrb[0].mxu0 }
  0xf7   :  { %v1960_v1 = vpop.f32.mrb[0].mxu1  ;;  %v1933_v2 = vpop.f32.mrb[1].mxu0 }
  0xf8   :  { %v1934_v3 = vadd.f32 %v1933_v2, %v1932_v0  ;;  %v1961_v4 = vpop.f32.mrb[1].mxu1  ;;  %v1935_v5 = vpop.f32.mrb[2].mxu0 }
  0xf9   :  { %v1962_v6 = vadd.f32 %v1961_v4, %v1960_v1  ;;  %v1963_v7 = vpop.f32.mrb[2].mxu1  ;;  %v1936_v8 = vpop.f32.mrb[3].mxu0 }
  0xfa   :  { %v1937_v9 = vadd.f32 %v1936_v8, %v1935_v5  ;;  %v1964_v10 = vpop.f32.mrb[3].mxu1 }
  0xfb   :  { %v1318_v11 = vadd.f32 %v1962_v6, %v1934_v3  ;;  %v1965_v12 = vadd.f32 %v1964_v10, %v1963_v7 }
  0xfd   :  { %v1321_v13 = vadd.f32 %v1965_v12, %v1937_v9 }
  0xfe   :  { %v1938_v14 = vpop.f32.mrb[4].mxu0 }
  0xff   :  { %v1966_v15 = vpop.f32.mrb[4].mxu1  ;;  %v1939_v16 = vpop.f32.mrb[5].mxu0 }
 0x100   :  { %v1940_v17 = vadd.f32 %v1939_v16, %v1938_v14  ;;  %v1967_v18 = vpop.f32.mrb[5].mxu1  ;;  %v1941_v19 = vpop.f32.mrb[6].mxu0 }
 0x101   :  { %v1968_v20 = vadd.f32 %v1967_v18, %v1966_v15  ;;  %v1969_v21 = vpop.f32.mrb[6].mxu1  ;;  %v1942_v22 = vpop.f32.mrb[7].mxu0 }
 0x102   :  { %v1943_v23 = vadd.f32 %v1942_v22, %v1941_v19  ;;  %v1970_v24 = vpop.f32.mrb[7].mxu1 }
 0x103   :  { %v1326_v25 = vadd.f32 %v1968_v20, %v1940_v17  ;;  %v1971_v26 = vadd.f32 %v1970_v24, %v1969_v21 }
 0x105   :  { %v1329_v27 = vadd.f32 %v1971_v26, %v1943_v23 }
 0x116   :  { %v1988_v28 = vpop.f32.mrb[8].mxu0 }
 0x117   :  { %v2016_v29 = vpop.f32.mrb[8].mxu1  ;;  %v1989_v30 = vpop.f32.mrb[9].mxu0 }
 0x118   :  { %v2017_v31 = vpop.f32.mrb[9].mxu1  ;;  %v1990_v32 = vadd.f32 %v1989_v30, %v1988_v28  ;;  %v1991_v34 = vpop.f32.mrb[10].mxu0 }
 0x119   :  { %v2018_v33 = vadd.f32 %v2017_v31, %v2016_v29  ;;  %v2019_v35 = vpop.f32.mrb[10].mxu1  ;;  %v1992_v36 = vpop.f32.mrb[11].mxu0 }
 0x11a   :  { %v2020_v37 = vpop.f32.mrb[11].mxu1  ;;  %v1367_v38 = vadd.f32 %v1990_v32, %v1318_v11  ;;  %v1993_v39 = vadd.f32 %v1992_v36, %v1991_v34 }
 0x11b   :  { %v2021_v40 = vadd.f32 %v2020_v37, %v2019_v35 }
 0x11c   :  { %v1416_v41 = vadd.f32 %v2018_v33, %v1367_v38  ;;  %v1370_v42 = vadd.f32 %v1993_v39, %v1321_v13 }
 0x11e   :  { %v1419_v43 = vadd.f32 %v2021_v40, %v1370_v42  ;;  %v1994_v44 = vpop.f32.mrb[12].mxu0 }
 0x11f   :  { %v1995_v45 = vpop.f32.mrb[13].mxu0  ;;  %v2022_v50 = vpop.f32.mrb[12].mxu1 }
 0x120   :  { %v1996_v46 = vadd.f32 %v1995_v45, %v1994_v44  ;;  %v1997_v47 = vpop.f32.mrb[14].mxu0  ;;  %v2023_v52 = vpop.f32.mrb[13].mxu1 }
 0x121   :  { %v1998_v48 = vpop.f32.mrb[15].mxu0  ;;  %v2024_v54 = vadd.f32 %v2023_v52, %v2022_v50  ;;  %v2025_v55 = vpop.f32.mrb[14].mxu1 }
 0x122   :  { %v1375_v49 = vadd.f32 %v1996_v46, %v1326_v25  ;;  %v1999_v51 = vadd.f32 %v1998_v48, %v1997_v47  ;;  %v2026_v56 = vpop.f32.mrb[15].mxu1 }
 0x123   :  { %v2027_v58 = vadd.f32 %v2026_v56, %v2025_v55 }
 0x124   :  { %v1378_v53 = vadd.f32 %v1999_v51, %v1329_v27  ;;  %v1424_v57 = vadd.f32 %v2024_v54, %v1375_v49 }
 0x126   :  { %v1427_v59 = vadd.f32 %v2027_v58, %v1378_v53 }
 0x136   :  { %v2044_v60 = vpop.f32.mrb[16].mxu0 }
 0x137   :  { %v2072_v61 = vpop.f32.mrb[16].mxu1  ;;  %v2045_v62 = vpop.f32.mrb[17].mxu0 }
 0x138   :  { %v2046_v63 = vadd.f32 %v2045_v62, %v2044_v60  ;;  %v2073_v0 = vpop.f32.mrb[17].mxu1  ;;  %v2047_v1 = vpop.f32.mrb[18].mxu0 }
 0x139   :  { %v2074_v2 = vadd.f32 %v2073_v0, %v2072_v61  ;;  %v2075_v3 = vpop.f32.mrb[18].mxu1  ;;  %v2048_v4 = vpop.f32.mrb[19].mxu0 }
 0x13a   :  { %v1465_v5 = vadd.f32 %v2046_v63, %v1416_v41  ;;  %v2049_v6 = vadd.f32 %v2048_v4, %v2047_v1  ;;  %v2076_v7 = vpop.f32.mrb[19].mxu1 }
 0x13b   :  { %v2077_v8 = vadd.f32 %v2076_v7, %v2075_v3 }
 0x13c   :  { %v1514_v9 = vadd.f32 %v2074_v2, %v1465_v5  ;;  %v1468_v10 = vadd.f32 %v2049_v6, %v1419_v43 }
 0x13e   :  { %v1517_v11 = vadd.f32 %v2077_v8, %v1468_v10  ;;  %v2050_v12 = vpop.f32.mrb[20].mxu0 }
 0x13f   :  { %v2051_v13 = vpop.f32.mrb[21].mxu0  ;;  %v2078_v16 = vpop.f32.mrb[20].mxu1 }
 0x140   :  { %v2052_v14 = vadd.f32 %v2051_v13, %v2050_v12  ;;  %v2053_v15 = vpop.f32.mrb[22].mxu0  ;;  %v2079_v20 = vpop.f32.mrb[21].mxu1 }
 0x141   :  { %v2054_v17 = vpop.f32.mrb[23].mxu0  ;;  %v2080_v21 = vadd.f32 %v2079_v20, %v2078_v16  ;;  %v2081_v22 = vpop.f32.mrb[22].mxu1 }
 0x142   :  { %v1473_v18 = vadd.f32 %v2052_v14, %v1424_v57  ;;  %v2055_v19 = vadd.f32 %v2054_v17, %v2053_v15  ;;  %v2082_v24 = vpop.f32.mrb[23].mxu1 }
 0x143   :  { %v2083_v26 = vadd.f32 %v2082_v24, %v2081_v22 }
 0x144   :  { %v1476_v23 = vadd.f32 %v2055_v19, %v1427_v59  ;;  %v1522_v25 = vadd.f32 %v2080_v21, %v1473_v18 }
 0x146   :  { %v1525_v27 = vadd.f32 %v2083_v26, %v1476_v23 }
 0x156   :  { %v2100_v28 = vpop.f32.mrb[24].mxu0 }
 0x157   :  { %v2128_v29 = vpop.f32.mrb[24].mxu1  ;;  %v2101_v30 = vpop.f32.mrb[25].mxu0 }
 0x158   :  { %v2102_v31 = vadd.f32 %v2101_v30, %v2100_v28  ;;  %v2129_v32 = vpop.f32.mrb[25].mxu1  ;;  %v2103_v33 = vpop.f32.mrb[26].mxu0 }
 0x159   :  { %v2130_v34 = vadd.f32 %v2129_v32, %v2128_v29  ;;  %v2131_v35 = vpop.f32.mrb[26].mxu1  ;;  %v2104_v36 = vpop.f32.mrb[27].mxu0  ;;  %v1896_v32 = vld [vmem:[%s2790_s3] ss:$0 sm:$0xff] }
 0x15a   :  { %v1563_v37 = vadd.f32 %v2102_v31, %v1514_v9  ;;  %v2105_v38 = vadd.f32 %v2104_v36, %v2103_v33  ;;  %v2132_v39 = vpop.f32.mrb[27].mxu1 }
 0x15b   :  { %v2133_v40 = vadd.f32 %v2132_v39, %v2131_v35 }
 0x15c   :  { %v1612_v41 = vadd.f32 %v2130_v34, %v1563_v37  ;;  %v1566_v42 = vadd.f32 %v2105_v38, %v1517_v11 }
 0x15e   :  { %v1615_v43 = vadd.f32 %v2133_v40, %v1566_v42  ;;  %v2106_v44 = vpop.f32.mrb[28].mxu0 }
 0x15f   :  { %v2134_v45 = vpop.f32.mrb[28].mxu1  ;;  %v2107_v46 = vpop.f32.mrb[29].mxu0 }
 0x160   :  { %v1643_v47 = vadd.f32 %v1615_v43, %v1612_v41  ;;  %v2108_v48 = vadd.f32 %v2107_v46, %v2106_v44  ;;  %v2135_v49 = vpop.f32.mrb[29].mxu1  ;;  %v2109_v50 = vpop.f32.mrb[30].mxu0 }
 0x161   :  { %v2136_v51 = vadd.f32 %v2135_v49, %v2134_v45  ;;  %v2137_v52 = vpop.f32.mrb[30].mxu1  ;;  %v2110_v53 = vpop.f32.mrb[31].mxu0 }
 0x162   :  { %v1571_v54 = vadd.f32 %v2108_v48, %v1522_v25  ;;  %v2111_v55 = vadd.f32 %v2110_v53, %v2109_v50  ;;  %v2138_v56 = vpop.f32.mrb[31].mxu1  ;;  %v1680_v25 = vlaneseq }
 0x163   :  { %v2139_v57 = vadd.f32 %v2138_v56, %v2137_v52 }
 0x164   :  { %v1620_v58 = vadd.f32 %v2136_v51, %v1571_v54  ;;  %v1574_v59 = vadd.f32 %v2111_v55, %v1525_v27  ;;  %v1681_v26 = vshrl.u32 %v1680_v25, 7  ;;  %v1675_v27 = vld [vmem:[%s2789_s2] sm:$0x1] }
 0x166   :  { %v1644_v60 = vadd.f32 %v1643_v47, %v1620_v58  ;;  %v1623_v61 = vadd.f32 %v2139_v57, %v1574_v59  ;;  %v1682_v28 = vsub.s32 0, %v1681_v26 }
 0x168   :  { %v1645_v62 = vadd.f32 %v1644_v60, %v1623_v61 }
 0x16a   :  { %v1646_v63 = vrot.slane %v1645_v62, 4 }
 0x16c   :  { %v1647_v0 = vadd.f32 %v1646_v63, %v1645_v62 }
 0x16e   :  { %v1648_v1 = vrot.slane %v1647_v0, 2 }
 0x170   :  { %v1649_v2 = vadd.f32 %v1648_v1, %v1647_v0 }
 0x172   :  { %v1650_v3 = vrot.slane %v1649_v2, 1 }
 0x174   :  { %v1651_v4 = vadd.f32 %v1650_v3, %v1649_v2 }
 0x176   :  { %v1652_v5 = vmul.f32 0.03125, %v1651_v4 }
 0x178   :  { %v1653_v6 = vsub.f32 %v1612_v41, %v1652_v5  ;;  %v1654_v7 = vsub.f32 %v1615_v43, %v1652_v5  ;;  %v1655_v8 = vsub.f32 %v1620_v58, %v1652_v5  ;;  %v1656_v9 = vsub.f32 %v1623_v61, %v1652_v5 }
 0x17a   :  { %v1661_v10 = vmul.f32 %v1653_v6, %v1653_v6  ;;  %v1662_v11 = vmul.f32 %v1654_v7, %v1654_v7  ;;  %v1663_v12 = vmul.f32 %v1655_v8, %v1655_v8  ;;  %v1664_v14 = vmul.f32 %v1656_v9, %v1656_v9 }
 0x17c   :  { %v1665_v13 = vadd.f32 %v1662_v11, %v1661_v10 }
 0x17e   :  { %v1666_v15 = vadd.f32 %v1665_v13, %v1663_v12 }
 0x180   :  { %v1667_v16 = vadd.f32 %v1666_v15, %v1664_v14 }
 0x182   :  { %v1668_v17 = vrot.slane %v1667_v16, 4 }
 0x184   :  { %v1669_v18 = vadd.f32 %v1668_v17, %v1667_v16 }
 0x186   :  { %v1670_v19 = vrot.slane %v1669_v18, 2 }
 0x188   :  { %v1671_v20 = vadd.f32 %v1670_v19, %v1669_v18 }
 0x18a   :  { %v1672_v21 = vrot.slane %v1671_v20, 1 }
 0x18c   :  { %v1673_v22 = vadd.f32 %v1672_v21, %v1671_v20 }
 0x18e   :  { %v1674_v23 = vmul.f32 0.03125, %v1673_v22 }
 0x190   :  { %v1676_v24 = vadd.f32 1e-05, %v1674_v23 }
 0x192   :  { %2268 = vrsqrt.f32 %v1676_v24 }
 0x19c   :  { %v2269_v29 = vpop.eup %2268 }
 0x19d   :  { %v1678_v30 = vmul.f32 %v2269_v29, %v1675_v27 }
 0x19f   :  { %v1683_v31 = vrot.slane %v1678_v30, %v1682_v28 }
 0x1a1   :  { %v1685_v33 = vmul.f32 %v1683_v31, %v1653_v6  ;;  %v1686_v34 = vmul.f32 %v1683_v31, %v1654_v7  ;;  %v1687_v35 = vmul.f32 %v1683_v31, %v1655_v8  ;;  %v1688_v36 = vmul.f32 %v1683_v31, %v1656_v9 }
 0x1a3   :  { %v1696_v37 = vadd.f32 %v1896_v32, %v1685_v33  ;;  %v1697_v38 = vadd.f32 %v1896_v32, %v1686_v34  ;;  %v1698_v39 = vadd.f32 %v1896_v32, %v1687_v35  ;;  %v1699_v40 = vadd.f32 %v1896_v32, %v1688_v36 }
 0x1a5   :  { %v1700_v41 = vmul.f32 0.2, %v1696_v37  ;;  %v1701_v42 = vmul.f32 0.2, %v1697_v38  ;;  %v1702_v43 = vmul.f32 0.2, %v1698_v39 }
 0x1a6   :  { %v1703_v44 = vmul.f32 0.2, %v1699_v40 }
 0x1a7   :  { %v1704_v45 = vmax.f32 %v1696_v37, %v1700_v41  ;;  %v1705_v46 = vmax.f32 %v1697_v38, %v1701_v42  ;;  %v1706_v47 = vmax.f32 %v1698_v39, %v1702_v43 }
 0x1a8   :  { %v1707_v48 = vmax.f32 %v1699_v40, %v1703_v44 }
 0x1a9   :  { %v1908_v49 = vpack.c.bf16 %v1705_v46, %v1704_v45 }
 0x1aa   :  { %v1913_v50 = vpack.c.bf16 %v1707_v48, %v1706_v47 }
 0x1ab   :  { %1909 = vst [vmem:[%s2791_s4] sm:$0xff] %v1908_v49  }
 0x1ac   :  { %1915 = vst [vmem:[%s2791_s4 + $0x8] sm:$0xff] %v1913_v50  }

// kernel: discriminator_forward.5
= control target key start
LH: loop header
LB: loop body
LE: loop exit
PB: predicated region body
PF: predicated region fallthrough
CT: control target
= control target key end

     0   :  { %s12229_s1 = inlined_call_operand.vmem [shape: bf16[2048,128], index: 1, kind: input, shape index: {}]   ;;  %s12230_s0 = inlined_call_operand.vmem [shape: bf16[16,8192], index: 0, kind: input, shape index: {}]   ;;  %s12231_s4 = inlined_call_operand.vmem [shape: bf16[512,512], index: 4, kind: input, shape index: {}]   ;;  %s12232_s2 = inlined_call_operand.vmem [shape: f32[1,512], index: 2, kind: input, shape index: {}]   ;;  %s12233_s3 = inlined_call_operand.vmem [shape: f32[1,512], index: 3, kind: input, shape index: {}]   ;;  %s12234_s7 = inlined_call_operand.vmem [shape: bf16[512,512], index: 7, kind: input, shape index: {}]   ;;  %s12235_s5 = inlined_call_operand.vmem [shape: f32[1,512], index: 5, kind: input, shape index: {}]   ;;  %s12236_s6 = inlined_call_operand.vmem [shape: f32[1,512], index: 6, kind: input, shape index: {}]   ;;  %s12237_s10 = inlined_call_operand.vmem [shape: bf16[512,512], index: 10, kind: input, shape index: {}]   ;;  %s12238_s8 = inlined_call_operand.vmem [shape: f32[1,512], index: 8, kind: input, shape index: {}]   ;;  %s12239_s9 = inlined_call_operand.vmem [shape: f32[1,512], index: 9, kind: input, shape index: {}]   ;;  %s12240_s11 = inlined_call_operand.vmem [shape: f32[1,512], index: 11, kind: input, shape index: {}]   ;;  %s12241_s12 = inlined_call_operand.vmem [shape: f32[1,512], index: 12, kind: input, shape index: {}]   ;;  %s12242_s13 = inlined_call_operand.vmem [shape: f32[1,512], index: 13, kind: input, shape index: {}]   ;;  %s12243_s14 = inlined_call_operand.<no memory space> [shape: f32[1], index: 14, kind: input, shape index: {}]   ;;  %s12244_s15 = inlined_call_operand.vmem [shape: f32[16,128], index: 15, kind: output, shape index: {}]  }
   0x1   :  { %v7756_v0 = vld [vmem:[%s12229_s1 + $0x40] sm:$0xff]   ;;  %v7760_v4 = vld [vmem:[%s12229_s1 + $0x48] sm:$0xff]   ;;  %v7764_v8 = vld [vmem:[%s12229_s1 + $0x50] sm:$0xff]  }
   0x2   :  { %v7757_v1 = vld [vmem:[%s12229_s1 + $0xc0] sm:$0xff]   ;;  %7026 = vmatprep.subr.bf16.mxu0 %v7756_v0  ;;  %v7761_v5 = vld [vmem:[%s12229_s1 + $0xc8] sm:$0xff]   ;;  %v7765_v9 = vld [vmem:[%s12229_s1 + $0xd0] sm:$0xff]  }
   0x3   :  { %v7758_v2 = vld [vmem:[%s12229_s1] sm:$0xff]   ;;  %7048 = vmatprep.subr.bf16.mxu1 %v7757_v1  ;;  %v7762_v6 = vld [vmem:[%s12229_s1 + $0x8] sm:$0xff]   ;;  %v7766_v10 = vld [vmem:[%s12229_s1 + $0x10] sm:$0xff]  }
   0x4   :  { %v7759_v3 = vld [vmem:[%s12229_s1 + $0x80] sm:$0xff]   ;;  %7027 = vmatpush3.bf16.msra.mxu0 %v7758_v2  ;;  %v7763_v7 = vld [vmem:[%s12229_s1 + $0x88] sm:$0xff]   ;;  %v7767_v11 = vld [vmem:[%s12229_s1 + $0x90] sm:$0xff]  }
   0x5   :  { %7049 = vmatpush3.bf16.msra.mxu1 %v7759_v3  ;;  %7028 = vmatprep.subr.bf16.mxu0 %v7760_v4  ;;  %v7768_v12 = vld [vmem:[%s12229_s1 + $0x58] sm:$0xff]   ;;  %v7772_v16 = vld [vmem:[%s12229_s1 + $0x60] sm:$0xff]   ;;  %v8751_v20 = vld [vmem:[%s12229_s1 + $0x68] sm:$0xff]  }
   0x6   :  { %7050 = vmatprep.subr.bf16.mxu1 %v7761_v5  ;;  %v7769_v13 = vld [vmem:[%s12229_s1 + $0xd8] sm:$0xff]   ;;  %v7773_v17 = vld [vmem:[%s12229_s1 + $0xe0] sm:$0xff]   ;;  %v8757_v21 = vld [vmem:[%s12229_s1 + $0xe8] sm:$0xff]  }
   0x7   :  { %v7770_v14 = vld [vmem:[%s12229_s1 + $0x18] sm:$0xff]   ;;  %v7774_v18 = vld [vmem:[%s12229_s1 + $0x20] sm:$0xff]   ;;  %v8763_v22 = vld [vmem:[%s12229_s1 + $0x28] sm:$0xff]  }
   0x8   :  { %7029 = vmatpush3.bf16.msra.mxu0 %v7762_v6  ;;  %v7771_v15 = vld [vmem:[%s12229_s1 + $0x98] sm:$0xff]   ;;  %v8746_v19 = vld [vmem:[%s12229_s1 + $0xa0] sm:$0xff]   ;;  %v8769_v23 = vld [vmem:[%s12229_s1 + $0xa8] sm:$0xff]  }
   0x9   :  { %7051 = vmatpush3.bf16.msra.mxu1 %v7763_v7  ;;  %7030 = vmatprep.subr.bf16.mxu0 %v7764_v8  ;;  %v8775_v24 = vld [vmem:[%s12229_s1 + $0x70] sm:$0xff]   ;;  %v8799_v28 = vld [vmem:[%s12229_s1 + $0x78] sm:$0xff]   ;;  %v317_v32 = vld [vmem:[%s12230_s0] sm:$0xff] }
   0xa   :  { %7052 = vmatprep.subr.bf16.mxu1 %v7765_v9  ;;  %v8781_v25 = vld [vmem:[%s12229_s1 + $0xf0] sm:$0xff]   ;;  %v8805_v29 = vld [vmem:[%s12229_s1 + $0xf8] sm:$0xff]   ;;  %v325_v33 = vld [vmem:[%s12230_s0 + $0x100] sm:$0xff] }
   0xb   :  { %v8787_v26 = vld [vmem:[%s12229_s1 + $0x30] sm:$0xff]   ;;  %v8811_v30 = vld [vmem:[%s12229_s1 + $0x38] sm:$0xff]   ;;  %v318_v34 = vld [vmem:[%s12230_s0 + $0x8] sm:$0xff]  ;;  %v6448_v35 = vcombine.low %v317_v32, %v325_v33  ;;  %v6449_v36 = vcombine.high %v317_v32, %v325_v33 }
   0xc   :  { %7031 = vmatpush3.bf16.msra.mxu0 %v7766_v10  ;;  %v8793_v27 = vld [vmem:[%s12229_s1 + $0xb0] sm:$0xff]   ;;  %v8817_v31 = vld [vmem:[%s12229_s1 + $0xb8] sm:$0xff]   ;;  %v326_v37 = vld [vmem:[%s12230_s0 + $0x108] sm:$0xff] }
   0xd   :  { %7053 = vmatpush3.bf16.msra.mxu1 %v7767_v11  ;;  %7032 = vmatprep.subr.bf16.mxu0 %v7768_v12  ;;  %v6450_v38 = vcombine.low %v318_v34, %v326_v37  ;;  %v6451_v39 = vcombine.high %v318_v34, %v326_v37  ;;  %v8836_v40 = vld [vmem:[%s12229_s1 + $0x140] sm:$0xff]   ;;  %v8859_v44 = vld [vmem:[%s12229_s1 + $0x148] sm:$0xff]   ;;  %v8883_v48 = vld [vmem:[%s12229_s1 + $0x150] sm:$0xff]  }
   0xe   :  { %7054 = vmatprep.subr.bf16.mxu1 %v7769_v13  ;;  %1213 = vmatprep.mubr.bf16.mxu0 %v6449_v36  ;;  %v8841_v41 = vld [vmem:[%s12229_s1 + $0x1c0] sm:$0xff]   ;;  %v8865_v45 = vld [vmem:[%s12229_s1 + $0x1c8] sm:$0xff]   ;;  %v8889_v49 = vld [vmem:[%s12229_s1 + $0x1d0] sm:$0xff]  }
   0xf   :  { %1254 = vmatprep.mubr.bf16.mxu1 %v6451_v39  ;;  %v8846_v42 = vld [vmem:[%s12229_s1 + $0x100] sm:$0xff]   ;;  %v8871_v46 = vld [vmem:[%s12229_s1 + $0x108] sm:$0xff]   ;;  %v8895_v50 = vld [vmem:[%s12229_s1 + $0x110] sm:$0xff]  }
  0x10   :  { %7033 = vmatpush3.bf16.msra.mxu0 %v7770_v14  ;;  %v8852_v43 = vld [vmem:[%s12229_s1 + $0x180] sm:$0xff]   ;;  %v8877_v47 = vld [vmem:[%s12229_s1 + $0x188] sm:$0xff]   ;;  %v8901_v51 = vld [vmem:[%s12229_s1 + $0x190] sm:$0xff]  }
  0x11   :  { %7055 = vmatpush3.bf16.msra.mxu1 %v7771_v15  ;;  %7034 = vmatprep.subr.bf16.mxu0 %v7772_v16  ;;  %v8907_v52 = vld [vmem:[%s12229_s1 + $0x158] sm:$0xff]   ;;  %v8931_v56 = vld [vmem:[%s12229_s1 + $0x160] sm:$0xff]   ;;  %v8955_v60 = vld [vmem:[%s12229_s1 + $0x168] sm:$0xff]  }
  0x12   :  { %7056 = vmatprep.subr.bf16.mxu1 %v7773_v17  ;;  %v8913_v53 = vld [vmem:[%s12229_s1 + $0x1d8] sm:$0xff]   ;;  %v8937_v57 = vld [vmem:[%s12229_s1 + $0x1e0] sm:$0xff]   ;;  %v8961_v61 = vld [vmem:[%s12229_s1 + $0x1e8] sm:$0xff]  }
  0x13   :  { %v8919_v54 = vld [vmem:[%s12229_s1 + $0x118] sm:$0xff]   ;;  %v8943_v58 = vld [vmem:[%s12229_s1 + $0x120] sm:$0xff]   ;;  %v8967_v62 = vld [vmem:[%s12229_s1 + $0x128] sm:$0xff]  }
  0x14   :  { %7035 = vmatpush3.bf16.msra.mxu0 %v7774_v18  ;;  %v8925_v55 = vld [vmem:[%s12229_s1 + $0x198] sm:$0xff]   ;;  %v8949_v59 = vld [vmem:[%s12229_s1 + $0x1a0] sm:$0xff]   ;;  %v8973_v63 = vld [vmem:[%s12229_s1 + $0x1a8] sm:$0xff]  }
  0x15   :  { %7057 = vmatpush3.bf16.msra.mxu1 %v8746_v19  ;;  %7036 = vmatprep.subr.bf16.mxu0 %v8751_v20  ;;  %v8979_v0 = vld [vmem:[%s12229_s1 + $0x170] sm:$0xff]   ;;  %v9003_v4 = vld [vmem:[%s12229_s1 + $0x178] sm:$0xff]   ;;  %v9040_v16 = vld [vmem:[%s12229_s1 + $0x240] sm:$0xff]  }
  0x16   :  { %7058 = vmatprep.subr.bf16.mxu1 %v8757_v21  ;;  %v8985_v1 = vld [vmem:[%s12229_s1 + $0x1f0] sm:$0xff]   ;;  %v9009_v5 = vld [vmem:[%s12229_s1 + $0x1f8] sm:$0xff]   ;;  %v9045_v17 = vld [vmem:[%s12229_s1 + $0x2c0] sm:$0xff]  }
  0x17   :  { %v8991_v2 = vld [vmem:[%s12229_s1 + $0x130] sm:$0xff]   ;;  %v9015_v6 = vld [vmem:[%s12229_s1 + $0x138] sm:$0xff]   ;;  %v9050_v18 = vld [vmem:[%s12229_s1 + $0x200] sm:$0xff]  }
  0x18   :  { %7037 = vmatpush3.bf16.msra.mxu0 %v8763_v22  ;;  %v8997_v3 = vld [vmem:[%s12229_s1 + $0x1b0] sm:$0xff]   ;;  %v9021_v7 = vld [vmem:[%s12229_s1 + $0x1b8] sm:$0xff]   ;;  %v9056_v32 = vld [vmem:[%s12229_s1 + $0x280] sm:$0xff]  }
  0x19   :  { %7059 = vmatpush3.bf16.msra.mxu1 %v8769_v23  ;;  %7038 = vmatprep.subr.bf16.mxu0 %v8775_v24  ;;  %v319_v8 = vld [vmem:[%s12230_s0 + $0x10] sm:$0xff]  ;;  %v320_v12 = vld [vmem:[%s12230_s0 + $0x18] sm:$0xff]  ;;  %v9063_v33 = vld [vmem:[%s12229_s1 + $0x248] sm:$0xff]  }
  0x1a   :  { %7060 = vmatprep.subr.bf16.mxu1 %v8781_v25  ;;  %v327_v9 = vld [vmem:[%s12230_s0 + $0x110] sm:$0xff]  ;;  %v328_v13 = vld [vmem:[%s12230_s0 + $0x118] sm:$0xff]  ;;  %v9069_v34 = vld [vmem:[%s12229_s1 + $0x2c8] sm:$0xff]  }
  0x1b   :  { %v6452_v10 = vcombine.low %v319_v8, %v327_v9  ;;  %v6453_v11 = vcombine.high %v319_v8, %v327_v9  ;;  %v6454_v14 = vcombine.low %v320_v12, %v328_v13  ;;  %v6455_v15 = vcombine.high %v320_v12, %v328_v13  ;;  %v9081_v36 = vld [vmem:[%s12229_s1 + $0x288] sm:$0xff]   ;;  %v9087_v37 = vld [vmem:[%s12229_s1 + $0x250] sm:$0xff]   ;;  %v9111_v9 = vld [vmem:[%s12229_s1 + $0x258] sm:$0xff]  }
  0x1c   :  { %7039 = vmatpush3.bf16.msra.mxu0 %v8787_v26  ;;  %12429 = vst [vmem:[#allocation3_spill] sm:$0xff] %v9087_v37  ;;  %v9099_v39 = vld [vmem:[%s12229_s1 + $0x210] sm:$0xff]   ;;  %12433 = vst [vmem:[#allocation7_spill] sm:$0xff] %v9111_v9  ;;  %v9129_v12 = vld [vmem:[%s12229_s1 + $0x298] sm:$0xff]  }
  0x1d   :  { %7061 = vmatpush3.bf16.msra.mxu1 %v8793_v27  ;;  %7040 = vmatprep.subr.bf16.mxu0 %v8799_v28  ;;  %12431 = vst [vmem:[#allocation5_spill] sm:$0xff] %v9099_v39  ;;  %v9105_v8 = vld [vmem:[%s12229_s1 + $0x290] sm:$0xff]   ;;  %12436 = vst [vmem:[#allocation10_spill] sm:$0xff] %v9129_v12  ;;  %v9135_v13 = vld [vmem:[%s12229_s1 + $0x260] sm:$0xff]  }
  0x1e   :  { %7062 = vmatprep.subr.bf16.mxu1 %v8805_v29  ;;  %12432 = vst [vmem:[#allocation6_spill] sm:$0xff] %v9105_v8  ;;  %12437 = vst [vmem:[#allocation11_spill] sm:$0xff] %v9135_v13 }
  0x20   :  { %7041 = vmatpush3.bf16.msra.mxu0 %v8811_v30 }
  0x21   :  { %7063 = vmatpush3.bf16.msra.mxu1 %v8817_v31  ;;  %7070 = vmatprep.subr.bf16.mxu0 %v8836_v40 }
  0x22   :  { %7092 = vmatprep.subr.bf16.mxu1 %v8841_v41 }
  0x23   :  { %1214 = vmatmul.mubr.bf16.vlgmr.msra.gmra.mrb[0].mxu0 %v6448_v35  ;;  %v9075_v35 = vld [vmem:[%s12229_s1 + $0x208] sm:$0xff]  }
  0x24   :  { %1255 = vmatmul.mubr.bf16.vlgmr.msra.gmra.mrb[0].mxu1 %v6450_v38  ;;  %7071 = vmatpush3.bf16.msra.mxu0 %v8846_v42  ;;  %v9093_v38 = vld [vmem:[%s12229_s1 + $0x2d0] sm:$0xff]  }
  0x25   :  { %7093 = vmatpush3.bf16.msra.mxu1 %v8852_v43  ;;  %7072 = vmatprep.subr.bf16.mxu0 %v8859_v44  ;;  %12430 = vst [vmem:[#allocation4_spill] sm:$0xff] %v9093_v38 }
  0x26   :  { %7094 = vmatprep.subr.bf16.mxu1 %v8865_v45  ;;  %1295 = vmatprep.mubr.bf16.mxu0 %v6453_v11  ;;  %v9123_v11 = vld [vmem:[%s12229_s1 + $0x218] sm:$0xff]  }
  0x27   :  { %1336 = vmatprep.mubr.bf16.mxu1 %v6455_v15  ;;  %12435 = vst [vmem:[#allocation9_spill] sm:$0xff] %v9123_v11  ;;  %v9147_v15 = vld [vmem:[%s12229_s1 + $0x220] sm:$0xff]  }
  0x28   :  { %7073 = vmatpush3.bf16.msra.mxu0 %v8871_v46  ;;  %12439 = vst [vmem:[#allocation13_spill] sm:$0xff] %v9147_v15 }
  0x29   :  { %7095 = vmatpush3.bf16.msra.mxu1 %v8877_v47  ;;  %7074 = vmatprep.subr.bf16.mxu0 %v8883_v48 }
  0x2a   :  { %7096 = vmatprep.subr.bf16.mxu1 %v8889_v49 }
  0x2c   :  { %7075 = vmatpush3.bf16.msra.mxu0 %v8895_v50 }
  0x2d   :  { %7097 = vmatpush3.bf16.msra.mxu1 %v8901_v51  ;;  %7076 = vmatprep.subr.bf16.mxu0 %v8907_v52 }
  0x2e   :  { %7098 = vmatprep.subr.bf16.mxu1 %v8913_v53 }
  0x30   :  { %7077 = vmatpush3.bf16.msra.mxu0 %v8919_v54 }
  0x31   :  { %7099 = vmatpush3.bf16.msra.mxu1 %v8925_v55  ;;  %7078 = vmatprep.subr.bf16.mxu0 %v8931_v56 }
  0x32   :  { %7100 = vmatprep.subr.bf16.mxu1 %v8937_v57 }
  0x34   :  { %7079 = vmatpush3.bf16.msra.mxu0 %v8943_v58 }
  0x35   :  { %7101 = vmatpush3.bf16.msra.mxu1 %v8949_v59  ;;  %7080 = vmatprep.subr.bf16.mxu0 %v8955_v60 }
  0x36   :  { %7102 = vmatprep.subr.bf16.mxu1 %v8961_v61 }
  0x38   :  { %7081 = vmatpush3.bf16.msra.mxu0 %v8967_v62 }
  0x39   :  { %7103 = vmatpush3.bf16.msra.mxu1 %v8973_v63  ;;  %7082 = vmatprep.subr.bf16.mxu0 %v8979_v0 }
  0x3a   :  { %7104 = vmatprep.subr.bf16.mxu1 %v8985_v1 }
  0x3c   :  { %7083 = vmatpush3.bf16.msra.mxu0 %v8991_v2 }
  0x3d   :  { %7105 = vmatpush3.bf16.msra.mxu1 %v8997_v3  ;;  %7084 = vmatprep.subr.bf16.mxu0 %v9003_v4 }
  0x3e   :  { %7106 = vmatprep.subr.bf16.mxu1 %v9009_v5 }
  0x40   :  { %7085 = vmatpush3.bf16.msra.mxu0 %v9015_v6 }
  0x41   :  { %7107 = vmatpush3.bf16.msra.mxu1 %v9021_v7  ;;  %7114 = vmatprep.subr.bf16.mxu0 %v9040_v16 }
  0x42   :  { %7136 = vmatprep.subr.bf16.mxu1 %v9045_v17 }
  0x43   :  { %1296 = vmatmul.mubr.bf16.vlgmr.msra.gmra.mrb[4].mxu0 %v6452_v10  ;;  %v9117_v10 = vld [vmem:[%s12229_s1 + $0x2d8] sm:$0xff]  }
  0x44   :  { %1337 = vmatmul.mubr.bf16.vlgmr.msra.gmra.mrb[4].mxu1 %v6454_v14  ;;  %7115 = vmatpush3.bf16.msra.mxu0 %v9050_v18  ;;  %12434 = vst [vmem:[#allocation8_spill] sm:$0xff] %v9117_v10  ;;  %v9141_v14 = vld [vmem:[%s12229_s1 + $0x2e0] sm:$0xff]  }
  0x45   :  { %7137 = vmatpush3.bf16.msra.mxu1 %v9056_v32  ;;  %7116 = vmatprep.subr.bf16.mxu0 %v9063_v33  ;;  %12438 = vst [vmem:[#allocation12_spill] sm:$0xff] %v9141_v14 }
  0x46   :  { %7138 = vmatprep.subr.bf16.mxu1 %v9069_v34 }
  0x48   :  { %7117 = vmatpush3.bf16.msra.mxu0 %v9075_v35 }
  0x49   :  { %7139 = vmatpush3.bf16.msra.mxu1 %v9081_v36  ;;  %7118 = vmatprep.subr.bf16.mxu0 %v9087_v37  ;;  %v9249_v37 = vld [vmem:[%s12229_s1 + $0x3c0] sm:$0xff]  }
  0x4a   :  { %7140 = vmatprep.subr.bf16.mxu1 %v9093_v38  ;;  %12454 = vst [vmem:[#allocation28_spill] sm:$0xff] %v9249_v37 }
  0x4c   :  { %7119 = vmatpush3.bf16.msra.mxu0 %v9099_v39 }
  0x4d   :  { %7141 = vmatpush3.bf16.msra.mxu1 %v9105_v8  ;;  %7120 = vmatprep.subr.bf16.mxu0 %v9111_v9 }
  0x4e   :  { %7142 = vmatprep.subr.bf16.mxu1 %v9117_v10  ;;  %v322_v10 = vld [vmem:[%s12230_s0 + $0x28] sm:$0xff] }
  0x50   :  { %7121 = vmatpush3.bf16.msra.mxu0 %v9123_v11  ;;  %v9153_v11 = vld [vmem:[%s12229_s1 + $0x2a0] sm:$0xff]  }
  0x51   :  { %7143 = vmatpush3.bf16.msra.mxu1 %v9129_v12  ;;  %7122 = vmatprep.subr.bf16.mxu0 %v9135_v13  ;;  %12440 = vst [vmem:[#allocation14_spill] sm:$0xff] %v9153_v11  ;;  %v9159_v12 = vld [vmem:[%s12229_s1 + $0x268] sm:$0xff]  }
  0x52   :  { %7144 = vmatprep.subr.bf16.mxu1 %v9141_v14  ;;  %12441 = vst [vmem:[#allocation15_spill] sm:$0xff] %v9159_v12  ;;  %v9165_v13 = vld [vmem:[%s12229_s1 + $0x2e8] sm:$0xff]  }
  0x53   :  { %12442 = vst [vmem:[#allocation16_spill] sm:$0xff] %v9165_v13  ;;  %v9171_v14 = vld [vmem:[%s12229_s1 + $0x228] sm:$0xff]  }
  0x54   :  { %7123 = vmatpush3.bf16.msra.mxu0 %v9147_v15  ;;  %12443 = vst [vmem:[#allocation17_spill] sm:$0xff] %v9171_v14  ;;  %v9177_v15 = vld [vmem:[%s12229_s1 + $0x2a8] sm:$0xff]  }
  0x55   :  { %7145 = vmatpush3.bf16.msra.mxu1 %v9153_v11  ;;  %7124 = vmatprep.subr.bf16.mxu0 %v9159_v12  ;;  %12444 = vst [vmem:[#allocation18_spill] sm:$0xff] %v9177_v15  ;;  %v9183_v11 = vld [vmem:[%s12229_s1 + $0x270] sm:$0xff]  }
  0x56   :  { %7146 = vmatprep.subr.bf16.mxu1 %v9165_v13  ;;  %12445 = vst [vmem:[#allocation19_spill] sm:$0xff] %v9183_v11  ;;  %v9189_v12 = vld [vmem:[%s12229_s1 + $0x2f0] sm:$0xff]  }
  0x57   :  { %12446 = vst [vmem:[#allocation20_spill] sm:$0xff] %v9189_v12  ;;  %v9195_v13 = vld [vmem:[%s12229_s1 + $0x230] sm:$0xff]  }
  0x58   :  { %7125 = vmatpush3.bf16.msra.mxu0 %v9171_v14  ;;  %12447 = vst [vmem:[#allocation21_spill] sm:$0xff] %v9195_v13  ;;  %v9201_v14 = vld [vmem:[%s12229_s1 + $0x2b0] sm:$0xff]  }
  0x59   :  { %7147 = vmatpush3.bf16.msra.mxu1 %v9177_v15  ;;  %7126 = vmatprep.subr.bf16.mxu0 %v9183_v11  ;;  %12448 = vst [vmem:[#allocation22_spill] sm:$0xff] %v9201_v14  ;;  %v9207_v15 = vld [vmem:[%s12229_s1 + $0x278] sm:$0xff]  }
  0x5a   :  { %7148 = vmatprep.subr.bf16.mxu1 %v9189_v12  ;;  %12449 = vst [vmem:[#allocation23_spill] sm:$0xff] %v9207_v15  ;;  %v9213_v11 = vld [vmem:[%s12229_s1 + $0x2f8] sm:$0xff]  }
  0x5b   :  { %12450 = vst [vmem:[#allocation24_spill] sm:$0xff] %v9213_v11  ;;  %v9219_v12 = vld [vmem:[%s12229_s1 + $0x238] sm:$0xff]  }
  0x5c   :  { %7127 = vmatpush3.bf16.msra.mxu0 %v9195_v13  ;;  %12451 = vst [vmem:[#allocation25_spill] sm:$0xff] %v9219_v12  ;;  %v9225_v13 = vld [vmem:[%s12229_s1 + $0x2b8] sm:$0xff]  }
  0x5d   :  { %7149 = vmatpush3.bf16.msra.mxu1 %v9201_v14  ;;  %7128 = vmatprep.subr.bf16.mxu0 %v9207_v15  ;;  %12452 = vst [vmem:[#allocation26_spill] sm:$0xff] %v9225_v13  ;;  %v321_v14 = vld [vmem:[%s12230_s0 + $0x20] sm:$0xff] }
  0x5e   :  { %7150 = vmatprep.subr.bf16.mxu1 %v9213_v11  ;;  %v329_v15 = vld [vmem:[%s12230_s0 + $0x120] sm:$0xff]  ;;  %v330_v11 = vld [vmem:[%s12230_s0 + $0x128] sm:$0xff] }
  0x5f   :  { %v6456_v9 = vcombine.low %v321_v14, %v329_v15  ;;  %v6457_v8 = vcombine.high %v321_v14, %v329_v15  ;;  %v6458_v39 = vcombine.low %v322_v10, %v330_v11  ;;  %v6459_v38 = vcombine.high %v322_v10, %v330_v11  ;;  %v9259_v10 = vld [vmem:[%s12229_s1 + $0x380] sm:$0xff]   ;;  %v9290_v11 = vld [vmem:[%s12229_s1 + $0x350] sm:$0xff]  }
  0x60   :  { %7129 = vmatpush3.bf16.msra.mxu0 %v9219_v12  ;;  %v9244_v12 = vld [vmem:[%s12229_s1 + $0x340] sm:$0xff]   ;;  %12456 = vst [vmem:[#allocation30_spill] sm:$0xff] %v9259_v10  ;;  %12461 = vst [vmem:[#allocation35_spill] sm:$0xff] %v9290_v11  ;;  %v9297_v14 = vld [vmem:[%s12229_s1 + $0x3d0] sm:$0xff]  }
  0x61   :  { %7151 = vmatpush3.bf16.msra.mxu1 %v9225_v13  ;;  %12453 = vst [vmem:[#allocation27_spill] sm:$0xff] %v9244_v12  ;;  %1377 = vmatprep.mubr.bf16.mxu0 %v6457_v8  ;;  %v9254_v13 = vld [vmem:[%s12229_s1 + $0x300] sm:$0xff]   ;;  %v9279_v8 = vld [vmem:[%s12229_s1 + $0x308] sm:$0xff]   ;;  %12462 = vst [vmem:[#allocation36_spill] sm:$0xff] %v9297_v14 }
  0x62   :  { %1418 = vmatprep.mubr.bf16.mxu1 %v6459_v38  ;;  %12455 = vst [vmem:[#allocation29_spill] sm:$0xff] %v9254_v13  ;;  %7158 = vmatprep.subr.bf16.mxu0 %v9244_v12  ;;  %v9266_v38 = vld [vmem:[%s12229_s1 + $0x348] sm:$0xff]   ;;  %12459 = vst [vmem:[#allocation33_spill] sm:$0xff] %v9279_v8  ;;  %v9303_v15 = vld [vmem:[%s12229_s1 + $0x310] sm:$0xff]  }
  0x63   :  { %1378 = vmatmul.mubr.bf16.vlgmr.msra.gmra.mrb[8].mxu0 %v6456_v9  ;;  %7180 = vmatprep.subr.bf16.mxu1 %v9249_v37  ;;  %12457 = vst [vmem:[#allocation31_spill] sm:$0xff] %v9266_v38  ;;  %v9285_v9 = vld [vmem:[%s12229_s1 + $0x388] sm:$0xff]   ;;  %12463 = vst [vmem:[#allocation37_spill] sm:$0xff] %v9303_v15  ;;  %v9453_v37 = vld [vmem:[%s12230_s0 + $0x140] sm:$0xff] }
  0x64   :  { %1419 = vmatmul.mubr.bf16.vlgmr.msra.gmra.mrb[8].mxu1 %v6458_v39  ;;  %7159 = vmatpush3.bf16.msra.mxu0 %v9254_v13  ;;  %v9273_v39 = vld [vmem:[%s12229_s1 + $0x3c8] sm:$0xff]   ;;  %12460 = vst [vmem:[#allocation34_spill] sm:$0xff] %v9285_v9  ;;  %v9448_v13 = vld [vmem:[%s12230_s0 + $0x40] sm:$0xff] }
  0x65   :  { %7181 = vmatpush3.bf16.msra.mxu1 %v9259_v10  ;;  %12458 = vst [vmem:[#allocation32_spill] sm:$0xff] %v9273_v39  ;;  %7160 = vmatprep.subr.bf16.mxu0 %v9266_v38  ;;  %v332_v10 = vld [vmem:[%s12230_s0 + $0x138] sm:$0xff] }
  0x66   :  { %7182 = vmatprep.subr.bf16.mxu1 %v9273_v39  ;;  %v324_v39 = vld [vmem:[%s12230_s0 + $0x38] sm:$0xff] }
  0x67   :  { %v6462_v12 = vcombine.low %v324_v39, %v332_v10 }
  0x68   :  { %7161 = vmatpush3.bf16.msra.mxu0 %v9279_v8  ;;  %v9309_v8 = vld [vmem:[%s12229_s1 + $0x390] sm:$0xff]  }
  0x69   :  { %7183 = vmatpush3.bf16.msra.mxu1 %v9285_v9  ;;  %7162 = vmatprep.subr.bf16.mxu0 %v9290_v11  ;;  %12464 = vst [vmem:[#allocation38_spill] sm:$0xff] %v9309_v8  ;;  %v9314_v9 = vld [vmem:[%s12229_s1 + $0x358] sm:$0xff]  }
  0x6a   :  { %7184 = vmatprep.subr.bf16.mxu1 %v9297_v14  ;;  %12465 = vst [vmem:[#allocation39_spill] sm:$0xff] %v9314_v9  ;;  %v9321_v11 = vld [vmem:[%s12229_s1 + $0x3d8] sm:$0xff]  }
  0x6b   :  { %12466 = vst [vmem:[#allocation40_spill] sm:$0xff] %v9321_v11  ;;  %v9327_v14 = vld [vmem:[%s12229_s1 + $0x318] sm:$0xff]  }
  0x6c   :  { %7163 = vmatpush3.bf16.msra.mxu0 %v9303_v15  ;;  %12467 = vst [vmem:[#allocation41_spill] sm:$0xff] %v9327_v14  ;;  %v9333_v15 = vld [vmem:[%s12229_s1 + $0x398] sm:$0xff]  }
  0x6d   :  { %7185 = vmatpush3.bf16.msra.mxu1 %v9309_v8  ;;  %7164 = vmatprep.subr.bf16.mxu0 %v9314_v9  ;;  %12468 = vst [vmem:[#allocation42_spill] sm:$0xff] %v9333_v15  ;;  %v9338_v8 = vld [vmem:[%s12229_s1 + $0x360] sm:$0xff]  }
  0x6e   :  { %7186 = vmatprep.subr.bf16.mxu1 %v9321_v11  ;;  %12469 = vst [vmem:[#allocation43_spill] sm:$0xff] %v9338_v8  ;;  %v9345_v9 = vld [vmem:[%s12229_s1 + $0x3e0] sm:$0xff]  }
  0x6f   :  { %12470 = vst [vmem:[#allocation44_spill] sm:$0xff] %v9345_v9  ;;  %v9351_v11 = vld [vmem:[%s12229_s1 + $0x320] sm:$0xff]  }
  0x70   :  { %7165 = vmatpush3.bf16.msra.mxu0 %v9327_v14  ;;  %12471 = vst [vmem:[#allocation45_spill] sm:$0xff] %v9351_v11  ;;  %v9357_v14 = vld [vmem:[%s12229_s1 + $0x3a0] sm:$0xff]  }
  0x71   :  { %7187 = vmatpush3.bf16.msra.mxu1 %v9333_v15  ;;  %7166 = vmatprep.subr.bf16.mxu0 %v9338_v8  ;;  %12472 = vst [vmem:[#allocation46_spill] sm:$0xff] %v9357_v14  ;;  %v9362_v15 = vld [vmem:[%s12229_s1 + $0x368] sm:$0xff]  }
  0x72   :  { %7188 = vmatprep.subr.bf16.mxu1 %v9345_v9  ;;  %12473 = vst [vmem:[#allocation47_spill] sm:$0xff] %v9362_v15  ;;  %v9369_v8 = vld [vmem:[%s12229_s1 + $0x3e8] sm:$0xff]  }
  0x73   :  { %12474 = vst [vmem:[#allocation48_spill] sm:$0xff] %v9369_v8  ;;  %v9375_v9 = vld [vmem:[%s12229_s1 + $0x328] sm:$0xff]  }
  0x74   :  { %7167 = vmatpush3.bf16.msra.mxu0 %v9351_v11  ;;  %12475 = vst [vmem:[#allocation49_spill] sm:$0xff] %v9375_v9  ;;  %v9381_v11 = vld [vmem:[%s12229_s1 + $0x3a8] sm:$0xff]  }
  0x75   :  { %7189 = vmatpush3.bf16.msra.mxu1 %v9357_v14  ;;  %7168 = vmatprep.subr.bf16.mxu0 %v9362_v15  ;;  %12476 = vst [vmem:[#allocation50_spill] sm:$0xff] %v9381_v11  ;;  %v9386_v14 = vld [vmem:[%s12229_s1 + $0x370] sm:$0xff]  }
  0x76   :  { %7190 = vmatprep.subr.bf16.mxu1 %v9369_v8  ;;  %12477 = vst [vmem:[#allocation51_spill] sm:$0xff] %v9386_v14  ;;  %v9393_v15 = vld [vmem:[%s12229_s1 + $0x3f0] sm:$0xff]  }
  0x77   :  { %12478 = vst [vmem:[#allocation52_spill] sm:$0xff] %v9393_v15  ;;  %v9399_v8 = vld [vmem:[%s12229_s1 + $0x330] sm:$0xff]  }
  0x78   :  { %7169 = vmatpush3.bf16.msra.mxu0 %v9375_v9  ;;  %12479 = vst [vmem:[#allocation53_spill] sm:$0xff] %v9399_v8  ;;  %v9405_v9 = vld [vmem:[%s12229_s1 + $0x3b0] sm:$0xff]  }
  0x79   :  { %7191 = vmatpush3.bf16.msra.mxu1 %v9381_v11  ;;  %7170 = vmatprep.subr.bf16.mxu0 %v9386_v14  ;;  %12480 = vst [vmem:[#allocation54_spill] sm:$0xff] %v9405_v9  ;;  %v9410_v11 = vld [vmem:[%s12229_s1 + $0x378] sm:$0xff]  }
  0x7a   :  { %7192 = vmatprep.subr.bf16.mxu1 %v9393_v15  ;;  %12481 = vst [vmem:[#allocation55_spill] sm:$0xff] %v9410_v11  ;;  %v9417_v14 = vld [vmem:[%s12229_s1 + $0x3f8] sm:$0xff]  }
  0x7b   :  { %12482 = vst [vmem:[#allocation56_spill] sm:$0xff] %v9417_v14  ;;  %v9423_v15 = vld [vmem:[%s12229_s1 + $0x338] sm:$0xff]  }
  0x7c   :  { %7171 = vmatpush3.bf16.msra.mxu0 %v9399_v8  ;;  %12483 = vst [vmem:[#allocation57_spill] sm:$0xff] %v9423_v15  ;;  %v9429_v8 = vld [vmem:[%s12229_s1 + $0x3b8] sm:$0xff]  }
  0x7d   :  { %7193 = vmatpush3.bf16.msra.mxu1 %v9405_v9  ;;  %7172 = vmatprep.subr.bf16.mxu0 %v9410_v11  ;;  %12484 = vst [vmem:[#allocation58_spill] sm:$0xff] %v9429_v8  ;;  %v323_v9 = vld [vmem:[%s12230_s0 + $0x30] sm:$0xff] }
  0x7e   :  { %7194 = vmatprep.subr.bf16.mxu1 %v9417_v14  ;;  %v331_v11 = vld [vmem:[%s12230_s0 + $0x130] sm:$0xff] }
  0x7f   :  { %v6460_v14 = vcombine.low %v323_v9, %v331_v11  ;;  %v6461_v38 = vcombine.high %v323_v9, %v331_v11  ;;  %v9458_v9 = vld [vmem:[%s12229_s1 + $0x40] sm:$0xff]  }
  0x80   :  { %7173 = vmatpush3.bf16.msra.mxu0 %v9423_v15  ;;  %v6463_v15 = vcombine.high %v324_v39, %v332_v10  ;;  %12485 = vst [vmem:[#allocation59_spill] sm:$0xff] %v9458_v9  ;;  %v9464_v11 = vld [vmem:[%s12229_s1 + $0xc0] sm:$0xff]   ;;  %v9475_v10 = vld [vmem:[%s12230_s0 + $0x148] sm:$0xff]  ;;  %v6593_v39 = vcombine.high %v9448_v13, %v9453_v37 }
  0x81   :  { %7195 = vmatpush3.bf16.msra.mxu1 %v9429_v8  ;;  %7202 = vmatprep.subr.bf16.mxu0 %v9458_v9  ;;  %12486 = vst [vmem:[#allocation60_spill] sm:$0xff] %v9464_v11  ;;  %v9470_v8 = vld [vmem:[%s12230_s0 + $0x48] sm:$0xff] }
  0x82   :  { %7224 = vmatprep.subr.bf16.mxu1 %v9464_v11  ;;  %1459 = vmatprep.mubr.bf16.mxu0 %v6461_v38  ;;  %v6595_v9 = vcombine.high %v9470_v8, %v9475_v10  ;;  %v9484_v11 = vld [vmem:[%s12229_s1] sm:$0xff]  }
  0x83   :  { %1500 = vmatprep.mubr.bf16.mxu1 %v6463_v15  ;;  %1460 = vmatmul.mubr.bf16.vlgmr.msra.gmra.mrb[12].mxu0 %v6460_v14  ;;  %v9490_v38 = vld [vmem:[%s12229_s1 + $0x80] sm:$0xff]   ;;  %v9496_v14 = vld [vmem:[%s12229_s1 + $0x48] sm:$0xff]  }
  0x84   :  { %1501 = vmatmul.mubr.bf16.vlgmr.msra.gmra.mrb[12].mxu1 %v6462_v12  ;;  %7203 = vmatpush3.bf16.msra.mxu0 %v9484_v11  ;;  %12487 = vst [vmem:[#allocation61_spill] sm:$0xff] %v9496_v14  ;;  %v9502_v12 = vld [vmem:[%s12229_s1 + $0xc8] sm:$0xff]  }
  0x85   :  { %7225 = vmatpush3.bf16.msra.mxu1 %v9490_v38  ;;  %7204 = vmatprep.subr.bf16.mxu0 %v9496_v14  ;;  %12488 = vst [vmem:[#allocation62_spill] sm:$0xff] %v9502_v12  ;;  %v9508_v15 = vld [vmem:[%s12229_s1 + $0x8] sm:$0xff]  }
  0x86   :  { %7226 = vmatprep.subr.bf16.mxu1 %v9502_v12  ;;  %1637 = vmatprep.mubr.bf16.mxu0 %v6593_v39  ;;  %v9514_v14 = vld [vmem:[%s12229_s1 + $0x88] sm:$0xff]   ;;  %v9520_v12 = vld [vmem:[%s12229_s1 + $0x50] sm:$0xff]  }
  0x87   :  { %1678 = vmatprep.mubr.bf16.mxu1 %v6595_v9  ;;  %12489 = vst [vmem:[#allocation63_spill] sm:$0xff] %v9514_v14  ;;  %12490 = vst [vmem:[#allocation64_spill] sm:$0xff] %v9520_v12  ;;  %v9526_v9 = vld [vmem:[%s12229_s1 + $0xd0] sm:$0xff]  }
  0x88   :  { %7205 = vmatpush3.bf16.msra.mxu0 %v9508_v15  ;;  %12491 = vst [vmem:[#allocation65_spill] sm:$0xff] %v9526_v9  ;;  %v9532_v39 = vld [vmem:[%s12229_s1 + $0x10] sm:$0xff]  }
  0x89   :  { %7227 = vmatpush3.bf16.msra.mxu1 %v9514_v14  ;;  %7206 = vmatprep.subr.bf16.mxu0 %v9520_v12  ;;  %12492 = vst [vmem:[#allocation66_spill] sm:$0xff] %v9532_v39  ;;  %v9538_v14 = vld [vmem:[%s12229_s1 + $0x90] sm:$0xff]   ;;  %v9544_v12 = vld [vmem:[%s12229_s1 + $0x58] sm:$0xff]  }
  0x8a   :  { %7228 = vmatprep.subr.bf16.mxu1 %v9526_v9  ;;  %12493 = vst [vmem:[#allocation67_spill] sm:$0xff] %v9538_v14  ;;  %12494 = vst [vmem:[#allocation68_spill] sm:$0xff] %v9544_v12  ;;  %v9550_v9 = vld [vmem:[%s12229_s1 + $0xd8] sm:$0xff]  }
  0x8b   :  { %12495 = vst [vmem:[#allocation69_spill] sm:$0xff] %v9550_v9 }
  0x8c   :  { %7207 = vmatpush3.bf16.msra.mxu0 %v9532_v39  ;;  %v9556_v39 = vld [vmem:[%s12229_s1 + $0x18] sm:$0xff]  }
  0x8d   :  { %7229 = vmatpush3.bf16.msra.mxu1 %v9538_v14  ;;  %7208 = vmatprep.subr.bf16.mxu0 %v9544_v12  ;;  %12496 = vst [vmem:[#allocation70_spill] sm:$0xff] %v9556_v39  ;;  %v9562_v14 = vld [vmem:[%s12229_s1 + $0x98] sm:$0xff]   ;;  %v9568_v12 = vld [vmem:[%s12229_s1 + $0x60] sm:$0xff]  }
  0x8e   :  { %7230 = vmatprep.subr.bf16.mxu1 %v9550_v9  ;;  %12497 = vst [vmem:[#allocation71_spill] sm:$0xff] %v9562_v14  ;;  %12498 = vst [vmem:[#allocation72_spill] sm:$0xff] %v9568_v12  ;;  %v9574_v9 = vld [vmem:[%s12229_s1 + $0xe0] sm:$0xff]  }
  0x8f   :  { %12499 = vst [vmem:[#allocation73_spill] sm:$0xff] %v9574_v9 }
  0x90   :  { %7209 = vmatpush3.bf16.msra.mxu0 %v9556_v39  ;;  %v9580_v39 = vld [vmem:[%s12229_s1 + $0x20] sm:$0xff]  }
  0x91   :  { %7231 = vmatpush3.bf16.msra.mxu1 %v9562_v14  ;;  %7210 = vmatprep.subr.bf16.mxu0 %v9568_v12  ;;  %12500 = vst [vmem:[#allocation74_spill] sm:$0xff] %v9580_v39 }
  0x92   :  { %7232 = vmatprep.subr.bf16.mxu1 %v9574_v9 }
  0x94   :  { %7211 = vmatpush3.bf16.msra.mxu0 %v9580_v39 }
  0x95   :  { %7233 = vmatpush3.bf16.msra.mxu1 %v8746_v19  ;;  %7212 = vmatprep.subr.bf16.mxu0 %v8751_v20  ;;  %v6592_v19 = vcombine.low %v9448_v13, %v9453_v37  ;;  %v1511_v20 = vld [vmem:[%s12230_s0 + $0x50] sm:$0xff]  ;;  %v12530_v37 = vld [vmem:[#allocation32_spill] sm:$0xff] }
  0x96   :  { %7234 = vmatprep.subr.bf16.mxu1 %v8757_v21  ;;  %v1519_v21 = vld [vmem:[%s12230_s0 + $0x150] sm:$0xff] }
  0x97   :  { %v12531_v13 = vld [vmem:[#allocation33_spill] sm:$0xff] }
  0x98   :  { %7213 = vmatpush3.bf16.msra.mxu0 %v8763_v22  ;;  %v6594_v22 = vcombine.low %v9470_v8, %v9475_v10  ;;  %v12532_v8 = vld [vmem:[#allocation34_spill] sm:$0xff]  ;;  %v12533_v10 = vld [vmem:[#allocation35_spill] sm:$0xff] }
  0x99   :  { %7235 = vmatpush3.bf16.msra.mxu1 %v8769_v23  ;;  %7214 = vmatprep.subr.bf16.mxu0 %v8775_v24  ;;  %v1512_v23 = vld [vmem:[%s12230_s0 + $0x58] sm:$0xff] }
  0x9a   :  { %7236 = vmatprep.subr.bf16.mxu1 %v8781_v25  ;;  %v1520_v24 = vld [vmem:[%s12230_s0 + $0x158] sm:$0xff]  ;;  %v6597_v25 = vcombine.high %v1511_v20, %v1519_v21 }
  0x9c   :  { %7215 = vmatpush3.bf16.msra.mxu0 %v8787_v26  ;;  %v6599_v26 = vcombine.high %v1512_v23, %v1520_v24 }
  0x9d   :  { %7237 = vmatpush3.bf16.msra.mxu1 %v8793_v27  ;;  %7216 = vmatprep.subr.bf16.mxu0 %v8799_v28  ;;  %v6596_v27 = vcombine.low %v1511_v20, %v1519_v21  ;;  %v1513_v28 = vld [vmem:[%s12230_s0 + $0x60] sm:$0xff]  ;;  %v12535_v20 = vld [vmem:[#allocation37_spill] sm:$0xff]  ;;  %v12536_v21 = vld [vmem:[#allocation38_spill] sm:$0xff] }
  0x9e   :  { %7238 = vmatprep.subr.bf16.mxu1 %v8805_v29  ;;  %v1521_v29 = vld [vmem:[%s12230_s0 + $0x160] sm:$0xff] }
  0xa0   :  { %7217 = vmatpush3.bf16.msra.mxu0 %v8811_v30  ;;  %v6598_v30 = vcombine.low %v1512_v23, %v1520_v24  ;;  %v12538_v23 = vld [vmem:[#allocation40_spill] sm:$0xff]  ;;  %v12539_v24 = vld [vmem:[#allocation41_spill] sm:$0xff] }
  0xa1   :  { %7239 = vmatpush3.bf16.msra.mxu1 %v8817_v31  ;;  %7246 = vmatprep.subr.bf16.mxu0 %v8836_v40  ;;  %v1514_v31 = vld [vmem:[%s12230_s0 + $0x68] sm:$0xff] }
  0xa2   :  { %7268 = vmatprep.subr.bf16.mxu1 %v8841_v41  ;;  %v1522_v40 = vld [vmem:[%s12230_s0 + $0x168] sm:$0xff]  ;;  %v6601_v41 = vcombine.high %v1513_v28, %v1521_v29 }
  0xa3   :  { %1638 = vmatmul.mubr.bf16.vlgmr.msra.gmra.mrb[16].mxu0 %v6592_v19  ;;  %v12534_v19 = vld [vmem:[#allocation36_spill] sm:$0xff] }
  0xa4   :  { %1679 = vmatmul.mubr.bf16.vlgmr.msra.gmra.mrb[16].mxu1 %v6594_v22  ;;  %7247 = vmatpush3.bf16.msra.mxu0 %v8846_v42  ;;  %v6603_v42 = vcombine.high %v1514_v31, %v1522_v40  ;;  %v12537_v22 = vld [vmem:[#allocation39_spill] sm:$0xff] }
  0xa5   :  { %7269 = vmatpush3.bf16.msra.mxu1 %v8852_v43  ;;  %7248 = vmatprep.subr.bf16.mxu0 %v8859_v44  ;;  %v12501_v43 = vld [vmem:[#allocation3_spill] sm:$0xff]  ;;  %v12502_v44 = vld [vmem:[#allocation4_spill] sm:$0xff] }
  0xa6   :  { %7270 = vmatprep.subr.bf16.mxu1 %v8865_v45  ;;  %1719 = vmatprep.mubr.bf16.mxu0 %v6597_v25  ;;  %v12503_v45 = vld [vmem:[#allocation5_spill] sm:$0xff]  ;;  %v12540_v25 = vld [vmem:[#allocation42_spill] sm:$0xff] }
  0xa7   :  { %1760 = vmatprep.mubr.bf16.mxu1 %v6599_v26  ;;  %v12541_v26 = vld [vmem:[#allocation43_spill] sm:$0xff] }
  0xa8   :  { %7249 = vmatpush3.bf16.msra.mxu0 %v8871_v46  ;;  %v12504_v46 = vld [vmem:[#allocation6_spill] sm:$0xff] }
  0xa9   :  { %7271 = vmatpush3.bf16.msra.mxu1 %v8877_v47  ;;  %7250 = vmatprep.subr.bf16.mxu0 %v8883_v48  ;;  %v12505_v47 = vld [vmem:[#allocation7_spill] sm:$0xff]  ;;  %v12506_v48 = vld [vmem:[#allocation8_spill] sm:$0xff] }
  0xaa   :  { %7272 = vmatprep.subr.bf16.mxu1 %v8889_v49  ;;  %v12507_v49 = vld [vmem:[#allocation9_spill] sm:$0xff] }
  0xac   :  { %7251 = vmatpush3.bf16.msra.mxu0 %v8895_v50  ;;  %v12508_v50 = vld [vmem:[#allocation10_spill] sm:$0xff] }
  0xad   :  { %7273 = vmatpush3.bf16.msra.mxu1 %v8901_v51  ;;  %7252 = vmatprep.subr.bf16.mxu0 %v8907_v52  ;;  %v12509_v51 = vld [vmem:[#allocation11_spill] sm:$0xff]  ;;  %v12510_v52 = vld [vmem:[#allocation12_spill] sm:$0xff] }
  0xae   :  { %7274 = vmatprep.subr.bf16.mxu1 %v8913_v53  ;;  %v12511_v53 = vld [vmem:[#allocation13_spill] sm:$0xff] }
  0xb0   :  { %7253 = vmatpush3.bf16.msra.mxu0 %v8919_v54  ;;  %v12512_v54 = vld [vmem:[#allocation14_spill] sm:$0xff] }
  0xb1   :  { %7275 = vmatpush3.bf16.msra.mxu1 %v8925_v55  ;;  %7254 = vmatprep.subr.bf16.mxu0 %v8931_v56  ;;  %v12513_v55 = vld [vmem:[#allocation15_spill] sm:$0xff]  ;;  %v12514_v56 = vld [vmem:[#allocation16_spill] sm:$0xff] }
  0xb2   :  { %7276 = vmatprep.subr.bf16.mxu1 %v8937_v57  ;;  %v12515_v57 = vld [vmem:[#allocation17_spill] sm:$0xff] }
  0xb4   :  { %7255 = vmatpush3.bf16.msra.mxu0 %v8943_v58  ;;  %v12516_v58 = vld [vmem:[#allocation18_spill] sm:$0xff] }
  0xb5   :  { %7277 = vmatpush3.bf16.msra.mxu1 %v8949_v59  ;;  %7256 = vmatprep.subr.bf16.mxu0 %v8955_v60  ;;  %v12517_v59 = vld [vmem:[#allocation19_spill] sm:$0xff]  ;;  %v12518_v60 = vld [vmem:[#allocation20_spill] sm:$0xff] }
  0xb6   :  { %7278 = vmatprep.subr.bf16.mxu1 %v8961_v61  ;;  %v12519_v61 = vld [vmem:[#allocation21_spill] sm:$0xff] }
  0xb8   :  { %7257 = vmatpush3.bf16.msra.mxu0 %v8967_v62  ;;  %v12520_v62 = vld [vmem:[#allocation22_spill] sm:$0xff] }
  0xb9   :  { %7279 = vmatpush3.bf16.msra.mxu1 %v8973_v63  ;;  %7258 = vmatprep.subr.bf16.mxu0 %v8979_v0  ;;  %v12521_v63 = vld [vmem:[#allocation23_spill] sm:$0xff]  ;;  %v12522_v0 = vld [vmem:[#allocation24_spill] sm:$0xff] }
  0xba   :  { %7280 = vmatprep.subr.bf16.mxu1 %v8985_v1  ;;  %v6600_v1 = vcombine.low %v1513_v28, %v1521_v29 }
  0xbc   :  { %7259 = vmatpush3.bf16.msra.mxu0 %v8991_v2  ;;  %v9689_v2 = vld [vmem:[%s12230_s0 + $0x70] sm:$0xff] }
  0xbd   :  { %7281 = vmatpush3.bf16.msra.mxu1 %v8997_v3  ;;  %7260 = vmatprep.subr.bf16.mxu0 %v9003_v4  ;;  %v9694_v3 = vld [vmem:[%s12230_s0 + $0x170] sm:$0xff] }
  0xbe   :  { %7282 = vmatprep.subr.bf16.mxu1 %v9009_v5  ;;  %v12523_v4 = vld [vmem:[#allocation25_spill] sm:$0xff]  ;;  %v6602_v5 = vcombine.low %v1514_v31, %v1522_v40 }
  0xbf   :  { %v12543_v31 = vld [vmem:[#allocation45_spill] sm:$0xff] }
  0xc0   :  { %7261 = vmatpush3.bf16.msra.mxu0 %v9015_v6  ;;  %v9700_v6 = vld [vmem:[%s12230_s0 + $0x78] sm:$0xff] }
  0xc1   :  { %7283 = vmatpush3.bf16.msra.mxu1 %v9021_v7  ;;  %7290 = vmatprep.subr.bf16.mxu0 %v9040_v16  ;;  %v9705_v7 = vld [vmem:[%s12230_s0 + $0x178] sm:$0xff] }
  0xc2   :  { %7312 = vmatprep.subr.bf16.mxu1 %v9045_v17  ;;  %v12524_v16 = vld [vmem:[#allocation26_spill] sm:$0xff]  ;;  %v12525_v17 = vld [vmem:[#allocation27_spill] sm:$0xff] }
  0xc3   :  { %1720 = vmatmul.mubr.bf16.vlgmr.msra.gmra.mrb[20].mxu0 %v6596_v27  ;;  %v12542_v27 = vld [vmem:[#allocation44_spill] sm:$0xff] }
  0xc4   :  { %1761 = vmatmul.mubr.bf16.vlgmr.msra.gmra.mrb[20].mxu1 %v6598_v30  ;;  %7291 = vmatpush3.bf16.msra.mxu0 %v9050_v18  ;;  %v12526_v18 = vld [vmem:[#allocation28_spill] sm:$0xff] }
  0xc5   :  { %7313 = vmatpush3.bf16.msra.mxu1 %v9056_v32  ;;  %7292 = vmatprep.subr.bf16.mxu0 %v9063_v33  ;;  %v6605_v32 = vcombine.high %v9689_v2, %v9694_v3  ;;  %v6607_v33 = vcombine.high %v9700_v6, %v9705_v7 }
  0xc6   :  { %7314 = vmatprep.subr.bf16.mxu1 %v9069_v34  ;;  %1801 = vmatprep.mubr.bf16.mxu0 %v6601_v41  ;;  %v12527_v34 = vld [vmem:[#allocation29_spill] sm:$0xff] }
  0xc7   :  { %1842 = vmatprep.mubr.bf16.mxu1 %v6603_v42 }
  0xc8   :  { %7293 = vmatpush3.bf16.msra.mxu0 %v9075_v35  ;;  %v12528_v35 = vld [vmem:[#allocation30_spill] sm:$0xff] }
  0xc9   :  { %7315 = vmatpush3.bf16.msra.mxu1 %v9081_v36  ;;  %7294 = vmatprep.subr.bf16.mxu0 %v12501_v43  ;;  %v12529_v36 = vld [vmem:[#allocation31_spill] sm:$0xff]  ;;  %v12544_v43 = vld [vmem:[#allocation46_spill] sm:$0xff] }
  0xca   :  { %7316 = vmatprep.subr.bf16.mxu1 %v12502_v44 }
  0xcc   :  { %7295 = vmatpush3.bf16.msra.mxu0 %v12503_v45  ;;  %v12545_v45 = vld [vmem:[#allocation47_spill] sm:$0xff] }
  0xcd   :  { %7317 = vmatpush3.bf16.msra.mxu1 %v12504_v46  ;;  %7296 = vmatprep.subr.bf16.mxu0 %v12505_v47 }
  0xce   :  { %7318 = vmatprep.subr.bf16.mxu1 %v12506_v48  ;;  %v12546_v48 = vld [vmem:[#allocation48_spill] sm:$0xff] }
  0xd0   :  { %7297 = vmatpush3.bf16.msra.mxu0 %v12507_v49 }
  0xd1   :  { %7319 = vmatpush3.bf16.msra.mxu1 %v12508_v50  ;;  %7298 = vmatprep.subr.bf16.mxu0 %v12509_v51 }
  0xd2   :  { %7320 = vmatprep.subr.bf16.mxu1 %v12510_v52 }
  0xd4   :  { %7299 = vmatpush3.bf16.msra.mxu0 %v12511_v53  ;;  %v12547_v53 = vld [vmem:[#allocation49_spill] sm:$0xff] }
  0xd5   :  { %7321 = vmatpush3.bf16.msra.mxu1 %v12512_v54  ;;  %7300 = vmatprep.subr.bf16.mxu0 %v12513_v55  ;;  %v12548_v54 = vld [vmem:[#allocation50_spill] sm:$0xff] }
  0xd6   :  { %7322 = vmatprep.subr.bf16.mxu1 %v12514_v56  ;;  %v12549_v56 = vld [vmem:[#allocation51_spill] sm:$0xff] }
  0xd8   :  { %7301 = vmatpush3.bf16.msra.mxu0 %v12515_v57  ;;  %v12550_v57 = vld [vmem:[#allocation52_spill] sm:$0xff] }
  0xd9   :  { %7323 = vmatpush3.bf16.msra.mxu1 %v12516_v58  ;;  %7302 = vmatprep.subr.bf16.mxu0 %v12517_v59  ;;  %v12551_v58 = vld [vmem:[#allocation53_spill] sm:$0xff]  ;;  %v12552_v59 = vld [vmem:[#allocation54_spill] sm:$0xff] }
  0xda   :  { %7324 = vmatprep.subr.bf16.mxu1 %v12518_v60  ;;  %v12553_v60 = vld [vmem:[#allocation55_spill] sm:$0xff] }
  0xdc   :  { %7303 = vmatpush3.bf16.msra.mxu0 %v12519_v61  ;;  %v12554_v61 = vld [vmem:[#allocation56_spill] sm:$0xff] }
  0xdd   :  { %7325 = vmatpush3.bf16.msra.mxu1 %v12520_v62  ;;  %7304 = vmatprep.subr.bf16.mxu0 %v12521_v63  ;;  %v6604_v62 = vcombine.low %v9689_v2, %v9694_v3  ;;  %v9749_v63 = vld [vmem:[%s12230_s0 + $0x80] sm:$0xff]  ;;  %v9767_v2 = vld [vmem:[%s12230_s0 + $0x188] sm:$0xff]  ;;  %v12556_v3 = vld [vmem:[#allocation58_spill] sm:$0xff] }
  0xde   :  { %7326 = vmatprep.subr.bf16.mxu1 %v12522_v0  ;;  %v9754_v0 = vld [vmem:[%s12230_s0 + $0x180] sm:$0xff] }
  0xe0   :  { %7305 = vmatpush3.bf16.msra.mxu0 %v12523_v4  ;;  %v6606_v4 = vcombine.low %v9700_v6, %v9705_v7  ;;  %v12559_v7 = vld [vmem:[#allocation61_spill] sm:$0xff] }
  0xe1   :  { %7327 = vmatpush3.bf16.msra.mxu1 %v12524_v16  ;;  %7334 = vmatprep.subr.bf16.mxu0 %v12525_v17  ;;  %v12557_v16 = vld [vmem:[#allocation59_spill] sm:$0xff]  ;;  %v12558_v17 = vld [vmem:[#allocation60_spill] sm:$0xff] }
  0xe2   :  { %7356 = vmatprep.subr.bf16.mxu1 %v12526_v18  ;;  %v6609_v18 = vcombine.high %v9749_v63, %v9754_v0 }
  0xe3   :  { %1802 = vmatmul.mubr.bf16.vlgmr.msra.gmra.mrb[24].mxu0 %v6600_v1  ;;  %v12555_v1 = vld [vmem:[#allocation57_spill] sm:$0xff] }
  0xe4   :  { %1843 = vmatmul.mubr.bf16.vlgmr.msra.gmra.mrb[24].mxu1 %v6602_v5  ;;  %7335 = vmatpush3.bf16.msra.mxu0 %v12527_v34  ;;  %v9762_v5 = vld [vmem:[%s12230_s0 + $0x88] sm:$0xff] }
  0xe5   :  { %7357 = vmatpush3.bf16.msra.mxu1 %v12528_v35  ;;  %7336 = vmatprep.subr.bf16.mxu0 %v12529_v36  ;;  %v6611_v6 = vcombine.high %v9762_v5, %v9767_v2  ;;  %v12562_v34 = vld [vmem:[#allocation64_spill] sm:$0xff] }
  0xe6   :  { %7358 = vmatprep.subr.bf16.mxu1 %v12530_v37  ;;  %1883 = vmatprep.mubr.bf16.mxu0 %v6605_v32  ;;  %v12560_v32 = vld [vmem:[#allocation62_spill] sm:$0xff] }
  0xe7   :  { %1924 = vmatprep.mubr.bf16.mxu1 %v6607_v33  ;;  %v12561_v33 = vld [vmem:[#allocation63_spill] sm:$0xff] }
  0xe8   :  { %7337 = vmatpush3.bf16.msra.mxu0 %v12531_v13 }
  0xe9   :  { %7359 = vmatpush3.bf16.msra.mxu1 %v12532_v8  ;;  %7338 = vmatprep.subr.bf16.mxu0 %v12533_v10 }
  0xea   :  { %7360 = vmatprep.subr.bf16.mxu1 %v12534_v19 }
  0xec   :  { %7339 = vmatpush3.bf16.msra.mxu0 %v12535_v20 }
  0xed   :  { %7361 = vmatpush3.bf16.msra.mxu1 %v12536_v21  ;;  %7340 = vmatprep.subr.bf16.mxu0 %v12537_v22 }
  0xee   :  { %7362 = vmatprep.subr.bf16.mxu1 %v12538_v23 }
  0xf0   :  { %7341 = vmatpush3.bf16.msra.mxu0 %v12539_v24 }
  0xf1   :  { %7363 = vmatpush3.bf16.msra.mxu1 %v12540_v25  ;;  %7342 = vmatprep.subr.bf16.mxu0 %v12541_v26 }
  0xf2   :  { %7364 = vmatprep.subr.bf16.mxu1 %v12542_v27 }
  0xf4   :  { %7343 = vmatpush3.bf16.msra.mxu0 %v12543_v31 }
  0xf5   :  { %7365 = vmatpush3.bf16.msra.mxu1 %v12544_v43  ;;  %7344 = vmatprep.subr.bf16.mxu0 %v12545_v45 }
  0xf6   :  { %v7042_v28 = vpop.f32.mrb[0].mxu0  ;;  %7366 = vmatprep.subr.bf16.mxu1 %v12546_v48 }
  0xf7   :  { %v7064_v29 = vpop.f32.mrb[0].mxu1  ;;  %v7043_v30 = vpop.f32.mrb[1].mxu0 }
  0xf8   :  { %v7044_v40 = vadd.f32 %v7043_v30, %v7042_v28  ;;  %v7065_v41 = vpop.f32.mrb[1].mxu1  ;;  %v7045_v42 = vpop.f32.mrb[2].mxu0  ;;  %7345 = vmatpush3.bf16.msra.mxu0 %v12547_v53  ;;  %v12563_v28 = vld [vmem:[#allocation65_spill] sm:$0xff]  ;;  %v12565_v30 = vld [vmem:[#allocation67_spill] sm:$0xff] }
  0xf9   :  { %v7066_v44 = vadd.f32 %v7065_v41, %v7064_v29  ;;  %v7067_v46 = vpop.f32.mrb[2].mxu1  ;;  %v7046_v47 = vpop.f32.mrb[3].mxu0  ;;  %7367 = vmatpush3.bf16.msra.mxu1 %v12548_v54  ;;  %7346 = vmatprep.subr.bf16.mxu0 %v12549_v56  ;;  %v12564_v29 = vld [vmem:[#allocation66_spill] sm:$0xff]  ;;  %v12567_v41 = vld [vmem:[#allocation69_spill] sm:$0xff] }
  0xfa   :  { %v7047_v49 = vadd.f32 %v7046_v47, %v7045_v42  ;;  %v7068_v50 = vpop.f32.mrb[3].mxu1  ;;  %7368 = vmatprep.subr.bf16.mxu1 %v12550_v57  ;;  %v12568_v42 = vld [vmem:[#allocation70_spill] sm:$0xff] }
  0xfb   :  { %v1257_v51 = vadd.f32 %v7066_v44, %v7044_v40  ;;  %v7069_v52 = vadd.f32 %v7068_v50, %v7067_v46  ;;  %v12566_v40 = vld [vmem:[#allocation68_spill] sm:$0xff] }
  0xfc   :  { %7347 = vmatpush3.bf16.msra.mxu0 %v12551_v58 }
  0xfd   :  { %v9736_v55 = vadd.f32 %v7069_v52, %v7047_v49  ;;  %7369 = vmatpush3.bf16.msra.mxu1 %v12552_v59  ;;  %7348 = vmatprep.subr.bf16.mxu0 %v12553_v60  ;;  %v9796_v49 = vld [vmem:[%s12229_s1 + $0xa0] sm:$0xff]  }
  0xfe   :  { %7370 = vmatprep.subr.bf16.mxu1 %v12554_v61  ;;  %12569 = vst [vmem:[#allocation3_spill] sm:$0xff] %v9796_v49 }
 0x100   :  { %7349 = vmatpush3.bf16.msra.mxu0 %v12555_v1 }
 0x101   :  { %7371 = vmatpush3.bf16.msra.mxu1 %v12556_v3  ;;  %7378 = vmatprep.subr.bf16.mxu0 %v12557_v16 }
 0x102   :  { %7400 = vmatprep.subr.bf16.mxu1 %v12558_v17 }
 0x103   :  { %1884 = vmatmul.mubr.bf16.vlgmr.msra.gmra.mrb[28].mxu0 %v6604_v62  ;;  %v9802_v62 = vld [vmem:[%s12229_s1 + $0x68] sm:$0xff]  }
 0x104   :  { %1925 = vmatmul.mubr.bf16.vlgmr.msra.gmra.mrb[28].mxu1 %v6606_v4  ;;  %7379 = vmatpush3.bf16.msra.mxu0 %v9484_v11  ;;  %12570 = vst [vmem:[#allocation4_spill] sm:$0xff] %v9802_v62 }
 0x105   :  { %7401 = vmatpush3.bf16.msra.mxu1 %v9490_v38  ;;  %7380 = vmatprep.subr.bf16.mxu0 %v12559_v7 }
 0x106   :  { %7402 = vmatprep.subr.bf16.mxu1 %v12560_v32  ;;  %2061 = vmatprep.mubr.bf16.mxu0 %v6609_v18 }
 0x107   :  { %2102 = vmatprep.mubr.bf16.mxu1 %v6611_v6  ;;  %v9808_v6 = vld [vmem:[%s12229_s1 + $0xe8] sm:$0xff]  }
 0x108   :  { %7381 = vmatpush3.bf16.msra.mxu0 %v9508_v15  ;;  %12571 = vst [vmem:[#allocation5_spill] sm:$0xff] %v9808_v6 }
 0x109   :  { %7403 = vmatpush3.bf16.msra.mxu1 %v12561_v33  ;;  %7382 = vmatprep.subr.bf16.mxu0 %v12562_v34 }
 0x10a   :  { %7404 = vmatprep.subr.bf16.mxu1 %v12563_v28 }
 0x10c   :  { %7383 = vmatpush3.bf16.msra.mxu0 %v12564_v29 }
 0x10d   :  { %7405 = vmatpush3.bf16.msra.mxu1 %v12565_v30  ;;  %7384 = vmatprep.subr.bf16.mxu0 %v12566_v40 }
 0x10e   :  { %7406 = vmatprep.subr.bf16.mxu1 %v12567_v41 }
 0x110   :  { %7385 = vmatpush3.bf16.msra.mxu0 %v12568_v42 }
 0x111   :  { %7407 = vmatpush3.bf16.msra.mxu1 %v9562_v14  ;;  %7386 = vmatprep.subr.bf16.mxu0 %v9568_v12  ;;  %v9814_v12 = vld [vmem:[%s12229_s1 + $0x28] sm:$0xff]  }
 0x112   :  { %7408 = vmatprep.subr.bf16.mxu1 %v9574_v9  ;;  %12572 = vst [vmem:[#allocation6_spill] sm:$0xff] %v9814_v12  ;;  %v10046_v14 = vld [vmem:[%s12229_s1 + $0x1a8] sm:$0xff]  }
 0x113   :  { %12604 = vst [vmem:[#allocation38_spill] sm:$0xff] %v10046_v14 }
 0x114   :  { %7387 = vmatpush3.bf16.msra.mxu0 %v9580_v39 }
 0x115   :  { %7409 = vmatpush3.bf16.msra.mxu1 %v9796_v49  ;;  %7388 = vmatprep.subr.bf16.mxu0 %v9802_v62  ;;  %v9822_v62 = vld [vmem:[%s12229_s1 + $0xa8] sm:$0xff]  }
 0x116   :  { %v7086_v44 = vpop.f32.mrb[4].mxu0  ;;  %7410 = vmatprep.subr.bf16.mxu1 %v9808_v6  ;;  %12573 = vst [vmem:[#allocation7_spill] sm:$0xff] %v9822_v62 }
 0x117   :  { %v7108_v46 = vpop.f32.mrb[4].mxu1  ;;  %v7087_v47 = vpop.f32.mrb[5].mxu0 }
 0x118   :  { %v7088_v50 = vadd.f32 %v7087_v47, %v7086_v44  ;;  %v7109_v52 = vpop.f32.mrb[5].mxu1  ;;  %v7089_v4 = vpop.f32.mrb[6].mxu0  ;;  %7389 = vmatpush3.bf16.msra.mxu0 %v9814_v12 }
 0x119   :  { %v7110_v18 = vadd.f32 %v7109_v52, %v7108_v46  ;;  %v7111_v39 = vpop.f32.mrb[6].mxu1  ;;  %v7090_v49 = vpop.f32.mrb[7].mxu0  ;;  %7411 = vmatpush3.bf16.msra.mxu1 %v9822_v62  ;;  %v10039_v62 = vld [vmem:[%s12229_s1 + $0x128] sm:$0xff]  }
 0x11a   :  { %v1298_v44 = vadd.f32 %v7088_v50, %v1257_v51  ;;  %v7091_v47 = vadd.f32 %v7090_v49, %v7089_v4  ;;  %v7112_v9 = vpop.f32.mrb[7].mxu1  ;;  %v9829_v49 = vld [vmem:[%s12229_s1 + $0x70] sm:$0xff]   ;;  %v9855_v4 = vld [vmem:[%s12229_s1 + $0x78] sm:$0xff]   ;;  %12603 = vst [vmem:[#allocation37_spill] sm:$0xff] %v10039_v62 }
 0x11b   :  { %v7113_v46 = vadd.f32 %v7112_v9, %v7111_v39  ;;  %12574 = vst [vmem:[#allocation8_spill] sm:$0xff] %v9829_v49  ;;  %7390 = vmatprep.subr.bf16.mxu0 %v9829_v49  ;;  %v9835_v9 = vld [vmem:[%s12229_s1 + $0xf0] sm:$0xff]   ;;  %12578 = vst [vmem:[#allocation12_spill] sm:$0xff] %v9855_v4 }
 0x11c   :  { %v9817_v52 = vadd.f32 %v7110_v18, %v1298_v44  ;;  %v1301_v51 = vadd.f32 %v7091_v47, %v9736_v55  ;;  %12575 = vst [vmem:[#allocation9_spill] sm:$0xff] %v9835_v9  ;;  %7412 = vmatprep.subr.bf16.mxu1 %v9835_v9  ;;  %v9843_v55 = vld [vmem:[%s12229_s1 + $0x30] sm:$0xff]   ;;  %v9861_v18 = vld [vmem:[%s12229_s1 + $0xf8] sm:$0xff]   ;;  %v6608_v44 = vcombine.low %v9749_v63, %v9754_v0 }
 0x11d   :  { %12576 = vst [vmem:[#allocation10_spill] sm:$0xff] %v9843_v55  ;;  %7391 = vmatpush3.bf16.msra.mxu0 %v9843_v55  ;;  %v9849_v50 = vld [vmem:[%s12229_s1 + $0xb0] sm:$0xff]   ;;  %12579 = vst [vmem:[#allocation13_spill] sm:$0xff] %v9861_v18  ;;  %v6610_v63 = vcombine.low %v9762_v5, %v9767_v2  ;;  %v9887_v0 = vld [vmem:[%s12230_s0 + $0x98] sm:$0xff] }
 0x11e   :  { %v9838_v39 = vadd.f32 %v7113_v46, %v1301_v51  ;;  %12577 = vst [vmem:[#allocation11_spill] sm:$0xff] %v9849_v50  ;;  %7413 = vmatpush3.bf16.msra.mxu1 %v9849_v50  ;;  %7392 = vmatprep.subr.bf16.mxu0 %v9855_v4  ;;  %v9869_v47 = vld [vmem:[%s12230_s0 + $0x90] sm:$0xff]  ;;  %v9879_v51 = vld [vmem:[%s12229_s1 + $0x38] sm:$0xff]   ;;  %v9903_v5 = vld [vmem:[%s12229_s1 + $0x140] sm:$0xff]  }
 0x11f   :  { %7414 = vmatprep.subr.bf16.mxu1 %v9861_v18  ;;  %v9874_v46 = vld [vmem:[%s12230_s0 + $0x190] sm:$0xff]  ;;  %12580 = vst [vmem:[#allocation14_spill] sm:$0xff] %v9879_v51  ;;  %v9892_v18 = vld [vmem:[%s12230_s0 + $0x198] sm:$0xff]  ;;  %12582 = vst [vmem:[#allocation16_spill] sm:$0xff] %v9903_v5 }
 0x120   :  { %v9897_v4 = vld [vmem:[%s12229_s1 + $0xb8] sm:$0xff]   ;;  %v9909_v2 = vld [vmem:[%s12229_s1 + $0x1c0] sm:$0xff]  }
 0x121   :  { %7393 = vmatpush3.bf16.msra.mxu0 %v9879_v51  ;;  %12581 = vst [vmem:[#allocation15_spill] sm:$0xff] %v9897_v4  ;;  %12583 = vst [vmem:[#allocation17_spill] sm:$0xff] %v9909_v2  ;;  %v6613_v51 = vcombine.high %v9869_v47, %v9874_v46  ;;  %v9919_v50 = vld [vmem:[%s12229_s1 + $0x100] sm:$0xff]  }
 0x122   :  { %7415 = vmatpush3.bf16.msra.mxu1 %v9897_v4  ;;  %7422 = vmatprep.subr.bf16.mxu0 %v9903_v5  ;;  %v6615_v4 = vcombine.high %v9887_v0, %v9892_v18  ;;  %12584 = vst [vmem:[#allocation18_spill] sm:$0xff] %v9919_v50  ;;  %v9925_v5 = vld [vmem:[%s12229_s1 + $0x180] sm:$0xff]  }
 0x123   :  { %7444 = vmatprep.subr.bf16.mxu1 %v9909_v2  ;;  %12585 = vst [vmem:[#allocation19_spill] sm:$0xff] %v9925_v5 }
 0x124   :  { %2062 = vmatmul.mubr.bf16.vlgmr.msra.gmra.mrb[32].mxu0 %v6608_v44  ;;  %v9931_v44 = vld [vmem:[%s12229_s1 + $0x148] sm:$0xff]  }
 0x125   :  { %2103 = vmatmul.mubr.bf16.vlgmr.msra.gmra.mrb[32].mxu1 %v6610_v63  ;;  %7423 = vmatpush3.bf16.msra.mxu0 %v9919_v50  ;;  %12586 = vst [vmem:[#allocation20_spill] sm:$0xff] %v9931_v44  ;;  %v9937_v63 = vld [vmem:[%s12229_s1 + $0x1c8] sm:$0xff]  }
 0x126   :  { %7445 = vmatpush3.bf16.msra.mxu1 %v9925_v5  ;;  %7424 = vmatprep.subr.bf16.mxu0 %v9931_v44  ;;  %12587 = vst [vmem:[#allocation21_spill] sm:$0xff] %v9937_v63  ;;  %v9943_v5 = vld [vmem:[%s12229_s1 + $0x108] sm:$0xff]  }
 0x127   :  { %7446 = vmatprep.subr.bf16.mxu1 %v9937_v63  ;;  %2143 = vmatprep.mubr.bf16.mxu0 %v6613_v51  ;;  %12588 = vst [vmem:[#allocation22_spill] sm:$0xff] %v9943_v5  ;;  %v9949_v44 = vld [vmem:[%s12229_s1 + $0x188] sm:$0xff]   ;;  %v9955_v63 = vld [vmem:[%s12229_s1 + $0x150] sm:$0xff]  }
 0x128   :  { %2184 = vmatprep.mubr.bf16.mxu1 %v6615_v4  ;;  %12589 = vst [vmem:[#allocation23_spill] sm:$0xff] %v9949_v44  ;;  %12590 = vst [vmem:[#allocation24_spill] sm:$0xff] %v9955_v63  ;;  %v9961_v4 = vld [vmem:[%s12229_s1 + $0x1d0] sm:$0xff]  }
 0x129   :  { %7425 = vmatpush3.bf16.msra.mxu0 %v9943_v5  ;;  %12591 = vst [vmem:[#allocation25_spill] sm:$0xff] %v9961_v4  ;;  %v9967_v51 = vld [vmem:[%s12229_s1 + $0x110] sm:$0xff]  }
 0x12a   :  { %7447 = vmatpush3.bf16.msra.mxu1 %v9949_v44  ;;  %7426 = vmatprep.subr.bf16.mxu0 %v9955_v63  ;;  %12592 = vst [vmem:[#allocation26_spill] sm:$0xff] %v9967_v51  ;;  %v9973_v44 = vld [vmem:[%s12229_s1 + $0x190] sm:$0xff]   ;;  %v9979_v63 = vld [vmem:[%s12229_s1 + $0x158] sm:$0xff]  }
 0x12b   :  { %7448 = vmatprep.subr.bf16.mxu1 %v9961_v4  ;;  %12593 = vst [vmem:[#allocation27_spill] sm:$0xff] %v9973_v44  ;;  %12594 = vst [vmem:[#allocation28_spill] sm:$0xff] %v9979_v63  ;;  %v9985_v4 = vld [vmem:[%s12229_s1 + $0x1d8] sm:$0xff]  }
 0x12c   :  { %12595 = vst [vmem:[#allocation29_spill] sm:$0xff] %v9985_v4 }
 0x12d   :  { %7427 = vmatpush3.bf16.msra.mxu0 %v9967_v51  ;;  %v9991_v51 = vld [vmem:[%s12229_s1 + $0x118] sm:$0xff]  }
 0x12e   :  { %7449 = vmatpush3.bf16.msra.mxu1 %v9973_v44  ;;  %7428 = vmatprep.subr.bf16.mxu0 %v9979_v63  ;;  %12596 = vst [vmem:[#allocation30_spill] sm:$0xff] %v9991_v51  ;;  %v9997_v44 = vld [vmem:[%s12229_s1 + $0x198] sm:$0xff]   ;;  %v10003_v63 = vld [vmem:[%s12229_s1 + $0x160] sm:$0xff]  }
 0x12f   :  { %7450 = vmatprep.subr.bf16.mxu1 %v9985_v4  ;;  %12597 = vst [vmem:[#allocation31_spill] sm:$0xff] %v9997_v44  ;;  %12598 = vst [vmem:[#allocation32_spill] sm:$0xff] %v10003_v63  ;;  %v10009_v4 = vld [vmem:[%s12229_s1 + $0x1e0] sm:$0xff]  }
 0x130   :  { %12599 = vst [vmem:[#allocation33_spill] sm:$0xff] %v10009_v4 }
 0x131   :  { %7429 = vmatpush3.bf16.msra.mxu0 %v9991_v51  ;;  %v10015_v51 = vld [vmem:[%s12229_s1 + $0x120] sm:$0xff]  }
 0x132   :  { %7451 = vmatpush3.bf16.msra.mxu1 %v9997_v44  ;;  %7430 = vmatprep.subr.bf16.mxu0 %v10003_v63  ;;  %12600 = vst [vmem:[#allocation34_spill] sm:$0xff] %v10015_v51  ;;  %v10021_v44 = vld [vmem:[%s12229_s1 + $0x1a0] sm:$0xff]  }
 0x133   :  { %7452 = vmatprep.subr.bf16.mxu1 %v10009_v4  ;;  %12601 = vst [vmem:[#allocation35_spill] sm:$0xff] %v10021_v44  ;;  %v10027_v4 = vld [vmem:[%s12229_s1 + $0x168] sm:$0xff]  }
 0x134   :  { %12602 = vst [vmem:[#allocation36_spill] sm:$0xff] %v10027_v4 }
 0x135   :  { %7431 = vmatpush3.bf16.msra.mxu0 %v10015_v51  ;;  %v10033_v51 = vld [vmem:[%s12229_s1 + $0x1e8] sm:$0xff]  }
 0x136   :  { %7453 = vmatpush3.bf16.msra.mxu1 %v10021_v44  ;;  %v7130_v63 = vpop.f32.mrb[8].mxu0  ;;  %7432 = vmatprep.subr.bf16.mxu0 %v10027_v4 }
 0x137   :  { %v7152_v5 = vpop.f32.mrb[8].mxu1  ;;  %v7131_v50 = vpop.f32.mrb[9].mxu0  ;;  %7454 = vmatprep.subr.bf16.mxu1 %v10033_v51 }
 0x138   :  { %v7153_v2 = vpop.f32.mrb[9].mxu1  ;;  %v7132_v55 = vadd.f32 %v7131_v50, %v7130_v63  ;;  %v7133_v9 = vpop.f32.mrb[10].mxu0 }
 0x139   :  { %v7154_v44 = vadd.f32 %v7153_v2, %v7152_v5  ;;  %v7155_v49 = vpop.f32.mrb[10].mxu1  ;;  %7433 = vmatpush3.bf16.msra.mxu0 %v10039_v62  ;;  %v7134_v4 = vpop.f32.mrb[11].mxu0  ;;  %v10052_v2 = vld [vmem:[%s12229_s1 + $0x170] sm:$0xff]  }
 0x13a   :  { %v7156_v12 = vpop.f32.mrb[11].mxu1  ;;  %v1380_v6 = vadd.f32 %v7132_v55, %v9817_v52  ;;  %7455 = vmatpush3.bf16.msra.mxu1 %v10046_v14  ;;  %v7135_v50 = vadd.f32 %v7134_v4, %v7133_v9  ;;  %12605 = vst [vmem:[#allocation39_spill] sm:$0xff] %v10052_v2  ;;  %7434 = vmatprep.subr.bf16.mxu0 %v10052_v2  ;;  %v10058_v52 = vld [vmem:[%s12229_s1 + $0x1f0] sm:$0xff]   ;;  %v10095_v4 = vld [vmem:[%s12230_s0 + $0xa0] sm:$0xff]  ;;  %v10271_v2 = vld [vmem:[%s12229_s1 + $0x2a8] sm:$0xff]  }
 0x13b   :  { %v7157_v5 = vadd.f32 %v7156_v12, %v7155_v49  ;;  %12606 = vst [vmem:[#allocation40_spill] sm:$0xff] %v10058_v52  ;;  %7456 = vmatprep.subr.bf16.mxu1 %v10058_v52  ;;  %v10067_v12 = vld [vmem:[%s12229_s1 + $0x130] sm:$0xff]   ;;  %12636 = vst [vmem:[#allocation70_spill] sm:$0xff] %v10271_v2 }
 0x13c   :  { %v10061_v55 = vadd.f32 %v7154_v44, %v1380_v6  ;;  %v1383_v63 = vadd.f32 %v7135_v50, %v9838_v39  ;;  %12607 = vst [vmem:[#allocation41_spill] sm:$0xff] %v10067_v12  ;;  %v10075_v9 = vld [vmem:[%s12229_s1 + $0x1b0] sm:$0xff]   ;;  %v10081_v6 = vld [vmem:[%s12229_s1 + $0x178] sm:$0xff]   ;;  %v6612_v44 = vcombine.low %v9869_v47, %v9874_v46  ;;  %v10100_v50 = vld [vmem:[%s12230_s0 + $0x1a0] sm:$0xff]  ;;  %v6614_v47 = vcombine.low %v9887_v0, %v9892_v18 }
 0x13d   :  { %7435 = vmatpush3.bf16.msra.mxu0 %v10067_v12  ;;  %12608 = vst [vmem:[#allocation42_spill] sm:$0xff] %v10075_v9  ;;  %12609 = vst [vmem:[#allocation43_spill] sm:$0xff] %v10081_v6  ;;  %v10087_v39 = vld [vmem:[%s12229_s1 + $0x1f8] sm:$0xff]   ;;  %v10113_v46 = vld [vmem:[%s12230_s0 + $0xa8] sm:$0xff] }
 0x13e   :  { %v10070_v49 = vadd.f32 %v7157_v5, %v1383_v63  ;;  %7457 = vmatpush3.bf16.msra.mxu1 %v10075_v9  ;;  %7436 = vmatprep.subr.bf16.mxu0 %v10081_v6  ;;  %12610 = vst [vmem:[#allocation44_spill] sm:$0xff] %v10087_v39  ;;  %v10105_v5 = vld [vmem:[%s12229_s1 + $0x138] sm:$0xff]   ;;  %v10118_v63 = vld [vmem:[%s12230_s0 + $0x1a8] sm:$0xff]  ;;  %v10129_v18 = vld [vmem:[%s12229_s1 + $0x240] sm:$0xff]  }
 0x13f   :  { %7458 = vmatprep.subr.bf16.mxu1 %v10087_v39  ;;  %12611 = vst [vmem:[#allocation45_spill] sm:$0xff] %v10105_v5  ;;  %v10123_v39 = vld [vmem:[%s12229_s1 + $0x1b8] sm:$0xff]   ;;  %12613 = vst [vmem:[#allocation47_spill] sm:$0xff] %v10129_v18  ;;  %v10135_v0 = vld [vmem:[%s12229_s1 + $0x2c0] sm:$0xff]  }
 0x140   :  { %12612 = vst [vmem:[#allocation46_spill] sm:$0xff] %v10123_v39  ;;  %12614 = vst [vmem:[#allocation48_spill] sm:$0xff] %v10135_v0  ;;  %v10145_v6 = vld [vmem:[%s12229_s1 + $0x200] sm:$0xff]   ;;  %v10265_v12 = vld [vmem:[%s12229_s1 + $0x228] sm:$0xff]  }
 0x141   :  { %7437 = vmatpush3.bf16.msra.mxu0 %v10105_v5  ;;  %v6617_v5 = vcombine.high %v10095_v4, %v10100_v50  ;;  %12615 = vst [vmem:[#allocation49_spill] sm:$0xff] %v10145_v6  ;;  %12635 = vst [vmem:[#allocation69_spill] sm:$0xff] %v10265_v12 }
 0x142   :  { %7459 = vmatpush3.bf16.msra.mxu1 %v10123_v39  ;;  %7466 = vmatprep.subr.bf16.mxu0 %v10129_v18  ;;  %v6619_v39 = vcombine.high %v10113_v46, %v10118_v63  ;;  %v10151_v18 = vld [vmem:[%s12229_s1 + $0x280] sm:$0xff]  }
 0x143   :  { %7488 = vmatprep.subr.bf16.mxu1 %v10135_v0  ;;  %12616 = vst [vmem:[#allocation50_spill] sm:$0xff] %v10151_v18 }
 0x144   :  { %2144 = vmatmul.mubr.bf16.vlgmr.msra.gmra.mrb[36].mxu0 %v6612_v44  ;;  %v10157_v44 = vld [vmem:[%s12229_s1 + $0x248] sm:$0xff]  }
 0x145   :  { %2185 = vmatmul.mubr.bf16.vlgmr.msra.gmra.mrb[36].mxu1 %v6614_v47  ;;  %7467 = vmatpush3.bf16.msra.mxu0 %v10145_v6  ;;  %12617 = vst [vmem:[#allocation51_spill] sm:$0xff] %v10157_v44  ;;  %v10163_v47 = vld [vmem:[%s12229_s1 + $0x2c8] sm:$0xff]  }
 0x146   :  { %7489 = vmatpush3.bf16.msra.mxu1 %v10151_v18  ;;  %7468 = vmatprep.subr.bf16.mxu0 %v10157_v44  ;;  %12618 = vst [vmem:[#allocation52_spill] sm:$0xff] %v10163_v47  ;;  %v10169_v18 = vld [vmem:[%s12229_s1 + $0x208] sm:$0xff]  }
 0x147   :  { %7490 = vmatprep.subr.bf16.mxu1 %v10163_v47  ;;  %2225 = vmatprep.mubr.bf16.mxu0 %v6617_v5  ;;  %12619 = vst [vmem:[#allocation53_spill] sm:$0xff] %v10169_v18  ;;  %v10175_v44 = vld [vmem:[%s12229_s1 + $0x288] sm:$0xff]   ;;  %v10181_v47 = vld [vmem:[%s12229_s1 + $0x250] sm:$0xff]  }
 0x148   :  { %2266 = vmatprep.mubr.bf16.mxu1 %v6619_v39  ;;  %12620 = vst [vmem:[#allocation54_spill] sm:$0xff] %v10175_v44  ;;  %12621 = vst [vmem:[#allocation55_spill] sm:$0xff] %v10181_v47  ;;  %v10187_v39 = vld [vmem:[%s12229_s1 + $0x2d0] sm:$0xff]  }
 0x149   :  { %7469 = vmatpush3.bf16.msra.mxu0 %v10169_v18  ;;  %12622 = vst [vmem:[#allocation56_spill] sm:$0xff] %v10187_v39  ;;  %v10193_v5 = vld [vmem:[%s12229_s1 + $0x210] sm:$0xff]   ;;  %v10259_v18 = vld [vmem:[%s12229_s1 + $0x2e8] sm:$0xff]  }
 0x14a   :  { %7491 = vmatpush3.bf16.msra.mxu1 %v10175_v44  ;;  %7470 = vmatprep.subr.bf16.mxu0 %v10181_v47  ;;  %12623 = vst [vmem:[#allocation57_spill] sm:$0xff] %v10193_v5  ;;  %v10199_v44 = vld [vmem:[%s12229_s1 + $0x290] sm:$0xff]   ;;  %v10205_v47 = vld [vmem:[%s12229_s1 + $0x258] sm:$0xff]   ;;  %12634 = vst [vmem:[#allocation68_spill] sm:$0xff] %v10259_v18 }
 0x14b   :  { %7492 = vmatprep.subr.bf16.mxu1 %v10187_v39  ;;  %12624 = vst [vmem:[#allocation58_spill] sm:$0xff] %v10199_v44  ;;  %12625 = vst [vmem:[#allocation59_spill] sm:$0xff] %v10205_v47  ;;  %v10211_v39 = vld [vmem:[%s12229_s1 + $0x2d8] sm:$0xff]  }
 0x14c   :  { %12626 = vst [vmem:[#allocation60_spill] sm:$0xff] %v10211_v39 }
 0x14d   :  { %7471 = vmatpush3.bf16.msra.mxu0 %v10193_v5  ;;  %v10217_v5 = vld [vmem:[%s12229_s1 + $0x218] sm:$0xff]  }
 0x14e   :  { %7493 = vmatpush3.bf16.msra.mxu1 %v10199_v44  ;;  %7472 = vmatprep.subr.bf16.mxu0 %v10205_v47  ;;  %12627 = vst [vmem:[#allocation61_spill] sm:$0xff] %v10217_v5  ;;  %v10223_v44 = vld [vmem:[%s12229_s1 + $0x298] sm:$0xff]   ;;  %v10229_v47 = vld [vmem:[%s12229_s1 + $0x260] sm:$0xff]  }
 0x14f   :  { %7494 = vmatprep.subr.bf16.mxu1 %v10211_v39  ;;  %12628 = vst [vmem:[#allocation62_spill] sm:$0xff] %v10223_v44  ;;  %12629 = vst [vmem:[#allocation63_spill] sm:$0xff] %v10229_v47  ;;  %v10235_v39 = vld [vmem:[%s12229_s1 + $0x2e0] sm:$0xff]  }
 0x150   :  { %12630 = vst [vmem:[#allocation64_spill] sm:$0xff] %v10235_v39 }
 0x151   :  { %7473 = vmatpush3.bf16.msra.mxu0 %v10217_v5  ;;  %v10241_v5 = vld [vmem:[%s12229_s1 + $0x220] sm:$0xff]  }
 0x152   :  { %7495 = vmatpush3.bf16.msra.mxu1 %v10223_v44  ;;  %7474 = vmatprep.subr.bf16.mxu0 %v10229_v47  ;;  %12631 = vst [vmem:[#allocation65_spill] sm:$0xff] %v10241_v5  ;;  %v10247_v44 = vld [vmem:[%s12229_s1 + $0x2a0] sm:$0xff]   ;;  %v10253_v47 = vld [vmem:[%s12229_s1 + $0x268] sm:$0xff]  }
 0x153   :  { %7496 = vmatprep.subr.bf16.mxu1 %v10235_v39  ;;  %12632 = vst [vmem:[#allocation66_spill] sm:$0xff] %v10247_v44  ;;  %12633 = vst [vmem:[#allocation67_spill] sm:$0xff] %v10253_v47 }
 0x155   :  { %7475 = vmatpush3.bf16.msra.mxu0 %v10241_v5 }
 0x156   :  { %7497 = vmatpush3.bf16.msra.mxu1 %v10247_v44  ;;  %7476 = vmatprep.subr.bf16.mxu0 %v10253_v47  ;;  %v7174_v39 = vpop.f32.mrb[12].mxu0 }
 0x157   :  { %7498 = vmatprep.subr.bf16.mxu1 %v10259_v18  ;;  %v7196_v5 = vpop.f32.mrb[12].mxu1  ;;  %v7175_v6 = vpop.f32.mrb[13].mxu0 }
 0x158   :  { %v7176_v0 = vadd.f32 %v7175_v6, %v7174_v39  ;;  %v7197_v9 = vpop.f32.mrb[13].mxu1  ;;  %v7177_v44 = vpop.f32.mrb[14].mxu0  ;;  %v10277_v6 = vld [vmem:[%s12229_s1 + $0x270] sm:$0xff]  }
 0x159   :  { %7477 = vmatpush3.bf16.msra.mxu0 %v10265_v12  ;;  %v7198_v47 = vadd.f32 %v7197_v9, %v7196_v5  ;;  %v7199_v52 = vpop.f32.mrb[14].mxu1  ;;  %v7178_v18 = vpop.f32.mrb[15].mxu0  ;;  %12637 = vst [vmem:[#allocation75_spill] sm:$0xff] %v10277_v6  ;;  %v10284_v5 = vld [vmem:[%s12229_s1 + $0x2f0] sm:$0xff]  }
 0x15a   :  { %7499 = vmatpush3.bf16.msra.mxu1 %v10271_v2  ;;  %7478 = vmatprep.subr.bf16.mxu0 %v10277_v6  ;;  %v1462_v39 = vadd.f32 %v7176_v0, %v10061_v55  ;;  %v7179_v12 = vadd.f32 %v7178_v18, %v7177_v44  ;;  %v7200_v9 = vpop.f32.mrb[15].mxu1  ;;  %v10293_v6 = vld [vmem:[%s12229_s1 + $0x230] sm:$0xff]   ;;  %v6616_v18 = vcombine.low %v10095_v4, %v10100_v50  ;;  %v10335_v44 = vld [vmem:[%s12229_s1 + $0x238] sm:$0xff]  }
 0x15b   :  { %7500 = vmatprep.subr.bf16.mxu1 %v10284_v5  ;;  %v7201_v2 = vadd.f32 %v7200_v9, %v7199_v52  ;;  %v10299_v55 = vld [vmem:[%s12229_s1 + $0x2b0] sm:$0xff]   ;;  %v10305_v52 = vld [vmem:[%s12229_s1 + $0x278] sm:$0xff]   ;;  %v6618_v4 = vcombine.low %v10113_v46, %v10118_v63  ;;  %v10359_v46 = vld [vmem:[%s12229_s1 + $0x340] sm:$0xff]  }
 0x15c   :  { %v10287_v14 = vadd.f32 %v7198_v47, %v1462_v39  ;;  %v1465_v62 = vadd.f32 %v7179_v12, %v10070_v49  ;;  %v10313_v49 = vld [vmem:[%s12229_s1 + $0x2f8] sm:$0xff]   ;;  %v10321_v0 = vld [vmem:[%s12230_s0 + $0xb0] sm:$0xff]  ;;  %v10365_v63 = vld [vmem:[%s12229_s1 + $0x3c0] sm:$0xff]  }
 0x15d   :  { %7479 = vmatpush3.bf16.msra.mxu0 %v10293_v6  ;;  %v10343_v50 = vld [vmem:[%s12230_s0 + $0xb8] sm:$0xff] }
 0x15e   :  { %12638 = vst [vmem:[#allocation76_spill] sm:$0xff] %v10287_v14  ;;  %7501 = vmatpush3.bf16.msra.mxu1 %v10299_v55  ;;  %7480 = vmatprep.subr.bf16.mxu0 %v10305_v52  ;;  %v10308_v12 = vadd.f32 %v7201_v2, %v1465_v62  ;;  %v10326_v62 = vld [vmem:[%s12230_s0 + $0x1b0] sm:$0xff]  ;;  %v10348_v47 = vld [vmem:[%s12230_s0 + $0x1b8] sm:$0xff] }
 0x15f   :  { %7502 = vmatprep.subr.bf16.mxu1 %v10313_v49  ;;  %v10353_v39 = vld [vmem:[%s12229_s1 + $0x2b8] sm:$0xff]   ;;  %v6621_v9 = vcombine.high %v10321_v0, %v10326_v62 }
 0x160   :  { %12639 = vst [vmem:[#allocation77_spill] sm:$0xff] %v10308_v12  ;;  %v10330_v2 = vadd.f32 %v10308_v12, %v10287_v14  ;;  %v6623_v12 = vcombine.high %v10343_v50, %v10348_v47  ;;  %v10375_v14 = vld [vmem:[%s12229_s1 + $0x300] sm:$0xff]  }
 0x161   :  { %7481 = vmatpush3.bf16.msra.mxu0 %v10335_v44 }
 0x162   :  { %7503 = vmatpush3.bf16.msra.mxu1 %v10353_v39  ;;  %7510 = vmatprep.subr.bf16.mxu0 %v10359_v46 }
 0x163   :  { %7532 = vmatprep.subr.bf16.mxu1 %v10365_v63 }
 0x164   :  { %2226 = vmatmul.mubr.bf16.vlgmr.msra.gmra.mrb[40].mxu0 %v6616_v18 }
 0x165   :  { %2267 = vmatmul.mubr.bf16.vlgmr.msra.gmra.mrb[40].mxu1 %v6618_v4  ;;  %7511 = vmatpush3.bf16.msra.mxu0 %v10375_v14  ;;  %v12651_v4 = vld [vmem:[#allocation10_spill] sm:$0xff] }
 0x166   :  { %7533 = vmatpush3.bf16.msra.mxu1 %v12528_v35  ;;  %7512 = vmatprep.subr.bf16.mxu0 %v12529_v36 }
 0x167   :  { %7534 = vmatprep.subr.bf16.mxu1 %v12530_v37  ;;  %2307 = vmatprep.mubr.bf16.mxu0 %v6621_v9 }
 0x168   :  { %2348 = vmatprep.mubr.bf16.mxu1 %v6623_v12  ;;  %v12650_v12 = vld [vmem:[#allocation9_spill] sm:$0xff] }
 0x169   :  { %7513 = vmatpush3.bf16.msra.mxu0 %v12531_v13 }
 0x16a   :  { %7535 = vmatpush3.bf16.msra.mxu1 %v12532_v8  ;;  %7514 = vmatprep.subr.bf16.mxu0 %v12533_v10 }
 0x16b   :  { %7536 = vmatprep.subr.bf16.mxu1 %v12534_v19 }
 0x16d   :  { %7515 = vmatpush3.bf16.msra.mxu0 %v12535_v20 }
 0x16e   :  { %7537 = vmatpush3.bf16.msra.mxu1 %v12536_v21  ;;  %7516 = vmatprep.subr.bf16.mxu0 %v12537_v22 }
 0x16f   :  { %7538 = vmatprep.subr.bf16.mxu1 %v12538_v23 }
 0x171   :  { %7517 = vmatpush3.bf16.msra.mxu0 %v12539_v24 }
 0x172   :  { %7539 = vmatpush3.bf16.msra.mxu1 %v12540_v25  ;;  %7518 = vmatprep.subr.bf16.mxu0 %v12541_v26 }
 0x173   :  { %7540 = vmatprep.subr.bf16.mxu1 %v12542_v27  ;;  %v6620_v27 = vcombine.low %v10321_v0, %v10326_v62 }
 0x175   :  { %7519 = vmatpush3.bf16.msra.mxu0 %v12543_v31  ;;  %v10410_v31 = vld [vmem:[%s12230_s0 + $0xc0] sm:$0xff] }
 0x176   :  { %7541 = vmatpush3.bf16.msra.mxu1 %v12544_v43  ;;  %7520 = vmatprep.subr.bf16.mxu0 %v12545_v45  ;;  %v7218_v35 = vpop.f32.mrb[16].mxu0  ;;  %v10415_v43 = vld [vmem:[%s12230_s0 + $0x1c0] sm:$0xff]  ;;  %v6622_v45 = vcombine.low %v10343_v50, %v10348_v47  ;;  %v12653_v47 = vld [vmem:[#allocation12_spill] sm:$0xff] }
 0x177   :  { %7542 = vmatprep.subr.bf16.mxu1 %v12546_v48  ;;  %v7240_v36 = vpop.f32.mrb[16].mxu1  ;;  %v7219_v37 = vpop.f32.mrb[17].mxu0  ;;  %v10423_v48 = vld [vmem:[%s12230_s0 + $0xc8] sm:$0xff]  ;;  %v12652_v50 = vld [vmem:[#allocation11_spill] sm:$0xff] }
 0x178   :  { %v7220_v13 = vadd.f32 %v7219_v37, %v7218_v35  ;;  %v7241_v8 = vpop.f32.mrb[17].mxu1  ;;  %v7221_v10 = vpop.f32.mrb[18].mxu0  ;;  %v12654_v35 = vld [vmem:[#allocation13_spill] sm:$0xff] }
 0x179   :  { %7521 = vmatpush3.bf16.msra.mxu0 %v12547_v53  ;;  %v7242_v19 = vadd.f32 %v7241_v8, %v7240_v36  ;;  %v7243_v20 = vpop.f32.mrb[18].mxu1  ;;  %v7222_v21 = vpop.f32.mrb[19].mxu0  ;;  %v10428_v53 = vld [vmem:[%s12230_s0 + $0x1c8] sm:$0xff]  ;;  %v6624_v36 = vcombine.low %v10410_v31, %v10415_v43  ;;  %v10470_v37 = vld [vmem:[%s12230_s0 + $0xd0] sm:$0xff]  ;;  %v12655_v8 = vld [vmem:[#allocation14_spill] sm:$0xff] }
 0x17a   :  { %7543 = vmatpush3.bf16.msra.mxu1 %v12548_v54  ;;  %7522 = vmatprep.subr.bf16.mxu0 %v12549_v56  ;;  %v7223_v22 = vadd.f32 %v7222_v21, %v7221_v10  ;;  %v7244_v23 = vpop.f32.mrb[19].mxu1  ;;  %v6625_v54 = vcombine.high %v10410_v31, %v10415_v43  ;;  %v6627_v56 = vcombine.high %v10423_v48, %v10428_v53  ;;  %v12656_v21 = vld [vmem:[#allocation15_spill] sm:$0xff]  ;;  %v12661_v31 = vld [vmem:[#allocation20_spill] sm:$0xff]  ;;  %v12662_v43 = vld [vmem:[#allocation21_spill] sm:$0xff] }
 0x17b   :  { %7544 = vmatprep.subr.bf16.mxu1 %v12550_v57  ;;  %v1681_v24 = vadd.f32 %v7242_v19, %v7220_v13  ;;  %v7245_v25 = vadd.f32 %v7244_v23, %v7243_v20  ;;  %v12643_v57 = vld [vmem:[#allocation74_spill] sm:$0xff]  ;;  %v10475_v13 = vld [vmem:[%s12230_s0 + $0x1d0] sm:$0xff]  ;;  %v6626_v10 = vcombine.low %v10423_v48, %v10428_v53  ;;  %v12664_v48 = vld [vmem:[#allocation23_spill] sm:$0xff] }
 0x17c   :  { %v10483_v19 = vld [vmem:[%s12230_s0 + $0xd8] sm:$0xff]  ;;  %v12658_v23 = vld [vmem:[#allocation17_spill] sm:$0xff]  ;;  %v12665_v53 = vld [vmem:[#allocation24_spill] sm:$0xff] }
 0x17d   :  { %7523 = vmatpush3.bf16.msra.mxu0 %v12551_v58  ;;  %v1684_v26 = vadd.f32 %v7245_v25, %v7223_v22  ;;  %v12644_v58 = vld [vmem:[#allocation3_spill] sm:$0xff]  ;;  %v10488_v20 = vld [vmem:[%s12230_s0 + $0x1d8] sm:$0xff]  ;;  %v12657_v22 = vld [vmem:[#allocation16_spill] sm:$0xff] }
 0x17e   :  { %7545 = vmatpush3.bf16.msra.mxu1 %v12552_v59  ;;  %7524 = vmatprep.subr.bf16.mxu0 %v12553_v60  ;;  %v12645_v59 = vld [vmem:[#allocation4_spill] sm:$0xff]  ;;  %v6631_v25 = vcombine.high %v10483_v19, %v10488_v20 }
 0x17f   :  { %7546 = vmatprep.subr.bf16.mxu1 %v12554_v61  ;;  %v12646_v61 = vld [vmem:[#allocation5_spill] sm:$0xff] }
 0x181   :  { %7525 = vmatpush3.bf16.msra.mxu0 %v12555_v1 }
 0x182   :  { %7547 = vmatpush3.bf16.msra.mxu1 %v12556_v3  ;;  %7554 = vmatprep.subr.bf16.mxu0 %v12557_v16 }
 0x183   :  { %7576 = vmatprep.subr.bf16.mxu1 %v12558_v17 }
 0x184   :  { %2308 = vmatmul.mubr.bf16.vlgmr.msra.gmra.mrb[44].mxu0 %v6620_v27  ;;  %v12660_v27 = vld [vmem:[#allocation19_spill] sm:$0xff] }
 0x185   :  { %2349 = vmatmul.mubr.bf16.vlgmr.msra.gmra.mrb[44].mxu1 %v6622_v45  ;;  %7555 = vmatpush3.bf16.msra.mxu0 %v9484_v11  ;;  %v12640_v11 = vld [vmem:[#allocation71_spill] sm:$0xff]  ;;  %v12663_v45 = vld [vmem:[#allocation22_spill] sm:$0xff] }
 0x186   :  { %7577 = vmatpush3.bf16.msra.mxu1 %v9490_v38  ;;  %7556 = vmatprep.subr.bf16.mxu0 %v12559_v7  ;;  %v12641_v38 = vld [vmem:[#allocation72_spill] sm:$0xff] }
 0x187   :  { %7578 = vmatprep.subr.bf16.mxu1 %v12560_v32  ;;  %2485 = vmatprep.mubr.bf16.mxu0 %v6625_v54  ;;  %v12647_v32 = vld [vmem:[#allocation6_spill] sm:$0xff]  ;;  %v12666_v54 = vld [vmem:[#allocation25_spill] sm:$0xff] }
 0x188   :  { %2526 = vmatprep.mubr.bf16.mxu1 %v6627_v56  ;;  %v12667_v56 = vld [vmem:[#allocation26_spill] sm:$0xff] }
 0x189   :  { %7557 = vmatpush3.bf16.msra.mxu0 %v9508_v15  ;;  %v12642_v15 = vld [vmem:[#allocation73_spill] sm:$0xff] }
 0x18a   :  { %7579 = vmatpush3.bf16.msra.mxu1 %v12561_v33  ;;  %7558 = vmatprep.subr.bf16.mxu0 %v12562_v34 }
 0x18b   :  { %7580 = vmatprep.subr.bf16.mxu1 %v12563_v28  ;;  %v12648_v28 = vld [vmem:[#allocation7_spill] sm:$0xff] }
 0x18d   :  { %7559 = vmatpush3.bf16.msra.mxu0 %v12564_v29 }
 0x18e   :  { %7581 = vmatpush3.bf16.msra.mxu1 %v12565_v30  ;;  %7560 = vmatprep.subr.bf16.mxu0 %v12566_v40  ;;  %v12649_v30 = vld [vmem:[#allocation8_spill] sm:$0xff] }
 0x18f   :  { %7582 = vmatprep.subr.bf16.mxu1 %v12567_v41 }
 0x191   :  { %7561 = vmatpush3.bf16.msra.mxu0 %v12568_v42 }
 0x192   :  { %7583 = vmatpush3.bf16.msra.mxu1 %v12640_v11  ;;  %7562 = vmatprep.subr.bf16.mxu0 %v12641_v38  ;;  %v12668_v11 = vld [vmem:[#allocation27_spill] sm:$0xff]  ;;  %v12669_v38 = vld [vmem:[#allocation28_spill] sm:$0xff] }
 0x193   :  { %7584 = vmatprep.subr.bf16.mxu1 %v12642_v15  ;;  %v12670_v15 = vld [vmem:[#allocation29_spill] sm:$0xff] }
 0x195   :  { %7563 = vmatpush3.bf16.msra.mxu0 %v12643_v57  ;;  %v12671_v57 = vld [vmem:[#allocation30_spill] sm:$0xff] }
 0x196   :  { %7585 = vmatpush3.bf16.msra.mxu1 %v12644_v58  ;;  %7564 = vmatprep.subr.bf16.mxu0 %v12645_v59  ;;  %v7262_v60 = vpop.f32.mrb[20].mxu0  ;;  %v12672_v58 = vld [vmem:[#allocation31_spill] sm:$0xff]  ;;  %v12673_v59 = vld [vmem:[#allocation32_spill] sm:$0xff] }
 0x197   :  { %7586 = vmatprep.subr.bf16.mxu1 %v12646_v61  ;;  %v7284_v1 = vpop.f32.mrb[20].mxu1  ;;  %v7263_v3 = vpop.f32.mrb[21].mxu0  ;;  %v12675_v61 = vld [vmem:[#allocation34_spill] sm:$0xff] }
 0x198   :  { %v7264_v16 = vadd.f32 %v7263_v3, %v7262_v60  ;;  %v7285_v17 = vpop.f32.mrb[21].mxu1  ;;  %v7265_v7 = vpop.f32.mrb[22].mxu0  ;;  %v12674_v60 = vld [vmem:[#allocation33_spill] sm:$0xff]  ;;  %v12677_v3 = vld [vmem:[#allocation36_spill] sm:$0xff] }
 0x199   :  { %7565 = vmatpush3.bf16.msra.mxu0 %v12647_v32  ;;  %v7286_v33 = vadd.f32 %v7285_v17, %v7284_v1  ;;  %v7287_v34 = vpop.f32.mrb[22].mxu1  ;;  %v7266_v29 = vpop.f32.mrb[23].mxu0  ;;  %v12676_v1 = vld [vmem:[#allocation35_spill] sm:$0xff] }
 0x19a   :  { %7587 = vmatpush3.bf16.msra.mxu1 %v12648_v28  ;;  %7566 = vmatprep.subr.bf16.mxu0 %v12649_v30  ;;  %v1722_v40 = vadd.f32 %v7264_v16, %v1681_v24  ;;  %v7267_v41 = vadd.f32 %v7266_v29, %v7265_v7  ;;  %v7288_v42 = vpop.f32.mrb[23].mxu1  ;;  %v6629_v24 = vcombine.high %v10470_v37, %v10475_v13  ;;  %v12678_v28 = vld [vmem:[#allocation37_spill] sm:$0xff] }
 0x19b   :  { %7588 = vmatprep.subr.bf16.mxu1 %v12650_v12  ;;  %v7289_v18 = vadd.f32 %v7288_v42, %v7287_v34  ;;  %v12680_v42 = vld [vmem:[#allocation39_spill] sm:$0xff] }
 0x19c   :  { %v1763_v0 = vadd.f32 %v7286_v33, %v1722_v40  ;;  %v1725_v62 = vadd.f32 %v7267_v41, %v1684_v26  ;;  %v12659_v26 = vld [vmem:[#allocation18_spill] sm:$0xff] }
 0x19d   :  { %7567 = vmatpush3.bf16.msra.mxu0 %v12651_v4  ;;  %v12679_v40 = vld [vmem:[#allocation38_spill] sm:$0xff]  ;;  %v12681_v4 = vld [vmem:[#allocation40_spill] sm:$0xff] }
 0x19e   :  { %7589 = vmatpush3.bf16.msra.mxu1 %v12652_v50  ;;  %7568 = vmatprep.subr.bf16.mxu0 %v12653_v47  ;;  %v1766_v9 = vadd.f32 %v7289_v18, %v1725_v62 }
 0x19f   :  { %7590 = vmatprep.subr.bf16.mxu1 %v12654_v35  ;;  %v12682_v35 = vld [vmem:[#allocation41_spill] sm:$0xff] }
 0x1a1   :  { %7569 = vmatpush3.bf16.msra.mxu0 %v12655_v8  ;;  %v12684_v8 = vld [vmem:[#allocation43_spill] sm:$0xff] }
 0x1a2   :  { %7591 = vmatpush3.bf16.msra.mxu1 %v12656_v21  ;;  %7598 = vmatprep.subr.bf16.mxu0 %v12657_v22  ;;  %v12685_v21 = vld [vmem:[#allocation44_spill] sm:$0xff]  ;;  %v6628_v22 = vcombine.low %v10470_v37, %v10475_v13  ;;  %v12687_v13 = vld [vmem:[#allocation46_spill] sm:$0xff] }
 0x1a3   :  { %7620 = vmatprep.subr.bf16.mxu1 %v12658_v23  ;;  %v12686_v23 = vld [vmem:[#allocation45_spill] sm:$0xff]  ;;  %v10548_v37 = vld [vmem:[%s12230_s0 + $0x1e8] sm:$0xff] }
 0x1a4   :  { %2486 = vmatmul.mubr.bf16.vlgmr.msra.gmra.mrb[48].mxu0 %v6624_v36  ;;  %v12683_v36 = vld [vmem:[#allocation42_spill] sm:$0xff] }
 0x1a5   :  { %2527 = vmatmul.mubr.bf16.vlgmr.msra.gmra.mrb[48].mxu1 %v6626_v10  ;;  %7599 = vmatpush3.bf16.msra.mxu0 %v12659_v26  ;;  %v12688_v26 = vld [vmem:[#allocation47_spill] sm:$0xff] }
 0x1a6   :  { %7621 = vmatpush3.bf16.msra.mxu1 %v12660_v27  ;;  %7600 = vmatprep.subr.bf16.mxu0 %v12661_v31  ;;  %v12689_v27 = vld [vmem:[#allocation48_spill] sm:$0xff] }
 0x1a7   :  { %7622 = vmatprep.subr.bf16.mxu1 %v12662_v43  ;;  %2567 = vmatprep.mubr.bf16.mxu0 %v6629_v24  ;;  %v6630_v24 = vcombine.low %v10483_v19, %v10488_v20  ;;  %v12690_v20 = vld [vmem:[#allocation49_spill] sm:$0xff]  ;;  %v12691_v43 = vld [vmem:[#allocation50_spill] sm:$0xff] }
 0x1a8   :  { %2608 = vmatprep.mubr.bf16.mxu1 %v6631_v25  ;;  %v10543_v25 = vld [vmem:[%s12230_s0 + $0xe8] sm:$0xff] }
 0x1a9   :  { %7601 = vmatpush3.bf16.msra.mxu0 %v12663_v45  ;;  %v6635_v19 = vcombine.high %v10543_v25, %v10548_v37  ;;  %v12692_v45 = vld [vmem:[#allocation51_spill] sm:$0xff] }
 0x1aa   :  { %7623 = vmatpush3.bf16.msra.mxu1 %v12664_v48  ;;  %7602 = vmatprep.subr.bf16.mxu0 %v12665_v53  ;;  %v12693_v48 = vld [vmem:[#allocation52_spill] sm:$0xff]  ;;  %v12694_v53 = vld [vmem:[#allocation53_spill] sm:$0xff] }
 0x1ab   :  { %7624 = vmatprep.subr.bf16.mxu1 %v12666_v54  ;;  %v12695_v54 = vld [vmem:[#allocation54_spill] sm:$0xff] }
 0x1ad   :  { %7603 = vmatpush3.bf16.msra.mxu0 %v12667_v56  ;;  %v12696_v56 = vld [vmem:[#allocation55_spill] sm:$0xff] }
 0x1ae   :  { %7625 = vmatpush3.bf16.msra.mxu1 %v12668_v11  ;;  %7604 = vmatprep.subr.bf16.mxu0 %v12669_v38  ;;  %v12697_v11 = vld [vmem:[#allocation56_spill] sm:$0xff]  ;;  %v12698_v38 = vld [vmem:[#allocation57_spill] sm:$0xff] }
 0x1af   :  { %7626 = vmatprep.subr.bf16.mxu1 %v12670_v15  ;;  %v12699_v15 = vld [vmem:[#allocation58_spill] sm:$0xff] }
 0x1b1   :  { %7605 = vmatpush3.bf16.msra.mxu0 %v12671_v57  ;;  %v12700_v57 = vld [vmem:[#allocation59_spill] sm:$0xff] }
 0x1b2   :  { %7627 = vmatpush3.bf16.msra.mxu1 %v12672_v58  ;;  %7606 = vmatprep.subr.bf16.mxu0 %v12673_v59  ;;  %v12701_v58 = vld [vmem:[#allocation60_spill] sm:$0xff]  ;;  %v12702_v59 = vld [vmem:[#allocation61_spill] sm:$0xff] }
 0x1b3   :  { %7628 = vmatprep.subr.bf16.mxu1 %v12674_v60  ;;  %v12703_v60 = vld [vmem:[#allocation62_spill] sm:$0xff] }
 0x1b5   :  { %7607 = vmatpush3.bf16.msra.mxu0 %v12675_v61  ;;  %v12704_v61 = vld [vmem:[#allocation63_spill] sm:$0xff] }
 0x1b6   :  { %7629 = vmatpush3.bf16.msra.mxu1 %v12676_v1  ;;  %7608 = vmatprep.subr.bf16.mxu0 %v12677_v3  ;;  %v7306_v16 = vpop.f32.mrb[24].mxu0  ;;  %v12705_v1 = vld [vmem:[#allocation64_spill] sm:$0xff]  ;;  %v12706_v3 = vld [vmem:[#allocation65_spill] sm:$0xff] }
 0x1b7   :  { %7630 = vmatprep.subr.bf16.mxu1 %v10033_v51  ;;  %v7328_v17 = vpop.f32.mrb[24].mxu1  ;;  %v7307_v7 = vpop.f32.mrb[25].mxu0 }
 0x1b8   :  { %v7308_v32 = vadd.f32 %v7307_v7, %v7306_v16  ;;  %v7329_v33 = vpop.f32.mrb[25].mxu1  ;;  %v7309_v34 = vpop.f32.mrb[26].mxu0  ;;  %v12707_v16 = vld [vmem:[#allocation66_spill] sm:$0xff] }
 0x1b9   :  { %7609 = vmatpush3.bf16.msra.mxu0 %v12678_v28  ;;  %v7330_v29 = vadd.f32 %v7329_v33, %v7328_v17  ;;  %v7331_v30 = vpop.f32.mrb[26].mxu1  ;;  %v7310_v41 = vpop.f32.mrb[27].mxu0  ;;  %v12708_v17 = vld [vmem:[#allocation67_spill] sm:$0xff]  ;;  %v2784_v28 = vrot.slane %v10330_v2, 4 }
 0x1ba   :  { %7631 = vmatpush3.bf16.msra.mxu1 %v12679_v40  ;;  %7610 = vmatprep.subr.bf16.mxu0 %v12680_v42  ;;  %v1804_v12 = vadd.f32 %v7308_v32, %v1763_v0  ;;  %v7311_v18 = vadd.f32 %v7310_v41, %v7309_v34  ;;  %v7332_v62 = vpop.f32.mrb[27].mxu1  ;;  %v10530_v0 = vld [vmem:[%s12230_s0 + $0xe0] sm:$0xff]  ;;  %v12709_v32 = vld [vmem:[#allocation68_spill] sm:$0xff]  ;;  %v12710_v41 = vld [vmem:[#allocation69_spill] sm:$0xff] }
 0x1bb   :  { %7632 = vmatprep.subr.bf16.mxu1 %v12681_v4  ;;  %v7333_v51 = vadd.f32 %v7332_v62, %v7331_v30  ;;  %v12712_v4 = vld [vmem:[#allocation75_spill] sm:$0xff] }
 0x1bc   :  { %v1845_v50 = vadd.f32 %v7330_v29, %v1804_v12  ;;  %v1807_v47 = vadd.f32 %v7311_v18, %v1766_v9  ;;  %v10535_v9 = vld [vmem:[%s12230_s0 + $0x1e0] sm:$0xff]  ;;  %v12711_v18 = vld [vmem:[#allocation70_spill] sm:$0xff] }
 0x1bd   :  { %7611 = vmatpush3.bf16.msra.mxu0 %v12682_v35  ;;  %v6633_v31 = vcombine.high %v10530_v0, %v10535_v9 }
 0x1be   :  { %7633 = vmatpush3.bf16.msra.mxu1 %v12683_v36  ;;  %7612 = vmatprep.subr.bf16.mxu0 %v12684_v8  ;;  %v1848_v10 = vadd.f32 %v7333_v51, %v1807_v47  ;;  %v2785_v8 = vadd.f32 %v2784_v28, %v10330_v2  ;;  %v10611_v2 = vld [vmem:[%s12230_s0 + $0xf8] sm:$0xff] }
 0x1bf   :  { %7634 = vmatprep.subr.bf16.mxu1 %v12685_v21 }
 0x1c1   :  { %7613 = vmatpush3.bf16.msra.mxu0 %v12686_v23 }
 0x1c2   :  { %7635 = vmatpush3.bf16.msra.mxu1 %v12687_v13  ;;  %7642 = vmatprep.subr.bf16.mxu0 %v12688_v26  ;;  %v8578_v26 = vld [vmem:[%s12229_s1 + $0x308] sm:$0xff]  }
 0x1c3   :  { %7664 = vmatprep.subr.bf16.mxu1 %v12689_v27  ;;  %v8579_v27 = vld [vmem:[%s12229_s1 + $0x388] sm:$0xff]  }
 0x1c4   :  { %2568 = vmatmul.mubr.bf16.vlgmr.msra.gmra.mrb[52].mxu0 %v6628_v22 }
 0x1c5   :  { %2609 = vmatmul.mubr.bf16.vlgmr.msra.gmra.mrb[52].mxu1 %v6630_v24  ;;  %7643 = vmatpush3.bf16.msra.mxu0 %v12690_v20  ;;  %v8581_v20 = vld [vmem:[%s12229_s1 + $0x3d0] sm:$0xff]  }
 0x1c6   :  { %7665 = vmatpush3.bf16.msra.mxu1 %v12691_v43  ;;  %7644 = vmatprep.subr.bf16.mxu0 %v12692_v45 }
 0x1c7   :  { %7666 = vmatprep.subr.bf16.mxu1 %v12693_v48  ;;  %2649 = vmatprep.mubr.bf16.mxu0 %v6633_v31  ;;  %v8580_v31 = vld [vmem:[%s12229_s1 + $0x350] sm:$0xff]  }
 0x1c8   :  { %2690 = vmatprep.mubr.bf16.mxu1 %v6635_v19  ;;  %v8582_v48 = vld [vmem:[%s12229_s1 + $0x310] sm:$0xff]  }
 0x1c9   :  { %7645 = vmatpush3.bf16.msra.mxu0 %v12694_v53  ;;  %v8583_v53 = vld [vmem:[%s12229_s1 + $0x390] sm:$0xff]  }
 0x1ca   :  { %7667 = vmatpush3.bf16.msra.mxu1 %v12695_v54  ;;  %7646 = vmatprep.subr.bf16.mxu0 %v12696_v56  ;;  %v8584_v54 = vld [vmem:[%s12229_s1 + $0x358] sm:$0xff]  }
 0x1cb   :  { %7668 = vmatprep.subr.bf16.mxu1 %v12697_v11  ;;  %v8585_v11 = vld [vmem:[%s12229_s1 + $0x3d8] sm:$0xff]  }
 0x1cd   :  { %7647 = vmatpush3.bf16.msra.mxu0 %v12698_v38  ;;  %v8586_v38 = vld [vmem:[%s12229_s1 + $0x318] sm:$0xff]  }
 0x1ce   :  { %7669 = vmatpush3.bf16.msra.mxu1 %v12699_v15  ;;  %7648 = vmatprep.subr.bf16.mxu0 %v12700_v57  ;;  %v8587_v15 = vld [vmem:[%s12229_s1 + $0x398] sm:$0xff]   ;;  %v8588_v57 = vld [vmem:[%s12229_s1 + $0x360] sm:$0xff]  }
 0x1cf   :  { %7670 = vmatprep.subr.bf16.mxu1 %v12701_v58  ;;  %v8589_v58 = vld [vmem:[%s12229_s1 + $0x3e0] sm:$0xff]  }
 0x1d1   :  { %7649 = vmatpush3.bf16.msra.mxu0 %v12702_v59  ;;  %v8590_v59 = vld [vmem:[%s12229_s1 + $0x320] sm:$0xff]  }
 0x1d2   :  { %7671 = vmatpush3.bf16.msra.mxu1 %v12703_v60  ;;  %7650 = vmatprep.subr.bf16.mxu0 %v12704_v61  ;;  %v8591_v60 = vld [vmem:[%s12229_s1 + $0x3a0] sm:$0xff]   ;;  %v8592_v61 = vld [vmem:[%s12229_s1 + $0x368] sm:$0xff]  }
 0x1d3   :  { %7672 = vmatprep.subr.bf16.mxu1 %v12705_v1 }
 0x1d5   :  { %7651 = vmatpush3.bf16.msra.mxu0 %v12706_v3  ;;  %v8593_v3 = vld [vmem:[%s12229_s1 + $0x3e8] sm:$0xff]  }
 0x1d6   :  { %7673 = vmatpush3.bf16.msra.mxu1 %v12707_v16  ;;  %7652 = vmatprep.subr.bf16.mxu0 %v12708_v17  ;;  %v7350_v7 = vpop.f32.mrb[28].mxu0 }
 0x1d7   :  { %7674 = vmatprep.subr.bf16.mxu1 %v12709_v32  ;;  %v7372_v33 = vpop.f32.mrb[28].mxu1  ;;  %v7351_v34 = vpop.f32.mrb[29].mxu0 }
 0x1d8   :  { %v7352_v29 = vadd.f32 %v7351_v34, %v7350_v7  ;;  %v7373_v30 = vpop.f32.mrb[29].mxu1  ;;  %v7353_v40 = vpop.f32.mrb[30].mxu0  ;;  %v8594_v34 = vld [vmem:[%s12229_s1 + $0x328] sm:$0xff]  }
 0x1d9   :  { %7653 = vmatpush3.bf16.msra.mxu0 %v12710_v41  ;;  %v7374_v42 = vadd.f32 %v7373_v30, %v7372_v33  ;;  %v7375_v12 = vpop.f32.mrb[30].mxu1  ;;  %v7354_v62 = vpop.f32.mrb[31].mxu0  ;;  %v8595_v30 = vld [vmem:[%s12229_s1 + $0x3a8] sm:$0xff]   ;;  %v8596_v41 = vld [vmem:[%s12229_s1 + $0x370] sm:$0xff]  }
 0x1da   :  { %7675 = vmatpush3.bf16.msra.mxu1 %v12711_v18  ;;  %7654 = vmatprep.subr.bf16.mxu0 %v12712_v4  ;;  %v1886_v51 = vadd.f32 %v7352_v29, %v1845_v50  ;;  %v7355_v47 = vadd.f32 %v7354_v62, %v7353_v40  ;;  %v7376_v35 = vpop.f32.mrb[31].mxu1  ;;  %v6632_v50 = vcombine.low %v10530_v0, %v10535_v9  ;;  %v8597_v18 = vld [vmem:[%s12229_s1 + $0x3f0] sm:$0xff]  }
 0x1db   :  { %7676 = vmatprep.subr.bf16.mxu1 %v10284_v5  ;;  %v7377_v36 = vadd.f32 %v7376_v35, %v7375_v12  ;;  %v10596_v5 = vld [vmem:[%s12230_s0 + $0xf0] sm:$0xff] }
 0x1dc   :  { %v10583_v21 = vadd.f32 %v7374_v42, %v1886_v51  ;;  %v1889_v22 = vadd.f32 %v7355_v47, %v1848_v10  ;;  %v10616_v10 = vld [vmem:[%s12230_s0 + $0x1f8] sm:$0xff]  ;;  %v8598_v51 = vld [vmem:[%s12229_s1 + $0x330] sm:$0xff]  }
 0x1dd   :  { %7655 = vmatpush3.bf16.msra.mxu0 %v10293_v6  ;;  %v10601_v6 = vld [vmem:[%s12230_s0 + $0x1f0] sm:$0xff]  ;;  %v6639_v9 = vcombine.high %v10611_v2, %v10616_v10 }
 0x1de   :  { %7677 = vmatpush3.bf16.msra.mxu1 %v10299_v55  ;;  %7656 = vmatprep.subr.bf16.mxu0 %v10305_v52  ;;  %v10588_v23 = vadd.f32 %v7377_v36, %v1889_v22  ;;  %v2786_v55 = vrot.slane %v2785_v8, 2  ;;  %v8599_v35 = vld [vmem:[%s12229_s1 + $0x3b0] sm:$0xff]   ;;  %v8600_v36 = vld [vmem:[%s12229_s1 + $0x378] sm:$0xff]   ;;  %v6636_v22 = vcombine.low %v10596_v5, %v10601_v6 }
 0x1df   :  { %7678 = vmatprep.subr.bf16.mxu1 %v10313_v49  ;;  %v6634_v49 = vcombine.low %v10543_v25, %v10548_v37  ;;  %v8577_v37 = vld [vmem:[%s12229_s1 + $0x3c8] sm:$0xff]  }
 0x1e0   :  { %v2790_v52 = vadd.f32 %v10588_v23, %v10583_v21  ;;  %v2787_v24 = vadd.f32 %v2786_v55, %v2785_v8  ;;  %v8601_v8 = vld [vmem:[%s12229_s1 + $0x3f8] sm:$0xff]   ;;  %v6638_v55 = vcombine.low %v10611_v2, %v10616_v10 }
 0x1e1   :  { %7657 = vmatpush3.bf16.msra.mxu0 %v10335_v44  ;;  %v6637_v44 = vcombine.high %v10596_v5, %v10601_v6 }
 0x1e2   :  { %7679 = vmatpush3.bf16.msra.mxu1 %v10353_v39  ;;  %7686 = vmatprep.subr.bf16.mxu0 %v10359_v46  ;;  %v2791_v0 = vrot.slane %v2790_v52, 4  ;;  %v8575_v39 = vld [vmem:[%s12229_s1 + $0x380] sm:$0xff]   ;;  %v8576_v46 = vld [vmem:[%s12229_s1 + $0x348] sm:$0xff]   ;;  %v2788_v13 = vrot.slane %v2787_v24, 1 }
 0x1e3   :  { %7708 = vmatprep.subr.bf16.mxu1 %v10365_v63 }
 0x1e4   :  { %2650 = vmatmul.mubr.bf16.vlgmr.msra.gmra.mrb[56].mxu0 %v6632_v50  ;;  %v2792_v25 = vadd.f32 %v2791_v0, %v2790_v52  ;;  %v2789_v43 = vadd.f32 %v2788_v13, %v2787_v24  ;;  %v8602_v50 = vld [vmem:[%s12229_s1 + $0x338] sm:$0xff]  }
 0x1e5   :  { %2691 = vmatmul.mubr.bf16.vlgmr.msra.gmra.mrb[56].mxu1 %v6634_v49  ;;  %7687 = vmatpush3.bf16.msra.mxu0 %v10375_v14  ;;  %v8603_v52 = vld [vmem:[%s12229_s1 + $0x3b8] sm:$0xff]  }
 0x1e6   :  { %7709 = vmatpush3.bf16.msra.mxu1 %v8575_v39  ;;  %7688 = vmatprep.subr.bf16.mxu0 %v8576_v46  ;;  %v2793_v63 = vrot.slane %v2792_v25, 2 }
 0x1e7   :  { %7710 = vmatprep.subr.bf16.mxu1 %v8577_v37  ;;  %2731 = vmatprep.mubr.bf16.mxu0 %v6637_v44 }
 0x1e8   :  { %2772 = vmatprep.mubr.bf16.mxu1 %v6639_v9  ;;  %v2794_v14 = vadd.f32 %v2793_v63, %v2792_v25 }
 0x1e9   :  { %7689 = vmatpush3.bf16.msra.mxu0 %v8578_v26 }
 0x1ea   :  { %7711 = vmatpush3.bf16.msra.mxu1 %v8579_v27  ;;  %7690 = vmatprep.subr.bf16.mxu0 %v8580_v31  ;;  %v2795_v19 = vrot.slane %v2794_v14, 1 }
 0x1eb   :  { %7712 = vmatprep.subr.bf16.mxu1 %v8581_v20 }
 0x1ec   :  { %v2796_v45 = vadd.f32 %v2795_v19, %v2794_v14 }
 0x1ed   :  { %7691 = vmatpush3.bf16.msra.mxu0 %v8582_v48 }
 0x1ee   :  { %7713 = vmatpush3.bf16.msra.mxu1 %v8583_v53  ;;  %7692 = vmatprep.subr.bf16.mxu0 %v8584_v54  ;;  %v10656_v56 = vadd.f32 %v2796_v45, %v2789_v43 }
 0x1ef   :  { %7714 = vmatprep.subr.bf16.mxu1 %v8585_v11 }
 0x1f1   :  { %7693 = vmatpush3.bf16.msra.mxu0 %v8586_v38 }
 0x1f2   :  { %7715 = vmatpush3.bf16.msra.mxu1 %v8587_v15  ;;  %7694 = vmatprep.subr.bf16.mxu0 %v8588_v57 }
 0x1f3   :  { %7716 = vmatprep.subr.bf16.mxu1 %v8589_v58 }
 0x1f5   :  { %7695 = vmatpush3.bf16.msra.mxu0 %v8590_v59 }
 0x1f6   :  { %7717 = vmatpush3.bf16.msra.mxu1 %v8591_v60  ;;  %7696 = vmatprep.subr.bf16.mxu0 %v8592_v61 }
 0x1f7   :  { %v7394_v1 = vpop.f32.mrb[32].mxu0  ;;  %7718 = vmatprep.subr.bf16.mxu1 %v8593_v3 }
 0x1f8   :  { %v7416_v16 = vpop.f32.mrb[32].mxu1  ;;  %v7395_v17 = vpop.f32.mrb[33].mxu0 }
 0x1f9   :  { %v7396_v7 = vadd.f32 %v7395_v17, %v7394_v1  ;;  %v7417_v32 = vpop.f32.mrb[33].mxu1  ;;  %v7397_v33 = vpop.f32.mrb[34].mxu0  ;;  %7697 = vmatpush3.bf16.msra.mxu0 %v8594_v34 }
 0x1fa   :  { %v7418_v28 = vadd.f32 %v7417_v32, %v7416_v16  ;;  %v7419_v29 = vpop.f32.mrb[34].mxu1  ;;  %7719 = vmatpush3.bf16.msra.mxu1 %v8595_v30  ;;  %v7398_v40 = vpop.f32.mrb[35].mxu0  ;;  %7698 = vmatprep.subr.bf16.mxu0 %v8596_v41 }
 0x1fb   :  { %v7399_v42 = vadd.f32 %v7398_v40, %v7397_v33  ;;  %v7420_v12 = vpop.f32.mrb[35].mxu1  ;;  %7720 = vmatprep.subr.bf16.mxu1 %v8597_v18 }
 0x1fc   :  { %v2105_v62 = vadd.f32 %v7418_v28, %v7396_v7  ;;  %v7421_v4 = vadd.f32 %v7420_v12, %v7419_v29 }
 0x1fd   :  { %7699 = vmatpush3.bf16.msra.mxu0 %v8598_v51 }
 0x1fe   :  { %v2108_v47 = vadd.f32 %v7421_v4, %v7399_v42  ;;  %7721 = vmatpush3.bf16.msra.mxu1 %v8599_v35  ;;  %7700 = vmatprep.subr.bf16.mxu0 %v8600_v36 }
 0x1ff   :  { %7722 = vmatprep.subr.bf16.mxu1 %v8601_v8  ;;  %v7886_v8 = vld [vmem:[%s12231_s4 + $0x4] ss:$16 sps:$4 sm:$0xff]  }
 0x201   :  { %7701 = vmatpush3.bf16.msra.mxu0 %v8602_v50 }
 0x202   :  { %7723 = vmatpush3.bf16.msra.mxu1 %v8603_v52  ;;  %3750 = vmatprep.subr.bf16.mxu0 %v7886_v8  ;;  %v7889_v52 = vld [vmem:[%s12231_s4 + $0xc] ss:$16 sps:$4 sm:$0xff]  }
 0x203   :  { %3836 = vmatprep.subr.bf16.mxu1 %v7889_v52 }
 0x204   :  { %2732 = vmatmul.mubr.bf16.vlgmr.msra.gmra.mrb[60].mxu0 %v6636_v22  ;;  %v7884_v22 = vld [vmem:[%s12231_s4] ss:$16 sps:$4 sm:$0xff]  }
 0x205   :  { %2773 = vmatmul.mubr.bf16.vlgmr.msra.gmra.mrb[60].mxu1 %v6638_v55  ;;  %v7887_v55 = vld [vmem:[%s12231_s4 + $0x8] ss:$16 sps:$4 sm:$0xff]   ;;  %3751 = vmatpush1.bf16.msra.mxu0 %v7884_v22 }
 0x206   :  { %3837 = vmatpush1.bf16.msra.mxu1 %v7887_v55 }
 0x217   :  { %v7438_v49 = vpop.f32.mrb[36].mxu0 }
 0x218   :  { %v7460_v0 = vpop.f32.mrb[36].mxu1  ;;  %v7439_v44 = vpop.f32.mrb[37].mxu0 }
 0x219   :  { %v7440_v9 = vadd.f32 %v7439_v44, %v7438_v49  ;;  %v7461_v5 = vpop.f32.mrb[37].mxu1  ;;  %v7441_v6 = vpop.f32.mrb[38].mxu0 }
 0x21a   :  { %v7462_v24 = vadd.f32 %v7461_v5, %v7460_v0  ;;  %v7463_v25 = vpop.f32.mrb[38].mxu1  ;;  %v7442_v39 = vpop.f32.mrb[39].mxu0  ;;  %v7892_v5 = vld [vmem:[%s12231_s4 + $0x24] ss:$16 sps:$4 sm:$0xff]  }
 0x21b   :  { %v2146_v46 = vadd.f32 %v7440_v9, %v2105_v62  ;;  %v7443_v63 = vadd.f32 %v7442_v39, %v7441_v6  ;;  %v7464_v37 = vpop.f32.mrb[39].mxu1  ;;  %v7895_v6 = vld [vmem:[%s12231_s4 + $0x2c] ss:$16 sps:$4 sm:$0xff]   ;;  %3752 = vmatprep.subr.bf16.mxu0 %v7892_v5  ;;  %v7946_v5 = vld [vmem:[%s12231_s4 + $0x144] ss:$16 sps:$4 sm:$0xff]  }
 0x21c   :  { %v7465_v2 = vadd.f32 %v7464_v37, %v7463_v25  ;;  %3838 = vmatprep.subr.bf16.mxu1 %v7895_v6  ;;  %v7949_v6 = vld [vmem:[%s12231_s4 + $0x14c] ss:$16 sps:$4 sm:$0xff]  }
 0x21d   :  { %v2187_v10 = vadd.f32 %v7462_v24, %v2146_v46  ;;  %v2149_v13 = vadd.f32 %v7443_v63, %v2108_v47  ;;  %v7890_v46 = vld [vmem:[%s12231_s4 + $0x20] ss:$16 sps:$4 sm:$0xff]   ;;  %v7893_v63 = vld [vmem:[%s12231_s4 + $0x28] ss:$16 sps:$4 sm:$0xff]  }
 0x21e   :  { %3753 = vmatpush1.bf16.msra.mxu0 %v7890_v46  ;;  %3839 = vmatpush1.bf16.msra.mxu1 %v7893_v63  ;;  %v7952_v46 = vld [vmem:[%s12231_s4 + $0x164] ss:$16 sps:$4 sm:$0xff]   ;;  %v7955_v63 = vld [vmem:[%s12231_s4 + $0x16c] ss:$16 sps:$4 sm:$0xff]  }
 0x21f   :  { %v2190_v14 = vadd.f32 %v7465_v2, %v2149_v13 }
 0x237   :  { %v7482_v26 = vpop.f32.mrb[40].mxu0 }
 0x238   :  { %v7504_v27 = vpop.f32.mrb[40].mxu1  ;;  %v7483_v31 = vpop.f32.mrb[41].mxu0 }
 0x239   :  { %v7484_v19 = vadd.f32 %v7483_v31, %v7482_v26  ;;  %v7505_v20 = vpop.f32.mrb[41].mxu1  ;;  %v7485_v43 = vpop.f32.mrb[42].mxu0  ;;  %v7901_v26 = vld [vmem:[%s12231_s4 + $0x4c] ss:$16 sps:$4 sm:$0xff]   ;;  %v7896_v31 = vld [vmem:[%s12231_s4 + $0x40] ss:$16 sps:$4 sm:$0xff]  }
 0x23a   :  { %v7506_v45 = vadd.f32 %v7505_v20, %v7504_v27  ;;  %v7507_v48 = vpop.f32.mrb[42].mxu1  ;;  %v7486_v53 = vpop.f32.mrb[43].mxu0  ;;  %3840 = vmatprep.subr.bf16.mxu1 %v7901_v26  ;;  %v7904_v20 = vld [vmem:[%s12231_s4 + $0x64] ss:$16 sps:$4 sm:$0xff]   ;;  %v7959_v26 = vld [vmem:[%s12231_s4 + $0x188] ss:$16 sps:$4 sm:$0xff]  }
 0x23b   :  { %v2228_v54 = vadd.f32 %v7484_v19, %v2187_v10  ;;  %v7487_v11 = vadd.f32 %v7486_v53, %v7485_v43  ;;  %v7508_v38 = vpop.f32.mrb[43].mxu1  ;;  %v7899_v19 = vld [vmem:[%s12231_s4 + $0x48] ss:$16 sps:$4 sm:$0xff]   ;;  %v7907_v43 = vld [vmem:[%s12231_s4 + $0x6c] ss:$16 sps:$4 sm:$0xff]  }
 0x23c   :  { %v7509_v15 = vadd.f32 %v7508_v38, %v7507_v48  ;;  %3841 = vmatpush1.bf16.msra.mxu1 %v7899_v19  ;;  %v7905_v48 = vld [vmem:[%s12231_s4 + $0x68] ss:$16 sps:$4 sm:$0xff]   ;;  %v7910_v53 = vld [vmem:[%s12231_s4 + $0x84] ss:$16 sps:$4 sm:$0xff]   ;;  %v7962_v19 = vld [vmem:[%s12231_s4 + $0x1a0] ss:$16 sps:$4 sm:$0xff]  }
 0x23d   :  { %v2269_v57 = vadd.f32 %v7506_v45, %v2228_v54  ;;  %v2231_v58 = vadd.f32 %v7487_v11, %v2190_v14  ;;  %v7898_v14 = vld [vmem:[%s12231_s4 + $0x44] ss:$16 sps:$4 sm:$0xff]   ;;  %v7902_v45 = vld [vmem:[%s12231_s4 + $0x60] ss:$16 sps:$4 sm:$0xff]   ;;  %3842 = vmatprep.subr.bf16.mxu1 %v7907_v43  ;;  %v7913_v54 = vld [vmem:[%s12231_s4 + $0x8c] ss:$16 sps:$4 sm:$0xff]  }
 0x23e   :  { %3754 = vmatprep.subr.bf16.mxu0 %v7898_v14  ;;  %v7908_v11 = vld [vmem:[%s12231_s4 + $0x80] ss:$16 sps:$4 sm:$0xff]   ;;  %v7911_v38 = vld [vmem:[%s12231_s4 + $0x88] ss:$16 sps:$4 sm:$0xff]   ;;  %v7970_v43 = vld [vmem:[%s12231_s4 + $0x1c4] ss:$16 sps:$4 sm:$0xff]  }
 0x23f   :  { %v2272_v59 = vadd.f32 %v7509_v15, %v2231_v58  ;;  %3755 = vmatpush1.bf16.msra.mxu0 %v7896_v31  ;;  %v7916_v15 = vld [vmem:[%s12231_s4 + $0xa4] ss:$16 sps:$4 sm:$0xff]   ;;  %v7914_v58 = vld [vmem:[%s12231_s4 + $0xa0] ss:$16 sps:$4 sm:$0xff]   ;;  %v7967_v31 = vld [vmem:[%s12231_s4 + $0x1ac] ss:$16 sps:$4 sm:$0xff]  }
 0x240   :  { %3756 = vmatprep.subr.bf16.mxu0 %v7904_v20  ;;  %3843 = vmatpush1.bf16.msra.mxu1 %v7905_v48  ;;  %v7956_v14 = vld [vmem:[%s12231_s4 + $0x180] ss:$16 sps:$4 sm:$0xff]   ;;  %v7965_v20 = vld [vmem:[%s12231_s4 + $0x1a8] ss:$16 sps:$4 sm:$0xff]  }
 0x241   :  { %3844 = vmatprep.subr.bf16.mxu1 %v7913_v54  ;;  %v7971_v48 = vld [vmem:[%s12231_s4 + $0x1c8] ss:$16 sps:$4 sm:$0xff]   ;;  %v7976_v54 = vld [vmem:[%s12231_s4 + $0x1e4] ss:$16 sps:$4 sm:$0xff]  }
 0x243   :  { %3757 = vmatpush1.bf16.msra.mxu0 %v7902_v45  ;;  %v7968_v45 = vld [vmem:[%s12231_s4 + $0x1c0] ss:$16 sps:$4 sm:$0xff]  }
 0x244   :  { %3758 = vmatprep.subr.bf16.mxu0 %v7910_v53  ;;  %3845 = vmatpush1.bf16.msra.mxu1 %v7911_v38  ;;  %v7973_v53 = vld [vmem:[%s12231_s4 + $0x1cc] ss:$16 sps:$4 sm:$0xff]   ;;  %v7974_v38 = vld [vmem:[%s12231_s4 + $0x1e0] ss:$16 sps:$4 sm:$0xff]  }
 0x247   :  { %3759 = vmatpush1.bf16.msra.mxu0 %v7908_v11  ;;  %v7979_v11 = vld [vmem:[%s12231_s4 + $0x1ec] ss:$16 sps:$4 sm:$0xff]  }
 0x248   :  { %3760 = vmatprep.subr.bf16.mxu0 %v7916_v15  ;;  %v7977_v15 = vld [vmem:[%s12231_s4 + $0x1e8] ss:$16 sps:$4 sm:$0xff]  }
 0x24b   :  { %3761 = vmatpush1.bf16.msra.mxu0 %v7914_v58  ;;  %v7985_v58 = vld [vmem:[%s12231_s4 + $0x20c] ss:$16 sps:$4 sm:$0xff]  }
 0x257   :  { %v7526_v60 = vpop.f32.mrb[44].mxu0 }
 0x258   :  { %v7548_v61 = vpop.f32.mrb[44].mxu1  ;;  %v7527_v1 = vpop.f32.mrb[45].mxu0 }
 0x259   :  { %v7528_v3 = vadd.f32 %v7527_v1, %v7526_v60  ;;  %v7549_v16 = vpop.f32.mrb[45].mxu1  ;;  %v7529_v17 = vpop.f32.mrb[46].mxu0  ;;  %v7922_v60 = vld [vmem:[%s12231_s4 + $0xc4] ss:$16 sps:$4 sm:$0xff]   ;;  %v7920_v1 = vld [vmem:[%s12231_s4 + $0xc0] ss:$16 sps:$4 sm:$0xff]  }
 0x25a   :  { %v7550_v7 = vadd.f32 %v7549_v16, %v7548_v61  ;;  %v7551_v32 = vpop.f32.mrb[46].mxu1  ;;  %v7530_v33 = vpop.f32.mrb[47].mxu0  ;;  %v7925_v61 = vld [vmem:[%s12231_s4 + $0xcc] ss:$16 sps:$4 sm:$0xff]   ;;  %3762 = vmatprep.subr.bf16.mxu0 %v7922_v60  ;;  %v7928_v16 = vld [vmem:[%s12231_s4 + $0xe4] ss:$16 sps:$4 sm:$0xff]  }
 0x25b   :  { %v2310_v34 = vadd.f32 %v7528_v3, %v2269_v57  ;;  %v7531_v28 = vadd.f32 %v7530_v33, %v7529_v17  ;;  %v7552_v29 = vpop.f32.mrb[47].mxu1  ;;  %v7919_v57 = vld [vmem:[%s12231_s4 + $0xac] ss:$16 sps:$4 sm:$0xff]   ;;  %v7923_v3 = vld [vmem:[%s12231_s4 + $0xc8] ss:$16 sps:$4 sm:$0xff]   ;;  %3763 = vmatpush1.bf16.msra.mxu0 %v7920_v1 }
 0x25c   :  { %v7553_v30 = vadd.f32 %v7552_v29, %v7551_v32  ;;  %3846 = vmatprep.subr.bf16.mxu1 %v7919_v57  ;;  %v7931_v17 = vld [vmem:[%s12231_s4 + $0xec] ss:$16 sps:$4 sm:$0xff]   ;;  %v7929_v32 = vld [vmem:[%s12231_s4 + $0xe8] ss:$16 sps:$4 sm:$0xff]   ;;  %3764 = vmatprep.subr.bf16.mxu0 %v7928_v16  ;;  %v7934_v33 = vld [vmem:[%s12231_s4 + $0x104] ss:$16 sps:$4 sm:$0xff]  }
 0x25d   :  { %v10719_v40 = vadd.f32 %v7550_v7, %v2310_v34  ;;  %v2313_v41 = vadd.f32 %v7531_v28, %v2272_v59  ;;  %v7917_v59 = vld [vmem:[%s12231_s4 + $0xa8] ss:$16 sps:$4 sm:$0xff]   ;;  %v7926_v7 = vld [vmem:[%s12231_s4 + $0xe0] ss:$16 sps:$4 sm:$0xff]   ;;  %v7937_v34 = vld [vmem:[%s12231_s4 + $0x10c] ss:$16 sps:$4 sm:$0xff]  }
 0x25e   :  { %3847 = vmatpush1.bf16.msra.mxu1 %v7917_v59  ;;  %v7932_v28 = vld [vmem:[%s12231_s4 + $0x100] ss:$16 sps:$4 sm:$0xff]   ;;  %v7935_v29 = vld [vmem:[%s12231_s4 + $0x108] ss:$16 sps:$4 sm:$0xff]   ;;  %v7982_v57 = vld [vmem:[%s12231_s4 + $0x204] ss:$16 sps:$4 sm:$0xff]  }
 0x25f   :  { %v10721_v42 = vadd.f32 %v7553_v30, %v2313_v41  ;;  %3848 = vmatprep.subr.bf16.mxu1 %v7925_v61  ;;  %3765 = vmatpush1.bf16.msra.mxu0 %v7926_v7 }
 0x260   :  { %3766 = vmatprep.subr.bf16.mxu0 %v7934_v33 }
 0x261   :  { %v2797_v12 = vadd.f32 %v10721_v42, %v10719_v40 }
 0x262   :  { %3849 = vmatpush1.bf16.msra.mxu1 %v7923_v3 }
 0x263   :  { %v2798_v18 = vrot.slane %v2797_v12, 4  ;;  %3850 = vmatprep.subr.bf16.mxu1 %v7931_v17  ;;  %3767 = vmatpush1.bf16.msra.mxu0 %v7932_v28 }
 0x265   :  { %v2799_v62 = vadd.f32 %v2798_v18, %v2797_v12 }
 0x266   :  { %3851 = vmatpush1.bf16.msra.mxu1 %v7929_v32 }
 0x267   :  { %v2800_v4 = vrot.slane %v2799_v62, 2  ;;  %3852 = vmatprep.subr.bf16.mxu1 %v7937_v34 }
 0x269   :  { %v2801_v51 = vadd.f32 %v2800_v4, %v2799_v62 }
 0x26a   :  { %3853 = vmatpush1.bf16.msra.mxu1 %v7935_v29 }
 0x26b   :  { %v2802_v47 = vrot.slane %v2801_v51, 1 }
 0x26d   :  { %v2803_v35 = vadd.f32 %v2802_v47, %v2801_v51  ;;  %v7940_v51 = vld [vmem:[%s12231_s4 + $0x124] ss:$16 sps:$4 sm:$0xff]   ;;  %v7943_v47 = vld [vmem:[%s12231_s4 + $0x12c] ss:$16 sps:$4 sm:$0xff]  }
 0x26e   :  { %3768 = vmatprep.subr.bf16.mxu0 %v7940_v51  ;;  %3854 = vmatprep.subr.bf16.mxu1 %v7943_v47 }
 0x26f   :  { %v10726_v36 = vadd.f32 %v10656_v56, %v2803_v35 }
 0x277   :  { %v7570_v50 = vpop.f32.mrb[48].mxu0 }
 0x278   :  { %v7592_v56 = vpop.f32.mrb[48].mxu1  ;;  %v7571_v49 = vpop.f32.mrb[49].mxu0 }
 0x279   :  { %v7572_v0 = vadd.f32 %v7571_v49, %v7570_v50  ;;  %v7593_v44 = vpop.f32.mrb[49].mxu1  ;;  %v7573_v9 = vpop.f32.mrb[50].mxu0  ;;  %v7938_v50 = vld [vmem:[%s12231_s4 + $0x120] ss:$16 sps:$4 sm:$0xff]   ;;  %v7941_v49 = vld [vmem:[%s12231_s4 + $0x128] ss:$16 sps:$4 sm:$0xff]  }
 0x27a   :  { %v7594_v24 = vadd.f32 %v7593_v44, %v7592_v56  ;;  %v7595_v25 = vpop.f32.mrb[50].mxu1  ;;  %v7574_v39 = vpop.f32.mrb[51].mxu0  ;;  %3769 = vmatpush1.bf16.msra.mxu0 %v7938_v50  ;;  %3855 = vmatpush1.bf16.msra.mxu1 %v7941_v49 }
 0x27b   :  { %v7575_v37 = vadd.f32 %v7574_v39, %v7573_v9  ;;  %v7596_v2 = vpop.f32.mrb[51].mxu1  ;;  %3770 = vmatprep.subr.bf16.mxu0 %v7946_v5  ;;  %3856 = vmatprep.subr.bf16.mxu1 %v7949_v6 }
 0x27c   :  { %v10752_v10 = vadd.f32 %v7594_v24, %v7572_v0  ;;  %v7597_v13 = vadd.f32 %v7596_v2, %v7595_v25  ;;  %v7944_v24 = vld [vmem:[%s12231_s4 + $0x140] ss:$16 sps:$4 sm:$0xff]   ;;  %v7947_v25 = vld [vmem:[%s12231_s4 + $0x148] ss:$16 sps:$4 sm:$0xff]  }
 0x27d   :  { %v7953_v2 = vld [vmem:[%s12231_s4 + $0x168] ss:$16 sps:$4 sm:$0xff]  }
 0x27e   :  { %v10760_v27 = vadd.f32 %v7597_v13, %v7575_v37  ;;  %3771 = vmatpush1.bf16.msra.mxu0 %v7944_v24  ;;  %3857 = vmatpush1.bf16.msra.mxu1 %v7947_v25  ;;  %v7950_v37 = vld [vmem:[%s12231_s4 + $0x160] ss:$16 sps:$4 sm:$0xff]   ;;  %v7961_v13 = vld [vmem:[%s12231_s4 + $0x18c] ss:$16 sps:$4 sm:$0xff]   ;;  %v52_v25 = vlaneseq }
 0x27f   :  { %3772 = vmatprep.subr.bf16.mxu0 %v7952_v46  ;;  %3858 = vmatprep.subr.bf16.mxu1 %v7955_v63 }
 0x280   :  { %v10938_v63 = vshrl.u32 %v52_v25, 7 }
 0x282   :  { %3773 = vmatpush1.bf16.msra.mxu0 %v7950_v37  ;;  %3859 = vmatpush1.bf16.msra.mxu1 %v7953_v2  ;;  %vm55_vm0 = vcmp.lt.s32.totalorder %v10938_v63, 2 }
 0x283   :  { %3860 = vmatprep.subr.bf16.mxu1 %v7961_v13  ;;  %v10942_v13 = vsub.s32 0, %v10938_v63 }
 0x286   :  { %3861 = vmatpush1.bf16.msra.mxu1 %v7959_v26 }
 0x287   :  { %3862 = vmatprep.subr.bf16.mxu1 %v7967_v31 }
 0x28a   :  { %3863 = vmatpush1.bf16.msra.mxu1 %v7965_v20 }
 0x28b   :  { %3864 = vmatprep.subr.bf16.mxu1 %v7973_v53  ;;  %v12714_v53 = vld [vmem:[#allocation77_spill] sm:$0xff] }
 0x28e   :  { %3865 = vmatpush1.bf16.msra.mxu1 %v7971_v48 }
 0x28f   :  { %3866 = vmatprep.subr.bf16.mxu1 %v7979_v11 }
 0x292   :  { %3867 = vmatpush1.bf16.msra.mxu1 %v7977_v15 }
 0x293   :  { %3879 = vmatprep.subr.bf16.mxu1 %v7985_v58 }
 0x297   :  { %v7614_v30 = vpop.f32.mrb[52].mxu0 }
 0x298   :  { %v7636_v41 = vpop.f32.mrb[52].mxu1  ;;  %v7615_v12 = vpop.f32.mrb[53].mxu0 }
 0x299   :  { %v7616_v18 = vadd.f32 %v7615_v12, %v7614_v30  ;;  %v7637_v62 = vpop.f32.mrb[53].mxu1  ;;  %v7617_v4 = vpop.f32.mrb[54].mxu0 }
 0x29a   :  { %v7638_v35 = vadd.f32 %v7637_v62, %v7636_v41  ;;  %v7639_v8 = vpop.f32.mrb[54].mxu1  ;;  %v7618_v22 = vpop.f32.mrb[55].mxu0 }
 0x29b   :  { %v2570_v55 = vadd.f32 %v7616_v18, %v10752_v10  ;;  %v7619_v52 = vadd.f32 %v7618_v22, %v7617_v4  ;;  %v7640_v56 = vpop.f32.mrb[55].mxu1  ;;  %v7958_v10 = vld [vmem:[%s12231_s4 + $0x184] ss:$16 sps:$4 sm:$0xff]  }
 0x29c   :  { %v7641_v0 = vadd.f32 %v7640_v56, %v7639_v8  ;;  %3774 = vmatprep.subr.bf16.mxu0 %v7958_v10 }
 0x29d   :  { %v10853_v44 = vadd.f32 %v7638_v35, %v2570_v55  ;;  %v2573_v9 = vadd.f32 %v7619_v52, %v10760_v27  ;;  %3775 = vmatpush1.bf16.msra.mxu0 %v7956_v14  ;;  %v7964_v27 = vld [vmem:[%s12231_s4 + $0x1a4] ss:$16 sps:$4 sm:$0xff]  }
 0x29e   :  { %3776 = vmatprep.subr.bf16.mxu0 %v7964_v27  ;;  %v8604_v27 = vmov 0.0  }
 0x29f   :  { %v10868_v39 = vadd.f32 %v7641_v0, %v2573_v9  ;;  %v10946_v31 = vsel %vm55_vm0, 1.0, %v8604_v27 }
 0x2a1   :  { %3777 = vmatpush1.bf16.msra.mxu0 %v7962_v19  ;;  %v12713_v19 = vld [vmem:[#allocation76_spill] sm:$0xff] }
 0x2a2   :  { %3778 = vmatprep.subr.bf16.mxu0 %v7970_v43 }
 0x2a5   :  { %3779 = vmatpush1.bf16.msra.mxu0 %v7968_v45 }
 0x2a6   :  { %3780 = vmatprep.subr.bf16.mxu0 %v7976_v54 }
 0x2a9   :  { %3781 = vmatpush1.bf16.msra.mxu0 %v7974_v38 }
 0x2aa   :  { %3793 = vmatprep.subr.bf16.mxu0 %v7982_v57 }
 0x2b7   :  { %v7658_v59 = vpop.f32.mrb[56].mxu0 }
 0x2b8   :  { %v7680_v60 = vpop.f32.mrb[56].mxu1  ;;  %v7659_v61 = vpop.f32.mrb[57].mxu0 }
 0x2b9   :  { %v7660_v1 = vadd.f32 %v7659_v61, %v7658_v59  ;;  %v7681_v3 = vpop.f32.mrb[57].mxu1  ;;  %v7661_v16 = vpop.f32.mrb[58].mxu0 }
 0x2ba   :  { %v7682_v17 = vadd.f32 %v7681_v3, %v7680_v60  ;;  %v7683_v7 = vpop.f32.mrb[58].mxu1  ;;  %v7662_v32 = vpop.f32.mrb[59].mxu0 }
 0x2bb   :  { %v2652_v33 = vadd.f32 %v7660_v1, %v10853_v44  ;;  %v7663_v34 = vadd.f32 %v7662_v32, %v7661_v16  ;;  %v7684_v28 = vpop.f32.mrb[59].mxu1 }
 0x2bc   :  { %v7685_v29 = vadd.f32 %v7684_v28, %v7683_v7 }
 0x2bd   :  { %v2693_v30 = vadd.f32 %v7682_v17, %v2652_v33  ;;  %v2655_v41 = vadd.f32 %v7663_v34, %v10868_v39 }
 0x2bf   :  { %v2696_v12 = vadd.f32 %v7685_v29, %v2655_v41 }
 0x2d7   :  { %v7702_v18 = vpop.f32.mrb[60].mxu0 }
 0x2d8   :  { %v7724_v62 = vpop.f32.mrb[60].mxu1  ;;  %v7703_v4 = vpop.f32.mrb[61].mxu0 }
 0x2d9   :  { %v7704_v51 = vadd.f32 %v7703_v4, %v7702_v18  ;;  %v7725_v47 = vpop.f32.mrb[61].mxu1  ;;  %v7705_v35 = vpop.f32.mrb[62].mxu0 }
 0x2da   :  { %v7726_v8 = vadd.f32 %v7725_v47, %v7724_v62  ;;  %v7727_v22 = vpop.f32.mrb[62].mxu1  ;;  %v7706_v50 = vpop.f32.mrb[63].mxu0 }
 0x2db   :  { %v2734_v55 = vadd.f32 %v7704_v51, %v2693_v30  ;;  %v7707_v52 = vadd.f32 %v7706_v50, %v7705_v35  ;;  %v7728_v56 = vpop.f32.mrb[63].mxu1 }
 0x2dc   :  { %v7729_v49 = vadd.f32 %v7728_v56, %v7727_v22 }
 0x2dd   :  { %v2775_v0 = vadd.f32 %v7726_v8, %v2734_v55  ;;  %v2737_v44 = vadd.f32 %v7707_v52, %v2696_v12 }
 0x2df   :  { %v2778_v9 = vadd.f32 %v7729_v49, %v2737_v44 }
 0x2e1   :  { %v2804_v5 = vadd.f32 %v2778_v9, %v2775_v0 }
 0x2e3   :  { %v2805_v6 = vrot.slane %v2804_v5, 4 }
 0x2e5   :  { %v2806_v24 = vadd.f32 %v2805_v6, %v2804_v5 }
 0x2e7   :  { %v2807_v39 = vrot.slane %v2806_v24, 2 }
 0x2e9   :  { %v2808_v46 = vadd.f32 %v2807_v39, %v2806_v24 }
 0x2eb   :  { %v2809_v37 = vrot.slane %v2808_v46, 1 }
 0x2ed   :  { %v2810_v2 = vadd.f32 %v2809_v37, %v2808_v46 }
 0x2ef   :  { %v2813_v10 = vadd.f32 %v10726_v36, %v2810_v2 }
 0x2f1   :  { %v2814_v14 = vmul.f32 0.125, %v2813_v10 }
 0x2f3   :  { %v2818_v26 = vrot.slane %v2814_v14, %v10942_v13 }
 0x2f5   :  { %v2819_v20 = vsub.f32 %v12713_v19, %v2818_v26  ;;  %v2820_v43 = vsub.f32 %v10583_v21, %v2818_v26  ;;  %v2821_v45 = vsub.f32 %v10719_v40, %v2818_v26  ;;  %v2822_v48 = vsub.f32 %v2775_v0, %v2818_v26 }
 0x2f6   :  { %v2823_v36 = vsub.f32 %v12714_v53, %v2818_v26  ;;  %v2824_v54 = vsub.f32 %v10588_v23, %v2818_v26  ;;  %v2825_v11 = vsub.f32 %v10721_v42, %v2818_v26  ;;  %v2826_v38 = vsub.f32 %v2778_v9, %v2818_v26 }
 0x2f7   :  { %v10955_v15 = vmul.f32 %v10946_v31, %v2819_v20  ;;  %v10958_v57 = vmul.f32 %v10946_v31, %v2820_v43  ;;  %v10961_v58 = vmul.f32 %v10946_v31, %v2821_v45  ;;  %v10964_v21 = vmul.f32 %v10946_v31, %v2822_v48 }
 0x2f8   :  { %v10966_v40 = vmul.f32 0.0, %v2823_v36  ;;  %v10968_v59 = vmul.f32 0.0, %v2824_v54  ;;  %v10970_v23 = vmul.f32 0.0, %v2825_v11  ;;  %v10972_v42 = vmul.f32 0.0, %v2826_v38  ;;  %v2781_v36 = vld [vmem:[%s12232_s2] sm:$0xf] }
 0x2f9   :  { %v2835_v60 = vmul.f32 %v10955_v15, %v10955_v15  ;;  %v2836_v61 = vmul.f32 %v10958_v57, %v10958_v57  ;;  %v2837_v1 = vmul.f32 %v10961_v58, %v10961_v58  ;;  %v2838_v3 = vmul.f32 %v10964_v21, %v10964_v21  ;;  %v2782_v38 = vld [vmem:[%s12233_s3] sm:$0xf] }
 0x2fa   :  { %v2839_v16 = vmul.f32 %v10966_v40, %v10966_v40  ;;  %v2840_v17 = vmul.f32 %v10968_v59, %v10968_v59  ;;  %v2841_v7 = vmul.f32 %v10970_v23, %v10970_v23  ;;  %v2842_v32 = vmul.f32 %v10972_v42, %v10972_v42 }
 0x2fb   :  { %v8605_v26 = vmov 1966171168   ;;  %v10999_v11 = vsub.s32 3, %v10938_v63 }
 0x2fc   :  { %v2843_v33 = vadd.f32 %v2839_v16, %v2835_v60  ;;  %v2850_v34 = vadd.f32 %v2840_v17, %v2836_v61  ;;  %v2857_v28 = vadd.f32 %v2841_v7, %v2837_v1  ;;  %v2864_v29 = vadd.f32 %v2842_v32, %v2838_v3 }
 0x2fd   :  { %v2880_v27 = vunpack.c.l.s4 %v8605_v26  ;;  %v11005_v60 = vsub.s32 1, %v10938_v63  ;;  %v11008_v61 = vsub.s32 2, %v10938_v63  ;;  %v2941_v16 = vrot.slane %v2782_v38, %v10999_v11  ;;  %v7991_v26 = vld [vmem:[%s12231_s4 + $0x22c] ss:$16 sps:$4 sm:$0xff]  }
 0x2fe   :  { %v2844_v30 = vrot.slane %v2843_v33, 4  ;;  %v2851_v41 = vrot.slane %v2850_v34, 4  ;;  %v2858_v12 = vrot.slane %v2857_v28, 4  ;;  %v2865_v18 = vrot.slane %v2864_v29, 4 }
 0x2ff   :  { %v2881_v19 = vunpack.c.0.s8 %v2880_v27  ;;  %v2933_v3 = vrot.slane %v2782_v38, %v11005_v60 }
 0x300   :  { %v2845_v62 = vadd.f32 %v2844_v30, %v2843_v33  ;;  %v2852_v4 = vadd.f32 %v2851_v41, %v2850_v34  ;;  %v2859_v51 = vadd.f32 %v2858_v12, %v2857_v28  ;;  %v2866_v47 = vadd.f32 %v2865_v18, %v2864_v29 }
 0x301   :  { %v10991_v20 = vsub.s32 %v2881_v19, %v10938_v63  ;;  %v2929_v34 = vrot.slane %v2782_v38, %v10942_v13  ;;  %v2937_v28 = vrot.slane %v2782_v38, %v11008_v61  ;;  %v7986_v19 = vld [vmem:[%s12231_s4 + $0x220] ss:$16 sps:$4 sm:$0xff]   ;;  %v8003_v38 = vld [vmem:[%s12231_s4 + $0x26c] ss:$16 sps:$4 sm:$0xff]  }
 0x302   :  { %v2846_v35 = vrot.slane %v2845_v62, 2  ;;  %v2853_v8 = vrot.slane %v2852_v4, 2  ;;  %v2860_v22 = vrot.slane %v2859_v51, 2  ;;  %v2867_v50 = vrot.slane %v2866_v47, 2 }
 0x304   :  { %v2847_v55 = vadd.f32 %v2846_v35, %v2845_v62  ;;  %v2854_v52 = vadd.f32 %v2853_v8, %v2852_v4  ;;  %v2861_v56 = vadd.f32 %v2860_v22, %v2859_v51  ;;  %v2868_v49 = vadd.f32 %v2867_v50, %v2866_v47 }
 0x306   :  { %v2848_v0 = vrot.slane %v2847_v55, 1  ;;  %v2855_v44 = vrot.slane %v2854_v52, 1  ;;  %v2862_v9 = vrot.slane %v2861_v56, 1  ;;  %v2869_v24 = vrot.slane %v2868_v49, 1 }
 0x308   :  { %v2849_v5 = vadd.f32 %v2848_v0, %v2847_v55  ;;  %v2856_v6 = vadd.f32 %v2855_v44, %v2854_v52  ;;  %v2863_v25 = vadd.f32 %v2862_v9, %v2861_v56  ;;  %v2870_v46 = vadd.f32 %v2869_v24, %v2868_v49 }
 0x30a   :  { %v2871_v39 = vadd.f32 %v2856_v6, %v2849_v5 }
 0x30c   :  { %v2872_v37 = vadd.f32 %v2871_v39, %v2863_v25 }
 0x30e   :  { %v2873_v2 = vadd.f32 %v2872_v37, %v2870_v46  ;;  %v7980_v37 = vld [vmem:[%s12231_s4 + $0x200] ss:$16 sps:$4 sm:$0xff]  }
 0x310   :  { %v2874_v10 = vmul.f32 0.125, %v2873_v2  ;;  %v7983_v2 = vld [vmem:[%s12231_s4 + $0x208] ss:$16 sps:$4 sm:$0xff]  }
 0x312   :  { %v2875_v14 = vadd.f32 1e-05, %v2874_v10 }
 0x314   :  { %8460 = vrsqrt.f32 %v2875_v14  ;;  %v7988_v14 = vld [vmem:[%s12231_s4 + $0x224] ss:$16 sps:$4 sm:$0xff]  }
 0x31e   :  { %v8461_v43 = vpop.eup %8460 }
 0x31f   :  { %v2878_v45 = vcombine.low %v8461_v43, %v8461_v43  ;;  %v7989_v43 = vld [vmem:[%s12231_s4 + $0x228] ss:$16 sps:$4 sm:$0xff]  }
 0x321   :  { %v2885_v48 = vrot.slane %v2878_v45, %v10991_v20  ;;  %v7994_v45 = vld [vmem:[%s12231_s4 + $0x244] ss:$16 sps:$4 sm:$0xff]  }
 0x323   :  { %v2886_v53 = vcombine.low %v2885_v48, %v2885_v48  ;;  %v7997_v48 = vld [vmem:[%s12231_s4 + $0x24c] ss:$16 sps:$4 sm:$0xff]  }
 0x325   :  { %v2893_v54 = vrot.slane %v2886_v53, %v10991_v20  ;;  %v7992_v53 = vld [vmem:[%s12231_s4 + $0x240] ss:$16 sps:$4 sm:$0xff]  }
 0x327   :  { %v2895_v1 = vmul.f32 %v2893_v54, %v2781_v36  ;;  %v7995_v36 = vld [vmem:[%s12231_s4 + $0x248] ss:$16 sps:$4 sm:$0xff]   ;;  %v8000_v54 = vld [vmem:[%s12231_s4 + $0x264] ss:$16 sps:$4 sm:$0xff]  }
 0x329   :  { %v2912_v17 = vrot.slane %v2895_v1, %v10999_v11  ;;  %v2904_v7 = vrot.slane %v2895_v1, %v11005_v60  ;;  %v2900_v32 = vrot.slane %v2895_v1, %v10942_v13  ;;  %v2908_v33 = vrot.slane %v2895_v1, %v11008_v61  ;;  %v7998_v1 = vld [vmem:[%s12231_s4 + $0x260] ss:$16 sps:$4 sm:$0xff]  }
 0x32b   :  { %v2920_v63 = vmul.f32 %v2912_v17, %v10964_v21  ;;  %v2924_v29 = vmul.f32 %v2912_v17, %v10972_v42  ;;  %v2918_v30 = vmul.f32 %v2904_v7, %v10958_v57  ;;  %v2922_v41 = vmul.f32 %v2904_v7, %v10968_v59  ;;  %v8009_v17 = vld [vmem:[%s12231_s4 + $0x28c] ss:$16 sps:$4 sm:$0xff]   ;;  %v8004_v7 = vld [vmem:[%s12231_s4 + $0x280] ss:$16 sps:$4 sm:$0xff]  }
 0x32c   :  { %v2917_v12 = vmul.f32 %v2900_v32, %v10955_v15  ;;  %v2921_v18 = vmul.f32 %v2900_v32, %v10966_v40  ;;  %v2919_v62 = vmul.f32 %v2908_v33, %v10961_v58  ;;  %v2923_v4 = vmul.f32 %v2908_v33, %v10970_v23  ;;  %v8007_v32 = vld [vmem:[%s12231_s4 + $0x288] ss:$16 sps:$4 sm:$0xff]   ;;  %v8012_v33 = vld [vmem:[%s12231_s4 + $0x2a4] ss:$16 sps:$4 sm:$0xff]  }
 0x32d   :  { %v2947_v51 = vadd.f32 %v2933_v3, %v2918_v30  ;;  %v2951_v47 = vadd.f32 %v2933_v3, %v2922_v41  ;;  %v2949_v35 = vadd.f32 %v2941_v16, %v2920_v63  ;;  %v2953_v8 = vadd.f32 %v2941_v16, %v2924_v29  ;;  %v8001_v3 = vld [vmem:[%s12231_s4 + $0x268] ss:$16 sps:$4 sm:$0xff]   ;;  %v8006_v16 = vld [vmem:[%s12231_s4 + $0x284] ss:$16 sps:$4 sm:$0xff]   ;;  %v8021_v30 = vld [vmem:[%s12231_s4 + $0x2cc] ss:$16 sps:$4 sm:$0xff]  }
 0x32e   :  { %v2946_v22 = vadd.f32 %v2929_v34, %v2917_v12  ;;  %v2950_v21 = vadd.f32 %v2929_v34, %v2921_v18  ;;  %v11026_v50 = vadd.f32 %v2937_v28, %v2919_v62  ;;  %v11028_v42 = vadd.f32 %v2937_v28, %v2923_v4  ;;  %v8015_v34 = vld [vmem:[%s12231_s4 + $0x2ac] ss:$16 sps:$4 sm:$0xff]   ;;  %v8010_v28 = vld [vmem:[%s12231_s4 + $0x2a0] ss:$16 sps:$4 sm:$0xff]   ;;  %v8013_v63 = vld [vmem:[%s12231_s4 + $0x2a8] ss:$16 sps:$4 sm:$0xff]  }
 0x32f   :  { %v2955_v57 = vmul.f32 0.2, %v2947_v51  ;;  %v2959_v59 = vmul.f32 0.2, %v2951_v47  ;;  %v2957_v55 = vmul.f32 0.2, %v2949_v35 }
 0x330   :  { %v2954_v15 = vmul.f32 0.2, %v2946_v22  ;;  %v2958_v52 = vmul.f32 0.2, %v2950_v21  ;;  %v2961_v40 = vmul.f32 0.2, %v2953_v8 }
 0x331   :  { %v2963_v56 = vmax.f32 %v2947_v51, %v2955_v57  ;;  %v2967_v58 = vmax.f32 %v2951_v47, %v2959_v59  ;;  %v2965_v49 = vmax.f32 %v2949_v35, %v2957_v55  ;;  %v8018_v29 = vld [vmem:[%s12231_s4 + $0x2c4] ss:$16 sps:$4 sm:$0xff]   ;;  %v8016_v41 = vld [vmem:[%s12231_s4 + $0x2c0] ss:$16 sps:$4 sm:$0xff]   ;;  %v8019_v12 = vld [vmem:[%s12231_s4 + $0x2c8] ss:$16 sps:$4 sm:$0xff]  }
 0x332   :  { %v2962_v23 = vmax.f32 %v2946_v22, %v2954_v15  ;;  %v2966_v0 = vmax.f32 %v2950_v21, %v2958_v52  ;;  %v2969_v44 = vmax.f32 %v2953_v8, %v2961_v40  ;;  %v8024_v18 = vld [vmem:[%s12231_s4 + $0x2e4] ss:$16 sps:$4 sm:$0xff]   ;;  %v8027_v62 = vld [vmem:[%s12231_s4 + $0x2ec] ss:$16 sps:$4 sm:$0xff]   ;;  %v8022_v4 = vld [vmem:[%s12231_s4 + $0x2e0] ss:$16 sps:$4 sm:$0xff]  }
 0x333   :  { %v11031_v9 = vmul.f32 %v10946_v31, %v2963_v56  ;;  %v11033_v5 = vmul.f32 0.0, %v2967_v58  ;;  %v11041_v25 = vmul.f32 %v10946_v31, %v2965_v49  ;;  %v8025_v51 = vld [vmem:[%s12231_s4 + $0x2e8] ss:$16 sps:$4 sm:$0xff]   ;;  %v8030_v47 = vld [vmem:[%s12231_s4 + $0x304] ss:$16 sps:$4 sm:$0xff]  }
 0x334   :  { %v11036_v6 = vmul.f32 %v10946_v31, %v2962_v23  ;;  %v11038_v24 = vmul.f32 0.0, %v2966_v0  ;;  %v11043_v39 = vmul.f32 0.0, %v2969_v44  ;;  %v8033_v35 = vld [vmem:[%s12231_s4 + $0x30c] ss:$16 sps:$4 sm:$0xff]   ;;  %v8028_v8 = vld [vmem:[%s12231_s4 + $0x300] ss:$16 sps:$4 sm:$0xff]  }
 0x335   :  { %v2979_v46 = vpack.c.bf16 %v11033_v5, %v11031_v9  ;;  %v8031_v22 = vld [vmem:[%s12231_s4 + $0x308] ss:$16 sps:$4 sm:$0xff]   ;;  %v8036_v21 = vld [vmem:[%s12231_s4 + $0x324] ss:$16 sps:$4 sm:$0xff]   ;;  %v8039_v57 = vld [vmem:[%s12231_s4 + $0x32c] ss:$16 sps:$4 sm:$0xff]  }
 0x336   :  { %v2978_v10 = vpack.c.bf16 %v11038_v24, %v11036_v6  ;;  %v2981_v27 = vpack.c.bf16 %v11043_v39, %v11041_v25  ;;  %v8034_v59 = vld [vmem:[%s12231_s4 + $0x320] ss:$16 sps:$4 sm:$0xff]   ;;  %v8037_v55 = vld [vmem:[%s12231_s4 + $0x328] ss:$16 sps:$4 sm:$0xff]   ;;  %v8042_v15 = vld [vmem:[%s12231_s4 + $0x344] ss:$16 sps:$4 sm:$0xff]  }
 0x337   :  { %3782 = vmatprep.mubr.bf16.mxu0 %v2979_v46  ;;  %3868 = vmatprep.mubr.bf16.mxu1 %v2979_v46  ;;  %v8045_v52 = vld [vmem:[%s12231_s4 + $0x34c] ss:$16 sps:$4 sm:$0xff]   ;;  %v8040_v40 = vld [vmem:[%s12231_s4 + $0x340] ss:$16 sps:$4 sm:$0xff]   ;;  %v8043_v56 = vld [vmem:[%s12231_s4 + $0x348] ss:$16 sps:$4 sm:$0xff]  }
 0x338   :  { %3783 = vmatmul.mubr.bf16.vlgmr.msra.gmra.mrb[64].mxu0 %v2978_v10  ;;  %3869 = vmatmul.mubr.bf16.vlgmr.msra.gmra.mrb[64].mxu1 %v2978_v10  ;;  %v8048_v58 = vld [vmem:[%s12231_s4 + $0x364] ss:$16 sps:$4 sm:$0xff]   ;;  %v8051_v49 = vld [vmem:[%s12231_s4 + $0x36c] ss:$16 sps:$4 sm:$0xff]   ;;  %v8046_v23 = vld [vmem:[%s12231_s4 + $0x360] ss:$16 sps:$4 sm:$0xff]  }
 0x339   :  { %3794 = vmatpush1.bf16.msra.mxu0 %v7980_v37  ;;  %3880 = vmatpush1.bf16.msra.mxu1 %v7983_v2  ;;  %v8049_v0 = vld [vmem:[%s12231_s4 + $0x368] ss:$16 sps:$4 sm:$0xff]   ;;  %v8054_v44 = vld [vmem:[%s12231_s4 + $0x384] ss:$16 sps:$4 sm:$0xff]   ;;  %v8057_v46 = vld [vmem:[%s12231_s4 + $0x38c] ss:$16 sps:$4 sm:$0xff]  }
 0x33a   :  { %3825 = vmatprep.mubr.bf16.mxu0 %v2981_v27  ;;  %3911 = vmatprep.mubr.bf16.mxu1 %v2981_v27  ;;  %v8052_v37 = vld [vmem:[%s12231_s4 + $0x380] ss:$16 sps:$4 sm:$0xff]   ;;  %v8055_v2 = vld [vmem:[%s12231_s4 + $0x388] ss:$16 sps:$4 sm:$0xff]   ;;  %v8060_v10 = vld [vmem:[%s12231_s4 + $0x3a4] ss:$16 sps:$4 sm:$0xff]  }
 0x33b   :  { %3795 = vmatprep.subr.bf16.mxu0 %v7988_v14  ;;  %3881 = vmatprep.subr.bf16.mxu1 %v7991_v26  ;;  %v8063_v14 = vld [vmem:[%s12231_s4 + $0x3ac] ss:$16 sps:$4 sm:$0xff]   ;;  %v8058_v26 = vld [vmem:[%s12231_s4 + $0x3a0] ss:$16 sps:$4 sm:$0xff]   ;;  %v8061_v27 = vld [vmem:[%s12231_s4 + $0x3a8] ss:$16 sps:$4 sm:$0xff]  }
 0x33d   :  { %3796 = vmatpush1.bf16.msra.mxu0 %v7986_v19  ;;  %3882 = vmatpush1.bf16.msra.mxu1 %v7989_v43  ;;  %v8066_v19 = vld [vmem:[%s12231_s4 + $0x3c4] ss:$16 sps:$4 sm:$0xff]   ;;  %v8069_v43 = vld [vmem:[%s12231_s4 + $0x3cc] ss:$16 sps:$4 sm:$0xff]  }
 0x33e   :  { %3797 = vmatprep.subr.bf16.mxu0 %v7994_v45  ;;  %3883 = vmatprep.subr.bf16.mxu1 %v7997_v48  ;;  %v2956_v45 = vmul.f32 0.2, %v11026_v50  ;;  %v2960_v48 = vmul.f32 0.2, %v11028_v42 }
 0x341   :  { %3798 = vmatpush1.bf16.msra.mxu0 %v7992_v53  ;;  %3884 = vmatpush1.bf16.msra.mxu1 %v7995_v36  ;;  %v8064_v53 = vld [vmem:[%s12231_s4 + $0x3c0] ss:$16 sps:$4 sm:$0xff]   ;;  %v8067_v36 = vld [vmem:[%s12231_s4 + $0x3c8] ss:$16 sps:$4 sm:$0xff]  }
 0x342   :  { %3799 = vmatprep.subr.bf16.mxu0 %v8000_v54  ;;  %3885 = vmatprep.subr.bf16.mxu1 %v8003_v38  ;;  %v8072_v54 = vld [vmem:[%s12231_s4 + $0x3e4] ss:$16 sps:$4 sm:$0xff]   ;;  %v8075_v38 = vld [vmem:[%s12231_s4 + $0x3ec] ss:$16 sps:$4 sm:$0xff]  }
 0x345   :  { %3800 = vmatpush1.bf16.msra.mxu0 %v7998_v1  ;;  %3886 = vmatpush1.bf16.msra.mxu1 %v8001_v3  ;;  %v2964_v1 = vmax.f32 %v11026_v50, %v2956_v45  ;;  %v2968_v3 = vmax.f32 %v11028_v42, %v2960_v48  ;;  %v8078_v42 = vld [vmem:[%s12234_s7 + $0x4] ss:$16 sps:$4 sm:$0xff]   ;;  %v8133_v45 = vld [vmem:[%s12234_s7 + $0x128] ss:$16 sps:$4 sm:$0xff]  }
 0x346   :  { %3801 = vmatprep.subr.bf16.mxu0 %v8006_v16  ;;  %3887 = vmatprep.subr.bf16.mxu1 %v8009_v17  ;;  %v8070_v16 = vld [vmem:[%s12231_s4 + $0x3e0] ss:$16 sps:$4 sm:$0xff]   ;;  %v8073_v17 = vld [vmem:[%s12231_s4 + $0x3e8] ss:$16 sps:$4 sm:$0xff]   ;;  %v8138_v48 = vld [vmem:[%s12234_s7 + $0x144] ss:$16 sps:$4 sm:$0xff]  }
 0x349   :  { %3802 = vmatpush1.bf16.msra.mxu0 %v8004_v7  ;;  %3888 = vmatpush1.bf16.msra.mxu1 %v8007_v32  ;;  %v11242_v7 = vmul.f32 %v10946_v31, %v2964_v1  ;;  %v11244_v32 = vmul.f32 0.0, %v2968_v3  ;;  %v8147_v1 = vld [vmem:[%s12234_s7 + $0x16c] ss:$16 sps:$4 sm:$0xff]   ;;  %v8142_v3 = vld [vmem:[%s12234_s7 + $0x160] ss:$16 sps:$4 sm:$0xff]  }
 0x34a   :  { %3803 = vmatprep.subr.bf16.mxu0 %v8012_v33  ;;  %3889 = vmatprep.subr.bf16.mxu1 %v8015_v34  ;;  %v8076_v33 = vld [vmem:[%s12234_s7] ss:$16 sps:$4 sm:$0xff]   ;;  %v8079_v34 = vld [vmem:[%s12234_s7 + $0x8] ss:$16 sps:$4 sm:$0xff]  }
 0x34b   :  { %v2980_v50 = vpack.c.bf16 %v11244_v32, %v11242_v7 }
 0x34d   :  { %3804 = vmatpush1.bf16.msra.mxu0 %v8010_v28  ;;  %3890 = vmatpush1.bf16.msra.mxu1 %v8013_v63  ;;  %v8081_v28 = vld [vmem:[%s12234_s7 + $0xc] ss:$16 sps:$4 sm:$0xff]   ;;  %v8084_v63 = vld [vmem:[%s12234_s7 + $0x24] ss:$16 sps:$4 sm:$0xff]  }
 0x34e   :  { %3805 = vmatprep.subr.bf16.mxu0 %v8018_v29  ;;  %3891 = vmatprep.subr.bf16.mxu1 %v8021_v30  ;;  %v8087_v29 = vld [vmem:[%s12234_s7 + $0x2c] ss:$16 sps:$4 sm:$0xff]   ;;  %v8082_v30 = vld [vmem:[%s12234_s7 + $0x20] ss:$16 sps:$4 sm:$0xff]  }
 0x351   :  { %3806 = vmatpush1.bf16.msra.mxu0 %v8016_v41  ;;  %3892 = vmatpush1.bf16.msra.mxu1 %v8019_v12  ;;  %v8085_v41 = vld [vmem:[%s12234_s7 + $0x28] ss:$16 sps:$4 sm:$0xff]   ;;  %v8090_v12 = vld [vmem:[%s12234_s7 + $0x44] ss:$16 sps:$4 sm:$0xff]  }
 0x352   :  { %3807 = vmatprep.subr.bf16.mxu0 %v8024_v18  ;;  %3893 = vmatprep.subr.bf16.mxu1 %v8027_v62  ;;  %v8093_v18 = vld [vmem:[%s12234_s7 + $0x4c] ss:$16 sps:$4 sm:$0xff]   ;;  %v8088_v62 = vld [vmem:[%s12234_s7 + $0x40] ss:$16 sps:$4 sm:$0xff]  }
 0x355   :  { %3808 = vmatpush1.bf16.msra.mxu0 %v8022_v4  ;;  %3894 = vmatpush1.bf16.msra.mxu1 %v8025_v51  ;;  %v8091_v4 = vld [vmem:[%s12234_s7 + $0x48] ss:$16 sps:$4 sm:$0xff]   ;;  %v8096_v51 = vld [vmem:[%s12234_s7 + $0x64] ss:$16 sps:$4 sm:$0xff]  }
 0x356   :  { %3809 = vmatprep.subr.bf16.mxu0 %v8030_v47  ;;  %3895 = vmatprep.subr.bf16.mxu1 %v8033_v35  ;;  %v8099_v47 = vld [vmem:[%s12234_s7 + $0x6c] ss:$16 sps:$4 sm:$0xff]   ;;  %v8094_v35 = vld [vmem:[%s12234_s7 + $0x60] ss:$16 sps:$4 sm:$0xff]  }
 0x359   :  { %3810 = vmatpush1.bf16.msra.mxu0 %v8028_v8  ;;  %3896 = vmatpush1.bf16.msra.mxu1 %v8031_v22  ;;  %v8097_v8 = vld [vmem:[%s12234_s7 + $0x68] ss:$16 sps:$4 sm:$0xff]   ;;  %v8102_v22 = vld [vmem:[%s12234_s7 + $0x84] ss:$16 sps:$4 sm:$0xff]  }
 0x35a   :  { %3811 = vmatprep.subr.bf16.mxu0 %v8036_v21  ;;  %3897 = vmatprep.subr.bf16.mxu1 %v8039_v57  ;;  %v8105_v21 = vld [vmem:[%s12234_s7 + $0x8c] ss:$16 sps:$4 sm:$0xff]   ;;  %v8100_v57 = vld [vmem:[%s12234_s7 + $0x80] ss:$16 sps:$4 sm:$0xff]  }
 0x35d   :  { %3812 = vmatpush1.bf16.msra.mxu0 %v8034_v59  ;;  %3898 = vmatpush1.bf16.msra.mxu1 %v8037_v55  ;;  %v8103_v59 = vld [vmem:[%s12234_s7 + $0x88] ss:$16 sps:$4 sm:$0xff]   ;;  %v8108_v55 = vld [vmem:[%s12234_s7 + $0xa4] ss:$16 sps:$4 sm:$0xff]  }
 0x35e   :  { %3813 = vmatprep.subr.bf16.mxu0 %v8042_v15  ;;  %3899 = vmatprep.subr.bf16.mxu1 %v8045_v52  ;;  %v8111_v15 = vld [vmem:[%s12234_s7 + $0xac] ss:$16 sps:$4 sm:$0xff]   ;;  %v8106_v52 = vld [vmem:[%s12234_s7 + $0xa0] ss:$16 sps:$4 sm:$0xff]  }
 0x361   :  { %3814 = vmatpush1.bf16.msra.mxu0 %v8040_v40  ;;  %3900 = vmatpush1.bf16.msra.mxu1 %v8043_v56  ;;  %v8109_v40 = vld [vmem:[%s12234_s7 + $0xa8] ss:$16 sps:$4 sm:$0xff]   ;;  %v8114_v56 = vld [vmem:[%s12234_s7 + $0xc4] ss:$16 sps:$4 sm:$0xff]  }
 0x362   :  { %3815 = vmatprep.subr.bf16.mxu0 %v8048_v58  ;;  %3901 = vmatprep.subr.bf16.mxu1 %v8051_v49  ;;  %v8117_v58 = vld [vmem:[%s12234_s7 + $0xcc] ss:$16 sps:$4 sm:$0xff]   ;;  %v8112_v49 = vld [vmem:[%s12234_s7 + $0xc0] ss:$16 sps:$4 sm:$0xff]  }
 0x365   :  { %3816 = vmatpush1.bf16.msra.mxu0 %v8046_v23  ;;  %3902 = vmatpush1.bf16.msra.mxu1 %v8049_v0  ;;  %v8115_v23 = vld [vmem:[%s12234_s7 + $0xc8] ss:$16 sps:$4 sm:$0xff]   ;;  %v8120_v0 = vld [vmem:[%s12234_s7 + $0xe4] ss:$16 sps:$4 sm:$0xff]  }
 0x366   :  { %3817 = vmatprep.subr.bf16.mxu0 %v8054_v44  ;;  %3903 = vmatprep.subr.bf16.mxu1 %v8057_v46  ;;  %v8123_v44 = vld [vmem:[%s12234_s7 + $0xec] ss:$16 sps:$4 sm:$0xff]   ;;  %v8118_v46 = vld [vmem:[%s12234_s7 + $0xe0] ss:$16 sps:$4 sm:$0xff]  }
 0x369   :  { %3818 = vmatpush1.bf16.msra.mxu0 %v8052_v37  ;;  %3904 = vmatpush1.bf16.msra.mxu1 %v8055_v2  ;;  %v8121_v37 = vld [vmem:[%s12234_s7 + $0xe8] ss:$16 sps:$4 sm:$0xff]   ;;  %v8126_v2 = vld [vmem:[%s12234_s7 + $0x104] ss:$16 sps:$4 sm:$0xff]  }
 0x36a   :  { %3819 = vmatprep.subr.bf16.mxu0 %v8060_v10  ;;  %3905 = vmatprep.subr.bf16.mxu1 %v8063_v14  ;;  %v8129_v10 = vld [vmem:[%s12234_s7 + $0x10c] ss:$16 sps:$4 sm:$0xff]   ;;  %v8124_v14 = vld [vmem:[%s12234_s7 + $0x100] ss:$16 sps:$4 sm:$0xff]  }
 0x36d   :  { %3820 = vmatpush1.bf16.msra.mxu0 %v8058_v26  ;;  %3906 = vmatpush1.bf16.msra.mxu1 %v8061_v27  ;;  %v8127_v26 = vld [vmem:[%s12234_s7 + $0x108] ss:$16 sps:$4 sm:$0xff]   ;;  %v8132_v27 = vld [vmem:[%s12234_s7 + $0x124] ss:$16 sps:$4 sm:$0xff]  }
 0x36e   :  { %3821 = vmatprep.subr.bf16.mxu0 %v8066_v19  ;;  %3907 = vmatprep.subr.bf16.mxu1 %v8069_v43  ;;  %v8135_v19 = vld [vmem:[%s12234_s7 + $0x12c] ss:$16 sps:$4 sm:$0xff]   ;;  %v8130_v43 = vld [vmem:[%s12234_s7 + $0x120] ss:$16 sps:$4 sm:$0xff]  }
 0x371   :  { %3822 = vmatpush1.bf16.msra.mxu0 %v8064_v53  ;;  %3908 = vmatpush1.bf16.msra.mxu1 %v8067_v36  ;;  %v8141_v53 = vld [vmem:[%s12234_s7 + $0x14c] ss:$16 sps:$4 sm:$0xff]   ;;  %v8136_v36 = vld [vmem:[%s12234_s7 + $0x140] ss:$16 sps:$4 sm:$0xff]  }
 0x372   :  { %3823 = vmatprep.subr.bf16.mxu0 %v8072_v54  ;;  %3909 = vmatprep.subr.bf16.mxu1 %v8075_v38  ;;  %v8139_v54 = vld [vmem:[%s12234_s7 + $0x148] ss:$16 sps:$4 sm:$0xff]   ;;  %v8144_v38 = vld [vmem:[%s12234_s7 + $0x164] ss:$16 sps:$4 sm:$0xff]  }
 0x375   :  { %3824 = vmatpush1.bf16.msra.mxu0 %v8070_v16  ;;  %3910 = vmatpush1.bf16.msra.mxu1 %v8073_v17  ;;  %v8145_v16 = vld [vmem:[%s12234_s7 + $0x168] ss:$16 sps:$4 sm:$0xff]   ;;  %v8150_v17 = vld [vmem:[%s12234_s7 + $0x184] ss:$16 sps:$4 sm:$0xff]  }
 0x376   :  { %4883 = vmatprep.subr.bf16.mxu0 %v8078_v42  ;;  %4969 = vmatprep.subr.bf16.mxu1 %v8081_v28  ;;  %v8148_v42 = vld [vmem:[%s12234_s7 + $0x180] ss:$16 sps:$4 sm:$0xff]   ;;  %v8159_v28 = vld [vmem:[%s12234_s7 + $0x1ac] ss:$16 sps:$4 sm:$0xff]  }
 0x378   :  { %3826 = vmatmul.mubr.bf16.vlgmr.msra.gmra.mrb[64].mxu0 %v2980_v50  ;;  %3912 = vmatmul.mubr.bf16.vlgmr.msra.gmra.mrb[64].mxu1 %v2980_v50  ;;  %v8153_v50 = vld [vmem:[%s12234_s7 + $0x18c] ss:$16 sps:$4 sm:$0xff]  }
 0x379   :  { %4884 = vmatpush1.bf16.msra.mxu0 %v8076_v33  ;;  %4970 = vmatpush1.bf16.msra.mxu1 %v8079_v34  ;;  %v8151_v33 = vld [vmem:[%s12234_s7 + $0x188] ss:$16 sps:$4 sm:$0xff]   ;;  %v8156_v34 = vld [vmem:[%s12234_s7 + $0x1a4] ss:$16 sps:$4 sm:$0xff]  }
 0x37a   :  { %4885 = vmatprep.subr.bf16.mxu0 %v8084_v63  ;;  %4971 = vmatprep.subr.bf16.mxu1 %v8087_v29  ;;  %v8154_v63 = vld [vmem:[%s12234_s7 + $0x1a0] ss:$16 sps:$4 sm:$0xff]   ;;  %v8157_v29 = vld [vmem:[%s12234_s7 + $0x1a8] ss:$16 sps:$4 sm:$0xff]  }
 0x37d   :  { %4886 = vmatpush1.bf16.msra.mxu0 %v8082_v30  ;;  %4972 = vmatpush1.bf16.msra.mxu1 %v8085_v41  ;;  %v8162_v30 = vld [vmem:[%s12234_s7 + $0x1c4] ss:$16 sps:$4 sm:$0xff]   ;;  %v8165_v41 = vld [vmem:[%s12234_s7 + $0x1cc] ss:$16 sps:$4 sm:$0xff]  }
 0x37e   :  { %4887 = vmatprep.subr.bf16.mxu0 %v8090_v12  ;;  %4973 = vmatprep.subr.bf16.mxu1 %v8093_v18  ;;  %v8160_v12 = vld [vmem:[%s12234_s7 + $0x1c0] ss:$16 sps:$4 sm:$0xff]   ;;  %v8163_v18 = vld [vmem:[%s12234_s7 + $0x1c8] ss:$16 sps:$4 sm:$0xff]  }
 0x381   :  { %4888 = vmatpush1.bf16.msra.mxu0 %v8088_v62  ;;  %4974 = vmatpush1.bf16.msra.mxu1 %v8091_v4  ;;  %v8166_v62 = vld [vmem:[%s12234_s7 + $0x1e0] ss:$16 sps:$4 sm:$0xff]   ;;  %v8168_v4 = vld [vmem:[%s12234_s7 + $0x1e4] ss:$16 sps:$4 sm:$0xff]  }
 0x382   :  { %4889 = vmatprep.subr.bf16.mxu0 %v8096_v51  ;;  %4975 = vmatprep.subr.bf16.mxu1 %v8099_v47  ;;  %v8171_v51 = vld [vmem:[%s12234_s7 + $0x1ec] ss:$16 sps:$4 sm:$0xff]   ;;  %v8169_v47 = vld [vmem:[%s12234_s7 + $0x1e8] ss:$16 sps:$4 sm:$0xff]  }
 0x385   :  { %4890 = vmatpush1.bf16.msra.mxu0 %v8094_v35  ;;  %4976 = vmatpush1.bf16.msra.mxu1 %v8097_v8  ;;  %v8174_v35 = vld [vmem:[%s12234_s7 + $0x204] ss:$16 sps:$4 sm:$0xff]   ;;  %v8177_v8 = vld [vmem:[%s12234_s7 + $0x20c] ss:$16 sps:$4 sm:$0xff]  }
 0x386   :  { %4891 = vmatprep.subr.bf16.mxu0 %v8102_v22  ;;  %4977 = vmatprep.subr.bf16.mxu1 %v8105_v21 }
 0x389   :  { %4892 = vmatpush1.bf16.msra.mxu0 %v8100_v57  ;;  %4978 = vmatpush1.bf16.msra.mxu1 %v8103_v59 }
 0x38a   :  { %4893 = vmatprep.subr.bf16.mxu0 %v8108_v55  ;;  %4979 = vmatprep.subr.bf16.mxu1 %v8111_v15 }
 0x38d   :  { %4894 = vmatpush1.bf16.msra.mxu0 %v8106_v52  ;;  %4980 = vmatpush1.bf16.msra.mxu1 %v8109_v40 }
 0x38e   :  { %4895 = vmatprep.subr.bf16.mxu0 %v8114_v56  ;;  %4981 = vmatprep.subr.bf16.mxu1 %v8117_v58 }
 0x391   :  { %4896 = vmatpush1.bf16.msra.mxu0 %v8112_v49  ;;  %4982 = vmatpush1.bf16.msra.mxu1 %v8115_v23 }
 0x392   :  { %4897 = vmatprep.subr.bf16.mxu0 %v8120_v0  ;;  %4983 = vmatprep.subr.bf16.mxu1 %v8123_v44 }
 0x395   :  { %4898 = vmatpush1.bf16.msra.mxu0 %v8118_v46  ;;  %4984 = vmatpush1.bf16.msra.mxu1 %v8121_v37 }
 0x396   :  { %4899 = vmatprep.subr.bf16.mxu0 %v8126_v2  ;;  %4985 = vmatprep.subr.bf16.mxu1 %v8129_v10 }
 0x399   :  { %4900 = vmatpush1.bf16.msra.mxu0 %v8124_v14  ;;  %4986 = vmatpush1.bf16.msra.mxu1 %v8127_v26 }
 0x39a   :  { %4901 = vmatprep.subr.bf16.mxu0 %v8132_v27  ;;  %4987 = vmatprep.subr.bf16.mxu1 %v8135_v19 }
 0x39d   :  { %4902 = vmatpush1.bf16.msra.mxu0 %v8130_v43  ;;  %4988 = vmatpush1.bf16.msra.mxu1 %v8133_v45 }
 0x39e   :  { %4903 = vmatprep.subr.bf16.mxu0 %v8138_v48  ;;  %4989 = vmatprep.subr.bf16.mxu1 %v8141_v53 }
 0x3a1   :  { %4904 = vmatpush1.bf16.msra.mxu0 %v8136_v36  ;;  %4990 = vmatpush1.bf16.msra.mxu1 %v8139_v54 }
 0x3a2   :  { %4905 = vmatprep.subr.bf16.mxu0 %v8144_v38  ;;  %4991 = vmatprep.subr.bf16.mxu1 %v8147_v1 }
 0x3a5   :  { %4906 = vmatpush1.bf16.msra.mxu0 %v8142_v3  ;;  %4992 = vmatpush1.bf16.msra.mxu1 %v8145_v16 }
 0x3a6   :  { %4907 = vmatprep.subr.bf16.mxu0 %v8150_v17  ;;  %4993 = vmatprep.subr.bf16.mxu1 %v8153_v50 }
 0x3a9   :  { %4908 = vmatpush1.bf16.msra.mxu0 %v8148_v42  ;;  %4994 = vmatpush1.bf16.msra.mxu1 %v8151_v33 }
 0x3aa   :  { %4909 = vmatprep.subr.bf16.mxu0 %v8156_v34  ;;  %4995 = vmatprep.subr.bf16.mxu1 %v8159_v28 }
 0x3ad   :  { %4910 = vmatpush1.bf16.msra.mxu0 %v8154_v63  ;;  %4996 = vmatpush1.bf16.msra.mxu1 %v8157_v29 }
 0x3ae   :  { %4911 = vmatprep.subr.bf16.mxu0 %v8162_v30  ;;  %4997 = vmatprep.subr.bf16.mxu1 %v8165_v41 }
 0x3b1   :  { %4912 = vmatpush1.bf16.msra.mxu0 %v8160_v12  ;;  %4998 = vmatpush1.bf16.msra.mxu1 %v8163_v18 }
 0x3b2   :  { %4913 = vmatprep.subr.bf16.mxu0 %v8168_v4  ;;  %4999 = vmatprep.subr.bf16.mxu1 %v8171_v51 }
 0x3b5   :  { %4914 = vmatpush1.bf16.msra.mxu0 %v8166_v62  ;;  %5000 = vmatpush1.bf16.msra.mxu1 %v8169_v47 }
 0x3b6   :  { %4926 = vmatprep.subr.bf16.mxu0 %v8174_v35  ;;  %5012 = vmatprep.subr.bf16.mxu1 %v8177_v8 }
 0x44b   :  { %v3827_v22 = vpop.f32.mrb[64].mxu0  ;;  %v3913_v21 = vpop.f32.mrb[64].mxu1 }
 0x44c   :  { %v3829_v57 = vpop.f32.mrb[65].mxu0  ;;  %v3915_v59 = vpop.f32.mrb[65].mxu1 }
 0x44d   :  { %v3831_v55 = vpop.f32.mrb[66].mxu0  ;;  %v3917_v15 = vpop.f32.mrb[66].mxu1 }
 0x44e   :  { %v3924_v52 = vadd.f32 %v3831_v55, %v3827_v22  ;;  %v3938_v40 = vadd.f32 %v3917_v15, %v3913_v21  ;;  %v3833_v56 = vpop.f32.mrb[67].mxu0  ;;  %v3919_v58 = vpop.f32.mrb[67].mxu1 }
 0x44f   :  { %v3931_v49 = vadd.f32 %v3833_v56, %v3829_v57  ;;  %v3945_v23 = vadd.f32 %v3919_v58, %v3915_v59 }
 0x450   :  { %v3925_v0 = vrot.slane %v3924_v52, 4  ;;  %v3939_v44 = vrot.slane %v3938_v40, 4 }
 0x451   :  { %v3932_v46 = vrot.slane %v3931_v49, 4  ;;  %v3946_v37 = vrot.slane %v3945_v23, 4 }
 0x452   :  { %v3926_v2 = vadd.f32 %v3925_v0, %v3924_v52  ;;  %v3940_v10 = vadd.f32 %v3939_v44, %v3938_v40 }
 0x453   :  { %v3933_v14 = vadd.f32 %v3932_v46, %v3931_v49  ;;  %v3947_v26 = vadd.f32 %v3946_v37, %v3945_v23 }
 0x454   :  { %v3927_v27 = vrot.slane %v3926_v2, 2  ;;  %v3941_v19 = vrot.slane %v3940_v10, 2 }
 0x455   :  { %v3934_v43 = vrot.slane %v3933_v14, 2  ;;  %v3948_v45 = vrot.slane %v3947_v26, 2 }
 0x456   :  { %v3928_v48 = vadd.f32 %v3927_v27, %v3926_v2  ;;  %v3942_v53 = vadd.f32 %v3941_v19, %v3940_v10 }
 0x457   :  { %v3935_v36 = vadd.f32 %v3934_v43, %v3933_v14  ;;  %v3949_v54 = vadd.f32 %v3948_v45, %v3947_v26 }
 0x458   :  { %v3929_v38 = vrot.slane %v3928_v48, 1  ;;  %v3943_v1 = vrot.slane %v3942_v53, 1 }
 0x459   :  { %v3936_v3 = vrot.slane %v3935_v36, 1  ;;  %v3950_v50 = vrot.slane %v3949_v54, 1 }
 0x45a   :  { %v3930_v16 = vadd.f32 %v3929_v38, %v3928_v48  ;;  %v3944_v42 = vadd.f32 %v3943_v1, %v3942_v53 }
 0x45b   :  { %v3937_v17 = vadd.f32 %v3936_v3, %v3935_v36  ;;  %v3951_v34 = vadd.f32 %v3950_v50, %v3949_v54 }
 0x45d   :  { %v3952_v33 = vadd.f32 %v3937_v17, %v3930_v16 }
 0x45f   :  { %v3953_v28 = vadd.f32 %v3952_v33, %v3944_v42 }
 0x461   :  { %v3954_v63 = vadd.f32 %v3953_v28, %v3951_v34 }
 0x463   :  { %v3955_v29 = vmul.f32 0.125, %v3954_v63 }
 0x465   :  { %v3959_v30 = vrot.slane %v3955_v29, %v10942_v13 }
 0x467   :  { %v3960_v41 = vsub.f32 %v3827_v22, %v3959_v30  ;;  %v3961_v12 = vsub.f32 %v3829_v57, %v3959_v30  ;;  %v3962_v18 = vsub.f32 %v3913_v21, %v3959_v30  ;;  %v3963_v62 = vsub.f32 %v3915_v59, %v3959_v30 }
 0x468   :  { %v3964_v4 = vsub.f32 %v3831_v55, %v3959_v30  ;;  %v3965_v51 = vsub.f32 %v3833_v56, %v3959_v30  ;;  %v3966_v47 = vsub.f32 %v3917_v15, %v3959_v30  ;;  %v3967_v35 = vsub.f32 %v3919_v58, %v3959_v30 }
 0x469   :  { %v11448_v8 = vmul.f32 %v10946_v31, %v3960_v41  ;;  %v11451_v52 = vmul.f32 %v10946_v31, %v3961_v12  ;;  %v11454_v40 = vmul.f32 %v10946_v31, %v3962_v18  ;;  %v11457_v49 = vmul.f32 %v10946_v31, %v3963_v62 }
 0x46a   :  { %v11459_v22 = vmul.f32 0.0, %v3964_v4  ;;  %v11461_v21 = vmul.f32 0.0, %v3965_v51  ;;  %v11463_v57 = vmul.f32 0.0, %v3966_v47  ;;  %v3975_v59 = vmul.f32 0.0, %v3967_v35 }
 0x46b   :  { %v3976_v55 = vmul.f32 %v11448_v8, %v11448_v8  ;;  %v3977_v15 = vmul.f32 %v11451_v52, %v11451_v52  ;;  %v3978_v56 = vmul.f32 %v11454_v40, %v11454_v40  ;;  %v3979_v58 = vmul.f32 %v11457_v49, %v11457_v49 }
 0x46c   :  { %v3980_v23 = vmul.f32 %v11459_v22, %v11459_v22  ;;  %v3981_v0 = vmul.f32 %v11461_v21, %v11461_v21  ;;  %v3982_v44 = vmul.f32 %v11463_v57, %v11463_v57  ;;  %v3983_v46 = vmul.f32 %v3975_v59, %v3975_v59 }
 0x46e   :  { %v3984_v37 = vadd.f32 %v3980_v23, %v3976_v55  ;;  %v3991_v2 = vadd.f32 %v3981_v0, %v3977_v15  ;;  %v3998_v10 = vadd.f32 %v3982_v44, %v3978_v56  ;;  %v4005_v14 = vadd.f32 %v3983_v46, %v3979_v58  ;;  %v3922_v58 = vld [vmem:[%s12235_s5] sm:$0xf] }
 0x46f   :  { %v3923_v23 = vld [vmem:[%s12236_s6] sm:$0xf] }
 0x470   :  { %v3985_v26 = vrot.slane %v3984_v37, 4  ;;  %v3992_v27 = vrot.slane %v3991_v2, 4  ;;  %v3999_v19 = vrot.slane %v3998_v10, 4  ;;  %v4006_v43 = vrot.slane %v4005_v14, 4 }
 0x471   :  { %v4082_v46 = vrot.slane %v3923_v23, %v10999_v11 }
 0x472   :  { %v3986_v45 = vadd.f32 %v3985_v26, %v3984_v37  ;;  %v3993_v48 = vadd.f32 %v3992_v27, %v3991_v2  ;;  %v4000_v53 = vadd.f32 %v3999_v19, %v3998_v10  ;;  %v4007_v36 = vadd.f32 %v4006_v43, %v4005_v14 }
 0x473   :  { %v4074_v37 = vrot.slane %v3923_v23, %v11005_v60  ;;  %v4070_v27 = vrot.slane %v3923_v23, %v10942_v13  ;;  %v4078_v19 = vrot.slane %v3923_v23, %v11008_v61  ;;  %v8183_v23 = vld [vmem:[%s12234_s7 + $0x22c] ss:$16 sps:$4 sm:$0xff]  }
 0x474   :  { %v3987_v54 = vrot.slane %v3986_v45, 2  ;;  %v3994_v38 = vrot.slane %v3993_v48, 2  ;;  %v4001_v1 = vrot.slane %v4000_v53, 2  ;;  %v4008_v3 = vrot.slane %v4007_v36, 2 }
 0x476   :  { %v3988_v16 = vadd.f32 %v3987_v54, %v3986_v45  ;;  %v3995_v17 = vadd.f32 %v3994_v38, %v3993_v48  ;;  %v4002_v50 = vadd.f32 %v4001_v1, %v4000_v53  ;;  %v4009_v42 = vadd.f32 %v4008_v3, %v4007_v36 }
 0x478   :  { %v3989_v33 = vrot.slane %v3988_v16, 1  ;;  %v3996_v34 = vrot.slane %v3995_v17, 1  ;;  %v4003_v28 = vrot.slane %v4002_v50, 1  ;;  %v4010_v30 = vrot.slane %v4009_v42, 1 }
 0x47a   :  { %v3990_v63 = vadd.f32 %v3989_v33, %v3988_v16  ;;  %v3997_v29 = vadd.f32 %v3996_v34, %v3995_v17  ;;  %v4004_v41 = vadd.f32 %v4003_v28, %v4002_v50  ;;  %v4011_v18 = vadd.f32 %v4010_v30, %v4009_v42 }
 0x47c   :  { %v4012_v12 = vadd.f32 %v3997_v29, %v3990_v63 }
 0x47e   :  { %v4013_v62 = vadd.f32 %v4012_v12, %v4004_v41 }
 0x480   :  { %v4014_v4 = vadd.f32 %v4013_v62, %v4011_v18 }
 0x482   :  { %v4015_v51 = vmul.f32 0.125, %v4014_v4 }
 0x484   :  { %v4016_v47 = vadd.f32 1e-05, %v4015_v51 }
 0x486   :  { %8462 = vrsqrt.f32 %v4016_v47  ;;  %v8172_v47 = vld [vmem:[%s12234_s7 + $0x200] ss:$16 sps:$4 sm:$0xff]  }
 0x490   :  { %v8463_v35 = vpop.eup %8462 }
 0x491   :  { %v4019_v55 = vcombine.low %v8463_v35, %v8463_v35  ;;  %v8175_v35 = vld [vmem:[%s12234_s7 + $0x208] ss:$16 sps:$4 sm:$0xff]  }
 0x493   :  { %v4026_v15 = vrot.slane %v4019_v55, %v10991_v20 }
 0x495   :  { %v4027_v56 = vcombine.low %v4026_v15, %v4026_v15 }
 0x497   :  { %v4034_v0 = vrot.slane %v4027_v56, %v10991_v20 }
 0x499   :  { %v4036_v44 = vmul.f32 %v4034_v0, %v3922_v58  ;;  %v8180_v58 = vld [vmem:[%s12234_s7 + $0x224] ss:$16 sps:$4 sm:$0xff]   ;;  %v8178_v0 = vld [vmem:[%s12234_s7 + $0x220] ss:$16 sps:$4 sm:$0xff]  }
 0x49b   :  { %v4053_v2 = vrot.slane %v4036_v44, %v10999_v11  ;;  %v4045_v10 = vrot.slane %v4036_v44, %v11005_v60  ;;  %v4041_v14 = vrot.slane %v4036_v44, %v10942_v13  ;;  %v4049_v26 = vrot.slane %v4036_v44, %v11008_v61  ;;  %v8181_v44 = vld [vmem:[%s12234_s7 + $0x228] ss:$16 sps:$4 sm:$0xff]  }
 0x49d   :  { %v4061_v43 = vmul.f32 %v4053_v2, %v11457_v49  ;;  %v4065_v45 = vmul.f32 %v4053_v2, %v3975_v59  ;;  %v4059_v48 = vmul.f32 %v4045_v10, %v11451_v52  ;;  %v4063_v53 = vmul.f32 %v4045_v10, %v11461_v21  ;;  %v8184_v2 = vld [vmem:[%s12234_s7 + $0x240] ss:$16 sps:$4 sm:$0xff]   ;;  %v8187_v10 = vld [vmem:[%s12234_s7 + $0x248] ss:$16 sps:$4 sm:$0xff]  }
 0x49e   :  { %v4058_v36 = vmul.f32 %v4041_v14, %v11448_v8  ;;  %v4062_v54 = vmul.f32 %v4041_v14, %v11459_v22  ;;  %v4060_v38 = vmul.f32 %v4049_v26, %v11454_v40  ;;  %v4064_v1 = vmul.f32 %v4049_v26, %v11463_v57  ;;  %v8192_v14 = vld [vmem:[%s12234_s7 + $0x264] ss:$16 sps:$4 sm:$0xff]   ;;  %v8195_v26 = vld [vmem:[%s12234_s7 + $0x26c] ss:$16 sps:$4 sm:$0xff]  }
 0x49f   :  { %v4094_v3 = vadd.f32 %v4082_v46, %v4065_v45  ;;  %v4088_v16 = vadd.f32 %v4074_v37, %v4059_v48  ;;  %v4092_v17 = vadd.f32 %v4074_v37, %v4063_v53  ;;  %v4090_v50 = vadd.f32 %v4082_v46, %v4061_v43  ;;  %v8186_v46 = vld [vmem:[%s12234_s7 + $0x244] ss:$16 sps:$4 sm:$0xff]   ;;  %v8189_v37 = vld [vmem:[%s12234_s7 + $0x24c] ss:$16 sps:$4 sm:$0xff]   ;;  %v8196_v48 = vld [vmem:[%s12234_s7 + $0x280] ss:$16 sps:$4 sm:$0xff]  }
 0x4a0   :  { %v4087_v42 = vadd.f32 %v4070_v27, %v4058_v36  ;;  %v4091_v33 = vadd.f32 %v4070_v27, %v4062_v54  ;;  %v4089_v49 = vadd.f32 %v4078_v19, %v4060_v38  ;;  %v4093_v59 = vadd.f32 %v4078_v19, %v4064_v1  ;;  %v8190_v27 = vld [vmem:[%s12234_s7 + $0x260] ss:$16 sps:$4 sm:$0xff]   ;;  %v8193_v19 = vld [vmem:[%s12234_s7 + $0x268] ss:$16 sps:$4 sm:$0xff]   ;;  %v8198_v43 = vld [vmem:[%s12234_s7 + $0x284] ss:$16 sps:$4 sm:$0xff]  }
 0x4a1   :  { %v4096_v34 = vmax.f32 %v4088_v16, 0.0  ;;  %v4100_v52 = vmax.f32 %v4092_v17, 0.0  ;;  %v4098_v28 = vmax.f32 %v4090_v50, 0.0  ;;  %v4102_v21 = vmax.f32 %v4094_v3, 0.0  ;;  %v8201_v45 = vld [vmem:[%s12234_s7 + $0x28c] ss:$16 sps:$4 sm:$0xff]  }
 0x4a2   :  { %v4095_v63 = vmax.f32 %v4087_v42, 0.0  ;;  %v4099_v8 = vmax.f32 %v4091_v33, 0.0  ;;  %v4097_v29 = vmax.f32 %v4089_v49, 0.0  ;;  %v4101_v22 = vmax.f32 %v4093_v59, 0.0  ;;  %v8199_v53 = vld [vmem:[%s12234_s7 + $0x288] ss:$16 sps:$4 sm:$0xff]  }
 0x4a3   :  { %v4104_v40 = vmul.f32 %v10946_v31, %v4096_v34  ;;  %v4108_v30 = vmul.f32 0.0, %v4100_v52  ;;  %v4106_v57 = vmul.f32 %v10946_v31, %v4098_v28  ;;  %v4110_v41 = vmul.f32 0.0, %v4102_v21  ;;  %v8204_v36 = vld [vmem:[%s12234_s7 + $0x2a4] ss:$16 sps:$4 sm:$0xff]   ;;  %v8207_v54 = vld [vmem:[%s12234_s7 + $0x2ac] ss:$16 sps:$4 sm:$0xff]  }
 0x4a4   :  { %v4103_v12 = vmul.f32 %v10946_v31, %v4095_v63  ;;  %v4107_v18 = vmul.f32 0.0, %v4099_v8  ;;  %v4105_v62 = vmul.f32 %v10946_v31, %v4097_v29  ;;  %v4109_v4 = vmul.f32 0.0, %v4101_v22  ;;  %v8202_v38 = vld [vmem:[%s12234_s7 + $0x2a0] ss:$16 sps:$4 sm:$0xff]   ;;  %v8205_v1 = vld [vmem:[%s12234_s7 + $0x2a8] ss:$16 sps:$4 sm:$0xff]  }
 0x4a5   :  { %v4112_v51 = vpack.c.bf16 %v4108_v30, %v4104_v40  ;;  %v4114_v55 = vpack.c.bf16 %v4110_v41, %v4106_v57  ;;  %v8210_v3 = vld [vmem:[%s12234_s7 + $0x2c4] ss:$16 sps:$4 sm:$0xff]   ;;  %v8213_v16 = vld [vmem:[%s12234_s7 + $0x2cc] ss:$16 sps:$4 sm:$0xff]   ;;  %v8208_v17 = vld [vmem:[%s12234_s7 + $0x2c0] ss:$16 sps:$4 sm:$0xff]  }
 0x4a6   :  { %v4111_v15 = vpack.c.bf16 %v4107_v18, %v4103_v12  ;;  %v11512_v56 = vpack.c.bf16 %v4109_v4, %v4105_v62  ;;  %v8211_v50 = vld [vmem:[%s12234_s7 + $0x2c8] ss:$16 sps:$4 sm:$0xff]   ;;  %v8216_v42 = vld [vmem:[%s12234_s7 + $0x2e4] ss:$16 sps:$4 sm:$0xff]   ;;  %v8219_v33 = vld [vmem:[%s12234_s7 + $0x2ec] ss:$16 sps:$4 sm:$0xff]  }
 0x4a7   :  { %4915 = vmatprep.mubr.bf16.mxu0 %v4112_v51  ;;  %5001 = vmatprep.mubr.bf16.mxu1 %v4112_v51  ;;  %v8214_v49 = vld [vmem:[%s12234_s7 + $0x2e0] ss:$16 sps:$4 sm:$0xff]   ;;  %v8217_v59 = vld [vmem:[%s12234_s7 + $0x2e8] ss:$16 sps:$4 sm:$0xff]   ;;  %v8222_v34 = vld [vmem:[%s12234_s7 + $0x304] ss:$16 sps:$4 sm:$0xff]  }
 0x4a8   :  { %4916 = vmatmul.mubr.bf16.vlgmr.msra.gmra.mrb[68].mxu0 %v4111_v15  ;;  %5002 = vmatmul.mubr.bf16.vlgmr.msra.gmra.mrb[68].mxu1 %v4111_v15  ;;  %v8225_v52 = vld [vmem:[%s12234_s7 + $0x30c] ss:$16 sps:$4 sm:$0xff]   ;;  %v8220_v28 = vld [vmem:[%s12234_s7 + $0x300] ss:$16 sps:$4 sm:$0xff]   ;;  %v8223_v21 = vld [vmem:[%s12234_s7 + $0x308] ss:$16 sps:$4 sm:$0xff]  }
 0x4a9   :  { %4927 = vmatpush1.bf16.msra.mxu0 %v8172_v47  ;;  %5013 = vmatpush1.bf16.msra.mxu1 %v8175_v35  ;;  %v8228_v63 = vld [vmem:[%s12234_s7 + $0x324] ss:$16 sps:$4 sm:$0xff]   ;;  %v8231_v8 = vld [vmem:[%s12234_s7 + $0x32c] ss:$16 sps:$4 sm:$0xff]   ;;  %v8226_v29 = vld [vmem:[%s12234_s7 + $0x320] ss:$16 sps:$4 sm:$0xff]  }
 0x4aa   :  { %4958 = vmatprep.mubr.bf16.mxu0 %v4114_v55  ;;  %5044 = vmatprep.mubr.bf16.mxu1 %v4114_v55  ;;  %v8229_v22 = vld [vmem:[%s12234_s7 + $0x328] ss:$16 sps:$4 sm:$0xff]   ;;  %v8234_v40 = vld [vmem:[%s12234_s7 + $0x344] ss:$16 sps:$4 sm:$0xff]   ;;  %v8237_v30 = vld [vmem:[%s12234_s7 + $0x34c] ss:$16 sps:$4 sm:$0xff]  }
 0x4ab   :  { %4928 = vmatprep.subr.bf16.mxu0 %v8180_v58  ;;  %5014 = vmatprep.subr.bf16.mxu1 %v8183_v23  ;;  %v8232_v57 = vld [vmem:[%s12234_s7 + $0x340] ss:$16 sps:$4 sm:$0xff]   ;;  %v8235_v41 = vld [vmem:[%s12234_s7 + $0x348] ss:$16 sps:$4 sm:$0xff]   ;;  %v8240_v12 = vld [vmem:[%s12234_s7 + $0x364] ss:$16 sps:$4 sm:$0xff]  }
 0x4ac   :  { %v8243_v18 = vld [vmem:[%s12234_s7 + $0x36c] ss:$16 sps:$4 sm:$0xff]   ;;  %v8238_v62 = vld [vmem:[%s12234_s7 + $0x360] ss:$16 sps:$4 sm:$0xff]   ;;  %v8241_v4 = vld [vmem:[%s12234_s7 + $0x368] ss:$16 sps:$4 sm:$0xff]  }
 0x4ad   :  { %4929 = vmatpush1.bf16.msra.mxu0 %v8178_v0  ;;  %5015 = vmatpush1.bf16.msra.mxu1 %v8181_v44  ;;  %v8246_v51 = vld [vmem:[%s12234_s7 + $0x384] ss:$16 sps:$4 sm:$0xff]   ;;  %v8249_v47 = vld [vmem:[%s12234_s7 + $0x38c] ss:$16 sps:$4 sm:$0xff]   ;;  %v8244_v35 = vld [vmem:[%s12234_s7 + $0x380] ss:$16 sps:$4 sm:$0xff]  }
 0x4ae   :  { %4930 = vmatprep.subr.bf16.mxu0 %v8186_v46  ;;  %5016 = vmatprep.subr.bf16.mxu1 %v8189_v37  ;;  %v8247_v55 = vld [vmem:[%s12234_s7 + $0x388] ss:$16 sps:$4 sm:$0xff]   ;;  %v8252_v15 = vld [vmem:[%s12234_s7 + $0x3a4] ss:$16 sps:$4 sm:$0xff]   ;;  %v8255_v58 = vld [vmem:[%s12234_s7 + $0x3ac] ss:$16 sps:$4 sm:$0xff]  }
 0x4af   :  { %v8250_v23 = vld [vmem:[%s12234_s7 + $0x3a0] ss:$16 sps:$4 sm:$0xff]   ;;  %v8253_v0 = vld [vmem:[%s12234_s7 + $0x3a8] ss:$16 sps:$4 sm:$0xff]   ;;  %v8258_v44 = vld [vmem:[%s12234_s7 + $0x3c4] ss:$16 sps:$4 sm:$0xff]  }
 0x4b0   :  { %v8261_v46 = vld [vmem:[%s12234_s7 + $0x3cc] ss:$16 sps:$4 sm:$0xff]   ;;  %v8256_v37 = vld [vmem:[%s12234_s7 + $0x3c0] ss:$16 sps:$4 sm:$0xff]  }
 0x4b1   :  { %4931 = vmatpush1.bf16.msra.mxu0 %v8184_v2  ;;  %5017 = vmatpush1.bf16.msra.mxu1 %v8187_v10  ;;  %v8259_v2 = vld [vmem:[%s12234_s7 + $0x3c8] ss:$16 sps:$4 sm:$0xff]   ;;  %v8264_v10 = vld [vmem:[%s12234_s7 + $0x3e4] ss:$16 sps:$4 sm:$0xff]  }
 0x4b2   :  { %4932 = vmatprep.subr.bf16.mxu0 %v8192_v14  ;;  %5018 = vmatprep.subr.bf16.mxu1 %v8195_v26  ;;  %v8267_v14 = vld [vmem:[%s12234_s7 + $0x3ec] ss:$16 sps:$4 sm:$0xff]   ;;  %v8262_v26 = vld [vmem:[%s12234_s7 + $0x3e0] ss:$16 sps:$4 sm:$0xff]  }
 0x4b5   :  { %4933 = vmatpush1.bf16.msra.mxu0 %v8190_v27  ;;  %5019 = vmatpush1.bf16.msra.mxu1 %v8193_v19  ;;  %v8265_v27 = vld [vmem:[%s12234_s7 + $0x3e8] ss:$16 sps:$4 sm:$0xff]   ;;  %v8270_v19 = vld [vmem:[%s12237_s10 + $0x4] ss:$16 sps:$4 sm:$0xff]  }
 0x4b6   :  { %4934 = vmatprep.subr.bf16.mxu0 %v8198_v43  ;;  %5020 = vmatprep.subr.bf16.mxu1 %v8201_v45  ;;  %v8268_v43 = vld [vmem:[%s12237_s10] ss:$16 sps:$4 sm:$0xff]   ;;  %v8271_v45 = vld [vmem:[%s12237_s10 + $0x8] ss:$16 sps:$4 sm:$0xff]  }
 0x4b9   :  { %4935 = vmatpush1.bf16.msra.mxu0 %v8196_v48  ;;  %5021 = vmatpush1.bf16.msra.mxu1 %v8199_v53  ;;  %v8273_v48 = vld [vmem:[%s12237_s10 + $0xc] ss:$16 sps:$4 sm:$0xff]  }
 0x4ba   :  { %4936 = vmatprep.subr.bf16.mxu0 %v8204_v36  ;;  %5022 = vmatprep.subr.bf16.mxu1 %v8207_v54  ;;  %v8279_v53 = vld [vmem:[%s12237_s10 + $0x2c] ss:$16 sps:$4 sm:$0xff]   ;;  %v8274_v36 = vld [vmem:[%s12237_s10 + $0x20] ss:$16 sps:$4 sm:$0xff]   ;;  %v8277_v54 = vld [vmem:[%s12237_s10 + $0x28] ss:$16 sps:$4 sm:$0xff]  }
 0x4bd   :  { %4937 = vmatpush1.bf16.msra.mxu0 %v8202_v38  ;;  %5023 = vmatpush1.bf16.msra.mxu1 %v8205_v1  ;;  %v8282_v38 = vld [vmem:[%s12237_s10 + $0x44] ss:$16 sps:$4 sm:$0xff]   ;;  %v8285_v1 = vld [vmem:[%s12237_s10 + $0x4c] ss:$16 sps:$4 sm:$0xff]  }
 0x4be   :  { %4938 = vmatprep.subr.bf16.mxu0 %v8210_v3  ;;  %5024 = vmatprep.subr.bf16.mxu1 %v8213_v16  ;;  %v8280_v3 = vld [vmem:[%s12237_s10 + $0x40] ss:$16 sps:$4 sm:$0xff]   ;;  %v8283_v16 = vld [vmem:[%s12237_s10 + $0x48] ss:$16 sps:$4 sm:$0xff]  }
 0x4c1   :  { %4939 = vmatpush1.bf16.msra.mxu0 %v8208_v17  ;;  %5025 = vmatpush1.bf16.msra.mxu1 %v8211_v50  ;;  %v8288_v17 = vld [vmem:[%s12237_s10 + $0x64] ss:$16 sps:$4 sm:$0xff]   ;;  %v8291_v50 = vld [vmem:[%s12237_s10 + $0x6c] ss:$16 sps:$4 sm:$0xff]  }
 0x4c2   :  { %4940 = vmatprep.subr.bf16.mxu0 %v8216_v42  ;;  %5026 = vmatprep.subr.bf16.mxu1 %v8219_v33  ;;  %v8286_v42 = vld [vmem:[%s12237_s10 + $0x60] ss:$16 sps:$4 sm:$0xff]   ;;  %v8289_v33 = vld [vmem:[%s12237_s10 + $0x68] ss:$16 sps:$4 sm:$0xff]  }
 0x4c5   :  { %4941 = vmatpush1.bf16.msra.mxu0 %v8214_v49  ;;  %5027 = vmatpush1.bf16.msra.mxu1 %v8217_v59  ;;  %v8294_v49 = vld [vmem:[%s12237_s10 + $0x84] ss:$16 sps:$4 sm:$0xff]   ;;  %v8297_v59 = vld [vmem:[%s12237_s10 + $0x8c] ss:$16 sps:$4 sm:$0xff]  }
 0x4c6   :  { %4942 = vmatprep.subr.bf16.mxu0 %v8222_v34  ;;  %5028 = vmatprep.subr.bf16.mxu1 %v8225_v52  ;;  %v8292_v34 = vld [vmem:[%s12237_s10 + $0x80] ss:$16 sps:$4 sm:$0xff]   ;;  %v8295_v52 = vld [vmem:[%s12237_s10 + $0x88] ss:$16 sps:$4 sm:$0xff]  }
 0x4c9   :  { %4943 = vmatpush1.bf16.msra.mxu0 %v8220_v28  ;;  %5029 = vmatpush1.bf16.msra.mxu1 %v8223_v21  ;;  %v8300_v28 = vld [vmem:[%s12237_s10 + $0xa4] ss:$16 sps:$4 sm:$0xff]   ;;  %v8303_v21 = vld [vmem:[%s12237_s10 + $0xac] ss:$16 sps:$4 sm:$0xff]  }
 0x4ca   :  { %4944 = vmatprep.subr.bf16.mxu0 %v8228_v63  ;;  %5030 = vmatprep.subr.bf16.mxu1 %v8231_v8  ;;  %v8298_v63 = vld [vmem:[%s12237_s10 + $0xa0] ss:$16 sps:$4 sm:$0xff]   ;;  %v8301_v8 = vld [vmem:[%s12237_s10 + $0xa8] ss:$16 sps:$4 sm:$0xff]  }
 0x4cd   :  { %4945 = vmatpush1.bf16.msra.mxu0 %v8226_v29  ;;  %5031 = vmatpush1.bf16.msra.mxu1 %v8229_v22  ;;  %v8306_v29 = vld [vmem:[%s12237_s10 + $0xc4] ss:$16 sps:$4 sm:$0xff]   ;;  %v8309_v22 = vld [vmem:[%s12237_s10 + $0xcc] ss:$16 sps:$4 sm:$0xff]  }
 0x4ce   :  { %4946 = vmatprep.subr.bf16.mxu0 %v8234_v40  ;;  %5032 = vmatprep.subr.bf16.mxu1 %v8237_v30  ;;  %v8304_v40 = vld [vmem:[%s12237_s10 + $0xc0] ss:$16 sps:$4 sm:$0xff]   ;;  %v8307_v30 = vld [vmem:[%s12237_s10 + $0xc8] ss:$16 sps:$4 sm:$0xff]  }
 0x4d1   :  { %4947 = vmatpush1.bf16.msra.mxu0 %v8232_v57  ;;  %5033 = vmatpush1.bf16.msra.mxu1 %v8235_v41  ;;  %v8312_v57 = vld [vmem:[%s12237_s10 + $0xe4] ss:$16 sps:$4 sm:$0xff]   ;;  %v8315_v41 = vld [vmem:[%s12237_s10 + $0xec] ss:$16 sps:$4 sm:$0xff]  }
 0x4d2   :  { %4948 = vmatprep.subr.bf16.mxu0 %v8240_v12  ;;  %5034 = vmatprep.subr.bf16.mxu1 %v8243_v18  ;;  %v8310_v12 = vld [vmem:[%s12237_s10 + $0xe0] ss:$16 sps:$4 sm:$0xff]   ;;  %v8313_v18 = vld [vmem:[%s12237_s10 + $0xe8] ss:$16 sps:$4 sm:$0xff]  }
 0x4d5   :  { %4949 = vmatpush1.bf16.msra.mxu0 %v8238_v62  ;;  %5035 = vmatpush1.bf16.msra.mxu1 %v8241_v4  ;;  %v8318_v62 = vld [vmem:[%s12237_s10 + $0x104] ss:$16 sps:$4 sm:$0xff]   ;;  %v8321_v4 = vld [vmem:[%s12237_s10 + $0x10c] ss:$16 sps:$4 sm:$0xff]  }
 0x4d6   :  { %4950 = vmatprep.subr.bf16.mxu0 %v8246_v51  ;;  %5036 = vmatprep.subr.bf16.mxu1 %v8249_v47  ;;  %v8316_v51 = vld [vmem:[%s12237_s10 + $0x100] ss:$16 sps:$4 sm:$0xff]   ;;  %v8319_v47 = vld [vmem:[%s12237_s10 + $0x108] ss:$16 sps:$4 sm:$0xff]  }
 0x4d9   :  { %4951 = vmatpush1.bf16.msra.mxu0 %v8244_v35  ;;  %5037 = vmatpush1.bf16.msra.mxu1 %v8247_v55  ;;  %v8324_v35 = vld [vmem:[%s12237_s10 + $0x124] ss:$16 sps:$4 sm:$0xff]   ;;  %v8327_v55 = vld [vmem:[%s12237_s10 + $0x12c] ss:$16 sps:$4 sm:$0xff]  }
 0x4da   :  { %4952 = vmatprep.subr.bf16.mxu0 %v8252_v15  ;;  %5038 = vmatprep.subr.bf16.mxu1 %v8255_v58  ;;  %v8322_v15 = vld [vmem:[%s12237_s10 + $0x120] ss:$16 sps:$4 sm:$0xff]   ;;  %v8325_v58 = vld [vmem:[%s12237_s10 + $0x128] ss:$16 sps:$4 sm:$0xff]  }
 0x4dd   :  { %4953 = vmatpush1.bf16.msra.mxu0 %v8250_v23  ;;  %5039 = vmatpush1.bf16.msra.mxu1 %v8253_v0  ;;  %v8330_v23 = vld [vmem:[%s12237_s10 + $0x144] ss:$16 sps:$4 sm:$0xff]   ;;  %v8333_v0 = vld [vmem:[%s12237_s10 + $0x14c] ss:$16 sps:$4 sm:$0xff]  }
 0x4de   :  { %4954 = vmatprep.subr.bf16.mxu0 %v8258_v44  ;;  %5040 = vmatprep.subr.bf16.mxu1 %v8261_v46  ;;  %v8328_v44 = vld [vmem:[%s12237_s10 + $0x140] ss:$16 sps:$4 sm:$0xff]   ;;  %v8331_v46 = vld [vmem:[%s12237_s10 + $0x148] ss:$16 sps:$4 sm:$0xff]  }
 0x4e1   :  { %4955 = vmatpush1.bf16.msra.mxu0 %v8256_v37  ;;  %5041 = vmatpush1.bf16.msra.mxu1 %v8259_v2  ;;  %v8336_v37 = vld [vmem:[%s12237_s10 + $0x164] ss:$16 sps:$4 sm:$0xff]   ;;  %v8339_v2 = vld [vmem:[%s12237_s10 + $0x16c] ss:$16 sps:$4 sm:$0xff]  }
 0x4e2   :  { %4956 = vmatprep.subr.bf16.mxu0 %v8264_v10  ;;  %5042 = vmatprep.subr.bf16.mxu1 %v8267_v14  ;;  %v8334_v10 = vld [vmem:[%s12237_s10 + $0x160] ss:$16 sps:$4 sm:$0xff]   ;;  %v8337_v14 = vld [vmem:[%s12237_s10 + $0x168] ss:$16 sps:$4 sm:$0xff]  }
 0x4e5   :  { %4957 = vmatpush1.bf16.msra.mxu0 %v8262_v26  ;;  %5043 = vmatpush1.bf16.msra.mxu1 %v8265_v27  ;;  %v8342_v26 = vld [vmem:[%s12237_s10 + $0x184] ss:$16 sps:$4 sm:$0xff]   ;;  %v8345_v27 = vld [vmem:[%s12237_s10 + $0x18c] ss:$16 sps:$4 sm:$0xff]  }
 0x4e6   :  { %6016 = vmatprep.subr.bf16.mxu0 %v8270_v19  ;;  %6102 = vmatprep.subr.bf16.mxu1 %v8273_v48  ;;  %v8340_v19 = vld [vmem:[%s12237_s10 + $0x180] ss:$16 sps:$4 sm:$0xff]   ;;  %v8351_v48 = vld [vmem:[%s12237_s10 + $0x1ac] ss:$16 sps:$4 sm:$0xff]  }
 0x4e8   :  { %4959 = vmatmul.mubr.bf16.vlgmr.msra.gmra.mrb[68].mxu0 %v11512_v56  ;;  %5045 = vmatmul.mubr.bf16.vlgmr.msra.gmra.mrb[68].mxu1 %v11512_v56  ;;  %v8276_v56 = vld [vmem:[%s12237_s10 + $0x24] ss:$16 sps:$4 sm:$0xff]  }
 0x4e9   :  { %6017 = vmatpush1.bf16.msra.mxu0 %v8268_v43  ;;  %6103 = vmatpush1.bf16.msra.mxu1 %v8271_v45  ;;  %v8343_v43 = vld [vmem:[%s12237_s10 + $0x188] ss:$16 sps:$4 sm:$0xff]   ;;  %v8348_v45 = vld [vmem:[%s12237_s10 + $0x1a4] ss:$16 sps:$4 sm:$0xff]  }
 0x4ea   :  { %6018 = vmatprep.subr.bf16.mxu0 %v8276_v56  ;;  %6104 = vmatprep.subr.bf16.mxu1 %v8279_v53  ;;  %v8346_v56 = vld [vmem:[%s12237_s10 + $0x1a0] ss:$16 sps:$4 sm:$0xff]   ;;  %v8349_v53 = vld [vmem:[%s12237_s10 + $0x1a8] ss:$16 sps:$4 sm:$0xff]  }
 0x4ed   :  { %6019 = vmatpush1.bf16.msra.mxu0 %v8274_v36  ;;  %6105 = vmatpush1.bf16.msra.mxu1 %v8277_v54  ;;  %v8354_v36 = vld [vmem:[%s12237_s10 + $0x1c4] ss:$16 sps:$4 sm:$0xff]   ;;  %v8357_v54 = vld [vmem:[%s12237_s10 + $0x1cc] ss:$16 sps:$4 sm:$0xff]  }
 0x4ee   :  { %6020 = vmatprep.subr.bf16.mxu0 %v8282_v38  ;;  %6106 = vmatprep.subr.bf16.mxu1 %v8285_v1  ;;  %v8352_v38 = vld [vmem:[%s12237_s10 + $0x1c0] ss:$16 sps:$4 sm:$0xff]   ;;  %v8355_v1 = vld [vmem:[%s12237_s10 + $0x1c8] ss:$16 sps:$4 sm:$0xff]  }
 0x4f1   :  { %6021 = vmatpush1.bf16.msra.mxu0 %v8280_v3  ;;  %6107 = vmatpush1.bf16.msra.mxu1 %v8283_v16  ;;  %v8358_v3 = vld [vmem:[%s12237_s10 + $0x1e0] ss:$16 sps:$4 sm:$0xff]   ;;  %v8360_v16 = vld [vmem:[%s12237_s10 + $0x1e4] ss:$16 sps:$4 sm:$0xff]  }
 0x4f2   :  { %6022 = vmatprep.subr.bf16.mxu0 %v8288_v17  ;;  %6108 = vmatprep.subr.bf16.mxu1 %v8291_v50  ;;  %v8361_v17 = vld [vmem:[%s12237_s10 + $0x1e8] ss:$16 sps:$4 sm:$0xff]   ;;  %v8363_v50 = vld [vmem:[%s12237_s10 + $0x1ec] ss:$16 sps:$4 sm:$0xff]  }
 0x4f5   :  { %6023 = vmatpush1.bf16.msra.mxu0 %v8286_v42  ;;  %6109 = vmatpush1.bf16.msra.mxu1 %v8289_v33  ;;  %v8366_v42 = vld [vmem:[%s12237_s10 + $0x204] ss:$16 sps:$4 sm:$0xff]   ;;  %v8369_v33 = vld [vmem:[%s12237_s10 + $0x20c] ss:$16 sps:$4 sm:$0xff]  }
 0x4f6   :  { %6024 = vmatprep.subr.bf16.mxu0 %v8294_v49  ;;  %6110 = vmatprep.subr.bf16.mxu1 %v8297_v59 }
 0x4f9   :  { %6025 = vmatpush1.bf16.msra.mxu0 %v8292_v34  ;;  %6111 = vmatpush1.bf16.msra.mxu1 %v8295_v52 }
 0x4fa   :  { %6026 = vmatprep.subr.bf16.mxu0 %v8300_v28  ;;  %6112 = vmatprep.subr.bf16.mxu1 %v8303_v21 }
 0x4fd   :  { %6027 = vmatpush1.bf16.msra.mxu0 %v8298_v63  ;;  %6113 = vmatpush1.bf16.msra.mxu1 %v8301_v8 }
 0x4fe   :  { %6028 = vmatprep.subr.bf16.mxu0 %v8306_v29  ;;  %6114 = vmatprep.subr.bf16.mxu1 %v8309_v22 }
 0x501   :  { %6029 = vmatpush1.bf16.msra.mxu0 %v8304_v40  ;;  %6115 = vmatpush1.bf16.msra.mxu1 %v8307_v30 }
 0x502   :  { %6030 = vmatprep.subr.bf16.mxu0 %v8312_v57  ;;  %6116 = vmatprep.subr.bf16.mxu1 %v8315_v41 }
 0x505   :  { %6031 = vmatpush1.bf16.msra.mxu0 %v8310_v12  ;;  %6117 = vmatpush1.bf16.msra.mxu1 %v8313_v18 }
 0x506   :  { %6032 = vmatprep.subr.bf16.mxu0 %v8318_v62  ;;  %6118 = vmatprep.subr.bf16.mxu1 %v8321_v4 }
 0x509   :  { %6033 = vmatpush1.bf16.msra.mxu0 %v8316_v51  ;;  %6119 = vmatpush1.bf16.msra.mxu1 %v8319_v47 }
 0x50a   :  { %6034 = vmatprep.subr.bf16.mxu0 %v8324_v35  ;;  %6120 = vmatprep.subr.bf16.mxu1 %v8327_v55 }
 0x50d   :  { %6035 = vmatpush1.bf16.msra.mxu0 %v8322_v15  ;;  %6121 = vmatpush1.bf16.msra.mxu1 %v8325_v58 }
 0x50e   :  { %6036 = vmatprep.subr.bf16.mxu0 %v8330_v23  ;;  %6122 = vmatprep.subr.bf16.mxu1 %v8333_v0 }
 0x511   :  { %6037 = vmatpush1.bf16.msra.mxu0 %v8328_v44  ;;  %6123 = vmatpush1.bf16.msra.mxu1 %v8331_v46 }
 0x512   :  { %6038 = vmatprep.subr.bf16.mxu0 %v8336_v37  ;;  %6124 = vmatprep.subr.bf16.mxu1 %v8339_v2 }
 0x515   :  { %6039 = vmatpush1.bf16.msra.mxu0 %v8334_v10  ;;  %6125 = vmatpush1.bf16.msra.mxu1 %v8337_v14 }
 0x516   :  { %6040 = vmatprep.subr.bf16.mxu0 %v8342_v26  ;;  %6126 = vmatprep.subr.bf16.mxu1 %v8345_v27 }
 0x519   :  { %6041 = vmatpush1.bf16.msra.mxu0 %v8340_v19  ;;  %6127 = vmatpush1.bf16.msra.mxu1 %v8343_v43 }
 0x51a   :  { %6042 = vmatprep.subr.bf16.mxu0 %v8348_v45  ;;  %6128 = vmatprep.subr.bf16.mxu1 %v8351_v48 }
 0x51d   :  { %6043 = vmatpush1.bf16.msra.mxu0 %v8346_v56  ;;  %6129 = vmatpush1.bf16.msra.mxu1 %v8349_v53 }
 0x51e   :  { %6044 = vmatprep.subr.bf16.mxu0 %v8354_v36  ;;  %6130 = vmatprep.subr.bf16.mxu1 %v8357_v54 }
 0x521   :  { %6045 = vmatpush1.bf16.msra.mxu0 %v8352_v38  ;;  %6131 = vmatpush1.bf16.msra.mxu1 %v8355_v1 }
 0x522   :  { %6046 = vmatprep.subr.bf16.mxu0 %v8360_v16  ;;  %6132 = vmatprep.subr.bf16.mxu1 %v8363_v50 }
 0x525   :  { %6047 = vmatpush1.bf16.msra.mxu0 %v8358_v3  ;;  %6133 = vmatpush1.bf16.msra.mxu1 %v8361_v17 }
 0x526   :  { %6059 = vmatprep.subr.bf16.mxu0 %v8366_v42  ;;  %6145 = vmatprep.subr.bf16.mxu1 %v8369_v33 }
 0x5bb   :  { %v4960_v49 = vpop.f32.mrb[68].mxu0  ;;  %v5046_v59 = vpop.f32.mrb[68].mxu1 }
 0x5bc   :  { %v4962_v34 = vpop.f32.mrb[69].mxu0  ;;  %v5048_v52 = vpop.f32.mrb[69].mxu1 }
 0x5bd   :  { %v4964_v28 = vpop.f32.mrb[70].mxu0  ;;  %v5050_v21 = vpop.f32.mrb[70].mxu1 }
 0x5be   :  { %v5057_v63 = vadd.f32 %v4964_v28, %v4960_v49  ;;  %v5071_v8 = vadd.f32 %v5050_v21, %v5046_v59  ;;  %v4966_v29 = vpop.f32.mrb[71].mxu0  ;;  %v5052_v22 = vpop.f32.mrb[71].mxu1 }
 0x5bf   :  { %v5064_v40 = vadd.f32 %v4966_v29, %v4962_v34  ;;  %v5078_v30 = vadd.f32 %v5052_v22, %v5048_v52 }
 0x5c0   :  { %v5058_v57 = vrot.slane %v5057_v63, 4  ;;  %v5072_v41 = vrot.slane %v5071_v8, 4 }
 0x5c1   :  { %v5065_v12 = vrot.slane %v5064_v40, 4  ;;  %v5079_v18 = vrot.slane %v5078_v30, 4 }
 0x5c2   :  { %v5059_v62 = vadd.f32 %v5058_v57, %v5057_v63  ;;  %v5073_v4 = vadd.f32 %v5072_v41, %v5071_v8 }
 0x5c3   :  { %v5066_v51 = vadd.f32 %v5065_v12, %v5064_v40  ;;  %v5080_v47 = vadd.f32 %v5079_v18, %v5078_v30 }
 0x5c4   :  { %v5060_v35 = vrot.slane %v5059_v62, 2  ;;  %v5074_v55 = vrot.slane %v5073_v4, 2 }
 0x5c5   :  { %v5067_v15 = vrot.slane %v5066_v51, 2  ;;  %v5081_v58 = vrot.slane %v5080_v47, 2 }
 0x5c6   :  { %v5061_v23 = vadd.f32 %v5060_v35, %v5059_v62  ;;  %v5075_v0 = vadd.f32 %v5074_v55, %v5073_v4 }
 0x5c7   :  { %v5068_v44 = vadd.f32 %v5067_v15, %v5066_v51  ;;  %v5082_v46 = vadd.f32 %v5081_v58, %v5080_v47 }
 0x5c8   :  { %v5062_v37 = vrot.slane %v5061_v23, 1  ;;  %v5076_v2 = vrot.slane %v5075_v0, 1 }
 0x5c9   :  { %v5069_v10 = vrot.slane %v5068_v44, 1  ;;  %v5083_v27 = vrot.slane %v5082_v46, 1 }
 0x5ca   :  { %v5063_v14 = vadd.f32 %v5062_v37, %v5061_v23  ;;  %v5077_v19 = vadd.f32 %v5076_v2, %v5075_v0 }
 0x5cb   :  { %v5070_v26 = vadd.f32 %v5069_v10, %v5068_v44  ;;  %v5084_v45 = vadd.f32 %v5083_v27, %v5082_v46 }
 0x5cd   :  { %v5085_v43 = vadd.f32 %v5070_v26, %v5063_v14 }
 0x5cf   :  { %v5086_v48 = vadd.f32 %v5085_v43, %v5077_v19 }
 0x5d1   :  { %v5087_v56 = vadd.f32 %v5086_v48, %v5084_v45 }
 0x5d3   :  { %v5088_v53 = vmul.f32 0.125, %v5087_v56 }
 0x5d5   :  { %v5092_v36 = vrot.slane %v5088_v53, %v10942_v13 }
 0x5d7   :  { %v5093_v54 = vsub.f32 %v4960_v49, %v5092_v36  ;;  %v5094_v38 = vsub.f32 %v4962_v34, %v5092_v36  ;;  %v5095_v1 = vsub.f32 %v5046_v59, %v5092_v36  ;;  %v5096_v3 = vsub.f32 %v5048_v52, %v5092_v36 }
 0x5d8   :  { %v5097_v16 = vsub.f32 %v4964_v28, %v5092_v36  ;;  %v5098_v17 = vsub.f32 %v4966_v29, %v5092_v36  ;;  %v5099_v50 = vsub.f32 %v5050_v21, %v5092_v36  ;;  %v5100_v42 = vsub.f32 %v5052_v22, %v5092_v36 }
 0x5d9   :  { %v11896_v33 = vmul.f32 %v10946_v31, %v5093_v54  ;;  %v11899_v63 = vmul.f32 %v10946_v31, %v5094_v38  ;;  %v11902_v8 = vmul.f32 %v10946_v31, %v5095_v1  ;;  %v11905_v40 = vmul.f32 %v10946_v31, %v5096_v3 }
 0x5da   :  { %v11907_v49 = vmul.f32 0.0, %v5097_v16  ;;  %v11909_v59 = vmul.f32 0.0, %v5098_v17  ;;  %v11911_v34 = vmul.f32 0.0, %v5099_v50  ;;  %v5108_v52 = vmul.f32 0.0, %v5100_v42 }
 0x5db   :  { %v5109_v28 = vmul.f32 %v11896_v33, %v11896_v33  ;;  %v5110_v21 = vmul.f32 %v11899_v63, %v11899_v63  ;;  %v5111_v29 = vmul.f32 %v11902_v8, %v11902_v8  ;;  %v5112_v22 = vmul.f32 %v11905_v40, %v11905_v40 }
 0x5dc   :  { %v5113_v30 = vmul.f32 %v11907_v49, %v11907_v49  ;;  %v5114_v57 = vmul.f32 %v11909_v59, %v11909_v59  ;;  %v5115_v41 = vmul.f32 %v11911_v34, %v11911_v34  ;;  %v5116_v12 = vmul.f32 %v5108_v52, %v5108_v52 }
 0x5de   :  { %v5117_v18 = vadd.f32 %v5113_v30, %v5109_v28  ;;  %v5124_v62 = vadd.f32 %v5114_v57, %v5110_v21  ;;  %v5131_v4 = vadd.f32 %v5115_v41, %v5111_v29  ;;  %v5138_v51 = vadd.f32 %v5116_v12, %v5112_v22  ;;  %v5055_v22 = vld [vmem:[%s12238_s8] sm:$0xf] }
 0x5df   :  { %v5056_v30 = vld [vmem:[%s12239_s9] sm:$0xf] }
 0x5e0   :  { %v5118_v47 = vrot.slane %v5117_v18, 4  ;;  %v5125_v35 = vrot.slane %v5124_v62, 4  ;;  %v5132_v55 = vrot.slane %v5131_v4, 4  ;;  %v5139_v15 = vrot.slane %v5138_v51, 4 }
 0x5e1   :  { %v5215_v12 = vrot.slane %v5056_v30, %v10999_v11 }
 0x5e2   :  { %v5119_v58 = vadd.f32 %v5118_v47, %v5117_v18  ;;  %v5126_v23 = vadd.f32 %v5125_v35, %v5124_v62  ;;  %v5133_v0 = vadd.f32 %v5132_v55, %v5131_v4  ;;  %v5140_v44 = vadd.f32 %v5139_v15, %v5138_v51 }
 0x5e3   :  { %v5207_v18 = vrot.slane %v5056_v30, %v11005_v60  ;;  %v5203_v35 = vrot.slane %v5056_v30, %v10942_v13  ;;  %v5211_v55 = vrot.slane %v5056_v30, %v11008_v61  ;;  %v8375_v30 = vld [vmem:[%s12237_s10 + $0x22c] ss:$16 sps:$4 sm:$0xff]  }
 0x5e4   :  { %v5120_v46 = vrot.slane %v5119_v58, 2  ;;  %v5127_v37 = vrot.slane %v5126_v23, 2  ;;  %v5134_v2 = vrot.slane %v5133_v0, 2  ;;  %v5141_v10 = vrot.slane %v5140_v44, 2 }
 0x5e6   :  { %v5121_v14 = vadd.f32 %v5120_v46, %v5119_v58  ;;  %v5128_v26 = vadd.f32 %v5127_v37, %v5126_v23  ;;  %v5135_v27 = vadd.f32 %v5134_v2, %v5133_v0  ;;  %v5142_v19 = vadd.f32 %v5141_v10, %v5140_v44 }
 0x5e8   :  { %v5122_v43 = vrot.slane %v5121_v14, 1  ;;  %v5129_v45 = vrot.slane %v5128_v26, 1  ;;  %v5136_v48 = vrot.slane %v5135_v27, 1  ;;  %v5143_v36 = vrot.slane %v5142_v19, 1 }
 0x5ea   :  { %v5123_v56 = vadd.f32 %v5122_v43, %v5121_v14  ;;  %v5130_v53 = vadd.f32 %v5129_v45, %v5128_v26  ;;  %v5137_v54 = vadd.f32 %v5136_v48, %v5135_v27  ;;  %v5144_v1 = vadd.f32 %v5143_v36, %v5142_v19 }
 0x5ec   :  { %v5145_v38 = vadd.f32 %v5130_v53, %v5123_v56 }
 0x5ee   :  { %v5146_v3 = vadd.f32 %v5145_v38, %v5137_v54 }
 0x5f0   :  { %v5147_v16 = vadd.f32 %v5146_v3, %v5144_v1 }
 0x5f2   :  { %v5148_v17 = vmul.f32 0.125, %v5147_v16 }
 0x5f4   :  { %v5149_v50 = vadd.f32 1e-05, %v5148_v17 }
 0x5f6   :  { %8464 = vrsqrt.f32 %v5149_v50  ;;  %v8364_v50 = vld [vmem:[%s12237_s10 + $0x200] ss:$16 sps:$4 sm:$0xff]  }
 0x600   :  { %v8465_v42 = vpop.eup %8464 }
 0x601   :  { %v5152_v28 = vcombine.low %v8465_v42, %v8465_v42  ;;  %v8367_v42 = vld [vmem:[%s12237_s10 + $0x208] ss:$16 sps:$4 sm:$0xff]  }
 0x603   :  { %v5159_v21 = vrot.slane %v5152_v28, %v10991_v20 }
 0x605   :  { %v5160_v29 = vcombine.low %v5159_v21, %v5159_v21 }
 0x607   :  { %v5167_v57 = vrot.slane %v5160_v29, %v10991_v20 }
 0x609   :  { %v5169_v41 = vmul.f32 %v5167_v57, %v5055_v22  ;;  %v8372_v22 = vld [vmem:[%s12237_s10 + $0x224] ss:$16 sps:$4 sm:$0xff]   ;;  %v8370_v57 = vld [vmem:[%s12237_s10 + $0x220] ss:$16 sps:$4 sm:$0xff]  }
 0x60b   :  { %v5186_v62 = vrot.slane %v5169_v41, %v10999_v11  ;;  %v5178_v4 = vrot.slane %v5169_v41, %v11005_v60  ;;  %v5174_v51 = vrot.slane %v5169_v41, %v10942_v13  ;;  %v5182_v47 = vrot.slane %v5169_v41, %v11008_v61  ;;  %v8373_v41 = vld [vmem:[%s12237_s10 + $0x228] ss:$16 sps:$4 sm:$0xff]  }
 0x60d   :  { %v5194_v15 = vmul.f32 %v5186_v62, %v11905_v40  ;;  %v5198_v58 = vmul.f32 %v5186_v62, %v5108_v52  ;;  %v5192_v23 = vmul.f32 %v5178_v4, %v11899_v63  ;;  %v5196_v0 = vmul.f32 %v5178_v4, %v11909_v59  ;;  %v8376_v62 = vld [vmem:[%s12237_s10 + $0x240] ss:$16 sps:$4 sm:$0xff]   ;;  %v8379_v4 = vld [vmem:[%s12237_s10 + $0x248] ss:$16 sps:$4 sm:$0xff]  }
 0x60e   :  { %v5191_v44 = vmul.f32 %v5174_v51, %v11896_v33  ;;  %v5195_v46 = vmul.f32 %v5174_v51, %v11907_v49  ;;  %v5193_v37 = vmul.f32 %v5182_v47, %v11902_v8  ;;  %v5197_v2 = vmul.f32 %v5182_v47, %v11911_v34  ;;  %v8384_v51 = vld [vmem:[%s12237_s10 + $0x264] ss:$16 sps:$4 sm:$0xff]   ;;  %v8387_v47 = vld [vmem:[%s12237_s10 + $0x26c] ss:$16 sps:$4 sm:$0xff]  }
 0x60f   :  { %v5227_v10 = vadd.f32 %v5215_v12, %v5198_v58  ;;  %v5221_v14 = vadd.f32 %v5207_v18, %v5192_v23  ;;  %v5225_v26 = vadd.f32 %v5207_v18, %v5196_v0  ;;  %v5223_v27 = vadd.f32 %v5215_v12, %v5194_v15  ;;  %v8378_v12 = vld [vmem:[%s12237_s10 + $0x244] ss:$16 sps:$4 sm:$0xff]   ;;  %v8381_v18 = vld [vmem:[%s12237_s10 + $0x24c] ss:$16 sps:$4 sm:$0xff]   ;;  %v8388_v23 = vld [vmem:[%s12237_s10 + $0x280] ss:$16 sps:$4 sm:$0xff]  }
 0x610   :  { %v5220_v19 = vadd.f32 %v5203_v35, %v5191_v44  ;;  %v5224_v43 = vadd.f32 %v5203_v35, %v5195_v46  ;;  %v5222_v40 = vadd.f32 %v5211_v55, %v5193_v37  ;;  %v5226_v52 = vadd.f32 %v5211_v55, %v5197_v2  ;;  %v8382_v35 = vld [vmem:[%s12237_s10 + $0x260] ss:$16 sps:$4 sm:$0xff]   ;;  %v8385_v55 = vld [vmem:[%s12237_s10 + $0x268] ss:$16 sps:$4 sm:$0xff]   ;;  %v8390_v15 = vld [vmem:[%s12237_s10 + $0x284] ss:$16 sps:$4 sm:$0xff]  }
 0x611   :  { %v5229_v45 = vmax.f32 %v5221_v14, 0.0  ;;  %v5233_v63 = vmax.f32 %v5225_v26, 0.0  ;;  %v5231_v48 = vmax.f32 %v5223_v27, 0.0  ;;  %v5235_v59 = vmax.f32 %v5227_v10, 0.0  ;;  %v8393_v58 = vld [vmem:[%s12237_s10 + $0x28c] ss:$16 sps:$4 sm:$0xff]  }
 0x612   :  { %v5228_v56 = vmax.f32 %v5220_v19, 0.0  ;;  %v5232_v33 = vmax.f32 %v5224_v43, 0.0  ;;  %v5230_v53 = vmax.f32 %v5222_v40, 0.0  ;;  %v5234_v49 = vmax.f32 %v5226_v52, 0.0  ;;  %v8391_v0 = vld [vmem:[%s12237_s10 + $0x288] ss:$16 sps:$4 sm:$0xff]  }
 0x613   :  { %v5237_v8 = vmul.f32 %v10946_v31, %v5229_v45  ;;  %v5241_v36 = vmul.f32 0.0, %v5233_v63  ;;  %v5239_v34 = vmul.f32 %v10946_v31, %v5231_v48  ;;  %v5243_v54 = vmul.f32 0.0, %v5235_v59  ;;  %v8396_v44 = vld [vmem:[%s12237_s10 + $0x2a4] ss:$16 sps:$4 sm:$0xff]   ;;  %v8399_v46 = vld [vmem:[%s12237_s10 + $0x2ac] ss:$16 sps:$4 sm:$0xff]  }
 0x614   :  { %v5236_v38 = vmul.f32 %v10946_v31, %v5228_v56  ;;  %v5240_v1 = vmul.f32 0.0, %v5232_v33  ;;  %v5238_v3 = vmul.f32 %v10946_v31, %v5230_v53  ;;  %v5242_v16 = vmul.f32 0.0, %v5234_v49  ;;  %v8394_v37 = vld [vmem:[%s12237_s10 + $0x2a0] ss:$16 sps:$4 sm:$0xff]   ;;  %v8397_v2 = vld [vmem:[%s12237_s10 + $0x2a8] ss:$16 sps:$4 sm:$0xff]  }
 0x615   :  { %v5245_v17 = vpack.c.bf16 %v5241_v36, %v5237_v8  ;;  %v5247_v28 = vpack.c.bf16 %v5243_v54, %v5239_v34  ;;  %v8402_v10 = vld [vmem:[%s12237_s10 + $0x2c4] ss:$16 sps:$4 sm:$0xff]   ;;  %v8405_v14 = vld [vmem:[%s12237_s10 + $0x2cc] ss:$16 sps:$4 sm:$0xff]   ;;  %v8400_v26 = vld [vmem:[%s12237_s10 + $0x2c0] ss:$16 sps:$4 sm:$0xff]  }
 0x616   :  { %v5244_v21 = vpack.c.bf16 %v5240_v1, %v5236_v38  ;;  %v11960_v29 = vpack.c.bf16 %v5242_v16, %v5238_v3  ;;  %v8403_v27 = vld [vmem:[%s12237_s10 + $0x2c8] ss:$16 sps:$4 sm:$0xff]   ;;  %v8408_v19 = vld [vmem:[%s12237_s10 + $0x2e4] ss:$16 sps:$4 sm:$0xff]   ;;  %v8411_v43 = vld [vmem:[%s12237_s10 + $0x2ec] ss:$16 sps:$4 sm:$0xff]  }
 0x617   :  { %6048 = vmatprep.mubr.bf16.mxu0 %v5245_v17  ;;  %6134 = vmatprep.mubr.bf16.mxu1 %v5245_v17  ;;  %v8406_v40 = vld [vmem:[%s12237_s10 + $0x2e0] ss:$16 sps:$4 sm:$0xff]   ;;  %v8409_v52 = vld [vmem:[%s12237_s10 + $0x2e8] ss:$16 sps:$4 sm:$0xff]   ;;  %v8414_v45 = vld [vmem:[%s12237_s10 + $0x304] ss:$16 sps:$4 sm:$0xff]  }
 0x618   :  { %6049 = vmatmul.mubr.bf16.vlgmr.msra.gmra.mrb[72].mxu0 %v5244_v21  ;;  %6135 = vmatmul.mubr.bf16.vlgmr.msra.gmra.mrb[72].mxu1 %v5244_v21  ;;  %v8417_v63 = vld [vmem:[%s12237_s10 + $0x30c] ss:$16 sps:$4 sm:$0xff]   ;;  %v8412_v48 = vld [vmem:[%s12237_s10 + $0x300] ss:$16 sps:$4 sm:$0xff]   ;;  %v8415_v59 = vld [vmem:[%s12237_s10 + $0x308] ss:$16 sps:$4 sm:$0xff]  }
 0x619   :  { %6060 = vmatpush1.bf16.msra.mxu0 %v8364_v50  ;;  %6146 = vmatpush1.bf16.msra.mxu1 %v8367_v42  ;;  %v8420_v56 = vld [vmem:[%s12237_s10 + $0x324] ss:$16 sps:$4 sm:$0xff]   ;;  %v8423_v33 = vld [vmem:[%s12237_s10 + $0x32c] ss:$16 sps:$4 sm:$0xff]   ;;  %v8418_v53 = vld [vmem:[%s12237_s10 + $0x320] ss:$16 sps:$4 sm:$0xff]  }
 0x61a   :  { %6091 = vmatprep.mubr.bf16.mxu0 %v5247_v28  ;;  %6177 = vmatprep.mubr.bf16.mxu1 %v5247_v28  ;;  %v8421_v49 = vld [vmem:[%s12237_s10 + $0x328] ss:$16 sps:$4 sm:$0xff]   ;;  %v8426_v8 = vld [vmem:[%s12237_s10 + $0x344] ss:$16 sps:$4 sm:$0xff]   ;;  %v8429_v36 = vld [vmem:[%s12237_s10 + $0x34c] ss:$16 sps:$4 sm:$0xff]  }
 0x61b   :  { %6061 = vmatprep.subr.bf16.mxu0 %v8372_v22  ;;  %6147 = vmatprep.subr.bf16.mxu1 %v8375_v30  ;;  %v8424_v34 = vld [vmem:[%s12237_s10 + $0x340] ss:$16 sps:$4 sm:$0xff]   ;;  %v8427_v54 = vld [vmem:[%s12237_s10 + $0x348] ss:$16 sps:$4 sm:$0xff]   ;;  %v8432_v38 = vld [vmem:[%s12237_s10 + $0x364] ss:$16 sps:$4 sm:$0xff]  }
 0x61c   :  { %v8435_v1 = vld [vmem:[%s12237_s10 + $0x36c] ss:$16 sps:$4 sm:$0xff]   ;;  %v8430_v3 = vld [vmem:[%s12237_s10 + $0x360] ss:$16 sps:$4 sm:$0xff]   ;;  %v8433_v16 = vld [vmem:[%s12237_s10 + $0x368] ss:$16 sps:$4 sm:$0xff]  }
 0x61d   :  { %6062 = vmatpush1.bf16.msra.mxu0 %v8370_v57  ;;  %6148 = vmatpush1.bf16.msra.mxu1 %v8373_v41  ;;  %v8438_v17 = vld [vmem:[%s12237_s10 + $0x384] ss:$16 sps:$4 sm:$0xff]   ;;  %v8441_v50 = vld [vmem:[%s12237_s10 + $0x38c] ss:$16 sps:$4 sm:$0xff]   ;;  %v8436_v42 = vld [vmem:[%s12237_s10 + $0x380] ss:$16 sps:$4 sm:$0xff]  }
 0x61e   :  { %6063 = vmatprep.subr.bf16.mxu0 %v8378_v12  ;;  %6149 = vmatprep.subr.bf16.mxu1 %v8381_v18  ;;  %v8439_v28 = vld [vmem:[%s12237_s10 + $0x388] ss:$16 sps:$4 sm:$0xff]   ;;  %v8444_v21 = vld [vmem:[%s12237_s10 + $0x3a4] ss:$16 sps:$4 sm:$0xff]   ;;  %v8447_v22 = vld [vmem:[%s12237_s10 + $0x3ac] ss:$16 sps:$4 sm:$0xff]  }
 0x61f   :  { %v8442_v30 = vld [vmem:[%s12237_s10 + $0x3a0] ss:$16 sps:$4 sm:$0xff]   ;;  %v8445_v57 = vld [vmem:[%s12237_s10 + $0x3a8] ss:$16 sps:$4 sm:$0xff]   ;;  %v8450_v41 = vld [vmem:[%s12237_s10 + $0x3c4] ss:$16 sps:$4 sm:$0xff]  }
 0x620   :  { %v8453_v12 = vld [vmem:[%s12237_s10 + $0x3cc] ss:$16 sps:$4 sm:$0xff]   ;;  %v8448_v18 = vld [vmem:[%s12237_s10 + $0x3c0] ss:$16 sps:$4 sm:$0xff]  }
 0x621   :  { %6064 = vmatpush1.bf16.msra.mxu0 %v8376_v62  ;;  %6150 = vmatpush1.bf16.msra.mxu1 %v8379_v4  ;;  %v8451_v62 = vld [vmem:[%s12237_s10 + $0x3c8] ss:$16 sps:$4 sm:$0xff]   ;;  %v8456_v4 = vld [vmem:[%s12237_s10 + $0x3e4] ss:$16 sps:$4 sm:$0xff]  }
 0x622   :  { %6065 = vmatprep.subr.bf16.mxu0 %v8384_v51  ;;  %6151 = vmatprep.subr.bf16.mxu1 %v8387_v47  ;;  %v8459_v51 = vld [vmem:[%s12237_s10 + $0x3ec] ss:$16 sps:$4 sm:$0xff]   ;;  %v8454_v47 = vld [vmem:[%s12237_s10 + $0x3e0] ss:$16 sps:$4 sm:$0xff]  }
 0x625   :  { %6066 = vmatpush1.bf16.msra.mxu0 %v8382_v35  ;;  %6152 = vmatpush1.bf16.msra.mxu1 %v8385_v55  ;;  %v8457_v35 = vld [vmem:[%s12237_s10 + $0x3e8] ss:$16 sps:$4 sm:$0xff]  }
 0x626   :  { %6067 = vmatprep.subr.bf16.mxu0 %v8390_v15  ;;  %6153 = vmatprep.subr.bf16.mxu1 %v8393_v58 }
 0x629   :  { %6068 = vmatpush1.bf16.msra.mxu0 %v8388_v23  ;;  %6154 = vmatpush1.bf16.msra.mxu1 %v8391_v0 }
 0x62a   :  { %6069 = vmatprep.subr.bf16.mxu0 %v8396_v44  ;;  %6155 = vmatprep.subr.bf16.mxu1 %v8399_v46 }
 0x62d   :  { %6070 = vmatpush1.bf16.msra.mxu0 %v8394_v37  ;;  %6156 = vmatpush1.bf16.msra.mxu1 %v8397_v2 }
 0x62e   :  { %6071 = vmatprep.subr.bf16.mxu0 %v8402_v10  ;;  %6157 = vmatprep.subr.bf16.mxu1 %v8405_v14 }
 0x631   :  { %6072 = vmatpush1.bf16.msra.mxu0 %v8400_v26  ;;  %6158 = vmatpush1.bf16.msra.mxu1 %v8403_v27 }
 0x632   :  { %6073 = vmatprep.subr.bf16.mxu0 %v8408_v19  ;;  %6159 = vmatprep.subr.bf16.mxu1 %v8411_v43 }
 0x635   :  { %6074 = vmatpush1.bf16.msra.mxu0 %v8406_v40  ;;  %6160 = vmatpush1.bf16.msra.mxu1 %v8409_v52 }
 0x636   :  { %6075 = vmatprep.subr.bf16.mxu0 %v8414_v45  ;;  %6161 = vmatprep.subr.bf16.mxu1 %v8417_v63 }
 0x639   :  { %6076 = vmatpush1.bf16.msra.mxu0 %v8412_v48  ;;  %6162 = vmatpush1.bf16.msra.mxu1 %v8415_v59 }
 0x63a   :  { %6077 = vmatprep.subr.bf16.mxu0 %v8420_v56  ;;  %6163 = vmatprep.subr.bf16.mxu1 %v8423_v33 }
 0x63d   :  { %6078 = vmatpush1.bf16.msra.mxu0 %v8418_v53  ;;  %6164 = vmatpush1.bf16.msra.mxu1 %v8421_v49 }
 0x63e   :  { %6079 = vmatprep.subr.bf16.mxu0 %v8426_v8  ;;  %6165 = vmatprep.subr.bf16.mxu1 %v8429_v36 }
 0x641   :  { %6080 = vmatpush1.bf16.msra.mxu0 %v8424_v34  ;;  %6166 = vmatpush1.bf16.msra.mxu1 %v8427_v54 }
 0x642   :  { %6081 = vmatprep.subr.bf16.mxu0 %v8432_v38  ;;  %6167 = vmatprep.subr.bf16.mxu1 %v8435_v1 }
 0x645   :  { %6082 = vmatpush1.bf16.msra.mxu0 %v8430_v3  ;;  %6168 = vmatpush1.bf16.msra.mxu1 %v8433_v16 }
 0x646   :  { %6083 = vmatprep.subr.bf16.mxu0 %v8438_v17  ;;  %6169 = vmatprep.subr.bf16.mxu1 %v8441_v50 }
 0x649   :  { %6084 = vmatpush1.bf16.msra.mxu0 %v8436_v42  ;;  %6170 = vmatpush1.bf16.msra.mxu1 %v8439_v28 }
 0x64a   :  { %6085 = vmatprep.subr.bf16.mxu0 %v8444_v21  ;;  %6171 = vmatprep.subr.bf16.mxu1 %v8447_v22 }
 0x64d   :  { %6086 = vmatpush1.bf16.msra.mxu0 %v8442_v30  ;;  %6172 = vmatpush1.bf16.msra.mxu1 %v8445_v57 }
 0x64e   :  { %6087 = vmatprep.subr.bf16.mxu0 %v8450_v41  ;;  %6173 = vmatprep.subr.bf16.mxu1 %v8453_v12 }
 0x651   :  { %6088 = vmatpush1.bf16.msra.mxu0 %v8448_v18  ;;  %6174 = vmatpush1.bf16.msra.mxu1 %v8451_v62 }
 0x652   :  { %6089 = vmatprep.subr.bf16.mxu0 %v8456_v4  ;;  %6175 = vmatprep.subr.bf16.mxu1 %v8459_v51 }
 0x655   :  { %6090 = vmatpush1.bf16.msra.mxu0 %v8454_v47  ;;  %6176 = vmatpush1.bf16.msra.mxu1 %v8457_v35 }
 0x658   :  { %6092 = vmatmul.mubr.bf16.vlgmr.msra.gmra.mrb[72].mxu0 %v11960_v29  ;;  %6178 = vmatmul.mubr.bf16.vlgmr.msra.gmra.mrb[72].mxu1 %v11960_v29 }
 0x72b   :  { %v6093_v55 = vpop.f32.mrb[72].mxu0  ;;  %v6179_v15 = vpop.f32.mrb[72].mxu1 }
 0x72c   :  { %v6095_v58 = vpop.f32.mrb[73].mxu0  ;;  %v6181_v23 = vpop.f32.mrb[73].mxu1 }
 0x72d   :  { %v6097_v0 = vpop.f32.mrb[74].mxu0  ;;  %v6183_v44 = vpop.f32.mrb[74].mxu1 }
 0x72e   :  { %v6190_v46 = vadd.f32 %v6097_v0, %v6093_v55  ;;  %v6204_v37 = vadd.f32 %v6183_v44, %v6179_v15  ;;  %v6099_v2 = vpop.f32.mrb[75].mxu0  ;;  %v6185_v10 = vpop.f32.mrb[75].mxu1 }
 0x72f   :  { %v6197_v14 = vadd.f32 %v6099_v2, %v6095_v58  ;;  %v6211_v26 = vadd.f32 %v6185_v10, %v6181_v23 }
 0x730   :  { %v6191_v27 = vrot.slane %v6190_v46, 4  ;;  %v6205_v19 = vrot.slane %v6204_v37, 4 }
 0x731   :  { %v6198_v43 = vrot.slane %v6197_v14, 4  ;;  %v6212_v40 = vrot.slane %v6211_v26, 4 }
 0x732   :  { %v6192_v52 = vadd.f32 %v6191_v27, %v6190_v46  ;;  %v6206_v45 = vadd.f32 %v6205_v19, %v6204_v37 }
 0x733   :  { %v6199_v63 = vadd.f32 %v6198_v43, %v6197_v14  ;;  %v6213_v29 = vadd.f32 %v6212_v40, %v6211_v26 }
 0x734   :  { %v6193_v48 = vrot.slane %v6192_v52, 2  ;;  %v6207_v59 = vrot.slane %v6206_v45, 2 }
 0x735   :  { %v6200_v56 = vrot.slane %v6199_v63, 2  ;;  %v6214_v33 = vrot.slane %v6213_v29, 2 }
 0x736   :  { %v6194_v53 = vadd.f32 %v6193_v48, %v6192_v52  ;;  %v6208_v49 = vadd.f32 %v6207_v59, %v6206_v45 }
 0x737   :  { %v6201_v8 = vadd.f32 %v6200_v56, %v6199_v63  ;;  %v6215_v36 = vadd.f32 %v6214_v33, %v6213_v29 }
 0x738   :  { %v6195_v34 = vrot.slane %v6194_v53, 1  ;;  %v6209_v54 = vrot.slane %v6208_v49, 1 }
 0x739   :  { %v6202_v38 = vrot.slane %v6201_v8, 1  ;;  %v6216_v16 = vrot.slane %v6215_v36, 1 }
 0x73a   :  { %v6196_v1 = vadd.f32 %v6195_v34, %v6194_v53  ;;  %v6210_v17 = vadd.f32 %v6209_v54, %v6208_v49 }
 0x73b   :  { %v6203_v3 = vadd.f32 %v6202_v38, %v6201_v8  ;;  %v6217_v42 = vadd.f32 %v6216_v16, %v6215_v36 }
 0x73d   :  { %v6218_v50 = vadd.f32 %v6203_v3, %v6196_v1 }
 0x73f   :  { %v6219_v28 = vadd.f32 %v6218_v50, %v6210_v17 }
 0x741   :  { %v6220_v21 = vadd.f32 %v6219_v28, %v6217_v42 }
 0x743   :  { %v6221_v22 = vmul.f32 0.125, %v6220_v21 }
 0x745   :  { %v6225_v30 = vrot.slane %v6221_v22, %v10942_v13 }
 0x747   :  { %v6226_v57 = vsub.f32 %v6093_v55, %v6225_v30  ;;  %v6227_v41 = vsub.f32 %v6095_v58, %v6225_v30  ;;  %v6228_v12 = vsub.f32 %v6179_v15, %v6225_v30  ;;  %v6229_v18 = vsub.f32 %v6181_v23, %v6225_v30 }
 0x748   :  { %v6230_v62 = vsub.f32 %v6097_v0, %v6225_v30  ;;  %v6231_v4 = vsub.f32 %v6099_v2, %v6225_v30  ;;  %v6232_v51 = vsub.f32 %v6183_v44, %v6225_v30  ;;  %v6233_v47 = vsub.f32 %v6185_v10, %v6225_v30 }
 0x749   :  { %v12146_v35 = vmul.f32 %v10946_v31, %v6226_v57  ;;  %v12149_v46 = vmul.f32 %v10946_v31, %v6227_v41  ;;  %v12152_v37 = vmul.f32 %v10946_v31, %v6228_v12  ;;  %v12155_v14 = vmul.f32 %v10946_v31, %v6229_v18 }
 0x74a   :  { %v12157_v55 = vmul.f32 0.0, %v6230_v62  ;;  %v12159_v15 = vmul.f32 0.0, %v6231_v4  ;;  %v12161_v58 = vmul.f32 0.0, %v6232_v51  ;;  %v12163_v23 = vmul.f32 0.0, %v6233_v47 }
 0x74b   :  { %v6242_v0 = vmul.f32 %v12146_v35, %v12146_v35  ;;  %v6243_v44 = vmul.f32 %v12149_v46, %v12149_v46  ;;  %v6244_v2 = vmul.f32 %v12152_v37, %v12152_v37  ;;  %v6245_v31 = vmul.f32 %v12155_v14, %v12155_v14 }
 0x74c   :  { %v6246_v10 = vmul.f32 %v12157_v55, %v12157_v55  ;;  %v6247_v26 = vmul.f32 %v12159_v15, %v12159_v15  ;;  %v6248_v27 = vmul.f32 %v12161_v58, %v12161_v58  ;;  %v6249_v19 = vmul.f32 %v12163_v23, %v12163_v23 }
 0x74e   :  { %v6250_v43 = vadd.f32 %v6246_v10, %v6242_v0  ;;  %v6257_v40 = vadd.f32 %v6247_v26, %v6243_v44  ;;  %v6264_v52 = vadd.f32 %v6248_v27, %v6244_v2  ;;  %v6271_v45 = vadd.f32 %v6249_v19, %v6245_v31  ;;  %v6188_v2 = vld [vmem:[%s12240_s11] sm:$0xf] }
 0x74f   :  { %v6189_v31 = vld [vmem:[%s12241_s12] sm:$0xf] }
 0x750   :  { %v6251_v63 = vrot.slane %v6250_v43, 4  ;;  %v6258_v29 = vrot.slane %v6257_v40, 4  ;;  %v6265_v48 = vrot.slane %v6264_v52, 4  ;;  %v6272_v59 = vrot.slane %v6271_v45, 4  ;;  %v6385_v27 = vld [vmem:[%s12242_s13] sm:$0xf] }
 0x751   :  { %v6348_v19 = vrot.slane %v6189_v31, %v10999_v11 }
 0x752   :  { %v6252_v56 = vadd.f32 %v6251_v63, %v6250_v43  ;;  %v6259_v33 = vadd.f32 %v6258_v29, %v6257_v40  ;;  %v6266_v53 = vadd.f32 %v6265_v48, %v6264_v52  ;;  %v6273_v49 = vadd.f32 %v6272_v59, %v6271_v45 }
 0x753   :  { %v6336_v43 = vrot.slane %v6189_v31, %v10942_v13  ;;  %v6340_v40 = vrot.slane %v6189_v31, %v11005_v60  ;;  %v6390_v48 = vrot.slane %v6385_v27, %v10942_v13 }
 0x754   :  { %v6253_v8 = vrot.slane %v6252_v56, 2  ;;  %v6260_v36 = vrot.slane %v6259_v33, 2  ;;  %v6267_v34 = vrot.slane %v6266_v53, 2  ;;  %v6274_v54 = vrot.slane %v6273_v49, 2 }
 0x756   :  { %v6254_v38 = vadd.f32 %v6253_v8, %v6252_v56  ;;  %v6261_v1 = vadd.f32 %v6260_v36, %v6259_v33  ;;  %v6268_v3 = vadd.f32 %v6267_v34, %v6266_v53  ;;  %v6275_v16 = vadd.f32 %v6274_v54, %v6273_v49 }
 0x758   :  { %v6255_v17 = vrot.slane %v6254_v38, 1  ;;  %v6262_v50 = vrot.slane %v6261_v1, 1  ;;  %v6269_v42 = vrot.slane %v6268_v3, 1  ;;  %v6276_v22 = vrot.slane %v6275_v16, 1 }
 0x75a   :  { %v6256_v28 = vadd.f32 %v6255_v17, %v6254_v38  ;;  %v6263_v21 = vadd.f32 %v6262_v50, %v6261_v1  ;;  %v6270_v30 = vadd.f32 %v6269_v42, %v6268_v3  ;;  %v6277_v41 = vadd.f32 %v6276_v22, %v6275_v16 }
 0x75b   :  { %v6394_v22 = vrot.slane %v6385_v27, %v11005_v60 }
 0x75c   :  { %v6278_v57 = vadd.f32 %v6263_v21, %v6256_v28 }
 0x75e   :  { %v6279_v12 = vadd.f32 %v6278_v57, %v6270_v30 }
 0x760   :  { %v6280_v18 = vadd.f32 %v6279_v12, %v6277_v41 }
 0x762   :  { %v6281_v62 = vmul.f32 0.125, %v6280_v18 }
 0x764   :  { %v6282_v4 = vadd.f32 1e-05, %v6281_v62 }
 0x766   :  { %8466 = vrsqrt.f32 %v6282_v4 }
 0x770   :  { %v8467_v51 = vpop.eup %8466 }
 0x771   :  { %v6285_v47 = vcombine.low %v8467_v51, %v8467_v51 }
 0x773   :  { %v6292_v0 = vrot.slane %v6285_v47, %v10991_v20 }
 0x775   :  { %v6293_v44 = vcombine.low %v6292_v0, %v6292_v0 }
 0x777   :  { %v6300_v10 = vrot.slane %v6293_v44, %v10991_v20  ;;  %v6344_v20 = vrot.slane %v6189_v31, %v11008_v61 }
 0x779   :  { %v6302_v26 = vmul.f32 %v6300_v10, %v6188_v2 }
 0x77b   :  { %v6319_v52 = vrot.slane %v6302_v26, %v10999_v11  ;;  %v6307_v45 = vrot.slane %v6302_v26, %v10942_v13  ;;  %v6311_v63 = vrot.slane %v6302_v26, %v11005_v60  ;;  %v6315_v29 = vrot.slane %v6302_v26, %v11008_v61 }
 0x77d   :  { %v6327_v59 = vmul.f32 %v6319_v52, %v12155_v14  ;;  %v6331_v56 = vmul.f32 %v6319_v52, %v12163_v23  ;;  %v6324_v33 = vmul.f32 %v6307_v45, %v12146_v35  ;;  %v6325_v53 = vmul.f32 %v6311_v63, %v12149_v46 }
 0x77e   :  { %v6326_v49 = vmul.f32 %v6315_v29, %v12152_v37  ;;  %v6328_v8 = vmul.f32 %v6307_v45, %v12157_v55  ;;  %v6329_v36 = vmul.f32 %v6311_v63, %v12159_v15  ;;  %v6330_v34 = vmul.f32 %v6315_v29, %v12161_v58 }
 0x77f   :  { %v6360_v54 = vadd.f32 %v6348_v19, %v6331_v56  ;;  %v6353_v38 = vadd.f32 %v6336_v43, %v6324_v33  ;;  %v6354_v1 = vadd.f32 %v6340_v40, %v6325_v53  ;;  %v6356_v13 = vadd.f32 %v6348_v19, %v6327_v59 }
 0x780   :  { %v6355_v3 = vadd.f32 %v6344_v20, %v6326_v49  ;;  %v6357_v14 = vadd.f32 %v6336_v43, %v6328_v8  ;;  %v6358_v16 = vadd.f32 %v6340_v40, %v6329_v36  ;;  %v6359_v23 = vadd.f32 %v6344_v20, %v6330_v34 }
 0x781   :  { %v6368_v35 = vadd.f32 %v6360_v54, %v11043_v39  ;;  %v6361_v46 = vadd.f32 %v6353_v38, %v11036_v6  ;;  %v6362_v37 = vadd.f32 %v6354_v1, %v11031_v9  ;;  %v6364_v55 = vadd.f32 %v6356_v13, %v11041_v25 }
 0x782   :  { %v6363_v15 = vadd.f32 %v6355_v3, %v11242_v7  ;;  %v6365_v58 = vadd.f32 %v6357_v14, %v11038_v24  ;;  %v6366_v17 = vadd.f32 %v6358_v16, %v11033_v5  ;;  %v6367_v50 = vadd.f32 %v6359_v23, %v11244_v32 }
 0x783   :  { %v6369_v42 = vmul.f32 0.2, %v6361_v46  ;;  %v6370_v28 = vmul.f32 0.2, %v6362_v37  ;;  %v6372_v21 = vmul.f32 0.2, %v6364_v55  ;;  %v6398_v6 = vrot.slane %v6385_v27, %v11008_v61 }
 0x784   :  { %v6371_v39 = vmul.f32 0.2, %v6363_v15  ;;  %v6373_v30 = vmul.f32 0.2, %v6365_v58  ;;  %v6374_v9 = vmul.f32 0.2, %v6366_v17  ;;  %v6402_v7 = vrot.slane %v6385_v27, %v10999_v11 }
 0x785   :  { %v6377_v57 = vmax.f32 %v6361_v46, %v6369_v42  ;;  %v6378_v25 = vmax.f32 %v6362_v37, %v6370_v28  ;;  %v6375_v41 = vmul.f32 0.2, %v6367_v50  ;;  %v6376_v12 = vmul.f32 0.2, %v6368_v35 }
 0x786   :  { %v6379_v24 = vmax.f32 %v6363_v15, %v6371_v39  ;;  %v6381_v5 = vmax.f32 %v6365_v58, %v6373_v30  ;;  %v6382_v18 = vmax.f32 %v6366_v17, %v6374_v9  ;;  %v6380_v32 = vmax.f32 %v6364_v55, %v6372_v21 }
 0x787   :  { %v6407_v62 = vmul.f32 %v6390_v48, %v6377_v57  ;;  %v6408_v4 = vmul.f32 %v6394_v22, %v6378_v25  ;;  %v6383_v51 = vmax.f32 %v6367_v50, %v6375_v41  ;;  %v6384_v47 = vmax.f32 %v6368_v35, %v6376_v12 }
 0x788   :  { %v6411_v60 = vmul.f32 %v6390_v48, %v6381_v5  ;;  %v6412_v0 = vmul.f32 %v6394_v22, %v6382_v18  ;;  %v6409_v44 = vmul.f32 %v6398_v6, %v6379_v24  ;;  %v6410_v10 = vmul.f32 %v6402_v7, %v6380_v32 }
 0x789   :  { %v6415_v61 = vadd.f32 %v6408_v4, %v6407_v62  ;;  %v6413_v2 = vmul.f32 %v6398_v6, %v6383_v51  ;;  %v6414_v19 = vmul.f32 %v6402_v7, %v6384_v47  ;;  %v6426_v40 = vstv %s12243_s14 }
 0x78a   :  { %v6420_v31 = vadd.f32 %v6412_v0, %v6411_v60 }
 0x78b   :  { %v6416_v26 = vadd.f32 %v6415_v61, %v6409_v44 }
 0x78c   :  { %v6421_v11 = vadd.f32 %v6420_v31, %v6413_v2 }
 0x78d   :  { %v6417_v27 = vadd.f32 %v6416_v26, %v6410_v10 }
 0x78e   :  { %v6422_v43 = vadd.f32 %v6421_v11, %v6414_v19 }
 0x78f   :  { %6418 = vadd.xlane.f32.xlu0 %v6417_v27 }
 0x793   :  { %6423 = vadd.xlane.f32.xlu0 %v6422_v43 }
 0x81c   :  { %v6419_v52 = vpop.xlane.xlu0 %6418 }
 0x81d   :  { %v6427_v45 = vadd.f32 %v6426_v40, %v6419_v52 }
 0x81f   :  { %v7024_v63 = vmul.f32 -1.442695, %v6427_v45 }
 0x820   :  { %v6424_v29 = vpop.xlane.xlu0 %6423 }
 0x821   :  { %8468 = vpow2.f32 %v7024_v63  ;;  %v6428_v20 = vadd.f32 %v6426_v40, %v6424_v29 }
 0x823   :  { %v7025_v48 = vmul.f32 -1.442695, %v6428_v20 }
 0x825   :  { %8470 = vpow2.f32 %v7025_v48 }
 0x82b   :  { %v8469_v59 = vpop.eup %8468 }
 0x82c   :  { %v6435_v56 = vadd.f32 1.0, %v8469_v59 }
 0x82e   :  { %8472 = vrcp.f32 %v6435_v56 }
 0x82f   :  { %v8471_v33 = vpop.eup %8470 }
 0x830   :  { %v6436_v53 = vadd.f32 1.0, %v8471_v33 }
 0x832   :  { %8474 = vrcp.f32 %v6436_v53 }
 0x838   :  { %v8473_v49 = vpop.eup %8472 }
 0x839   :  { %6441 = vst [vmem:[%s12244_s15] sm:$0xff] %v8473_v49 }
 0x83c   :  { %v8475_v8 = vpop.eup %8474 }
 0x83d   :  { %6442 = vst [vmem:[%s12244_s15 + $0x8] sm:$0xff] %v8475_v8 }

</bundles_post_ra>
